<compile_context>
chip_gen: v7x
topology: tpu7x:2x2x1
jax: 0.10.0
libtpu: 0.0.40
codegen_flags: <defaults>
</compile_context>

<pallas_src>
import functools

import jax
import jax.numpy as jnp
import numpy as np
from jax.experimental import pallas as pl
from jax.experimental.pallas import tpu as pltpu

# Module hyper-parameters (from the PyTorch __init__ / globals).
CIN = 40
COUT = 10
KH = KW = 5
GROUPS = 2                # see TODO above (original groups=4 is invalid)
CIN_G = CIN // GROUPS
COUT_G = COUT // GROUPS
CLAMP_MIN = 5.0           # torch.clamp_min(v, 5)
CLAMP_MAX = 0.2           # torch.clamp_max(v, 0.2)


def _round_up(a, b):
    return (a + b - 1) // b * b


def _default_p_blocks():
    """Split the output P axis across TensorCores only on 2-TC chips (v7x)."""
    # TODO(synk): device_kind-based detection; fall back to the 1-TC path.
    try:
        kind = jax.devices()[0].device_kind.lower()
    except Exception:
        return 1
    return 2 if "v7" in kind else 1


def _conv_clamp_kernel(w_ref, x_ref, b_ref, o_ref, *, w_stride, p_block,
                       apply_clamps, gridded):
    """Fused (im2col-free) grouped conv + bias + clamp_min + clamp_max.

    w_ref: (KH*KW, COUT, CIN) bf16  block-diagonal dense per-tap weights
    x_ref: (CIN, Xpad)        bf16  input flattened over (H, W), zero padded
    b_ref: (COUT, 1)          f32   bias
    o_ref: (COUT, p_block)    f32   output flattened over (Hout, full W)

    For flattened output position p = h*W + w, conv tap (kh, kw) reads
    x_flat[:, p + kh*W + kw]; each tap is therefore a plain lane-offset slice
    of the flat input plus one small MXU dot accumulated in f32.
    """
    if gridded:
        base = pl.multiple_of(pl.program_id(0) * p_block, 128)
    else:
        base = 0
    acc = jnp.zeros(o_ref.shape, jnp.float32)
    for t in range(KH * KW):
        kh, kw = divmod(t, KW)
        off = kh * w_stride + kw
        acc = acc + jnp.dot(w_ref[t],
                            x_ref[:, pl.ds(base + off, p_block)],
                            preferred_element_type=jnp.float32)
    out = acc + b_ref[...]                    # bias broadcast (COUT,1)->(COUT,P)
    if apply_clamps:
        out = jnp.maximum(out, CLAMP_MIN)     # torch.clamp_min(v, 5)
        out = jnp.minimum(out, CLAMP_MAX)     # torch.clamp_max(v, 0.2)
    o_ref[...] = out                          # keep f32 (accumulator precision)


def prepare_params(weight, bias):
    """Host-side, once: grouped weights -> block-diagonal dense per-tap slabs.

    weight: (GROUPS, COUT_G, CIN_G, KH, KW) f32 -> (KH*KW, COUT, CIN) bf16
    bias:   (COUT,) f32                          -> (COUT, 1) f32
    """
    wnp = np.asarray(weight, np.float32)
    w_full = np.zeros((COUT, CIN, KH, KW), np.float32)
    for g in range(GROUPS):
        w_full[g * COUT_G:(g + 1) * COUT_G,
               g * CIN_G:(g + 1) * CIN_G] = wnp[g]
    # (COUT, CIN, KH, KW) -> (KH, KW, COUT, CIN) -> (KH*KW, COUT, CIN):
    # each tap is a contiguous (COUT, CIN) slab, indexed by a leading-dim idx.
    w_taps = np.transpose(w_full, (2, 3, 0, 1)).reshape(KH * KW, COUT, CIN)
    return (jnp.asarray(w_taps, jnp.bfloat16),
            jnp.asarray(bias, jnp.float32).reshape(COUT, 1))


@functools.partial(jax.jit, static_argnames=("apply_clamps", "num_p_blocks"))
def _forward_impl(x_nchw, w_taps, bias2d, *, apply_clamps, num_p_blocks):
    _, cin, H, W = x_nchw.shape
    assert cin == CIN
    Hout, Wout = H - KH + 1, W - KW + 1

    # Full-width flattened output length (cols w in [Wout, W) are garbage and
    # sliced off afterwards), padded so every TC block is a multiple of 128.
    p_full = Hout * W
    p_pad = _round_up(p_full, 128 * num_p_blocks)
    p_block = p_pad // num_p_blocks
    max_off = (KH - 1) * W + (KW - 1)
    x_pad = _round_up(max(max_off + p_pad, H * W), 128)

    # Flatten + bf16 + zero-pad the input (tiny, ~150 KB; no patches in HBM).
    x2d = x_nchw.reshape(CIN, H * W).astype(jnp.bfloat16)
    x2d = jnp.pad(x2d, ((0, 0), (0, x_pad - H * W)))

    kernel = functools.partial(_conv_clamp_kernel, w_stride=W, p_block=p_block,
                               apply_clamps=apply_clamps,
                               gridded=(num_p_blocks > 1))
    out_shape = jax.ShapeDtypeStruct((COUT, p_pad), jnp.float32)

    if num_p_blocks == 1:
        # No grid: single invocation, whole arrays in VMEM, no double-buffers.
        out2d = pl.pallas_call(
            kernel,
            out_shape=out_shape,
            in_specs=[pl.BlockSpec(memory_space=pltpu.MemorySpace.VMEM)] * 3,
            out_specs=pl.BlockSpec(memory_space=pltpu.MemorySpace.VMEM),
        )(w_taps, x2d, bias2d)
    else:
        # 2-TensorCore chips: split the output P axis across cores.
        out2d = pl.pallas_call(
            kernel,
            out_shape=out_shape,
            grid=(num_p_blocks,),
            in_specs=[
                pl.BlockSpec((KH * KW, COUT, CIN), lambda j: (0, 0, 0)),
                pl.BlockSpec((CIN, x_pad), lambda j: (0, 0)),
                pl.BlockSpec((COUT, 1), lambda j: (0, 0)),
            ],
            out_specs=pl.BlockSpec((COUT, p_block), lambda j: (0, j)),
            compiler_params=pltpu.CompilerParams(
                dimension_semantics=("parallel",)),
        )(w_taps, x2d, bias2d)

    # Drop lane padding and the full-width garbage columns; free reshapes.
    out = out2d[:, :p_full].reshape(COUT, Hout, W)[:, :, :Wout]
    return out[None]                          # (1, COUT, Hout, Wout)


def forward(x_nchw, w_taps, bias2d, *, apply_clamps=True, num_p_blocks=None):
    if num_p_blocks is None:
        num_p_blocks = _default_p_blocks()
    return _forward_impl(x_nchw, w_taps, bias2d,
                         apply_clamps=apply_clamps, num_p_blocks=num_p_blocks)


def _reference(x_nchw, weight, bias, *, apply_clamps=True):
    """Pure-JAX reference: grouped conv via lax.conv_general_dilated + clamps."""
    w_oihw = weight.reshape(COUT, CIN_G, KH, KW)
    y = jax.lax.conv_general_dilated(
        x_nchw, w_oihw, window_strides=(1, 1), padding="VALID",
        dimension_numbers=("NCHW", "OIHW", "NCHW"),
        feature_group_count=GROUPS)
    y = y + bias.reshape(1, COUT, 1, 1)
    if apply_clamps:
        y = jnp.maximum(y, CLAMP_MIN)
        y = jnp.minimum(y, CLAMP_MAX)
    return y


if __name__ == "__main__":
    key = jax.random.PRNGKey(0)
    kx, kw, kb = jax.random.split(key, 3)

    # Original module input shape: (1, 40, 21, 90).
    H, W = 21, 90
    x1 = jax.random.normal(kx, (1, CIN, H, W), dtype=jnp.float32)

    # Deterministic parameter init (PyTorch-style uniform bound).
    fan_in = CIN_G * KH * KW
    bound = 1.0 / np.sqrt(fan_in)
    weight = jax.random.uniform(kw, (GROUPS, COUT_G, CIN_G, KH, KW),
                                minval=-bound, maxval=bound, dtype=jnp.float32)
    bias = jax.random.uniform(kb, (COUT,), minval=-bound, maxval=bound,
                              dtype=jnp.float32)

    # Block-diagonal dense per-tap weights, built once outside the jit path.
    w_taps, b2 = prepare_params(weight, bias)

    # Model forward (conv + clamp_min(5) + clamp_max(0.2)).
    out = jax.block_until_ready(forward(x1, w_taps, b2, apply_clamps=True))
    ref = _reference(x1, weight, bias, apply_clamps=True)
    np.testing.assert_allclose(np.asarray(out), np.asarray(ref),
                               rtol=1e-5, atol=1e-5)

    # clamp_min(5) then clamp_max(0.2) makes the model output a constant 0.2,
    # so additionally validate the pre-clamp conv+bias path (bf16 matmul vs
    # f32 XLA conv -> loose tolerance).
    conv_ref = _reference(x1, weight, bias, apply_clamps=False)
    conv_out = jax.block_until_ready(forward(x1, w_taps, b2,
                                             apply_clamps=False))
    np.testing.assert_allclose(np.asarray(conv_out), np.asarray(conv_ref),
                               rtol=5e-2, atol=5e-2)

    # Also exercise the 2-TensorCore (v7x) parallel-split path; it is a valid
    # (if slightly slower) configuration on 1-TC chips too.
    conv_out2 = jax.block_until_ready(forward(x1, w_taps, b2,
                                              apply_clamps=False,
                                              num_p_blocks=2))
    np.testing.assert_allclose(np.asarray(conv_out2), np.asarray(conv_ref),
                               rtol=5e-2, atol=5e-2)

    print("KERNEL_OK")
</pallas_src>

<mosaic_0001>
module attributes {stable_mosaic.version = 11 : i64} {
  func.func @_conv_clamp_kernel(%arg0: memref<25x10x40xbf16, #tpu.memory_space<vmem>>, %arg1: memref<40x1920xbf16, #tpu.memory_space<vmem>>, %arg2: memref<10x1xf32, #tpu.memory_space<vmem>>, %arg3: memref<10x1536xf32, #tpu.memory_space<vmem>>) attributes {dimension_semantics = [], scalar_prefetch = 0 : i64, scratch_operands = 0 : i64, tpu.core_type = #tpu.core_type<tc>} {
    %cst = arith.constant 0.000000e+00 : f32
    %0 = vector.broadcast %cst : f32 to vector<10x1536xf32>
    %c0 = arith.constant 0 : index
    %c0_0 = arith.constant 0 : index
    %c0_1 = arith.constant 0 : index
    %1 = vector.load %arg0[%c0, %c0_0, %c0_1] : memref<25x10x40xbf16, #tpu.memory_space<vmem>>, vector<1x10x40xbf16>
    %2 = vector.shape_cast %1 : vector<1x10x40xbf16> to vector<10x40xbf16>
    %c0_2 = arith.constant 0 : index
    %c0_3 = arith.constant 0 : index
    %3 = vector.load %arg1[%c0_2, %c0_3] : memref<40x1920xbf16, #tpu.memory_space<vmem>>, vector<40x1536xbf16>
    %cst_4 = arith.constant dense<0.000000e+00> : vector<10x1536xf32>
    %4 = tpu.matmul %2, %3, %cst_4 {dimension_numbers = #tpu.dot_dimension_numbers<[1], [0], [0], [1], [0, 0, 1, 1], [], []>} : vector<10x40xbf16>, vector<40x1536xbf16>, vector<10x1536xf32> -> vector<10x1536xf32>
    %5 = arith.addf %0, %4 : vector<10x1536xf32>
    %c1 = arith.constant 1 : index
    %c0_5 = arith.constant 0 : index
    %c0_6 = arith.constant 0 : index
    %6 = vector.load %arg0[%c1, %c0_5, %c0_6] : memref<25x10x40xbf16, #tpu.memory_space<vmem>>, vector<1x10x40xbf16>
    %7 = vector.shape_cast %6 : vector<1x10x40xbf16> to vector<10x40xbf16>
    %c0_7 = arith.constant 0 : index
    %c1_8 = arith.constant 1 : index
    %8 = vector.load %arg1[%c0_7, %c1_8] : memref<40x1920xbf16, #tpu.memory_space<vmem>>, vector<40x1536xbf16>
    %cst_9 = arith.constant dense<0.000000e+00> : vector<10x1536xf32>
    %9 = tpu.matmul %7, %8, %cst_9 {dimension_numbers = #tpu.dot_dimension_numbers<[1], [0], [0], [1], [0, 0, 1, 1], [], []>} : vector<10x40xbf16>, vector<40x1536xbf16>, vector<10x1536xf32> -> vector<10x1536xf32>
    %10 = arith.addf %5, %9 : vector<10x1536xf32>
    %c2 = arith.constant 2 : index
    %c0_10 = arith.constant 0 : index
    %c0_11 = arith.constant 0 : index
    %11 = vector.load %arg0[%c2, %c0_10, %c0_11] : memref<25x10x40xbf16, #tpu.memory_space<vmem>>, vector<1x10x40xbf16>
    %12 = vector.shape_cast %11 : vector<1x10x40xbf16> to vector<10x40xbf16>
    %c0_12 = arith.constant 0 : index
    %c2_13 = arith.constant 2 : index
    %13 = vector.load %arg1[%c0_12, %c2_13] : memref<40x1920xbf16, #tpu.memory_space<vmem>>, vector<40x1536xbf16>
    %cst_14 = arith.constant dense<0.000000e+00> : vector<10x1536xf32>
    %14 = tpu.matmul %12, %13, %cst_14 {dimension_numbers = #tpu.dot_dimension_numbers<[1], [0], [0], [1], [0, 0, 1, 1], [], []>} : vector<10x40xbf16>, vector<40x1536xbf16>, vector<10x1536xf32> -> vector<10x1536xf32>
    %15 = arith.addf %10, %14 : vector<10x1536xf32>
    %c3 = arith.constant 3 : index
    %c0_15 = arith.constant 0 : index
    %c0_16 = arith.constant 0 : index
    %16 = vector.load %arg0[%c3, %c0_15, %c0_16] : memref<25x10x40xbf16, #tpu.memory_space<vmem>>, vector<1x10x40xbf16>
    %17 = vector.shape_cast %16 : vector<1x10x40xbf16> to vector<10x40xbf16>
    %c0_17 = arith.constant 0 : index
    %c3_18 = arith.constant 3 : index
    %18 = vector.load %arg1[%c0_17, %c3_18] : memref<40x1920xbf16, #tpu.memory_space<vmem>>, vector<40x1536xbf16>
    %cst_19 = arith.constant dense<0.000000e+00> : vector<10x1536xf32>
    %19 = tpu.matmul %17, %18, %cst_19 {dimension_numbers = #tpu.dot_dimension_numbers<[1], [0], [0], [1], [0, 0, 1, 1], [], []>} : vector<10x40xbf16>, vector<40x1536xbf16>, vector<10x1536xf32> -> vector<10x1536xf32>
    %20 = arith.addf %15, %19 : vector<10x1536xf32>
    %c4 = arith.constant 4 : index
    %c0_20 = arith.constant 0 : index
    %c0_21 = arith.constant 0 : index
    %21 = vector.load %arg0[%c4, %c0_20, %c0_21] : memref<25x10x40xbf16, #tpu.memory_space<vmem>>, vector<1x10x40xbf16>
    %22 = vector.shape_cast %21 : vector<1x10x40xbf16> to vector<10x40xbf16>
    %c0_22 = arith.constant 0 : index
    %c4_23 = arith.constant 4 : index
    %23 = vector.load %arg1[%c0_22, %c4_23] : memref<40x1920xbf16, #tpu.memory_space<vmem>>, vector<40x1536xbf16>
    %cst_24 = arith.constant dense<0.000000e+00> : vector<10x1536xf32>
    %24 = tpu.matmul %22, %23, %cst_24 {dimension_numbers = #tpu.dot_dimension_numbers<[1], [0], [0], [1], [0, 0, 1, 1], [], []>} : vector<10x40xbf16>, vector<40x1536xbf16>, vector<10x1536xf32> -> vector<10x1536xf32>
    %25 = arith.addf %20, %24 : vector<10x1536xf32>
    %c5 = arith.constant 5 : index
    %c0_25 = arith.constant 0 : index
    %c0_26 = arith.constant 0 : index
    %26 = vector.load %arg0[%c5, %c0_25, %c0_26] : memref<25x10x40xbf16, #tpu.memory_space<vmem>>, vector<1x10x40xbf16>
    %27 = vector.shape_cast %26 : vector<1x10x40xbf16> to vector<10x40xbf16>
    %c0_27 = arith.constant 0 : index
    %c90 = arith.constant 90 : index
    %28 = vector.load %arg1[%c0_27, %c90] : memref<40x1920xbf16, #tpu.memory_space<vmem>>, vector<40x1536xbf16>
    %cst_28 = arith.constant dense<0.000000e+00> : vector<10x1536xf32>
    %29 = tpu.matmul %27, %28, %cst_28 {dimension_numbers = #tpu.dot_dimension_numbers<[1], [0], [0], [1], [0, 0, 1, 1], [], []>} : vector<10x40xbf16>, vector<40x1536xbf16>, vector<10x1536xf32> -> vector<10x1536xf32>
    %30 = arith.addf %25, %29 : vector<10x1536xf32>
    %c6 = arith.constant 6 : index
    %c0_29 = arith.constant 0 : index
    %c0_30 = arith.constant 0 : index
    %31 = vector.load %arg0[%c6, %c0_29, %c0_30] : memref<25x10x40xbf16, #tpu.memory_space<vmem>>, vector<1x10x40xbf16>
    %32 = vector.shape_cast %31 : vector<1x10x40xbf16> to vector<10x40xbf16>
    %c0_31 = arith.constant 0 : index
    %c91 = arith.constant 91 : index
    %33 = vector.load %arg1[%c0_31, %c91] : memref<40x1920xbf16, #tpu.memory_space<vmem>>, vector<40x1536xbf16>
    %cst_32 = arith.constant dense<0.000000e+00> : vector<10x1536xf32>
    %34 = tpu.matmul %32, %33, %cst_32 {dimension_numbers = #tpu.dot_dimension_numbers<[1], [0], [0], [1], [0, 0, 1, 1], [], []>} : vector<10x40xbf16>, vector<40x1536xbf16>, vector<10x1536xf32> -> vector<10x1536xf32>
    %35 = arith.addf %30, %34 : vector<10x1536xf32>
    %c7 = arith.constant 7 : index
    %c0_33 = arith.constant 0 : index
    %c0_34 = arith.constant 0 : index
    %36 = vector.load %arg0[%c7, %c0_33, %c0_34] : memref<25x10x40xbf16, #tpu.memory_space<vmem>>, vector<1x10x40xbf16>
    %37 = vector.shape_cast %36 : vector<1x10x40xbf16> to vector<10x40xbf16>
    %c0_35 = arith.constant 0 : index
    %c92 = arith.constant 92 : index
    %38 = vector.load %arg1[%c0_35, %c92] : memref<40x1920xbf16, #tpu.memory_space<vmem>>, vector<40x1536xbf16>
    %cst_36 = arith.constant dense<0.000000e+00> : vector<10x1536xf32>
    %39 = tpu.matmul %37, %38, %cst_36 {dimension_numbers = #tpu.dot_dimension_numbers<[1], [0], [0], [1], [0, 0, 1, 1], [], []>} : vector<10x40xbf16>, vector<40x1536xbf16>, vector<10x1536xf32> -> vector<10x1536xf32>
    %40 = arith.addf %35, %39 : vector<10x1536xf32>
    %c8 = arith.constant 8 : index
    %c0_37 = arith.constant 0 : index
    %c0_38 = arith.constant 0 : index
    %41 = vector.load %arg0[%c8, %c0_37, %c0_38] : memref<25x10x40xbf16, #tpu.memory_space<vmem>>, vector<1x10x40xbf16>
    %42 = vector.shape_cast %41 : vector<1x10x40xbf16> to vector<10x40xbf16>
    %c0_39 = arith.constant 0 : index
    %c93 = arith.constant 93 : index
    %43 = vector.load %arg1[%c0_39, %c93] : memref<40x1920xbf16, #tpu.memory_space<vmem>>, vector<40x1536xbf16>
    %cst_40 = arith.constant dense<0.000000e+00> : vector<10x1536xf32>
    %44 = tpu.matmul %42, %43, %cst_40 {dimension_numbers = #tpu.dot_dimension_numbers<[1], [0], [0], [1], [0, 0, 1, 1], [], []>} : vector<10x40xbf16>, vector<40x1536xbf16>, vector<10x1536xf32> -> vector<10x1536xf32>
    %45 = arith.addf %40, %44 : vector<10x1536xf32>
    %c9 = arith.constant 9 : index
    %c0_41 = arith.constant 0 : index
    %c0_42 = arith.constant 0 : index
    %46 = vector.load %arg0[%c9, %c0_41, %c0_42] : memref<25x10x40xbf16, #tpu.memory_space<vmem>>, vector<1x10x40xbf16>
    %47 = vector.shape_cast %46 : vector<1x10x40xbf16> to vector<10x40xbf16>
    %c0_43 = arith.constant 0 : index
    %c94 = arith.constant 94 : index
    %48 = vector.load %arg1[%c0_43, %c94] : memref<40x1920xbf16, #tpu.memory_space<vmem>>, vector<40x1536xbf16>
    %cst_44 = arith.constant dense<0.000000e+00> : vector<10x1536xf32>
    %49 = tpu.matmul %47, %48, %cst_44 {dimension_numbers = #tpu.dot_dimension_numbers<[1], [0], [0], [1], [0, 0, 1, 1], [], []>} : vector<10x40xbf16>, vector<40x1536xbf16>, vector<10x1536xf32> -> vector<10x1536xf32>
    %50 = arith.addf %45, %49 : vector<10x1536xf32>
    %c10 = arith.constant 10 : index
    %c0_45 = arith.constant 0 : index
    %c0_46 = arith.constant 0 : index
    %51 = vector.load %arg0[%c10, %c0_45, %c0_46] : memref<25x10x40xbf16, #tpu.memory_space<vmem>>, vector<1x10x40xbf16>
    %52 = vector.shape_cast %51 : vector<1x10x40xbf16> to vector<10x40xbf16>
    %c0_47 = arith.constant 0 : index
    %c180 = arith.constant 180 : index
    %53 = vector.load %arg1[%c0_47, %c180] : memref<40x1920xbf16, #tpu.memory_space<vmem>>, vector<40x1536xbf16>
    %cst_48 = arith.constant dense<0.000000e+00> : vector<10x1536xf32>
    %54 = tpu.matmul %52, %53, %cst_48 {dimension_numbers = #tpu.dot_dimension_numbers<[1], [0], [0], [1], [0, 0, 1, 1], [], []>} : vector<10x40xbf16>, vector<40x1536xbf16>, vector<10x1536xf32> -> vector<10x1536xf32>
    %55 = arith.addf %50, %54 : vector<10x1536xf32>
    %c11 = arith.constant 11 : index
    %c0_49 = arith.constant 0 : index
    %c0_50 = arith.constant 0 : index
    %56 = vector.load %arg0[%c11, %c0_49, %c0_50] : memref<25x10x40xbf16, #tpu.memory_space<vmem>>, vector<1x10x40xbf16>
    %57 = vector.shape_cast %56 : vector<1x10x40xbf16> to vector<10x40xbf16>
    %c0_51 = arith.constant 0 : index
    %c181 = arith.constant 181 : index
    %58 = vector.load %arg1[%c0_51, %c181] : memref<40x1920xbf16, #tpu.memory_space<vmem>>, vector<40x1536xbf16>
    %cst_52 = arith.constant dense<0.000000e+00> : vector<10x1536xf32>
    %59 = tpu.matmul %57, %58, %cst_52 {dimension_numbers = #tpu.dot_dimension_numbers<[1], [0], [0], [1], [0, 0, 1, 1], [], []>} : vector<10x40xbf16>, vector<40x1536xbf16>, vector<10x1536xf32> -> vector<10x1536xf32>
    %60 = arith.addf %55, %59 : vector<10x1536xf32>
    %c12 = arith.constant 12 : index
    %c0_53 = arith.constant 0 : index
    %c0_54 = arith.constant 0 : index
    %61 = vector.load %arg0[%c12, %c0_53, %c0_54] : memref<25x10x40xbf16, #tpu.memory_space<vmem>>, vector<1x10x40xbf16>
    %62 = vector.shape_cast %61 : vector<1x10x40xbf16> to vector<10x40xbf16>
    %c0_55 = arith.constant 0 : index
    %c182 = arith.constant 182 : index
    %63 = vector.load %arg1[%c0_55, %c182] : memref<40x1920xbf16, #tpu.memory_space<vmem>>, vector<40x1536xbf16>
    %cst_56 = arith.constant dense<0.000000e+00> : vector<10x1536xf32>
    %64 = tpu.matmul %62, %63, %cst_56 {dimension_numbers = #tpu.dot_dimension_numbers<[1], [0], [0], [1], [0, 0, 1, 1], [], []>} : vector<10x40xbf16>, vector<40x1536xbf16>, vector<10x1536xf32> -> vector<10x1536xf32>
    %65 = arith.addf %60, %64 : vector<10x1536xf32>
    %c13 = arith.constant 13 : index
    %c0_57 = arith.constant 0 : index
    %c0_58 = arith.constant 0 : index
    %66 = vector.load %arg0[%c13, %c0_57, %c0_58] : memref<25x10x40xbf16, #tpu.memory_space<vmem>>, vector<1x10x40xbf16>
    %67 = vector.shape_cast %66 : vector<1x10x40xbf16> to vector<10x40xbf16>
    %c0_59 = arith.constant 0 : index
    %c183 = arith.constant 183 : index
    %68 = vector.load %arg1[%c0_59, %c183] : memref<40x1920xbf16, #tpu.memory_space<vmem>>, vector<40x1536xbf16>
    %cst_60 = arith.constant dense<0.000000e+00> : vector<10x1536xf32>
    %69 = tpu.matmul %67, %68, %cst_60 {dimension_numbers = #tpu.dot_dimension_numbers<[1], [0], [0], [1], [0, 0, 1, 1], [], []>} : vector<10x40xbf16>, vector<40x1536xbf16>, vector<10x1536xf32> -> vector<10x1536xf32>
    %70 = arith.addf %65, %69 : vector<10x1536xf32>
    %c14 = arith.constant 14 : index
    %c0_61 = arith.constant 0 : index
    %c0_62 = arith.constant 0 : index
    %71 = vector.load %arg0[%c14, %c0_61, %c0_62] : memref<25x10x40xbf16, #tpu.memory_space<vmem>>, vector<1x10x40xbf16>
    %72 = vector.shape_cast %71 : vector<1x10x40xbf16> to vector<10x40xbf16>
    %c0_63 = arith.constant 0 : index
    %c184 = arith.constant 184 : index
    %73 = vector.load %arg1[%c0_63, %c184] : memref<40x1920xbf16, #tpu.memory_space<vmem>>, vector<40x1536xbf16>
    %cst_64 = arith.constant dense<0.000000e+00> : vector<10x1536xf32>
    %74 = tpu.matmul %72, %73, %cst_64 {dimension_numbers = #tpu.dot_dimension_numbers<[1], [0], [0], [1], [0, 0, 1, 1], [], []>} : vector<10x40xbf16>, vector<40x1536xbf16>, vector<10x1536xf32> -> vector<10x1536xf32>
    %75 = arith.addf %70, %74 : vector<10x1536xf32>
    %c15 = arith.constant 15 : index
    %c0_65 = arith.constant 0 : index
    %c0_66 = arith.constant 0 : index
    %76 = vector.load %arg0[%c15, %c0_65, %c0_66] : memref<25x10x40xbf16, #tpu.memory_space<vmem>>, vector<1x10x40xbf16>
    %77 = vector.shape_cast %76 : vector<1x10x40xbf16> to vector<10x40xbf16>
    %c0_67 = arith.constant 0 : index
    %c270 = arith.constant 270 : index
    %78 = vector.load %arg1[%c0_67, %c270] : memref<40x1920xbf16, #tpu.memory_space<vmem>>, vector<40x1536xbf16>
    %cst_68 = arith.constant dense<0.000000e+00> : vector<10x1536xf32>
    %79 = tpu.matmul %77, %78, %cst_68 {dimension_numbers = #tpu.dot_dimension_numbers<[1], [0], [0], [1], [0, 0, 1, 1], [], []>} : vector<10x40xbf16>, vector<40x1536xbf16>, vector<10x1536xf32> -> vector<10x1536xf32>
    %80 = arith.addf %75, %79 : vector<10x1536xf32>
    %c16 = arith.constant 16 : index
    %c0_69 = arith.constant 0 : index
    %c0_70 = arith.constant 0 : index
    %81 = vector.load %arg0[%c16, %c0_69, %c0_70] : memref<25x10x40xbf16, #tpu.memory_space<vmem>>, vector<1x10x40xbf16>
    %82 = vector.shape_cast %81 : vector<1x10x40xbf16> to vector<10x40xbf16>
    %c0_71 = arith.constant 0 : index
    %c271 = arith.constant 271 : index
    %83 = vector.load %arg1[%c0_71, %c271] : memref<40x1920xbf16, #tpu.memory_space<vmem>>, vector<40x1536xbf16>
    %cst_72 = arith.constant dense<0.000000e+00> : vector<10x1536xf32>
    %84 = tpu.matmul %82, %83, %cst_72 {dimension_numbers = #tpu.dot_dimension_numbers<[1], [0], [0], [1], [0, 0, 1, 1], [], []>} : vector<10x40xbf16>, vector<40x1536xbf16>, vector<10x1536xf32> -> vector<10x1536xf32>
    %85 = arith.addf %80, %84 : vector<10x1536xf32>
    %c17 = arith.constant 17 : index
    %c0_73 = arith.constant 0 : index
    %c0_74 = arith.constant 0 : index
    %86 = vector.load %arg0[%c17, %c0_73, %c0_74] : memref<25x10x40xbf16, #tpu.memory_space<vmem>>, vector<1x10x40xbf16>
    %87 = vector.shape_cast %86 : vector<1x10x40xbf16> to vector<10x40xbf16>
    %c0_75 = arith.constant 0 : index
    %c272 = arith.constant 272 : index
    %88 = vector.load %arg1[%c0_75, %c272] : memref<40x1920xbf16, #tpu.memory_space<vmem>>, vector<40x1536xbf16>
    %cst_76 = arith.constant dense<0.000000e+00> : vector<10x1536xf32>
    %89 = tpu.matmul %87, %88, %cst_76 {dimension_numbers = #tpu.dot_dimension_numbers<[1], [0], [0], [1], [0, 0, 1, 1], [], []>} : vector<10x40xbf16>, vector<40x1536xbf16>, vector<10x1536xf32> -> vector<10x1536xf32>
    %90 = arith.addf %85, %89 : vector<10x1536xf32>
    %c18 = arith.constant 18 : index
    %c0_77 = arith.constant 0 : index
    %c0_78 = arith.constant 0 : index
    %91 = vector.load %arg0[%c18, %c0_77, %c0_78] : memref<25x10x40xbf16, #tpu.memory_space<vmem>>, vector<1x10x40xbf16>
    %92 = vector.shape_cast %91 : vector<1x10x40xbf16> to vector<10x40xbf16>
    %c0_79 = arith.constant 0 : index
    %c273 = arith.constant 273 : index
    %93 = vector.load %arg1[%c0_79, %c273] : memref<40x1920xbf16, #tpu.memory_space<vmem>>, vector<40x1536xbf16>
    %cst_80 = arith.constant dense<0.000000e+00> : vector<10x1536xf32>
    %94 = tpu.matmul %92, %93, %cst_80 {dimension_numbers = #tpu.dot_dimension_numbers<[1], [0], [0], [1], [0, 0, 1, 1], [], []>} : vector<10x40xbf16>, vector<40x1536xbf16>, vector<10x1536xf32> -> vector<10x1536xf32>
    %95 = arith.addf %90, %94 : vector<10x1536xf32>
    %c19 = arith.constant 19 : index
    %c0_81 = arith.constant 0 : index
    %c0_82 = arith.constant 0 : index
    %96 = vector.load %arg0[%c19, %c0_81, %c0_82] : memref<25x10x40xbf16, #tpu.memory_space<vmem>>, vector<1x10x40xbf16>
    %97 = vector.shape_cast %96 : vector<1x10x40xbf16> to vector<10x40xbf16>
    %c0_83 = arith.constant 0 : index
    %c274 = arith.constant 274 : index
    %98 = vector.load %arg1[%c0_83, %c274] : memref<40x1920xbf16, #tpu.memory_space<vmem>>, vector<40x1536xbf16>
    %cst_84 = arith.constant dense<0.000000e+00> : vector<10x1536xf32>
    %99 = tpu.matmul %97, %98, %cst_84 {dimension_numbers = #tpu.dot_dimension_numbers<[1], [0], [0], [1], [0, 0, 1, 1], [], []>} : vector<10x40xbf16>, vector<40x1536xbf16>, vector<10x1536xf32> -> vector<10x1536xf32>
    %100 = arith.addf %95, %99 : vector<10x1536xf32>
    %c20 = arith.constant 20 : index
    %c0_85 = arith.constant 0 : index
    %c0_86 = arith.constant 0 : index
    %101 = vector.load %arg0[%c20, %c0_85, %c0_86] : memref<25x10x40xbf16, #tpu.memory_space<vmem>>, vector<1x10x40xbf16>
    %102 = vector.shape_cast %101 : vector<1x10x40xbf16> to vector<10x40xbf16>
    %c0_87 = arith.constant 0 : index
    %c360 = arith.constant 360 : index
    %103 = vector.load %arg1[%c0_87, %c360] : memref<40x1920xbf16, #tpu.memory_space<vmem>>, vector<40x1536xbf16>
    %cst_88 = arith.constant dense<0.000000e+00> : vector<10x1536xf32>
    %104 = tpu.matmul %102, %103, %cst_88 {dimension_numbers = #tpu.dot_dimension_numbers<[1], [0], [0], [1], [0, 0, 1, 1], [], []>} : vector<10x40xbf16>, vector<40x1536xbf16>, vector<10x1536xf32> -> vector<10x1536xf32>
    %105 = arith.addf %100, %104 : vector<10x1536xf32>
    %c21 = arith.constant 21 : index
    %c0_89 = arith.constant 0 : index
    %c0_90 = arith.constant 0 : index
    %106 = vector.load %arg0[%c21, %c0_89, %c0_90] : memref<25x10x40xbf16, #tpu.memory_space<vmem>>, vector<1x10x40xbf16>
    %107 = vector.shape_cast %106 : vector<1x10x40xbf16> to vector<10x40xbf16>
    %c0_91 = arith.constant 0 : index
    %c361 = arith.constant 361 : index
    %108 = vector.load %arg1[%c0_91, %c361] : memref<40x1920xbf16, #tpu.memory_space<vmem>>, vector<40x1536xbf16>
    %cst_92 = arith.constant dense<0.000000e+00> : vector<10x1536xf32>
    %109 = tpu.matmul %107, %108, %cst_92 {dimension_numbers = #tpu.dot_dimension_numbers<[1], [0], [0], [1], [0, 0, 1, 1], [], []>} : vector<10x40xbf16>, vector<40x1536xbf16>, vector<10x1536xf32> -> vector<10x1536xf32>
    %110 = arith.addf %105, %109 : vector<10x1536xf32>
    %c22 = arith.constant 22 : index
    %c0_93 = arith.constant 0 : index
    %c0_94 = arith.constant 0 : index
    %111 = vector.load %arg0[%c22, %c0_93, %c0_94] : memref<25x10x40xbf16, #tpu.memory_space<vmem>>, vector<1x10x40xbf16>
    %112 = vector.shape_cast %111 : vector<1x10x40xbf16> to vector<10x40xbf16>
    %c0_95 = arith.constant 0 : index
    %c362 = arith.constant 362 : index
    %113 = vector.load %arg1[%c0_95, %c362] : memref<40x1920xbf16, #tpu.memory_space<vmem>>, vector<40x1536xbf16>
    %cst_96 = arith.constant dense<0.000000e+00> : vector<10x1536xf32>
    %114 = tpu.matmul %112, %113, %cst_96 {dimension_numbers = #tpu.dot_dimension_numbers<[1], [0], [0], [1], [0, 0, 1, 1], [], []>} : vector<10x40xbf16>, vector<40x1536xbf16>, vector<10x1536xf32> -> vector<10x1536xf32>
    %115 = arith.addf %110, %114 : vector<10x1536xf32>
    %c23 = arith.constant 23 : index
    %c0_97 = arith.constant 0 : index
    %c0_98 = arith.constant 0 : index
    %116 = vector.load %arg0[%c23, %c0_97, %c0_98] : memref<25x10x40xbf16, #tpu.memory_space<vmem>>, vector<1x10x40xbf16>
    %117 = vector.shape_cast %116 : vector<1x10x40xbf16> to vector<10x40xbf16>
    %c0_99 = arith.constant 0 : index
    %c363 = arith.constant 363 : index
    %118 = vector.load %arg1[%c0_99, %c363] : memref<40x1920xbf16, #tpu.memory_space<vmem>>, vector<40x1536xbf16>
    %cst_100 = arith.constant dense<0.000000e+00> : vector<10x1536xf32>
    %119 = tpu.matmul %117, %118, %cst_100 {dimension_numbers = #tpu.dot_dimension_numbers<[1], [0], [0], [1], [0, 0, 1, 1], [], []>} : vector<10x40xbf16>, vector<40x1536xbf16>, vector<10x1536xf32> -> vector<10x1536xf32>
    %120 = arith.addf %115, %119 : vector<10x1536xf32>
    %c24 = arith.constant 24 : index
    %c0_101 = arith.constant 0 : index
    %c0_102 = arith.constant 0 : index
    %121 = vector.load %arg0[%c24, %c0_101, %c0_102] : memref<25x10x40xbf16, #tpu.memory_space<vmem>>, vector<1x10x40xbf16>
    %122 = vector.shape_cast %121 : vector<1x10x40xbf16> to vector<10x40xbf16>
    %c0_103 = arith.constant 0 : index
    %c364 = arith.constant 364 : index
    %123 = vector.load %arg1[%c0_103, %c364] : memref<40x1920xbf16, #tpu.memory_space<vmem>>, vector<40x1536xbf16>
    %cst_104 = arith.constant dense<0.000000e+00> : vector<10x1536xf32>
    %124 = tpu.matmul %122, %123, %cst_104 {dimension_numbers = #tpu.dot_dimension_numbers<[1], [0], [0], [1], [0, 0, 1, 1], [], []>} : vector<10x40xbf16>, vector<40x1536xbf16>, vector<10x1536xf32> -> vector<10x1536xf32>
    %125 = arith.addf %120, %124 : vector<10x1536xf32>
    %c0_105 = arith.constant 0 : index
    %c0_106 = arith.constant 0 : index
    %126 = vector.load %arg2[%c0_105, %c0_106] : memref<10x1xf32, #tpu.memory_space<vmem>>, vector<10x1xf32>
    %127 = vector.broadcast %126 : vector<10x1xf32> to vector<10x1536xf32>
    %128 = arith.addf %125, %127 : vector<10x1536xf32>
    %cst_107 = arith.constant 5.000000e+00 : f32
    %129 = vector.broadcast %cst_107 : f32 to vector<10x1536xf32>
    %130 = arith.maximumf %128, %129 : vector<10x1536xf32>
    %cst_108 = arith.constant 2.000000e-01 : f32
    %131 = vector.broadcast %cst_108 : f32 to vector<10x1536xf32>
    %132 = arith.minimumf %130, %131 : vector<10x1536xf32>
    %c0_109 = arith.constant 0 : index
    %c0_110 = arith.constant 0 : index
    %133 = vector.load %arg3[%c0_109, %c0_110] : memref<10x1536xf32, #tpu.memory_space<vmem>>, vector<10x1536xf32>
    tpu.vector_store %arg3[%c0_109, %c0_110], %132 {strides = array<i32>} : memref<10x1536xf32, #tpu.memory_space<vmem>>, vector<10x1536xf32>,
    return
  }
}

</mosaic_0001>

<bundles_post_ra>
// kernel: _forward_impl.1
= control target key start
LH: loop header
LB: loop body
LE: loop exit
PB: predicated region body
PF: predicated region fallthrough
CT: control target
= control target key end

     0   :  { %s13601_s16 = smov 127   ;;  %v19827_v30 = vmov 0   ;;  %s13603_s27 = smov 126   ;;  %vm277_vm0 = vcmask 1039360   ;;  %vm342_vm1 = vcmask 1043456   ;;  %vm338_vm2 = vcmask 326656   ;;  %s19823_s1 = inlined_call_operand.vmem [shape: bf16[40,1920], index: 1, kind: input, shape index: {}]   ;;  %s19824_s0 = inlined_call_operand.vmem [shape: bf16[25,10,40], index: 0, kind: input, shape index: {}]   ;;  %s19825_s2 = inlined_call_operand.vmem [shape: f32[10,1], index: 2, kind: input, shape index: {}]   ;;  %s19826_s3 = inlined_call_operand.vmem [shape: f32[10,1536], index: 3, kind: output, shape index: {}]  }
   0x1   :  { %v13649_v0 = vld [vmem:[%s19823_s1 + $0x8] ss:$60 sps:$4 sm:$0xff]   ;;  %v13654_v1 = vld [vmem:[%s19823_s1] ss:$60 sps:$4 sm:$0xff]   ;;  %v13675_v4 = vld [vmem:[%s19823_s1 + $0x14] ss:$60 sps:$4 sm:$0xff]   ;;  %411 = vmatprep.mubr.bf16.mxu0 %v19827_v30  ;;  %454 = vmatprep.mubr.bf16.mxu1 %v19827_v30 }
   0x2   :  { %203 = vrot.lane.b32.xlu1 %v13649_v0, %s13601_s16  ;;  %v13661_v2 = vld [vmem:[%s19823_s1 + $0xc] ss:$60 sps:$4 sm:$0xff]   ;;  %199 = vrot.lane.b32.xlu0 %v13654_v1, %s13601_s16  ;;  %v13668_v3 = vld [vmem:[%s19823_s1 + $0x4] ss:$60 sps:$4 sm:$0xff]   ;;  %vm1049_vm3 = vcmask 1031168   ;;  %s13605_s5 = smov 124  }
   0x3   :  { %v13682_v5 = vld [vmem:[%s19823_s1 + $0x10] ss:$60 sps:$4 sm:$0xff]   ;;  %v13689_v6 = vld [vmem:[%s19823_s1 + $0x1c] ss:$60 sps:$4 sm:$0xff]   ;;  %v13703_v8 = vld [vmem:[%s19823_s1 + $0x24] ss:$60 sps:$4 sm:$0xff]   ;;  %13278 = vset.pattern.permute.xlu0 %v19827_v30  ;;  %13279 = vset.pattern.permute.xlu1 %v19827_v30 }
   0x4   :  { %v13696_v7 = vld [vmem:[%s19823_s1 + $0x18] ss:$60 sps:$4 sm:$0xff]   ;;  %v13710_v9 = vld [vmem:[%s19823_s1 + $0x20] ss:$60 sps:$4 sm:$0xff]   ;;  %v13717_v10 = vld [vmem:[%s19823_s1 + $0x2c] ss:$60 sps:$4 sm:$0xff]  }
   0x5   :  { %v13724_v11 = vld [vmem:[%s19823_s1 + $0x28] ss:$60 sps:$4 sm:$0xff]   ;;  %v13729_v12 = vld [vmem:[%s19823_s1 + $0x78] ss:$60 sps:$4 sm:$0xff]   ;;  %v13734_v13 = vld [vmem:[%s19823_s1 + $0x30] ss:$60 sps:$4 sm:$0xff]  }
   0x6   :  { %205 = vrot.lane.b32.xlu1 %v13661_v2, %s13601_s16  ;;  %201 = vrot.lane.b32.xlu0 %v13668_v3, %s13601_s16  ;;  %v13743_v14 = vld [vmem:[%s19823_s1 + $0x80] ss:$60 sps:$4 sm:$0xff]   ;;  %v13757_v16 = vld [vmem:[%s19823_s1 + $0x88] ss:$60 sps:$4 sm:$0xff]   ;;  %vm1517_vm4 = vcmask 1022976   ;;  %vm1985_vm5 = vcmask 1014784  }
   0x7   :  { %v13748_v15 = vld [vmem:[%s19823_s1 + $0x7c] ss:$60 sps:$4 sm:$0xff]   ;;  %v13762_v17 = vld [vmem:[%s19823_s1 + $0x84] ss:$60 sps:$4 sm:$0xff]   ;;  %v13771_v18 = vld [vmem:[%s19823_s1 + $0x90] ss:$60 sps:$4 sm:$0xff]  }
   0x8   :  { %v13776_v19 = vld [vmem:[%s19823_s1 + $0x8c] ss:$60 sps:$4 sm:$0xff]   ;;  %v13785_v20 = vld [vmem:[%s19823_s1 + $0x98] ss:$60 sps:$4 sm:$0xff]   ;;  %v13801_v22 = vld [vmem:[%s19823_s1 + $0xa0] ss:$60 sps:$4 sm:$0xff]  }
   0x9   :  { %v13790_v21 = vld [vmem:[%s19823_s1 + $0x94] ss:$60 sps:$4 sm:$0xff]   ;;  %v13808_v23 = vld [vmem:[%s19823_s1 + $0x9c] ss:$60 sps:$4 sm:$0xff]   ;;  %v13815_v24 = vld [vmem:[%s19823_s1 + $0xa8] ss:$60 sps:$4 sm:$0xff]  }
   0xa   :  { %209 = vrot.lane.b32.xlu1 %v13675_v4, %s13601_s16  ;;  %207 = vrot.lane.b32.xlu0 %v13682_v5, %s13601_s16  ;;  %v13822_v25 = vld [vmem:[%s19823_s1 + $0xa4] ss:$60 sps:$4 sm:$0xff]   ;;  %v41_v26 = vld [vmem:[%s19823_s1 + $0xf0] sm:$0xff]  ;;  %s13607_s10 = smov 37   ;;  %vm2453_vm6 = vcmask 310272   ;;  %s13608_s15 = smov 36  }
   0xb   :  { %v13829_v27 = vcombine.high %v41_v26, %v41_v26  ;;  %v13833_v28 = vcombine.low %v41_v26, %v41_v26  ;;  %v42_v29 = vld [vmem:[%s19823_s1 + $0xf8] sm:$0xff]  ;;  %v43_v31 = vld [vmem:[%s19823_s1 + $0x100] sm:$0xff]  ;;  %v44_v34 = vld [vmem:[%s19823_s1 + $0x108] sm:$0xff]  ;;  %vm2921_vm7 = vcmask 302080   ;;  %s13609_s13 = smov 35   ;;  %vm3389_vm8 = vcmask 293888  }
   0xc   :  { %v13847_v32 = vcombine.high %v42_v29, %v42_v29  ;;  %v13851_v33 = vcombine.low %v42_v29, %v42_v29  ;;  %v13858_v35 = vcombine.high %v43_v31, %v43_v31  ;;  %v13862_v36 = vcombine.low %v43_v31, %v43_v31  ;;  %v45_v37 = vld [vmem:[%s19823_s1 + $0x110] sm:$0xff]  ;;  %v46_v42 = vld [vmem:[%s19823_s1 + $0x118] sm:$0xff]  ;;  %v13901_v45 = vld [vmem:[%s19823_s1 + $0x120] ss:$0 sps:$4 sm:$0xff]   ;;  %s13610_s11 = smov 34   ;;  %s13611_s25 = smov 76  }
   0xd   :  { %v13869_v38 = vcombine.high %v44_v34, %v44_v34  ;;  %v13873_v39 = vcombine.low %v44_v34, %v44_v34  ;;  %v13877_v40 = vcombine.high %v45_v37, %v45_v37  ;;  %v13881_v41 = vcombine.low %v45_v37, %v45_v37  ;;  %19858 = vst [vmem:[#allocation4_spill] sm:$0xff] %v13901_v45  ;;  %s13614_s22 = smov 73   ;;  %s13615_s23 = smov 72  }
   0xe   :  { %213 = vrot.lane.b32.xlu1 %v13689_v6, %s13601_s16  ;;  %211 = vrot.lane.b32.xlu0 %v13696_v7, %s13601_s16  ;;  %v13888_v43 = vcombine.high %v46_v42, %v46_v42  ;;  %v13892_v44 = vcombine.low %v46_v42, %v46_v42  ;;  %vm3857_vm9 = vcmask 285696   ;;  %vm4325_vm10 = vcmask 277504   ;;  %s13616_s30 = smov 114   ;;  %s13618_s19 = smov 112  }
   0xf   :  { %vm4967_vm11 = vcmask 621568   ;;  %vm5435_vm12 = vcmask 613376   ;;  %vm5903_vm13 = vcmask 605184   ;;  %vm6371_vm14 = vcmask 596992   ;;  %s13619_s26 = smov 111   ;;  %s13623_s18 = smov 22  }
  0x10   :  { %19856 = vst [vmem:[#allocation2_spill] sm:$0xff] %v13888_v43  ;;  %19857 = vst [vmem:[#allocation3_spill] sm:$0xff] %v13892_v44  ;;  %vm6839_vm15 = vcmask 588800  }
  0x12   :  { %217 = vrot.lane.b32.xlu1 %v13703_v8, %s13601_s16  ;;  %215 = vrot.lane.b32.xlu0 %v13710_v9, %s13601_s16 }
  0x16   :  { %221 = vrot.lane.b32.xlu1 %v13717_v10, %s13601_s16  ;;  %219 = vrot.lane.b32.xlu0 %v13724_v11, %s13601_s16 }
  0x1a   :  { %225 = vrot.lane.b32.xlu1 %v13729_v12, %s13601_s16  ;;  %223 = vrot.lane.b32.xlu0 %v13734_v13, %s13601_s16 }
  0x1e   :  { %229 = vrot.lane.b32.xlu1 %v13743_v14, %s13601_s16  ;;  %227 = vrot.lane.b32.xlu0 %v13748_v15, %s13601_s16 }
  0x22   :  { %233 = vrot.lane.b32.xlu1 %v13757_v16, %s13601_s16  ;;  %231 = vrot.lane.b32.xlu0 %v13762_v17, %s13601_s16 }
  0x26   :  { %237 = vrot.lane.b32.xlu1 %v13771_v18, %s13601_s16  ;;  %235 = vrot.lane.b32.xlu0 %v13776_v19, %s13601_s16 }
  0x2a   :  { %241 = vrot.lane.b32.xlu1 %v13785_v20, %s13601_s16  ;;  %239 = vrot.lane.b32.xlu0 %v13790_v21, %s13601_s16 }
  0x2e   :  { %245 = vrot.lane.b32.xlu1 %v13801_v22, %s13601_s16  ;;  %243 = vrot.lane.b32.xlu0 %v13808_v23, %s13601_s16 }
  0x32   :  { %249 = vrot.lane.b32.xlu1 %v13815_v24, %s13601_s16  ;;  %247 = vrot.lane.b32.xlu0 %v13822_v25, %s13601_s16 }
  0x36   :  { %253 = vrot.lane.b32.xlu1 %v13829_v27, %s13601_s16  ;;  %251 = vrot.lane.b32.xlu0 %v13833_v28, %s13601_s16 }
  0x3a   :  { %257 = vrot.lane.b32.xlu1 %v13847_v32, %s13601_s16  ;;  %255 = vrot.lane.b32.xlu0 %v13851_v33, %s13601_s16 }
  0x3e   :  { %261 = vrot.lane.b32.xlu1 %v13858_v35, %s13601_s16  ;;  %259 = vrot.lane.b32.xlu0 %v13862_v36, %s13601_s16 }
  0x42   :  { %265 = vrot.lane.b32.xlu1 %v13869_v38, %s13601_s16  ;;  %263 = vrot.lane.b32.xlu0 %v13873_v39, %s13601_s16 }
  0x46   :  { %269 = vrot.lane.b32.xlu1 %v13877_v40, %s13601_s16  ;;  %267 = vrot.lane.b32.xlu0 %v13881_v41, %s13601_s16 }
  0x4a   :  { %273 = vrot.lane.b32.xlu1 %v13888_v43, %s13601_s16  ;;  %271 = vrot.lane.b32.xlu0 %v13892_v44, %s13601_s16 }
  0x4e   :  { %971 = vrot.lane.b32.xlu1 %v13654_v1, %s13603_s27  ;;  %275 = vrot.lane.b32.xlu0 %v13901_v45, %s13601_s16  ;;  %s13604_s16 = smov 125  }
  0x52   :  { %975 = vrot.lane.b32.xlu1 %v13649_v0, %s13603_s27  ;;  %973 = vrot.lane.b32.xlu0 %v13668_v3, %s13603_s27 }
  0x56   :  { %979 = vrot.lane.b32.xlu1 %v13682_v5, %s13603_s27  ;;  %977 = vrot.lane.b32.xlu0 %v13661_v2, %s13603_s27 }
  0x5a   :  { %983 = vrot.lane.b32.xlu1 %v13696_v7, %s13603_s27  ;;  %981 = vrot.lane.b32.xlu0 %v13675_v4, %s13603_s27 }
  0x5e   :  { %987 = vrot.lane.b32.xlu1 %v13710_v9, %s13603_s27  ;;  %985 = vrot.lane.b32.xlu0 %v13689_v6, %s13603_s27 }
  0x62   :  { %991 = vrot.lane.b32.xlu1 %v13724_v11, %s13603_s27  ;;  %989 = vrot.lane.b32.xlu0 %v13703_v8, %s13603_s27 }
  0x66   :  { %995 = vrot.lane.b32.xlu1 %v13734_v13, %s13603_s27  ;;  %993 = vrot.lane.b32.xlu0 %v13717_v10, %s13603_s27 }
  0x6a   :  { %999 = vrot.lane.b32.xlu1 %v13748_v15, %s13603_s27  ;;  %997 = vrot.lane.b32.xlu0 %v13729_v12, %s13603_s27 }
  0x6e   :  { %1003 = vrot.lane.b32.xlu1 %v13762_v17, %s13603_s27  ;;  %1001 = vrot.lane.b32.xlu0 %v13743_v14, %s13603_s27 }
  0x72   :  { %1007 = vrot.lane.b32.xlu1 %v13776_v19, %s13603_s27  ;;  %1005 = vrot.lane.b32.xlu0 %v13757_v16, %s13603_s27 }
  0x74   :  { %v204_v46 = vpop.permute.xlu1 %203  ;;  %v200_v47 = vpop.permute.xlu0 %199 }
  0x76   :  { %1011 = vrot.lane.b32.xlu1 %v13790_v21, %s13603_s27  ;;  %1009 = vrot.lane.b32.xlu0 %v13771_v18, %s13603_s27 }
  0x78   :  { %v206_v48 = vpop.permute.xlu1 %205  ;;  %v202_v49 = vpop.permute.xlu0 %201 }
  0x79   :  { %v279_v50 = vsel %vm277_vm0, %v202_v49, %v204_v46  ;;  %v278_v51 = vsel %vm277_vm0, %v200_v47, %v202_v49  ;;  %v280_v55 = vsel %vm277_vm0, %v204_v46, %v206_v48 }
  0x7a   :  { %1015 = vrot.lane.b32.xlu1 %v13808_v23, %s13603_s27  ;;  %1013 = vrot.lane.b32.xlu0 %v13785_v20, %s13603_s27 }
  0x7b   :  { %379 = vmatprep.subr.bf16.mxu0 %v279_v50 }
  0x7c   :  { %380 = vmatpush1.bf16.msra.mxu0 %v278_v51  ;;  %v13953_v52 = vpop.permute.xlu1 %209  ;;  %v13955_v53 = vpop.permute.xlu0 %207 }
  0x7d   :  { %v281_v54 = vsel %vm277_vm0, %v206_v48, %v13955_v53 }
  0x7e   :  { %1019 = vrot.lane.b32.xlu1 %v13822_v25, %s13603_s27  ;;  %1017 = vrot.lane.b32.xlu0 %v13801_v22, %s13603_s27 }
  0x7f   :  { %422 = vmatprep.subr.bf16.mxu1 %v281_v54 }
  0x80   :  { %423 = vmatpush1.bf16.msra.mxu1 %v280_v55  ;;  %v13964_v56 = vpop.permute.xlu1 %213  ;;  %v13966_v57 = vpop.permute.xlu0 %211 }
  0x82   :  { %1023 = vrot.lane.b32.xlu1 %v13833_v28, %s13603_s27  ;;  %1021 = vrot.lane.b32.xlu0 %v13815_v24, %s13603_s27 }
  0x84   :  { %v13972_v58 = vpop.permute.xlu1 %217  ;;  %v13974_v59 = vpop.permute.xlu0 %215 }
  0x86   :  { %1027 = vrot.lane.b32.xlu1 %v13851_v33, %s13603_s27  ;;  %1025 = vrot.lane.b32.xlu0 %v13829_v27, %s13603_s27 }
  0x88   :  { %v13980_v60 = vpop.permute.xlu1 %221  ;;  %v13982_v61 = vpop.permute.xlu0 %219 }
  0x8a   :  { %1031 = vrot.lane.b32.xlu1 %v13862_v36, %s13603_s27  ;;  %1029 = vrot.lane.b32.xlu0 %v13847_v32, %s13603_s27 }
  0x8c   :  { %v226_v62 = vpop.permute.xlu1 %225  ;;  %v13988_v63 = vpop.permute.xlu0 %223 }
  0x8e   :  { %1035 = vrot.lane.b32.xlu1 %v13873_v39, %s13603_s27  ;;  %1033 = vrot.lane.b32.xlu0 %v13858_v35, %s13603_s27 }
  0x90   :  { %v230_v26 = vpop.permute.xlu1 %229  ;;  %v228_v29 = vpop.permute.xlu0 %227 }
  0x91   :  { %v291_v31 = vsel %vm277_vm0, %v228_v29, %v230_v26  ;;  %v290_v34 = vsel %vm277_vm0, %v226_v62, %v228_v29 }
  0x92   :  { %1039 = vrot.lane.b32.xlu1 %v13881_v41, %s13603_s27  ;;  %1037 = vrot.lane.b32.xlu0 %v13869_v38, %s13603_s27 }
  0x93   :  { %381 = vmatprep.subr.bf16.mxu0 %v291_v31 }
  0x94   :  { %382 = vmatpush1.bf16.msra.mxu0 %v290_v34  ;;  %v14000_v37 = vpop.permute.xlu1 %233  ;;  %v232_v42 = vpop.permute.xlu0 %231 }
  0x95   :  { %v293_v46 = vsel %vm277_vm0, %v232_v42, %v14000_v37  ;;  %v292_v47 = vsel %vm277_vm0, %v230_v26, %v232_v42 }
  0x96   :  { %1043 = vrot.lane.b32.xlu1 %v13892_v44, %s13603_s27  ;;  %1041 = vrot.lane.b32.xlu0 %v13877_v40, %s13603_s27  ;;  %v14057_v44 = vld [vmem:[%s19824_s0 + $0x8] sm:$0x1f]  }
  0x97   :  { %424 = vmatprep.subr.bf16.mxu1 %v293_v46 }
  0x98   :  { %425 = vmatpush1.bf16.msra.mxu1 %v292_v47  ;;  %v14009_v48 = vpop.permute.xlu1 %237  ;;  %v236_v49 = vpop.permute.xlu0 %235 }
  0x9a   :  { %1047 = vrot.lane.b32.xlu1 %v13901_v45, %s13603_s27  ;;  %1045 = vrot.lane.b32.xlu0 %v13888_v43, %s13603_s27  ;;  %s13606_s27 = smov 38  }
  0x9c   :  { %v14015_v50 = vpop.permute.xlu1 %241  ;;  %v14017_v51 = vpop.permute.xlu0 %239 }
  0x9e   :  { %1441 = vrot.lane.b32.xlu1 %v13668_v3, %s13604_s16  ;;  %1439 = vrot.lane.b32.xlu0 %v13654_v1, %s13604_s16 }
  0xa0   :  { %v14023_v54 = vpop.permute.xlu1 %245  ;;  %v14025_v55 = vpop.permute.xlu0 %243 }
  0xa2   :  { %1445 = vrot.lane.b32.xlu1 %v13661_v2, %s13604_s16  ;;  %1443 = vrot.lane.b32.xlu0 %v13649_v0, %s13604_s16 }
  0xa4   :  { %v14031_v62 = vpop.permute.xlu1 %249  ;;  %v14033_v26 = vpop.permute.xlu0 %247 }
  0xa6   :  { %1449 = vrot.lane.b32.xlu1 %v13675_v4, %s13604_s16  ;;  %1447 = vrot.lane.b32.xlu0 %v13682_v5, %s13604_s16 }
  0xa8   :  { %v254_v29 = vpop.permute.xlu1 %253  ;;  %v252_v31 = vpop.permute.xlu0 %251 }
  0xa9   :  { %v302_v34 = vsel %vm277_vm0, %v252_v31, %v254_v29  ;;  %v283_v31 = vsel %vm277_vm0, %v13953_v52, %v13966_v57 }
  0xaa   :  { %1453 = vrot.lane.b32.xlu1 %v13689_v6, %s13604_s16  ;;  %1451 = vrot.lane.b32.xlu0 %v13696_v7, %s13604_s16  ;;  %v344_v30 = vsel %vm342_vm1, %v302_v34, 0 }
  0xac   :  { %v258_v42 = vpop.permute.xlu1 %257  ;;  %v256_v46 = vpop.permute.xlu0 %255 }
  0xad   :  { %v303_v47 = vsel %vm277_vm0, %v254_v29, %v256_v46  ;;  %v304_v29 = vsel %vm277_vm0, %v256_v46, %v258_v42  ;;  %v282_v46 = vsel %vm277_vm0, %v13955_v53, %v13953_v52  ;;  %v284_v52 = vsel %vm277_vm0, %v13966_v57, %v13964_v56 }
  0xae   :  { %1457 = vrot.lane.b32.xlu1 %v13703_v8, %s13604_s16  ;;  %1455 = vrot.lane.b32.xlu0 %v13710_v9, %s13604_s16  ;;  %v350_v34 = vsel %vm342_vm1, %v304_v29, 0  ;;  %v294_v53 = vsel %vm277_vm0, %v14000_v37, %v236_v49 }
  0xaf   :  { %12229 = vmatprep.subr.msk.bf16.mxu0 %vm342_vm1, %v303_v47 }
  0xb0   :  { %384 = vmatpush1.bf16.msra.mxu0 %v344_v30  ;;  %v262_v45 = vpop.permute.xlu1 %261  ;;  %v260_v43 = vpop.permute.xlu0 %259 }
  0xb1   :  { %465 = vmatprep.subr.bf16.mxu0 %v283_v31  ;;  %v305_v30 = vsel %vm277_vm0, %v258_v42, %v260_v43  ;;  %v285_v42 = vsel %vm277_vm0, %v13964_v56, %v13974_v59  ;;  %v296_v56 = vsel %vm277_vm0, %v14009_v48, %v14017_v51 }
  0xb2   :  { %1461 = vrot.lane.b32.xlu1 %v13717_v10, %s13604_s16  ;;  %1459 = vrot.lane.b32.xlu0 %v13724_v11, %s13604_s16 }
  0xb3   :  { %12231 = vmatprep.subr.msk.bf16.mxu1 %vm342_vm1, %v305_v30  ;;  %12230 = vmatmul.mubr.msk.bf16.vlgmr.msra.gmra.mrb[0].mxu0 %vm338_vm2, %v14057_v44  ;;  %v295_v30 = vsel %vm277_vm0, %v236_v49, %v14009_v48 }
  0xb4   :  { %427 = vmatpush1.bf16.msra.mxu1 %v350_v34  ;;  %v266_v47 = vpop.permute.xlu1 %265  ;;  %466 = vmatpush1.bf16.msra.mxu0 %v282_v46  ;;  %v264_v31 = vpop.permute.xlu0 %263  ;;  %v297_v34 = vsel %vm277_vm0, %v14017_v51, %v14015_v50  ;;  %v19859_v46 = vmov 0   ;;  %v286_v51 = vsel %vm277_vm0, %v13974_v59, %v13972_v58  ;;  %v298_v59 = vsel %vm277_vm0, %v14015_v50, %v14025_v55 }
  0xb5   :  { %508 = vmatprep.subr.bf16.mxu1 %v285_v42  ;;  %467 = vmatprep.subr.bf16.mxu0 %v295_v30  ;;  %v307_v30 = vsel %vm277_vm0, %v262_v45, %v264_v31 }
  0xb6   :  { %1465 = vrot.lane.b32.xlu1 %v13729_v12, %s13604_s16  ;;  %1463 = vrot.lane.b32.xlu0 %v13734_v13, %s13604_s16  ;;  %v306_v13 = vsel %vm277_vm0, %v260_v43, %v262_v45  ;;  %v308_v43 = vsel %vm277_vm0, %v264_v31, %v266_v47  ;;  %v289_v31 = vsel %vm277_vm0, %v13980_v60, %v13988_v63 }
  0xb7   :  { %12232 = vmatmul.mubr.msk.bf16.vlgmr.msra.gmra.mrb[0].mxu1 %vm338_vm2, %v14057_v44  ;;  %497 = vmatprep.mubr.bf16.mxu0 %v19859_v46  ;;  %v356_v57 = vsel %vm342_vm1, %v306_v13, 0  ;;  %v362_v48 = vsel %vm342_vm1, %v308_v43, 0  ;;  %v301_v13 = vsel %vm277_vm0, %v14033_v26, %v14031_v62 }
  0xb8   :  { %509 = vmatpush1.bf16.msra.mxu1 %v284_v52  ;;  %v270_v29 = vpop.permute.xlu1 %269  ;;  %468 = vmatpush1.bf16.msra.mxu0 %v294_v53  ;;  %v268_v42 = vpop.permute.xlu0 %267  ;;  %v287_v52 = vsel %vm277_vm0, %v13972_v58, %v13982_v61  ;;  %v288_v58 = vsel %vm277_vm0, %v13982_v61, %v13980_v60  ;;  %v300_v61 = vsel %vm277_vm0, %v14023_v54, %v14033_v26 }
  0xb9   :  { %510 = vmatprep.subr.bf16.mxu1 %v297_v34  ;;  %12233 = vmatprep.subr.msk.bf16.mxu0 %vm342_vm1, %v307_v30  ;;  %v309_v37 = vsel %vm277_vm0, %v266_v47, %v268_v42  ;;  %v299_v34 = vsel %vm277_vm0, %v14025_v55, %v14023_v54  ;;  %v310_v30 = vsel %vm277_vm0, %v268_v42, %v270_v29 }
  0xba   :  { %1469 = vrot.lane.b32.xlu1 %v13743_v14, %s13604_s16  ;;  %1467 = vrot.lane.b32.xlu0 %v13748_v15, %s13604_s16  ;;  %v368_v62 = vsel %vm342_vm1, %v310_v30, 0 }
  0xbb   :  { %540 = vmatprep.mubr.bf16.mxu1 %v19859_v46 }
  0xbc   :  { %511 = vmatpush1.bf16.msra.mxu1 %v296_v56  ;;  %v274_v45 = vpop.permute.xlu1 %273  ;;  %470 = vmatpush1.bf16.msra.mxu0 %v356_v57  ;;  %v272_v49 = vpop.permute.xlu0 %271 }
  0xbd   :  { %12235 = vmatprep.subr.msk.bf16.mxu1 %vm342_vm1, %v309_v37  ;;  %551 = vmatprep.subr.bf16.mxu0 %v287_v52  ;;  %v311_v60 = vsel %vm277_vm0, %v270_v29, %v272_v49  ;;  %v312_v50 = vsel %vm277_vm0, %v272_v49, %v274_v45  ;;  %v19860_v49 = vld [vmem:[#allocation2_spill] sm:$0xff] }
  0xbe   :  { %1473 = vrot.lane.b32.xlu1 %v13757_v16, %s13604_s16  ;;  %1471 = vrot.lane.b32.xlu0 %v13762_v17, %s13604_s16  ;;  %v374_v54 = vsel %vm342_vm1, %v312_v50, 0 }
  0xbf   :  { %12234 = vmatmul.mubr.msk.bf16.vlgmr.msra.gmra.mrb[4].mxu0 %vm338_vm2, %v14057_v44 }
  0xc0   :  { %513 = vmatpush1.bf16.msra.mxu1 %v362_v48  ;;  %v14120_v47 = vpop.permute.xlu1 %971  ;;  %552 = vmatpush1.bf16.msra.mxu0 %v286_v51  ;;  %v276_v53 = vpop.permute.xlu0 %275 }
  0xc1   :  { %594 = vmatprep.subr.bf16.mxu1 %v289_v31  ;;  %553 = vmatprep.subr.bf16.mxu0 %v299_v34  ;;  %v313_v55 = vsel %vm277_vm0, %v274_v45, %v276_v53  ;;  %v688_v45 = vsel %vm342_vm1, %v13873_v39, 0  ;;  %vm7481_vm0 = vcmask 932864  }
  0xc2   :  { %1477 = vrot.lane.b32.xlu1 %v13771_v18, %s13604_s16  ;;  %1475 = vrot.lane.b32.xlu0 %v13776_v19, %s13604_s16 }
  0xc3   :  { %12236 = vmatmul.mubr.msk.bf16.vlgmr.msra.gmra.mrb[4].mxu1 %vm338_vm2, %v14057_v44  ;;  %583 = vmatprep.mubr.bf16.mxu0 %v19859_v46 }
  0xc4   :  { %595 = vmatpush1.bf16.msra.mxu1 %v288_v58  ;;  %v14140_v63 = vpop.permute.xlu1 %975  ;;  %554 = vmatpush1.bf16.msra.mxu0 %v298_v59  ;;  %v14147_v56 = vpop.permute.xlu0 %973 }
  0xc5   :  { %596 = vmatprep.subr.bf16.mxu1 %v301_v13  ;;  %12237 = vmatprep.subr.msk.bf16.mxu0 %vm342_vm1, %v311_v60  ;;  %v1050_v51 = vsel %vm1049_vm3, %v14120_v47, %v14147_v56  ;;  %v14343_v47 = vld [vmem:[%s19823_s1 + $0xc] ss:$60 sps:$4 sm:$0xff]  }
  0xc6   :  { %1481 = vrot.lane.b32.xlu1 %v13785_v20, %s13604_s16  ;;  %1479 = vrot.lane.b32.xlu0 %v13790_v21, %s13604_s16 }
  0xc7   :  { %626 = vmatprep.mubr.bf16.mxu1 %v19859_v46 }
  0xc8   :  { %597 = vmatpush1.bf16.msra.mxu1 %v300_v61  ;;  %v14162_v29 = vpop.permute.xlu1 %979  ;;  %556 = vmatpush1.bf16.msra.mxu0 %v368_v62  ;;  %v14164_v42 = vpop.permute.xlu0 %977 }
  0xc9   :  { %12239 = vmatprep.subr.msk.bf16.mxu1 %vm342_vm1, %v313_v55  ;;  %705 = vmatprep.subr.bf16.mxu0 %v13668_v3  ;;  %v1053_v53 = vsel %vm1049_vm3, %v14164_v42, %v14162_v29  ;;  %v1052_v58 = vsel %vm1049_vm3, %v14140_v63, %v14164_v42  ;;  %v14381_v55 = vld [vmem:[%s19823_s1 + $0x1c] ss:$60 sps:$4 sm:$0xff]  }
  0xca   :  { %1485 = vrot.lane.b32.xlu1 %v13801_v22, %s13604_s16  ;;  %1483 = vrot.lane.b32.xlu0 %v13808_v23, %s13604_s16  ;;  %19863 = vst [vmem:[#allocation2_spill] sm:$0xff] %v14381_v55 }
  0xcb   :  { %12238 = vmatmul.mubr.msk.bf16.vlgmr.msra.gmra.mrb[8].mxu0 %vm338_vm2, %v14057_v44 }
  0xcc   :  { %599 = vmatpush1.bf16.msra.mxu1 %v374_v54  ;;  %v14175_v26 = vpop.permute.xlu1 %983  ;;  %706 = vmatpush1.bf16.msra.mxu0 %v13654_v1  ;;  %v14178_v43 = vpop.permute.xlu0 %981  ;;  %v14393_v54 = vld [vmem:[%s19824_s0 + $0x10] sm:$0x1f]  }
  0xcd   :  { %748 = vmatprep.subr.bf16.mxu1 %v13661_v2  ;;  %707 = vmatprep.subr.bf16.mxu0 %v13748_v15  ;;  %v670_v15 = vsel %vm342_vm1, %v13833_v28, 0 }
  0xce   :  { %1489 = vrot.lane.b32.xlu1 %v13815_v24, %s13604_s16  ;;  %1487 = vrot.lane.b32.xlu0 %v13822_v25, %s13604_s16  ;;  %v676_v24 = vsel %vm342_vm1, %v13851_v33, 0 }
  0xcf   :  { %12240 = vmatmul.mubr.msk.bf16.vlgmr.msra.gmra.mrb[8].mxu1 %vm338_vm2, %v14057_v44  ;;  %737 = vmatprep.mubr.bf16.mxu0 %v19859_v46 }
  0xd0   :  { %749 = vmatpush1.bf16.msra.mxu1 %v13649_v0  ;;  %v14189_v57 = vpop.permute.xlu1 %987  ;;  %708 = vmatpush1.bf16.msra.mxu0 %v13729_v12  ;;  %v14193_v2 = vpop.permute.xlu0 %985  ;;  %v14211_v12 = vld [vmem:[%s19824_s0] sm:$0x1f]  }
  0xd1   :  { %750 = vmatprep.subr.bf16.mxu1 %v13762_v17  ;;  %12242 = vmatprep.subr.msk.bf16.mxu0 %vm342_vm1, %v13829_v27 }
  0xd2   :  { %1493 = vrot.lane.b32.xlu1 %v13829_v27, %s13604_s16  ;;  %1491 = vrot.lane.b32.xlu0 %v13833_v28, %s13604_s16 }
  0xd3   :  { %780 = vmatprep.mubr.bf16.mxu1 %v19859_v46 }
  0xd4   :  { %751 = vmatpush1.bf16.msra.mxu1 %v13743_v14  ;;  %v14206_v0 = vpop.permute.xlu1 %991  ;;  %710 = vmatpush1.bf16.msra.mxu0 %v670_v15  ;;  %v14213_v17 = vpop.permute.xlu0 %989 }
  0xd5   :  { %12244 = vmatprep.subr.msk.bf16.mxu1 %vm342_vm1, %v13847_v32  ;;  %791 = vmatprep.subr.bf16.mxu0 %v13675_v4 }
  0xd6   :  { %1497 = vrot.lane.b32.xlu1 %v13847_v32, %s13604_s16  ;;  %1495 = vrot.lane.b32.xlu0 %v13851_v33, %s13604_s16 }
  0xd7   :  { %12243 = vmatmul.mubr.msk.bf16.vlgmr.msra.gmra.mrb[0].mxu0 %vm338_vm2, %v14211_v12 }
  0xd8   :  { %753 = vmatpush1.bf16.msra.mxu1 %v676_v24  ;;  %v14226_v14 = vpop.permute.xlu1 %995  ;;  %792 = vmatpush1.bf16.msra.mxu0 %v13682_v5  ;;  %v14229_v44 = vpop.permute.xlu0 %993  ;;  %v14399_v24 = vld [vmem:[%s19823_s1 + $0x28] ss:$60 sps:$4 sm:$0xff]  }
  0xd9   :  { %834 = vmatprep.subr.bf16.mxu1 %v13689_v6  ;;  %793 = vmatprep.subr.bf16.mxu0 %v13776_v19  ;;  %v682_v19 = vsel %vm342_vm1, %v13862_v36, 0 }
  0xda   :  { %1501 = vrot.lane.b32.xlu1 %v13858_v35, %s13604_s16  ;;  %1499 = vrot.lane.b32.xlu0 %v13862_v36, %s13604_s16 }
  0xdb   :  { %12245 = vmatmul.mubr.msk.bf16.vlgmr.msra.gmra.mrb[0].mxu1 %vm338_vm2, %v14211_v12  ;;  %823 = vmatprep.mubr.bf16.mxu0 %v19859_v46 }
  0xdc   :  { %835 = vmatpush1.bf16.msra.mxu1 %v13696_v7  ;;  %v14240_v4 = vpop.permute.xlu1 %999  ;;  %794 = vmatpush1.bf16.msra.mxu0 %v13757_v16  ;;  %v14244_v6 = vpop.permute.xlu0 %997 }
  0xdd   :  { %836 = vmatprep.subr.bf16.mxu1 %v13790_v21  ;;  %12246 = vmatprep.subr.msk.bf16.mxu0 %vm342_vm1, %v13858_v35  ;;  %v1062_v59 = vsel %vm1049_vm3, %v14244_v6, %v14240_v4  ;;  %v14407_v6 = vld [vmem:[%s19823_s1 + $0x24] ss:$60 sps:$4 sm:$0xff]  }
  0xde   :  { %1505 = vrot.lane.b32.xlu1 %v13869_v38, %s13604_s16  ;;  %1503 = vrot.lane.b32.xlu0 %v13873_v39, %s13604_s16 }
  0xdf   :  { %866 = vmatprep.mubr.bf16.mxu1 %v19859_v46 }
  0xe0   :  { %837 = vmatpush1.bf16.msra.mxu1 %v13771_v18  ;;  %v14257_v16 = vpop.permute.xlu1 %1003  ;;  %796 = vmatpush1.bf16.msra.mxu0 %v682_v19  ;;  %v14259_v21 = vpop.permute.xlu0 %1001 }
  0xe1   :  { %12248 = vmatprep.subr.msk.bf16.mxu1 %vm342_vm1, %v13869_v38  ;;  %877 = vmatprep.subr.bf16.mxu0 %v13703_v8  ;;  %v19861_v8 = vld [vmem:[#allocation3_spill] sm:$0xff] }
  0xe2   :  { %1509 = vrot.lane.b32.xlu1 %v13877_v40, %s13604_s16  ;;  %1507 = vrot.lane.b32.xlu0 %v13881_v41, %s13604_s16  ;;  %v700_v48 = vsel %vm342_vm1, %v19861_v8, 0  ;;  %19864 = vst [vmem:[#allocation3_spill] sm:$0xff] %v14407_v6 }
  0xe3   :  { %12247 = vmatmul.mubr.msk.bf16.vlgmr.msra.gmra.mrb[4].mxu0 %vm338_vm2, %v14211_v12 }
  0xe4   :  { %839 = vmatpush1.bf16.msra.mxu1 %v688_v45  ;;  %v14272_v18 = vpop.permute.xlu1 %1007  ;;  %878 = vmatpush1.bf16.msra.mxu0 %v13710_v9  ;;  %v14275_v37 = vpop.permute.xlu0 %1005  ;;  %v1057_v45 = vsel %vm1049_vm3, %v14193_v2, %v14189_v57 }
  0xe5   :  { %920 = vmatprep.subr.bf16.mxu1 %v13717_v10  ;;  %879 = vmatprep.subr.bf16.mxu0 %v13808_v23  ;;  %v19862_v23 = vld [vmem:[#allocation4_spill] sm:$0xff]  ;;  %v1065_v13 = vsel %vm1049_vm3, %v14257_v16, %v14275_v37 }
  0xe6   :  { %1513 = vrot.lane.b32.xlu1 %v19860_v49, %s13604_s16  ;;  %1511 = vrot.lane.b32.xlu0 %v19861_v8, %s13604_s16 }
  0xe7   :  { %12249 = vmatmul.mubr.msk.bf16.vlgmr.msra.gmra.mrb[4].mxu1 %vm338_vm2, %v14211_v12  ;;  %909 = vmatprep.mubr.bf16.mxu0 %v19859_v46 }
  0xe8   :  { %921 = vmatpush1.bf16.msra.mxu1 %v13724_v11  ;;  %v14286_v52 = vpop.permute.xlu1 %1011  ;;  %880 = vmatpush1.bf16.msra.mxu0 %v13785_v20  ;;  %v14290_v10 = vpop.permute.xlu0 %1009  ;;  %v694_v11 = vsel %vm342_vm1, %v13881_v41, 0 }
  0xe9   :  { %922 = vmatprep.subr.bf16.mxu1 %v13822_v25  ;;  %12250 = vmatprep.subr.msk.bf16.mxu0 %vm342_vm1, %v13877_v40 }
  0xea   :  { %1907 = vrot.lane.b32.xlu1 %v13654_v1, %s13605_s5  ;;  %1515 = vrot.lane.b32.xlu0 %v19862_v23, %s13604_s16  ;;  %v1051_v1 = vsel %vm1049_vm3, %v14147_v56, %v14140_v63  ;;  %v14367_v63 = vld [vmem:[%s19823_s1 + $0x14] ss:$60 sps:$4 sm:$0xff]   ;;  %v1064_v56 = vsel %vm1049_vm3, %v14259_v21, %v14257_v16  ;;  %v1054_v16 = vsel %vm1049_vm3, %v14162_v29, %v14178_v43  ;;  %v14434_v29 = vld [vmem:[%s19823_s1 + $0x2c] ss:$60 sps:$4 sm:$0xff]   ;;  %s13620_s16 = smov 110  }
  0xeb   :  { %952 = vmatprep.mubr.bf16.mxu1 %v19859_v46  ;;  %19865 = vst [vmem:[#allocation4_spill] sm:$0xff] %v14434_v29 }
  0xec   :  { %923 = vmatpush1.bf16.msra.mxu1 %v13801_v22  ;;  %v14303_v20 = vpop.permute.xlu1 %1015  ;;  %882 = vmatpush1.bf16.msra.mxu0 %v694_v11  ;;  %v14305_v25 = vpop.permute.xlu0 %1013  ;;  %v14317_v22 = vld [vmem:[%s19823_s1 + $0x8] ss:$60 sps:$4 sm:$0xff]  }
  0xed   :  { %12252 = vmatprep.subr.msk.bf16.mxu1 %vm342_vm1, %v19860_v49  ;;  %1149 = vmatprep.subr.bf16.mxu0 %v1051_v1  ;;  %v1067_v1 = vsel %vm1049_vm3, %v14272_v18, %v14290_v10 }
  0xee   :  { %1911 = vrot.lane.b32.xlu1 %v14317_v22, %s13605_s5  ;;  %1909 = vrot.lane.b32.xlu0 %v13668_v3, %s13605_s5  ;;  %v1063_v3 = vsel %vm1049_vm3, %v14240_v4, %v14259_v21 }
  0xef   :  { %12251 = vmatmul.mubr.msk.bf16.vlgmr.msra.gmra.mrb[8].mxu0 %vm338_vm2, %v14211_v12 }
  0xf0   :  { %925 = vmatpush1.bf16.msra.mxu1 %v700_v48  ;;  %v14328_v31 = vpop.permute.xlu1 %1019  ;;  %1150 = vmatpush1.bf16.msra.mxu0 %v1050_v51  ;;  %v14333_v34 = vpop.permute.xlu0 %1017  ;;  %v14427_v48 = vld [vmem:[%s19823_s1 + $0x30] ss:$60 sps:$4 sm:$0xff]   ;;  %v1066_v51 = vsel %vm1049_vm3, %v14275_v37, %v14272_v18  ;;  %v1068_v18 = vsel %vm1049_vm3, %v14290_v10, %v14286_v52  ;;  %v14488_v10 = vld [vmem:[%s19823_s1 + $0x80] ss:$60 sps:$4 sm:$0xff]  }
  0xf1   :  { %1192 = vmatprep.subr.bf16.mxu1 %v1053_v53  ;;  %1151 = vmatprep.subr.bf16.mxu0 %v1063_v3  ;;  %v1069_v3 = vsel %vm1049_vm3, %v14286_v52, %v14305_v25  ;;  %v14481_v52 = vld [vmem:[%s19823_s1 + $0x84] ss:$60 sps:$4 sm:$0xff]  }
  0xf2   :  { %1915 = vrot.lane.b32.xlu1 %v13682_v5, %s13605_s5  ;;  %1913 = vrot.lane.b32.xlu0 %v14343_v47, %s13605_s5 }
  0xf3   :  { %12253 = vmatmul.mubr.msk.bf16.vlgmr.msra.gmra.mrb[8].mxu1 %vm338_vm2, %v14211_v12  ;;  %1181 = vmatprep.mubr.bf16.mxu0 %v19859_v46 }
  0xf4   :  { %1193 = vmatpush1.bf16.msra.mxu1 %v1052_v58  ;;  %v1024_v5 = vpop.permute.xlu1 %1023  ;;  %1152 = vmatpush1.bf16.msra.mxu0 %v1062_v59  ;;  %v14359_v30 = vpop.permute.xlu0 %1021 }
  0xf5   :  { %1194 = vmatprep.subr.bf16.mxu1 %v1065_v13  ;;  %1224 = vmatprep.mubr.bf16.mxu1 %v19859_v46 }
  0xf6   :  { %1919 = vrot.lane.b32.xlu1 %v13696_v7, %s13605_s5  ;;  %1917 = vrot.lane.b32.xlu0 %v14367_v63, %s13605_s5 }
  0xf8   :  { %1195 = vmatpush1.bf16.msra.mxu1 %v1064_v56  ;;  %v1028_v60 = vpop.permute.xlu1 %1027  ;;  %v1026_v61 = vpop.permute.xlu0 %1025 }
  0xf9   :  { %v1074_v50 = vsel %vm1049_vm3, %v1024_v5, %v1026_v61  ;;  %v1075_v7 = vsel %vm1049_vm3, %v1026_v61, %v1028_v60 }
  0xfa   :  { %1923 = vrot.lane.b32.xlu1 %v13710_v9, %s13605_s5  ;;  %1921 = vrot.lane.b32.xlu0 %v14381_v55, %s13605_s5  ;;  %v1114_v62 = vsel %vm342_vm1, %v1074_v50, 0  ;;  %v1055_v9 = vsel %vm1049_vm3, %v14178_v43, %v14175_v26  ;;  %v1056_v43 = vsel %vm1049_vm3, %v14175_v26, %v14193_v2  ;;  %v14456_v26 = vld [vmem:[%s19823_s1 + $0x7c] ss:$60 sps:$4 sm:$0xff]   ;;  %v1059_v50 = vsel %vm1049_vm3, %v14213_v17, %v14206_v0 }
  0xfb   :  { %12257 = vmatprep.subr.msk.bf16.mxu0 %vm342_vm1, %v1075_v7  ;;  %v14463_v2 = vld [vmem:[%s19823_s1 + $0x78] ss:$60 sps:$4 sm:$0xff]  }
  0xfc   :  { %1154 = vmatpush1.bf16.msra.mxu0 %v1114_v62  ;;  %v1032_v42 = vpop.permute.xlu1 %1031  ;;  %v1030_v15 = vpop.permute.xlu0 %1029  ;;  %v1058_v62 = vsel %vm1049_vm3, %v14189_v57, %v14213_v17  ;;  %v14514_v57 = vld [vmem:[%s19823_s1 + $0x88] ss:$60 sps:$4 sm:$0xff]   ;;  %v1060_v17 = vsel %vm1049_vm3, %v14206_v0, %v14229_v44  ;;  %v14536_v0 = vld [vmem:[%s19823_s1 + $0x94] ss:$60 sps:$4 sm:$0xff]  }
  0xfd   :  { %1235 = vmatprep.subr.bf16.mxu0 %v1055_v9  ;;  %v1076_v12 = vsel %vm1049_vm3, %v1028_v60, %v1030_v15  ;;  %v1077_v4 = vsel %vm1049_vm3, %v1030_v15, %v1032_v42  ;;  %v1061_v9 = vsel %vm1049_vm3, %v14229_v44, %v14226_v14  ;;  %v1070_v14 = vsel %vm1049_vm3, %v14305_v25, %v14303_v20  ;;  %v14543_v44 = vld [vmem:[%s19823_s1 + $0x90] ss:$60 sps:$4 sm:$0xff]  }
  0xfe   :  { %1927 = vrot.lane.b32.xlu1 %v14399_v24, %s13605_s5  ;;  %1925 = vrot.lane.b32.xlu0 %v14407_v6, %s13605_s5  ;;  %v1120_v19 = vsel %vm342_vm1, %v1076_v12, 0  ;;  %v1071_v12 = vsel %vm1049_vm3, %v14303_v20, %v14333_v34  ;;  %v1072_v20 = vsel %vm1049_vm3, %v14333_v34, %v14328_v31  ;;  %v14566_v34 = vld [vmem:[%s19823_s1 + $0x98] ss:$60 sps:$4 sm:$0xff]  }
  0xff   :  { %12259 = vmatprep.subr.msk.bf16.mxu1 %vm342_vm1, %v1077_v4  ;;  %12258 = vmatmul.mubr.msk.bf16.vlgmr.msra.gmra.mrb[0].mxu0 %vm338_vm2, %v14393_v54  ;;  %v14507_v4 = vld [vmem:[%s19823_s1 + $0x8c] ss:$60 sps:$4 sm:$0xff]  }
 0x100   :  { %1197 = vmatpush1.bf16.msra.mxu1 %v1120_v19  ;;  %v1036_v21 = vpop.permute.xlu1 %1035  ;;  %1236 = vmatpush1.bf16.msra.mxu0 %v1054_v16  ;;  %v1034_v11 = vpop.permute.xlu0 %1033  ;;  %v1073_v16 = vsel %vm1049_vm3, %v14328_v31, %v14359_v30 }
 0x101   :  { %1278 = vmatprep.subr.bf16.mxu1 %v1057_v45  ;;  %1237 = vmatprep.subr.bf16.mxu0 %v1067_v1  ;;  %v1078_v58 = vsel %vm1049_vm3, %v1032_v42, %v1034_v11  ;;  %v1079_v5 = vsel %vm1049_vm3, %v1034_v11, %v1036_v21 }
 0x102   :  { %1931 = vrot.lane.b32.xlu1 %v14427_v48, %s13605_s5  ;;  %1929 = vrot.lane.b32.xlu0 %v14434_v29, %s13605_s5  ;;  %v1126_v13 = vsel %vm342_vm1, %v1078_v58, 0 }
 0x103   :  { %12260 = vmatmul.mubr.msk.bf16.vlgmr.msra.gmra.mrb[0].mxu1 %vm338_vm2, %v14393_v54  ;;  %1267 = vmatprep.mubr.bf16.mxu0 %v19859_v46 }
 0x104   :  { %1279 = vmatpush1.bf16.msra.mxu1 %v1056_v43  ;;  %v1040_v53 = vpop.permute.xlu1 %1039  ;;  %1238 = vmatpush1.bf16.msra.mxu0 %v1066_v51  ;;  %v1038_v59 = vpop.permute.xlu0 %1037 }
 0x105   :  { %1280 = vmatprep.subr.bf16.mxu1 %v1069_v3  ;;  %12261 = vmatprep.subr.msk.bf16.mxu0 %vm342_vm1, %v1079_v5  ;;  %v1080_v37 = vsel %vm1049_vm3, %v1036_v21, %v1038_v59  ;;  %v1081_v60 = vsel %vm1049_vm3, %v1038_v59, %v1040_v53 }
 0x106   :  { %1935 = vrot.lane.b32.xlu1 %v14456_v26, %s13605_s5  ;;  %1933 = vrot.lane.b32.xlu0 %v14463_v2, %s13605_s5  ;;  %v1132_v7 = vsel %vm342_vm1, %v1080_v37, 0 }
 0x107   :  { %1310 = vmatprep.mubr.bf16.mxu1 %v19859_v46 }
 0x108   :  { %1281 = vmatpush1.bf16.msra.mxu1 %v1068_v18  ;;  %v1044_v56 = vpop.permute.xlu1 %1043  ;;  %1240 = vmatpush1.bf16.msra.mxu0 %v1126_v13  ;;  %v1042_v61 = vpop.permute.xlu0 %1041  ;;  %v14582_v18 = vld [vmem:[%s19823_s1 + $0xa4] ss:$60 sps:$4 sm:$0xff]  }
 0x109   :  { %12263 = vmatprep.subr.msk.bf16.mxu1 %vm342_vm1, %v1081_v60  ;;  %1321 = vmatprep.subr.bf16.mxu0 %v1059_v50  ;;  %v1082_v21 = vsel %vm1049_vm3, %v1040_v53, %v1042_v61  ;;  %v1083_v11 = vsel %vm1049_vm3, %v1042_v61, %v1044_v56  ;;  %v14558_v53 = vld [vmem:[%s19823_s1 + $0x9c] ss:$60 sps:$4 sm:$0xff]   ;;  %v14608_v50 = vld [vmem:[%s19823_s1 + $0xa8] ss:$60 sps:$4 sm:$0xff]  }
 0x10a   :  { %1939 = vrot.lane.b32.xlu1 %v14481_v52, %s13605_s5  ;;  %1937 = vrot.lane.b32.xlu0 %v14488_v10, %s13605_s5  ;;  %v1138_v30 = vsel %vm342_vm1, %v1082_v21, 0  ;;  %v14591_v13 = vld [vmem:[%s19823_s1 + $0xa0] ss:$60 sps:$4 sm:$0xff]  }
 0x10b   :  { %12262 = vmatmul.mubr.msk.bf16.vlgmr.msra.gmra.mrb[4].mxu0 %vm338_vm2, %v14393_v54 }
 0x10c   :  { %1283 = vmatpush1.bf16.msra.mxu1 %v1132_v7  ;;  %v1048_v42 = vpop.permute.xlu1 %1047  ;;  %1322 = vmatpush1.bf16.msra.mxu0 %v1058_v62  ;;  %v1046_v15 = vpop.permute.xlu0 %1045 }
 0x10d   :  { %1364 = vmatprep.subr.bf16.mxu1 %v1061_v9  ;;  %1323 = vmatprep.subr.bf16.mxu0 %v1071_v12  ;;  %v1084_v25 = vsel %vm1049_vm3, %v1044_v56, %v1046_v15  ;;  %v1085_v43 = vsel %vm1049_vm3, %v1046_v15, %v1048_v42  ;;  %vm7949_vm3 = vcmask 924672  }
 0x10e   :  { %1943 = vrot.lane.b32.xlu1 %v14507_v4, %s13605_s5  ;;  %1941 = vrot.lane.b32.xlu0 %v14514_v57, %s13605_s5  ;;  %v1144_v3 = vsel %vm342_vm1, %v1084_v25, 0 }
 0x10f   :  { %12264 = vmatmul.mubr.msk.bf16.vlgmr.msra.gmra.mrb[4].mxu1 %vm338_vm2, %v14393_v54  ;;  %1353 = vmatprep.mubr.bf16.mxu0 %v19859_v46 }
 0x110   :  { %1365 = vmatpush1.bf16.msra.mxu1 %v1060_v17  ;;  %v1442_v19 = vpop.permute.xlu1 %1441  ;;  %1324 = vmatpush1.bf16.msra.mxu0 %v1070_v14  ;;  %v1440_v45 = vpop.permute.xlu0 %1439 }
 0x111   :  { %1366 = vmatprep.subr.bf16.mxu1 %v1073_v16  ;;  %12265 = vmatprep.subr.msk.bf16.mxu0 %vm342_vm1, %v1083_v11  ;;  %v1518_v58 = vsel %vm1517_vm4, %v1440_v45, %v1442_v19 }
 0x112   :  { %1947 = vrot.lane.b32.xlu1 %v14536_v0, %s13605_s5  ;;  %1945 = vrot.lane.b32.xlu0 %v14543_v44, %s13605_s5 }
 0x113   :  { %1396 = vmatprep.mubr.bf16.mxu1 %v19859_v46 }
 0x114   :  { %1367 = vmatpush1.bf16.msra.mxu1 %v1072_v20  ;;  %v1446_v1 = vpop.permute.xlu1 %1445  ;;  %1326 = vmatpush1.bf16.msra.mxu0 %v1138_v30  ;;  %v1444_v51 = vpop.permute.xlu0 %1443 }
 0x115   :  { %12267 = vmatprep.subr.msk.bf16.mxu1 %vm342_vm1, %v1085_v43  ;;  %v1519_v31 = vsel %vm1517_vm4, %v1442_v19, %v1444_v51  ;;  %v1520_v56 = vsel %vm1517_vm4, %v1444_v51, %v1446_v1  ;;  %v14662_v43 = vld [vmem:[%s19823_s1 + $0x4] ss:$60 sps:$4 sm:$0xff]  }
 0x116   :  { %1951 = vrot.lane.b32.xlu1 %v14558_v53, %s13605_s5  ;;  %1949 = vrot.lane.b32.xlu0 %v14566_v34, %s13605_s5 }
 0x117   :  { %1617 = vmatprep.subr.bf16.mxu0 %v1519_v31  ;;  %12266 = vmatmul.mubr.msk.bf16.vlgmr.msra.gmra.mrb[8].mxu0 %vm338_vm2, %v14393_v54 }
 0x118   :  { %1369 = vmatpush1.bf16.msra.mxu1 %v1144_v3  ;;  %v14574_v59 = vpop.permute.xlu1 %1449  ;;  %1618 = vmatpush1.bf16.msra.mxu0 %v1518_v58  ;;  %v14576_v5 = vpop.permute.xlu0 %1447 }
 0x119   :  { %1649 = vmatprep.mubr.bf16.mxu0 %v19859_v46  ;;  %v1521_v37 = vsel %vm1517_vm4, %v1446_v1, %v14576_v5 }
 0x11a   :  { %1955 = vrot.lane.b32.xlu1 %v14582_v18, %s13605_s5  ;;  %1953 = vrot.lane.b32.xlu0 %v14591_v13, %s13605_s5 }
 0x11b   :  { %1660 = vmatprep.subr.bf16.mxu1 %v1521_v37  ;;  %12268 = vmatmul.mubr.msk.bf16.vlgmr.msra.gmra.mrb[8].mxu1 %vm338_vm2, %v14393_v54  ;;  %v14690_v37 = vld [vmem:[%s19823_s1 + $0x10] ss:$60 sps:$4 sm:$0xff]  }
 0x11c   :  { %v14598_v60 = vpop.permute.xlu1 %1453  ;;  %1661 = vmatpush1.bf16.msra.mxu1 %v1520_v56  ;;  %v14600_v61 = vpop.permute.xlu0 %1451  ;;  %1692 = vmatprep.mubr.bf16.mxu1 %v19859_v46 }
 0x11e   :  { %1959 = vrot.lane.b32.xlu1 %v13833_v28, %s13605_s5  ;;  %1957 = vrot.lane.b32.xlu0 %v14608_v50, %s13605_s5 }
 0x120   :  { %v14612_v54 = vpop.permute.xlu1 %1457  ;;  %v14614_v7 = vpop.permute.xlu0 %1455 }
 0x122   :  { %1963 = vrot.lane.b32.xlu1 %v13851_v33, %s13605_s5  ;;  %1961 = vrot.lane.b32.xlu0 %v13829_v27, %s13605_s5 }
 0x124   :  { %v14620_v62 = vpop.permute.xlu1 %1461  ;;  %v14622_v42 = vpop.permute.xlu0 %1459 }
 0x126   :  { %1967 = vrot.lane.b32.xlu1 %v13862_v36, %s13605_s5  ;;  %1965 = vrot.lane.b32.xlu0 %v13847_v32, %s13605_s5 }
 0x128   :  { %v1466_v9 = vpop.permute.xlu1 %1465  ;;  %v14628_v15 = vpop.permute.xlu0 %1463 }
 0x12a   :  { %1971 = vrot.lane.b32.xlu1 %v13873_v39, %s13605_s5  ;;  %1969 = vrot.lane.b32.xlu0 %v13858_v35, %s13605_s5 }
 0x12c   :  { %v1470_v12 = vpop.permute.xlu1 %1469  ;;  %v1468_v17 = vpop.permute.xlu0 %1467 }
 0x12d   :  { %v1531_v14 = vsel %vm1517_vm4, %v1468_v17, %v1470_v12  ;;  %v1530_v19 = vsel %vm1517_vm4, %v1466_v9, %v1468_v17 }
 0x12e   :  { %1975 = vrot.lane.b32.xlu1 %v13881_v41, %s13605_s5  ;;  %1973 = vrot.lane.b32.xlu0 %v13869_v38, %s13605_s5 }
 0x12f   :  { %1619 = vmatprep.subr.bf16.mxu0 %v1531_v14 }
 0x130   :  { %1620 = vmatpush1.bf16.msra.mxu0 %v1530_v19  ;;  %v14640_v16 = vpop.permute.xlu1 %1473  ;;  %v1472_v21 = vpop.permute.xlu0 %1471 }
 0x131   :  { %v1533_v45 = vsel %vm1517_vm4, %v1472_v21, %v14640_v16  ;;  %v1532_v11 = vsel %vm1517_vm4, %v1470_v12, %v1472_v21  ;;  %v14699_v12 = vld [vmem:[%s19823_s1 + $0x18] ss:$60 sps:$4 sm:$0xff]  }
 0x132   :  { %1979 = vrot.lane.b32.xlu1 %v19861_v8, %s13605_s5  ;;  %1977 = vrot.lane.b32.xlu0 %v13877_v40, %s13605_s5 }
 0x133   :  { %1662 = vmatprep.subr.bf16.mxu1 %v1533_v45 }
 0x134   :  { %1663 = vmatpush1.bf16.msra.mxu1 %v1532_v11  ;;  %v14649_v20 = vpop.permute.xlu1 %1477  ;;  %v1476_v25 = vpop.permute.xlu0 %1475  ;;  %v14711_v11 = vld [vmem:[%s19823_s1 + $0x20] ss:$60 sps:$4 sm:$0xff]  }
 0x136   :  { %1983 = vrot.lane.b32.xlu1 %v19862_v23, %s13605_s5  ;;  %1981 = vrot.lane.b32.xlu0 %v19860_v49, %s13605_s5  ;;  %v14669_v23 = vld [vmem:[%s19823_s1] ss:$60 sps:$4 sm:$0xff]   ;;  %s13621_s5 = smov 24  }
 0x138   :  { %v14655_v30 = vpop.permute.xlu1 %1481  ;;  %v14657_v1 = vpop.permute.xlu0 %1479 }
 0x13a   :  { %2377 = vrot.lane.b32.xlu1 %v14662_v43, %s13606_s27  ;;  %2375 = vrot.lane.b32.xlu0 %v14669_v23, %s13606_s27 }
 0x13c   :  { %v14673_v51 = vpop.permute.xlu1 %1485  ;;  %v14675_v31 = vpop.permute.xlu0 %1483 }
 0x13e   :  { %2381 = vrot.lane.b32.xlu1 %v14343_v47, %s13606_s27  ;;  %2379 = vrot.lane.b32.xlu0 %v14317_v22, %s13606_s27 }
 0x140   :  { %v14681_v3 = vpop.permute.xlu1 %1489  ;;  %v14683_v58 = vpop.permute.xlu0 %1487 }
 0x142   :  { %2385 = vrot.lane.b32.xlu1 %v14367_v63, %s13606_s27  ;;  %2383 = vrot.lane.b32.xlu0 %v14690_v37, %s13606_s27 }
 0x144   :  { %v1494_v56 = vpop.permute.xlu1 %1493  ;;  %v1492_v9 = vpop.permute.xlu0 %1491 }
 0x145   :  { %v1542_v17 = vsel %vm1517_vm4, %v1492_v9, %v1494_v56 }
 0x146   :  { %2389 = vrot.lane.b32.xlu1 %v14381_v55, %s13606_s27  ;;  %2387 = vrot.lane.b32.xlu0 %v14699_v12, %s13606_s27  ;;  %v1582_v45 = vsel %vm342_vm1, %v1542_v17, 0  ;;  %v14723_v17 = vld [vmem:[%s19824_s0 + $0x18] sm:$0x1f]  }
 0x148   :  { %v1498_v14 = vpop.permute.xlu1 %1497  ;;  %v1496_v19 = vpop.permute.xlu0 %1495 }
 0x149   :  { %v1543_v21 = vsel %vm1517_vm4, %v1494_v56, %v1496_v19  ;;  %v1544_v9 = vsel %vm1517_vm4, %v1496_v19, %v1498_v14  ;;  %v1523_v56 = vsel %vm1517_vm4, %v14574_v59, %v14600_v61 }
 0x14a   :  { %2393 = vrot.lane.b32.xlu1 %v14407_v6, %s13606_s27  ;;  %2391 = vrot.lane.b32.xlu0 %v14711_v11, %s13606_s27  ;;  %v1588_v19 = vsel %vm342_vm1, %v1544_v9, 0 }
 0x14b   :  { %12272 = vmatprep.subr.msk.bf16.mxu0 %vm342_vm1, %v1543_v21 }
 0x14c   :  { %1622 = vmatpush1.bf16.msra.mxu0 %v1582_v45  ;;  %v1502_v55 = vpop.permute.xlu1 %1501  ;;  %v1500_v6 = vpop.permute.xlu0 %1499  ;;  %v1522_v45 = vsel %vm1517_vm4, %v14576_v5, %v14574_v59  ;;  %v1524_v59 = vsel %vm1517_vm4, %v14600_v61, %v14598_v60  ;;  %v1534_v5 = vsel %vm1517_vm4, %v14640_v16, %v1476_v25 }
 0x14d   :  { %1703 = vmatprep.subr.bf16.mxu0 %v1523_v56  ;;  %v1545_v21 = vsel %vm1517_vm4, %v1498_v14, %v1500_v6  ;;  %v1525_v14 = vsel %vm1517_vm4, %v14598_v60, %v14614_v7  ;;  %v1536_v60 = vsel %vm1517_vm4, %v14649_v20, %v14657_v1 }
 0x14e   :  { %2397 = vrot.lane.b32.xlu1 %v14434_v29, %s13606_s27  ;;  %2395 = vrot.lane.b32.xlu0 %v14399_v24, %s13606_s27 }
 0x14f   :  { %12274 = vmatprep.subr.msk.bf16.mxu1 %vm342_vm1, %v1545_v21  ;;  %12273 = vmatmul.mubr.msk.bf16.vlgmr.msra.gmra.mrb[0].mxu0 %vm338_vm2, %v14723_v17  ;;  %v1535_v21 = vsel %vm1517_vm4, %v1476_v25, %v14649_v20  ;;  %v1526_v20 = vsel %vm1517_vm4, %v14614_v7, %v14612_v54  ;;  %v1538_v7 = vsel %vm1517_vm4, %v14655_v30, %v14675_v31 }
 0x150   :  { %1665 = vmatpush1.bf16.msra.mxu1 %v1588_v19  ;;  %v1506_v56 = vpop.permute.xlu1 %1505  ;;  %1704 = vmatpush1.bf16.msra.mxu0 %v1522_v45  ;;  %v1504_v29 = vpop.permute.xlu0 %1503  ;;  %v1537_v19 = vsel %vm1517_vm4, %v14657_v1, %v14655_v30  ;;  %v1546_v45 = vsel %vm1517_vm4, %v1500_v6, %v1502_v55 }
 0x151   :  { %1746 = vmatprep.subr.bf16.mxu1 %v1525_v14  ;;  %1705 = vmatprep.subr.bf16.mxu0 %v1535_v21  ;;  %v1547_v21 = vsel %vm1517_vm4, %v1502_v55, %v1504_v29  ;;  %v1548_v6 = vsel %vm1517_vm4, %v1504_v29, %v1506_v56  ;;  %v1594_v61 = vsel %vm342_vm1, %v1546_v45, 0  ;;  %v1541_v45 = vsel %vm1517_vm4, %v14683_v58, %v14681_v3 }
 0x152   :  { %2401 = vrot.lane.b32.xlu1 %v14463_v2, %s13606_s27  ;;  %2399 = vrot.lane.b32.xlu0 %v14427_v48, %s13606_s27  ;;  %v1600_v29 = vsel %vm342_vm1, %v1548_v6, 0 }
 0x153   :  { %12275 = vmatmul.mubr.msk.bf16.vlgmr.msra.gmra.mrb[0].mxu1 %vm338_vm2, %v14723_v17  ;;  %1735 = vmatprep.mubr.bf16.mxu0 %v19859_v46 }
 0x154   :  { %1747 = vmatpush1.bf16.msra.mxu1 %v1524_v59  ;;  %v1510_v9 = vpop.permute.xlu1 %1509  ;;  %1706 = vmatpush1.bf16.msra.mxu0 %v1534_v5  ;;  %v1508_v14 = vpop.permute.xlu0 %1507  ;;  %v1527_v59 = vsel %vm1517_vm4, %v14612_v54, %v14622_v42  ;;  %v1528_v54 = vsel %vm1517_vm4, %v14622_v42, %v14620_v62 }
 0x155   :  { %1748 = vmatprep.subr.bf16.mxu1 %v1537_v19  ;;  %12276 = vmatprep.subr.msk.bf16.mxu0 %vm342_vm1, %v1547_v21  ;;  %v1549_v16 = vsel %vm1517_vm4, %v1506_v56, %v1508_v14  ;;  %v1529_v56 = vsel %vm1517_vm4, %v14620_v62, %v14628_v15  ;;  %v1539_v19 = vsel %vm1517_vm4, %v14675_v31, %v14673_v51 }
 0x156   :  { %2405 = vrot.lane.b32.xlu1 %v14488_v10, %s13606_s27  ;;  %2403 = vrot.lane.b32.xlu0 %v14456_v26, %s13606_s27  ;;  %v1550_v21 = vsel %vm1517_vm4, %v1508_v14, %v1510_v9  ;;  %v1540_v62 = vsel %vm1517_vm4, %v14673_v51, %v14683_v58 }
 0x157   :  { %1778 = vmatprep.mubr.bf16.mxu1 %v19859_v46  ;;  %v1606_v31 = vsel %vm342_vm1, %v1550_v21, 0 }
 0x158   :  { %1749 = vmatpush1.bf16.msra.mxu1 %v1536_v60  ;;  %v1514_v55 = vpop.permute.xlu1 %1513  ;;  %1708 = vmatpush1.bf16.msra.mxu0 %v1594_v61  ;;  %v1512_v25 = vpop.permute.xlu0 %1511 }
 0x159   :  { %12278 = vmatprep.subr.msk.bf16.mxu1 %vm342_vm1, %v1549_v16  ;;  %1789 = vmatprep.subr.bf16.mxu0 %v1527_v59  ;;  %v1551_v6 = vsel %vm1517_vm4, %v1510_v9, %v1512_v25  ;;  %v1552_v42 = vsel %vm1517_vm4, %v1512_v25, %v1514_v55 }
 0x15a   :  { %2409 = vrot.lane.b32.xlu1 %v14514_v57, %s13606_s27  ;;  %2407 = vrot.lane.b32.xlu0 %v14481_v52, %s13606_s27  ;;  %v1612_v51 = vsel %vm342_vm1, %v1552_v42, 0 }
 0x15b   :  { %12277 = vmatmul.mubr.msk.bf16.vlgmr.msra.gmra.mrb[4].mxu0 %vm338_vm2, %v14723_v17 }
 0x15c   :  { %1751 = vmatpush1.bf16.msra.mxu1 %v1600_v29  ;;  %v1908_v1 = vpop.permute.xlu1 %1907  ;;  %1790 = vmatpush1.bf16.msra.mxu0 %v1526_v20  ;;  %v1516_v5 = vpop.permute.xlu0 %1515 }
 0x15d   :  { %1832 = vmatprep.subr.bf16.mxu1 %v1529_v56  ;;  %1791 = vmatprep.subr.bf16.mxu0 %v1539_v19  ;;  %v1553_v30 = vsel %vm1517_vm4, %v1514_v55, %v1516_v5  ;;  %vm8417_vm4 = vcmask 916480  }
 0x15e   :  { %2413 = vrot.lane.b32.xlu1 %v14543_v44, %s13606_s27  ;;  %2411 = vrot.lane.b32.xlu0 %v14507_v4, %s13606_s27 }
 0x15f   :  { %12279 = vmatmul.mubr.msk.bf16.vlgmr.msra.gmra.mrb[4].mxu1 %vm338_vm2, %v14723_v17  ;;  %1821 = vmatprep.mubr.bf16.mxu0 %v19859_v46 }
 0x160   :  { %1833 = vmatpush1.bf16.msra.mxu1 %v1528_v54  ;;  %v1912_v15 = vpop.permute.xlu1 %1911  ;;  %1792 = vmatpush1.bf16.msra.mxu0 %v1538_v7  ;;  %v1910_v60 = vpop.permute.xlu0 %1909 }
 0x161   :  { %1834 = vmatprep.subr.bf16.mxu1 %v1541_v45  ;;  %12280 = vmatprep.subr.msk.bf16.mxu0 %vm342_vm1, %v1551_v6  ;;  %v1987_v14 = vsel %vm1985_vm5, %v1910_v60, %v1912_v15  ;;  %v1986_v58 = vsel %vm1985_vm5, %v1908_v1, %v1910_v60 }
 0x162   :  { %2417 = vrot.lane.b32.xlu1 %v14566_v34, %s13606_s27  ;;  %2415 = vrot.lane.b32.xlu0 %v14536_v0, %s13606_s27 }
 0x163   :  { %1864 = vmatprep.mubr.bf16.mxu1 %v19859_v46 }
 0x164   :  { %1835 = vmatpush1.bf16.msra.mxu1 %v1540_v62  ;;  %v14821_v3 = vpop.permute.xlu1 %1915  ;;  %1794 = vmatpush1.bf16.msra.mxu0 %v1606_v31  ;;  %v1914_v9 = vpop.permute.xlu0 %1913  ;;  %v14897_v31 = vld [vmem:[%s19823_s1 + $0x120] ss:$0 sps:$4 sm:$0xff]  }
 0x165   :  { %12282 = vmatprep.subr.msk.bf16.mxu1 %vm342_vm1, %v1553_v30  ;;  %2085 = vmatprep.subr.bf16.mxu0 %v1987_v14  ;;  %v1989_v55 = vsel %vm1985_vm5, %v1914_v9, %v14821_v3  ;;  %v1988_v25 = vsel %vm1985_vm5, %v1912_v15, %v1914_v9 }
 0x166   :  { %2421 = vrot.lane.b32.xlu1 %v14591_v13, %s13606_s27  ;;  %2419 = vrot.lane.b32.xlu0 %v14558_v53, %s13606_s27 }
 0x167   :  { %12281 = vmatmul.mubr.msk.bf16.vlgmr.msra.gmra.mrb[8].mxu0 %vm338_vm2, %v14723_v17 }
 0x168   :  { %1837 = vmatpush1.bf16.msra.mxu1 %v1612_v51  ;;  %v14833_v61 = vpop.permute.xlu1 %1919  ;;  %2086 = vmatpush1.bf16.msra.mxu0 %v1986_v58  ;;  %v14837_v16 = vpop.permute.xlu0 %1917 }
 0x169   :  { %2128 = vmatprep.subr.bf16.mxu1 %v1989_v55  ;;  %2117 = vmatprep.mubr.bf16.mxu0 %v19859_v46 }
 0x16a   :  { %2425 = vrot.lane.b32.xlu1 %v14608_v50, %s13606_s27  ;;  %2423 = vrot.lane.b32.xlu0 %v14582_v18, %s13606_s27 }
 0x16b   :  { %12283 = vmatmul.mubr.msk.bf16.vlgmr.msra.gmra.mrb[8].mxu1 %vm338_vm2, %v14723_v17 }
 0x16c   :  { %2129 = vmatpush1.bf16.msra.mxu1 %v1988_v25  ;;  %v14847_v59 = vpop.permute.xlu1 %1923  ;;  %2160 = vmatprep.mubr.bf16.mxu1 %v19859_v46  ;;  %v14850_v29 = vpop.permute.xlu0 %1921 }
 0x16e   :  { %2429 = vrot.lane.b32.xlu1 %v13829_v27, %s13606_s27  ;;  %2427 = vrot.lane.b32.xlu0 %v13833_v28, %s13606_s27 }
 0x170   :  { %v14856_v20 = vpop.permute.xlu1 %1927  ;;  %v14858_v1 = vpop.permute.xlu0 %1925 }
 0x172   :  { %2433 = vrot.lane.b32.xlu1 %v13847_v32, %s13606_s27  ;;  %2431 = vrot.lane.b32.xlu0 %v13851_v33, %s13606_s27 }
 0x174   :  { %v14864_v17 = vpop.permute.xlu1 %1931  ;;  %v14866_v56 = vpop.permute.xlu0 %1929 }
 0x176   :  { %2437 = vrot.lane.b32.xlu1 %v13858_v35, %s13606_s27  ;;  %2435 = vrot.lane.b32.xlu0 %v13862_v36, %s13606_s27 }
 0x178   :  { %v1936_v5 = vpop.permute.xlu1 %1935  ;;  %v1934_v19 = vpop.permute.xlu0 %1933 }
 0x179   :  { %v1998_v45 = vsel %vm1985_vm5, %v1934_v19, %v1936_v5 }
 0x17a   :  { %2441 = vrot.lane.b32.xlu1 %v13869_v38, %s13606_s27  ;;  %2439 = vrot.lane.b32.xlu0 %v13873_v39, %s13606_s27 }
 0x17c   :  { %v1940_v54 = vpop.permute.xlu1 %1939  ;;  %v1938_v7 = vpop.permute.xlu0 %1937 }
 0x17d   :  { %v1999_v15 = vsel %vm1985_vm5, %v1936_v5, %v1938_v7  ;;  %v2000_v62 = vsel %vm1985_vm5, %v1938_v7, %v1940_v54 }
 0x17e   :  { %2445 = vrot.lane.b32.xlu1 %v13877_v40, %s13606_s27  ;;  %2443 = vrot.lane.b32.xlu0 %v13881_v41, %s13606_s27 }
 0x17f   :  { %2087 = vmatprep.subr.bf16.mxu0 %v1999_v15 }
 0x180   :  { %2088 = vmatpush1.bf16.msra.mxu0 %v1998_v45  ;;  %v1944_v21 = vpop.permute.xlu1 %1943  ;;  %v1942_v60 = vpop.permute.xlu0 %1941  ;;  %v14937_v45 = vld [vmem:[%s19824_s0 + $0x20] sm:$0x1f]  }
 0x181   :  { %v2001_v6 = vsel %vm1985_vm5, %v1940_v54, %v1942_v60 }
 0x182   :  { %2449 = vrot.lane.b32.xlu1 %v19860_v49, %s13606_s27  ;;  %2447 = vrot.lane.b32.xlu0 %v19861_v8, %s13606_s27 }
 0x183   :  { %2130 = vmatprep.subr.bf16.mxu1 %v2001_v6 }
 0x184   :  { %2131 = vmatpush1.bf16.msra.mxu1 %v2000_v62  ;;  %v14888_v42 = vpop.permute.xlu1 %1947  ;;  %v14890_v30 = vpop.permute.xlu0 %1945 }
 0x186   :  { %2843 = vrot.lane.b32.xlu1 %v14669_v23, %s13607_s10  ;;  %2451 = vrot.lane.b32.xlu0 %v14897_v31, %s13606_s27 }
 0x188   :  { %v14901_v9 = vpop.permute.xlu1 %1951  ;;  %v14903_v14 = vpop.permute.xlu0 %1949 }
 0x18a   :  { %2847 = vrot.lane.b32.xlu1 %v14317_v22, %s13607_s10  ;;  %2845 = vrot.lane.b32.xlu0 %v14662_v43, %s13607_s10 }
 0x18c   :  { %v14909_v51 = vpop.permute.xlu1 %1955  ;;  %v14911_v58 = vpop.permute.xlu0 %1953 }
 0x18e   :  { %2851 = vrot.lane.b32.xlu1 %v14690_v37, %s13607_s10  ;;  %2849 = vrot.lane.b32.xlu0 %v14343_v47, %s13607_s10  ;;  %v19866_v47 = vld [vmem:[#allocation2_spill] sm:$0xff] }
 0x190   :  { %v1960_v55 = vpop.permute.xlu1 %1959  ;;  %v14917_v25 = vpop.permute.xlu0 %1957 }
 0x192   :  { %2855 = vrot.lane.b32.xlu1 %v14699_v12, %s13607_s10  ;;  %2853 = vrot.lane.b32.xlu0 %v14367_v63, %s13607_s10  ;;  %v1991_v63 = vsel %vm1985_vm5, %v14837_v16, %v14833_v61 }
 0x194   :  { %v1964_v22 = vpop.permute.xlu1 %1963  ;;  %v1962_v5 = vpop.permute.xlu0 %1961 }
 0x195   :  { %v2010_v19 = vsel %vm1985_vm5, %v1960_v55, %v1962_v5  ;;  %v2011_v54 = vsel %vm1985_vm5, %v1962_v5, %v1964_v22  ;;  %v19867_v5 = vld [vmem:[#allocation3_spill] sm:$0xff] }
 0x196   :  { %2859 = vrot.lane.b32.xlu1 %v14711_v11, %s13607_s10  ;;  %2857 = vrot.lane.b32.xlu0 %v19866_v47, %s13607_s10  ;;  %v2050_v7 = vsel %vm342_vm1, %v2010_v19, 0 }
 0x197   :  { %12287 = vmatprep.subr.msk.bf16.mxu0 %vm342_vm1, %v2011_v54 }
 0x198   :  { %2090 = vmatpush1.bf16.msra.mxu0 %v2050_v7  ;;  %v1968_v15 = vpop.permute.xlu1 %1967  ;;  %v1966_v6 = vpop.permute.xlu0 %1965 }
 0x199   :  { %2171 = vmatprep.subr.bf16.mxu0 %v1991_v63  ;;  %v2012_v62 = vsel %vm1985_vm5, %v1964_v22, %v1966_v6  ;;  %v2013_v55 = vsel %vm1985_vm5, %v1966_v6, %v1968_v15  ;;  %v1990_v22 = vsel %vm1985_vm5, %v14821_v3, %v14837_v16  ;;  %v2003_v63 = vsel %vm1985_vm5, %v1944_v21, %v14890_v30  ;;  %v19868_v6 = vld [vmem:[#allocation4_spill] sm:$0xff] }
 0x19a   :  { %2863 = vrot.lane.b32.xlu1 %v14399_v24, %s13607_s10  ;;  %2861 = vrot.lane.b32.xlu0 %v19867_v5, %s13607_s10  ;;  %v2056_v19 = vsel %vm342_vm1, %v2012_v62, 0  ;;  %v1993_v24 = vsel %vm1985_vm5, %v14850_v29, %v14847_v59  ;;  %v1992_v3 = vsel %vm1985_vm5, %v14833_v61, %v14850_v29  ;;  %v2002_v16 = vsel %vm1985_vm5, %v1942_v60, %v1944_v21 }
 0x19b   :  { %12289 = vmatprep.subr.msk.bf16.mxu1 %vm342_vm1, %v2013_v55  ;;  %12288 = vmatmul.mubr.msk.bf16.vlgmr.msra.gmra.mrb[0].mxu0 %vm338_vm2, %v14937_v45  ;;  %v2005_v55 = vsel %vm1985_vm5, %v14888_v42, %v14903_v14  ;;  %v2004_v61 = vsel %vm1985_vm5, %v14890_v30, %v14888_v42  ;;  %v1994_v30 = vsel %vm1985_vm5, %v14847_v59, %v14858_v1 }
 0x19c   :  { %2133 = vmatpush1.bf16.msra.mxu1 %v2056_v19  ;;  %v1972_v54 = vpop.permute.xlu1 %1971  ;;  %2172 = vmatpush1.bf16.msra.mxu0 %v1990_v22  ;;  %v1970_v7 = vpop.permute.xlu0 %1969  ;;  %v1996_v59 = vsel %vm1985_vm5, %v14856_v20, %v14866_v56 }
 0x19d   :  { %2214 = vmatprep.subr.bf16.mxu1 %v1993_v24  ;;  %2173 = vmatprep.subr.bf16.mxu0 %v2003_v63  ;;  %v2015_v22 = vsel %vm1985_vm5, %v1970_v7, %v1972_v54  ;;  %v2007_v63 = vsel %vm1985_vm5, %v14901_v9, %v14911_v58 }
 0x19e   :  { %2867 = vrot.lane.b32.xlu1 %v14427_v48, %s13607_s10  ;;  %2865 = vrot.lane.b32.xlu0 %v19868_v6, %s13607_s10  ;;  %v2014_v48 = vsel %vm1985_vm5, %v1968_v15, %v1970_v7  ;;  %v1997_v7 = vsel %vm1985_vm5, %v14866_v56, %v14864_v17 }
 0x19f   :  { %12290 = vmatmul.mubr.msk.bf16.vlgmr.msra.gmra.mrb[0].mxu1 %vm338_vm2, %v14937_v45  ;;  %2203 = vmatprep.mubr.bf16.mxu0 %v19859_v46  ;;  %v2062_v21 = vsel %vm342_vm1, %v2014_v48, 0 }
 0x1a0   :  { %2215 = vmatpush1.bf16.msra.mxu1 %v1992_v3  ;;  %v1976_v62 = vpop.permute.xlu1 %1975  ;;  %2174 = vmatpush1.bf16.msra.mxu0 %v2002_v16  ;;  %v1974_v19 = vpop.permute.xlu0 %1973 }
 0x1a1   :  { %2216 = vmatprep.subr.bf16.mxu1 %v2005_v55  ;;  %12291 = vmatprep.subr.msk.bf16.mxu0 %vm342_vm1, %v2015_v22  ;;  %v2016_v29 = vsel %vm1985_vm5, %v1972_v54, %v1974_v19  ;;  %v2017_v15 = vsel %vm1985_vm5, %v1974_v19, %v1976_v62 }
 0x1a2   :  { %2871 = vrot.lane.b32.xlu1 %v14456_v26, %s13607_s10  ;;  %2869 = vrot.lane.b32.xlu0 %v14463_v2, %s13607_s10  ;;  %v1995_v26 = vsel %vm1985_vm5, %v14858_v1, %v14856_v20  ;;  %v2068_v42 = vsel %vm342_vm1, %v2016_v29, 0  ;;  %v2006_v1 = vsel %vm1985_vm5, %v14903_v14, %v14901_v9  ;;  %v2008_v20 = vsel %vm1985_vm5, %v14911_v58, %v14909_v51 }
 0x1a3   :  { %2246 = vmatprep.mubr.bf16.mxu1 %v19859_v46 }
 0x1a4   :  { %2217 = vmatpush1.bf16.msra.mxu1 %v2004_v61  ;;  %v1980_v60 = vpop.permute.xlu1 %1979  ;;  %2176 = vmatpush1.bf16.msra.mxu0 %v2062_v21  ;;  %v1978_v24 = vpop.permute.xlu0 %1977 }
 0x1a5   :  { %12293 = vmatprep.subr.msk.bf16.mxu1 %vm342_vm1, %v2017_v15  ;;  %2257 = vmatprep.subr.bf16.mxu0 %v1995_v26  ;;  %v2018_v3 = vsel %vm1985_vm5, %v1976_v62, %v1978_v24  ;;  %v2019_v55 = vsel %vm1985_vm5, %v1978_v24, %v1980_v60 }
 0x1a6   :  { %2875 = vrot.lane.b32.xlu1 %v14481_v52, %s13607_s10  ;;  %2873 = vrot.lane.b32.xlu0 %v14488_v10, %s13607_s10  ;;  %v2074_v9 = vsel %vm342_vm1, %v2018_v3, 0 }
 0x1a7   :  { %12292 = vmatmul.mubr.msk.bf16.vlgmr.msra.gmra.mrb[4].mxu0 %vm338_vm2, %v14937_v45 }
 0x1a8   :  { %2219 = vmatpush1.bf16.msra.mxu1 %v2068_v42  ;;  %v1984_v54 = vpop.permute.xlu1 %1983  ;;  %2258 = vmatpush1.bf16.msra.mxu0 %v1994_v30  ;;  %v1982_v52 = vpop.permute.xlu0 %1981 }
 0x1a9   :  { %2300 = vmatprep.subr.bf16.mxu1 %v1997_v7  ;;  %2259 = vmatprep.subr.bf16.mxu0 %v2007_v63  ;;  %v2020_v56 = vsel %vm1985_vm5, %v1980_v60, %v1982_v52 }
 0x1aa   :  { %2879 = vrot.lane.b32.xlu1 %v14507_v4, %s13607_s10  ;;  %2877 = vrot.lane.b32.xlu0 %v14514_v57, %s13607_s10  ;;  %v2009_v4 = vsel %vm1985_vm5, %v14909_v51, %v14917_v25  ;;  %v2021_v25 = vsel %vm1985_vm5, %v1982_v52, %v1984_v54  ;;  %v2080_v58 = vsel %vm342_vm1, %v2020_v56, 0  ;;  %v15133_v56 = vld [vmem:[%s19823_s1 + $0x8] ss:$60 sps:$4 sm:$0xff]   ;;  %vm8885_vm5 = vcmask 908288  }
 0x1ab   :  { %12294 = vmatmul.mubr.msk.bf16.vlgmr.msra.gmra.mrb[4].mxu1 %vm338_vm2, %v14937_v45  ;;  %2289 = vmatprep.mubr.bf16.mxu0 %v19859_v46 }
 0x1ac   :  { %2301 = vmatpush1.bf16.msra.mxu1 %v1996_v59  ;;  %v2378_v17 = vpop.permute.xlu1 %2377  ;;  %2260 = vmatpush1.bf16.msra.mxu0 %v2006_v1  ;;  %v2376_v16 = vpop.permute.xlu0 %2375 }
 0x1ad   :  { %2302 = vmatprep.subr.bf16.mxu1 %v2009_v4  ;;  %12295 = vmatprep.subr.msk.bf16.mxu0 %vm342_vm1, %v2019_v55  ;;  %v2454_v62 = vsel %vm2453_vm6, %v2376_v16, %v2378_v17 }
 0x1ae   :  { %2883 = vrot.lane.b32.xlu1 %v14536_v0, %s13607_s10  ;;  %2881 = vrot.lane.b32.xlu0 %v14543_v44, %s13607_s10 }
 0x1af   :  { %2332 = vmatprep.mubr.bf16.mxu1 %v19859_v46 }
 0x1b0   :  { %2303 = vmatpush1.bf16.msra.mxu1 %v2008_v20  ;;  %v2382_v14 = vpop.permute.xlu1 %2381  ;;  %2262 = vmatpush1.bf16.msra.mxu0 %v2074_v9  ;;  %v2380_v0 = vpop.permute.xlu0 %2379  ;;  %v15126_v20 = vld [vmem:[%s19823_s1 + $0xc] ss:$60 sps:$4 sm:$0xff]  }
 0x1b1   :  { %12297 = vmatprep.subr.msk.bf16.mxu1 %vm342_vm1, %v2021_v25  ;;  %v2455_v51 = vsel %vm2453_vm6, %v2378_v17, %v2380_v0  ;;  %v2456_v22 = vsel %vm2453_vm6, %v2380_v0, %v2382_v14 }
 0x1b2   :  { %2887 = vrot.lane.b32.xlu1 %v14558_v53, %s13607_s10  ;;  %2885 = vrot.lane.b32.xlu0 %v14566_v34, %s13607_s10 }
 0x1b3   :  { %2553 = vmatprep.subr.bf16.mxu0 %v2455_v51  ;;  %12296 = vmatmul.mubr.msk.bf16.vlgmr.msra.gmra.mrb[8].mxu0 %vm338_vm2, %v14937_v45 }
 0x1b4   :  { %2305 = vmatpush1.bf16.msra.mxu1 %v2080_v58  ;;  %v15045_v48 = vpop.permute.xlu1 %2385  ;;  %2554 = vmatpush1.bf16.msra.mxu0 %v2454_v62  ;;  %v15047_v19 = vpop.permute.xlu0 %2383 }
 0x1b5   :  { %2585 = vmatprep.mubr.bf16.mxu0 %v19859_v46  ;;  %v2457_v53 = vsel %vm2453_vm6, %v2382_v14, %v15047_v19  ;;  %v15144_v14 = vld [vmem:[%s19823_s1 + $0x14] ss:$60 sps:$4 sm:$0xff]  }
 0x1b6   :  { %2891 = vrot.lane.b32.xlu1 %v14582_v18, %s13607_s10  ;;  %2889 = vrot.lane.b32.xlu0 %v14591_v13, %s13607_s10 }
 0x1b7   :  { %2596 = vmatprep.subr.bf16.mxu1 %v2457_v53  ;;  %12298 = vmatmul.mubr.msk.bf16.vlgmr.msra.gmra.mrb[8].mxu1 %vm338_vm2, %v14937_v45 }
 0x1b8   :  { %v15059_v61 = vpop.permute.xlu1 %2389  ;;  %2597 = vmatpush1.bf16.msra.mxu1 %v2456_v22  ;;  %v15061_v29 = vpop.permute.xlu0 %2387  ;;  %2628 = vmatprep.mubr.bf16.mxu1 %v19859_v46 }
 0x1ba   :  { %2895 = vrot.lane.b32.xlu1 %v13833_v28, %s13607_s10  ;;  %2893 = vrot.lane.b32.xlu0 %v14608_v50, %s13607_s10 }
 0x1bc   :  { %v15068_v18 = vpop.permute.xlu1 %2393  ;;  %v15070_v21 = vpop.permute.xlu0 %2391 }
 0x1be   :  { %2899 = vrot.lane.b32.xlu1 %v13851_v33, %s13607_s10  ;;  %2897 = vrot.lane.b32.xlu0 %v13829_v27, %s13607_s10 }
 0x1c0   :  { %v15076_v45 = vpop.permute.xlu1 %2397  ;;  %v15078_v60 = vpop.permute.xlu0 %2395 }
 0x1c2   :  { %2903 = vrot.lane.b32.xlu1 %v13862_v36, %s13607_s10  ;;  %2901 = vrot.lane.b32.xlu0 %v13847_v32, %s13607_s10 }
 0x1c4   :  { %v2402_v15 = vpop.permute.xlu1 %2401  ;;  %v15084_v24 = vpop.permute.xlu0 %2399 }
 0x1c6   :  { %2907 = vrot.lane.b32.xlu1 %v13873_v39, %s13607_s10  ;;  %2905 = vrot.lane.b32.xlu0 %v13858_v35, %s13607_s10 }
 0x1c8   :  { %v2406_v26 = vpop.permute.xlu1 %2405  ;;  %v2404_v42 = vpop.permute.xlu0 %2403 }
 0x1c9   :  { %v2467_v30 = vsel %vm2453_vm6, %v2404_v42, %v2406_v26  ;;  %v2466_v54 = vsel %vm2453_vm6, %v2402_v15, %v2404_v42 }
 0x1ca   :  { %2911 = vrot.lane.b32.xlu1 %v13881_v41, %s13607_s10  ;;  %2909 = vrot.lane.b32.xlu0 %v13869_v38, %s13607_s10 }
 0x1cb   :  { %2555 = vmatprep.subr.bf16.mxu0 %v2467_v30 }
 0x1cc   :  { %2556 = vmatpush1.bf16.msra.mxu0 %v2466_v54  ;;  %v15096_v7 = vpop.permute.xlu1 %2409  ;;  %v2408_v52 = vpop.permute.xlu0 %2407  ;;  %v15177_v54 = vld [vmem:[%s19823_s1 + $0x28] ss:$60 sps:$4 sm:$0xff]  }
 0x1cd   :  { %v2469_v63 = vsel %vm2453_vm6, %v2408_v52, %v15096_v7  ;;  %v2468_v59 = vsel %vm2453_vm6, %v2406_v26, %v2408_v52  ;;  %v2459_v26 = vsel %vm2453_vm6, %v15045_v48, %v15061_v29 }
 0x1ce   :  { %2915 = vrot.lane.b32.xlu1 %v19861_v8, %s13607_s10  ;;  %2913 = vrot.lane.b32.xlu0 %v13877_v40, %s13607_s10 }
 0x1cf   :  { %2598 = vmatprep.subr.bf16.mxu1 %v2469_v63 }
 0x1d0   :  { %2599 = vmatpush1.bf16.msra.mxu1 %v2468_v59  ;;  %v15105_v1 = vpop.permute.xlu1 %2413  ;;  %v2412_v17 = vpop.permute.xlu0 %2411  ;;  %v2461_v59 = vsel %vm2453_vm6, %v15059_v61, %v15070_v21 }
 0x1d2   :  { %2919 = vrot.lane.b32.xlu1 %v14897_v31, %s13607_s10  ;;  %2917 = vrot.lane.b32.xlu0 %v19860_v49, %s13607_s10  ;;  %s13622_s10 = smov 23  }
 0x1d4   :  { %v15111_v4 = vpop.permute.xlu1 %2417  ;;  %v15113_v3 = vpop.permute.xlu0 %2415 }
 0x1d6   :  { %3313 = vrot.lane.b32.xlu1 %v14662_v43, %s13608_s15  ;;  %3311 = vrot.lane.b32.xlu0 %v14669_v23, %s13608_s15 }
 0x1d8   :  { %v15119_v16 = vpop.permute.xlu1 %2421  ;;  %v15121_v55 = vpop.permute.xlu0 %2419 }
 0x1da   :  { %3317 = vrot.lane.b32.xlu1 %v15126_v20, %s13608_s15  ;;  %3315 = vrot.lane.b32.xlu0 %v15133_v56, %s13608_s15 }
 0x1dc   :  { %v15137_v43 = vpop.permute.xlu1 %2425  ;;  %v15139_v9 = vpop.permute.xlu0 %2423 }
 0x1de   :  { %3321 = vrot.lane.b32.xlu1 %v15144_v14, %s13608_s15  ;;  %3319 = vrot.lane.b32.xlu0 %v14690_v37, %s13608_s15 }
 0x1e0   :  { %v2430_v25 = vpop.permute.xlu1 %2429  ;;  %v2428_v0 = vpop.permute.xlu0 %2427 }
 0x1e1   :  { %v2478_v51 = vsel %vm2453_vm6, %v2428_v0, %v2430_v25  ;;  %v2471_v0 = vsel %vm2453_vm6, %v2412_v17, %v15105_v1 }
 0x1e2   :  { %3325 = vrot.lane.b32.xlu1 %v19866_v47, %s13608_s15  ;;  %3323 = vrot.lane.b32.xlu0 %v14699_v12, %s13608_s15  ;;  %v2518_v22 = vsel %vm342_vm1, %v2478_v51, 0  ;;  %v15198_v51 = vld [vmem:[%s19823_s1 + $0x30] ss:$60 sps:$4 sm:$0xff]  }
 0x1e4   :  { %v2434_v58 = vpop.permute.xlu1 %2433  ;;  %v2432_v62 = vpop.permute.xlu0 %2431 }
 0x1e5   :  { %v2479_v53 = vsel %vm2453_vm6, %v2430_v25, %v2432_v62  ;;  %v2480_v47 = vsel %vm2453_vm6, %v2432_v62, %v2434_v58 }
 0x1e6   :  { %3329 = vrot.lane.b32.xlu1 %v19867_v5, %s13608_s15  ;;  %3327 = vrot.lane.b32.xlu0 %v14711_v11, %s13608_s15  ;;  %v15169_v5 = vld [vmem:[%s19824_s0 + $0x28] sm:$0x1f]   ;;  %v2524_v52 = vsel %vm342_vm1, %v2480_v47, 0 }
 0x1e7   :  { %12302 = vmatprep.subr.msk.bf16.mxu0 %vm342_vm1, %v2479_v53 }
 0x1e8   :  { %2558 = vmatpush1.bf16.msra.mxu0 %v2518_v22  ;;  %v2438_v15 = vpop.permute.xlu1 %2437  ;;  %v2436_v42 = vpop.permute.xlu0 %2435 }
 0x1e9   :  { %2639 = vmatprep.subr.bf16.mxu0 %v2459_v26  ;;  %v2481_v30 = vsel %vm2453_vm6, %v2434_v58, %v2436_v42  ;;  %v2473_v58 = vsel %vm2453_vm6, %v15113_v3, %v15111_v4  ;;  %v2482_v62 = vsel %vm2453_vm6, %v2436_v42, %v2438_v15  ;;  %v2463_v26 = vsel %vm2453_vm6, %v15068_v18, %v15078_v60 }
 0x1ea   :  { %3333 = vrot.lane.b32.xlu1 %v19868_v6, %s13608_s15  ;;  %3331 = vrot.lane.b32.xlu0 %v15177_v54, %s13608_s15  ;;  %v2458_v6 = vsel %vm2453_vm6, %v15047_v19, %v15045_v48  ;;  %v2460_v48 = vsel %vm2453_vm6, %v15061_v29, %v15059_v61  ;;  %v2470_v19 = vsel %vm2453_vm6, %v15096_v7, %v2412_v17  ;;  %v15221_v61 = vld [vmem:[%s19823_s1 + $0x7c] ss:$60 sps:$4 sm:$0xff]   ;;  %v2530_v17 = vsel %vm342_vm1, %v2482_v62, 0 }
 0x1eb   :  { %12304 = vmatprep.subr.msk.bf16.mxu1 %vm342_vm1, %v2481_v30  ;;  %12303 = vmatmul.mubr.msk.bf16.vlgmr.msra.gmra.mrb[0].mxu0 %vm338_vm2, %v15169_v5  ;;  %v2472_v29 = vsel %vm2453_vm6, %v15105_v1, %v15113_v3  ;;  %v15241_v1 = vld [vmem:[%s19823_s1 + $0x84] ss:$60 sps:$4 sm:$0xff]   ;;  %v2462_v42 = vsel %vm2453_vm6, %v15070_v21, %v15068_v18  ;;  %v15262_v18 = vld [vmem:[%s19823_s1 + $0x8c] ss:$60 sps:$4 sm:$0xff]   ;;  %v2464_v21 = vsel %vm2453_vm6, %v15078_v60, %v15076_v45 }
 0x1ec   :  { %2601 = vmatpush1.bf16.msra.mxu1 %v2524_v52  ;;  %v2442_v63 = vpop.permute.xlu1 %2441  ;;  %2640 = vmatpush1.bf16.msra.mxu0 %v2458_v6  ;;  %v2440_v25 = vpop.permute.xlu0 %2439  ;;  %v2475_v6 = vsel %vm2453_vm6, %v15121_v55, %v15119_v16  ;;  %v2476_v60 = vsel %vm2453_vm6, %v15119_v16, %v15139_v9  ;;  %v15306_v16 = vld [vmem:[%s19823_s1 + $0x9c] ss:$60 sps:$4 sm:$0xff]  }
 0x1ed   :  { %2682 = vmatprep.subr.bf16.mxu1 %v2461_v59  ;;  %2641 = vmatprep.subr.bf16.mxu0 %v2471_v0  ;;  %v2483_v22 = vsel %vm2453_vm6, %v2438_v15, %v2440_v25  ;;  %v2484_v7 = vsel %vm2453_vm6, %v2440_v25, %v2442_v63 }
 0x1ee   :  { %3337 = vrot.lane.b32.xlu1 %v14463_v2, %s13608_s15  ;;  %3335 = vrot.lane.b32.xlu0 %v15198_v51, %s13608_s15  ;;  %v2536_v3 = vsel %vm342_vm1, %v2484_v7, 0 }
 0x1ef   :  { %12305 = vmatmul.mubr.msk.bf16.vlgmr.msra.gmra.mrb[0].mxu1 %vm338_vm2, %v15169_v5  ;;  %2671 = vmatprep.mubr.bf16.mxu0 %v19859_v46 }
 0x1f0   :  { %2683 = vmatpush1.bf16.msra.mxu1 %v2460_v48  ;;  %v2446_v2 = vpop.permute.xlu1 %2445  ;;  %2642 = vmatpush1.bf16.msra.mxu0 %v2470_v19  ;;  %v2444_v53 = vpop.permute.xlu0 %2443 }
 0x1f1   :  { %2684 = vmatprep.subr.bf16.mxu1 %v2473_v58  ;;  %12306 = vmatprep.subr.msk.bf16.mxu0 %vm342_vm1, %v2483_v22  ;;  %v2485_v47 = vsel %vm2453_vm6, %v2442_v63, %v2444_v53  ;;  %v2477_v63 = vsel %vm2453_vm6, %v15139_v9, %v15137_v43  ;;  %v2486_v59 = vsel %vm2453_vm6, %v2444_v53, %v2446_v2  ;;  %v15326_v53 = vld [vmem:[%s19823_s1 + $0xa4] ss:$60 sps:$4 sm:$0xff]  }
 0x1f2   :  { %3341 = vrot.lane.b32.xlu1 %v14488_v10, %s13608_s15  ;;  %3339 = vrot.lane.b32.xlu0 %v15221_v61, %s13608_s15 }
 0x1f3   :  { %2714 = vmatprep.mubr.bf16.mxu1 %v19859_v46 }
 0x1f4   :  { %2685 = vmatpush1.bf16.msra.mxu1 %v2472_v29  ;;  %v2450_v10 = vpop.permute.xlu1 %2449  ;;  %2644 = vmatpush1.bf16.msra.mxu0 %v2530_v17  ;;  %v2448_v15 = vpop.permute.xlu0 %2447 }
 0x1f5   :  { %12308 = vmatprep.subr.msk.bf16.mxu1 %vm342_vm1, %v2485_v47  ;;  %2725 = vmatprep.subr.bf16.mxu0 %v2463_v26  ;;  %v2487_v0 = vsel %vm2453_vm6, %v2446_v2, %v2448_v15 }
 0x1f6   :  { %3345 = vrot.lane.b32.xlu1 %v14514_v57, %s13608_s15  ;;  %3343 = vrot.lane.b32.xlu0 %v15241_v1, %s13608_s15  ;;  %v2465_v57 = vsel %vm2453_vm6, %v15076_v45, %v15084_v24  ;;  %v2474_v24 = vsel %vm2453_vm6, %v15111_v4, %v15121_v55  ;;  %v15286_v45 = vld [vmem:[%s19823_s1 + $0x94] ss:$60 sps:$4 sm:$0xff]   ;;  %v2488_v4 = vsel %vm2453_vm6, %v2448_v15, %v2450_v10 }
 0x1f7   :  { %12307 = vmatmul.mubr.msk.bf16.vlgmr.msra.gmra.mrb[4].mxu0 %vm338_vm2, %v15169_v5  ;;  %v2548_v9 = vsel %vm342_vm1, %v2488_v4, 0 }
 0x1f8   :  { %2687 = vmatpush1.bf16.msra.mxu1 %v2536_v3  ;;  %v2844_v30 = vpop.permute.xlu1 %2843  ;;  %2726 = vmatpush1.bf16.msra.mxu0 %v2462_v42  ;;  %v2452_v52 = vpop.permute.xlu0 %2451 }
 0x1f9   :  { %2768 = vmatprep.subr.bf16.mxu1 %v2465_v57  ;;  %2727 = vmatprep.subr.bf16.mxu0 %v2475_v6  ;;  %v2489_v55 = vsel %vm2453_vm6, %v2450_v10, %v2452_v52  ;;  %vm9353_vm6 = vcmask 900096  }
 0x1fa   :  { %3349 = vrot.lane.b32.xlu1 %v14543_v44, %s13608_s15  ;;  %3347 = vrot.lane.b32.xlu0 %v15262_v18, %s13608_s15 }
 0x1fb   :  { %12309 = vmatmul.mubr.msk.bf16.vlgmr.msra.gmra.mrb[4].mxu1 %vm338_vm2, %v15169_v5  ;;  %2757 = vmatprep.mubr.bf16.mxu0 %v19859_v46 }
 0x1fc   :  { %2769 = vmatpush1.bf16.msra.mxu1 %v2464_v21  ;;  %v2848_v44 = vpop.permute.xlu1 %2847  ;;  %2728 = vmatpush1.bf16.msra.mxu0 %v2474_v24  ;;  %v2846_v25 = vpop.permute.xlu0 %2845 }
 0x1fd   :  { %2770 = vmatprep.subr.bf16.mxu1 %v2477_v63  ;;  %12310 = vmatprep.subr.msk.bf16.mxu0 %vm342_vm1, %v2487_v0  ;;  %v2923_v19 = vsel %vm2921_vm7, %v2846_v25, %v2848_v44  ;;  %v2922_v2 = vsel %vm2921_vm7, %v2844_v30, %v2846_v25  ;;  %v15396_v25 = vld [vmem:[%s19823_s1 + $0x4] ss:$60 sps:$4 sm:$0xff]  }
 0x1fe   :  { %3353 = vrot.lane.b32.xlu1 %v14566_v34, %s13608_s15  ;;  %3351 = vrot.lane.b32.xlu0 %v15286_v45, %s13608_s15  ;;  %v2542_v34 = vsel %vm342_vm1, %v2486_v59, 0 }
 0x1ff   :  { %2800 = vmatprep.mubr.bf16.mxu1 %v19859_v46 }
 0x200   :  { %2771 = vmatpush1.bf16.msra.mxu1 %v2476_v60  ;;  %v15297_v43 = vpop.permute.xlu1 %2851  ;;  %2730 = vmatpush1.bf16.msra.mxu0 %v2542_v34  ;;  %v2850_v48 = vpop.permute.xlu0 %2849 }
 0x201   :  { %12312 = vmatprep.subr.msk.bf16.mxu1 %vm342_vm1, %v2489_v55  ;;  %3021 = vmatprep.subr.bf16.mxu0 %v2923_v19  ;;  %v2924_v22 = vsel %vm2921_vm7, %v2848_v44, %v2850_v48  ;;  %v15421_v19 = vld [vmem:[%s19823_s1 + $0x1c] ss:$60 sps:$4 sm:$0xff]  }
 0x202   :  { %3357 = vrot.lane.b32.xlu1 %v14591_v13, %s13608_s15  ;;  %3355 = vrot.lane.b32.xlu0 %v15306_v16, %s13608_s15  ;;  %v2925_v13 = vsel %vm2921_vm7, %v2850_v48, %v15297_v43 }
 0x203   :  { %12311 = vmatmul.mubr.msk.bf16.vlgmr.msra.gmra.mrb[8].mxu0 %vm338_vm2, %v15169_v5 }
 0x204   :  { %2773 = vmatpush1.bf16.msra.mxu1 %v2548_v9  ;;  %v15314_v58 = vpop.permute.xlu1 %2855  ;;  %3022 = vmatpush1.bf16.msra.mxu0 %v2922_v2  ;;  %v15318_v62 = vpop.permute.xlu0 %2853  ;;  %v15433_v2 = vld [vmem:[%s19824_s0 + $0x30] sm:$0x1f]  }
 0x205   :  { %3064 = vmatprep.subr.bf16.mxu1 %v2925_v13  ;;  %3053 = vmatprep.mubr.bf16.mxu0 %v19859_v46 }
 0x206   :  { %3361 = vrot.lane.b32.xlu1 %v14608_v50, %s13608_s15  ;;  %3359 = vrot.lane.b32.xlu0 %v15326_v53, %s13608_s15 }
 0x207   :  { %12313 = vmatmul.mubr.msk.bf16.vlgmr.msra.gmra.mrb[8].mxu1 %vm338_vm2, %v15169_v5 }
 0x208   :  { %3065 = vmatpush1.bf16.msra.mxu1 %v2924_v22  ;;  %v15333_v29 = vpop.permute.xlu1 %2859  ;;  %3096 = vmatprep.mubr.bf16.mxu1 %v19859_v46  ;;  %v15336_v50 = vpop.permute.xlu0 %2857 }
 0x20a   :  { %3365 = vrot.lane.b32.xlu1 %v13829_v27, %s13608_s15  ;;  %3363 = vrot.lane.b32.xlu0 %v13833_v28, %s13608_s15 }
 0x20c   :  { %v15342_v7 = vpop.permute.xlu1 %2863  ;;  %v15344_v17 = vpop.permute.xlu0 %2861 }
 0x20e   :  { %3369 = vrot.lane.b32.xlu1 %v13847_v32, %s13608_s15  ;;  %3367 = vrot.lane.b32.xlu0 %v13851_v33, %s13608_s15 }
 0x210   :  { %v15350_v5 = vpop.permute.xlu1 %2867  ;;  %v15352_v10 = vpop.permute.xlu0 %2865 }
 0x212   :  { %3373 = vrot.lane.b32.xlu1 %v13858_v35, %s13608_s15  ;;  %3371 = vrot.lane.b32.xlu0 %v13862_v36, %s13608_s15 }
 0x214   :  { %v2872_v47 = vpop.permute.xlu1 %2871  ;;  %v2870_v15 = vpop.permute.xlu0 %2869 }
 0x215   :  { %v2934_v30 = vsel %vm2921_vm7, %v2870_v15, %v2872_v47  ;;  %v15442_v15 = vld [vmem:[%s19823_s1 + $0x24] ss:$60 sps:$4 sm:$0xff]  }
 0x216   :  { %3377 = vrot.lane.b32.xlu1 %v13869_v38, %s13608_s15  ;;  %3375 = vrot.lane.b32.xlu0 %v13873_v39, %s13608_s15 }
 0x218   :  { %v2876_v26 = vpop.permute.xlu1 %2875  ;;  %v2874_v3 = vpop.permute.xlu0 %2873 }
 0x219   :  { %v2935_v42 = vsel %vm2921_vm7, %v2872_v47, %v2874_v3  ;;  %v2936_v21 = vsel %vm2921_vm7, %v2874_v3, %v2876_v26  ;;  %v2926_v3 = vsel %vm2921_vm7, %v15297_v43, %v15318_v62  ;;  %v15464_v43 = vld [vmem:[%s19823_s1 + $0x2c] ss:$60 sps:$4 sm:$0xff]  }
 0x21a   :  { %3381 = vrot.lane.b32.xlu1 %v13877_v40, %s13608_s15  ;;  %3379 = vrot.lane.b32.xlu0 %v13881_v41, %s13608_s15 }
 0x21b   :  { %3023 = vmatprep.subr.bf16.mxu0 %v2935_v42 }
 0x21c   :  { %3024 = vmatpush1.bf16.msra.mxu0 %v2934_v30  ;;  %v15368_v57 = vpop.permute.xlu1 %2879  ;;  %v15370_v52 = vpop.permute.xlu0 %2877  ;;  %v2929_v30 = vsel %vm2921_vm7, %v15336_v50, %v15333_v29 }
 0x21d   :  { %v2937_v6 = vsel %vm2921_vm7, %v2876_v26, %v15370_v52 }
 0x21e   :  { %3385 = vrot.lane.b32.xlu1 %v19860_v49, %s13608_s15  ;;  %3383 = vrot.lane.b32.xlu0 %v19861_v8, %s13608_s15 }
 0x21f   :  { %3066 = vmatprep.subr.bf16.mxu1 %v2937_v6 }
 0x220   :  { %3067 = vmatpush1.bf16.msra.mxu1 %v2936_v21  ;;  %v15379_v24 = vpop.permute.xlu1 %2883  ;;  %v15381_v44 = vpop.permute.xlu0 %2881 }
 0x221   :  { %v2939_v21 = vsel %vm2921_vm7, %v15368_v57, %v15381_v44 }
 0x222   :  { %3779 = vrot.lane.b32.xlu1 %v14669_v23, %s13609_s13  ;;  %3387 = vrot.lane.b32.xlu0 %v14897_v31, %s13608_s15  ;;  %s13613_s15 = smov 74  }
 0x224   :  { %v15387_v63 = vpop.permute.xlu1 %2887  ;;  %v15389_v59 = vpop.permute.xlu0 %2885 }
 0x226   :  { %3783 = vrot.lane.b32.xlu1 %v15133_v56, %s13609_s13  ;;  %3781 = vrot.lane.b32.xlu0 %v15396_v25, %s13609_s13 }
 0x228   :  { %v15400_v0 = vpop.permute.xlu1 %2891  ;;  %v15402_v23 = vpop.permute.xlu0 %2889 }
 0x22a   :  { %3787 = vrot.lane.b32.xlu1 %v14690_v37, %s13609_s13  ;;  %3785 = vrot.lane.b32.xlu0 %v15126_v20, %s13609_s13 }
 0x22c   :  { %v2896_v60 = vpop.permute.xlu1 %2895  ;;  %v15408_v4 = vpop.permute.xlu0 %2893 }
 0x22e   :  { %3791 = vrot.lane.b32.xlu1 %v14699_v12, %s13609_s13  ;;  %3789 = vrot.lane.b32.xlu0 %v15144_v14, %s13609_s13 }
 0x230   :  { %v2900_v55 = vpop.permute.xlu1 %2899  ;;  %v2898_v34 = vpop.permute.xlu0 %2897 }
 0x231   :  { %v2946_v48 = vsel %vm2921_vm7, %v2896_v60, %v2898_v34  ;;  %v2947_v37 = vsel %vm2921_vm7, %v2898_v34, %v2900_v55  ;;  %v2938_v60 = vsel %vm2921_vm7, %v15370_v52, %v15368_v57  ;;  %v2941_v34 = vsel %vm2921_vm7, %v15379_v24, %v15389_v59 }
 0x232   :  { %3795 = vrot.lane.b32.xlu1 %v14711_v11, %s13609_s13  ;;  %3793 = vrot.lane.b32.xlu0 %v15421_v19, %s13609_s13  ;;  %v2986_v12 = vsel %vm342_vm1, %v2946_v48, 0  ;;  %v2927_v11 = vsel %vm2921_vm7, %v15318_v62, %v15314_v58  ;;  %v2928_v62 = vsel %vm2921_vm7, %v15314_v58, %v15336_v50  ;;  %v15488_v58 = vld [vmem:[%s19823_s1 + $0x78] ss:$60 sps:$4 sm:$0xff]   ;;  %v2940_v50 = vsel %vm2921_vm7, %v15381_v44, %v15379_v24  ;;  %v15508_v24 = vld [vmem:[%s19823_s1 + $0x80] ss:$60 sps:$4 sm:$0xff]  }
 0x233   :  { %12317 = vmatprep.subr.msk.bf16.mxu0 %vm342_vm1, %v2947_v37 }
 0x234   :  { %3026 = vmatpush1.bf16.msra.mxu0 %v2986_v12  ;;  %v2904_v9 = vpop.permute.xlu1 %2903  ;;  %v2902_v13 = vpop.permute.xlu0 %2901 }
 0x235   :  { %3107 = vmatprep.subr.bf16.mxu0 %v2927_v11  ;;  %v2948_v22 = vsel %vm2921_vm7, %v2900_v55, %v2902_v13  ;;  %v2949_v47 = vsel %vm2921_vm7, %v2902_v13, %v2904_v9 }
 0x236   :  { %3799 = vrot.lane.b32.xlu1 %v15177_v54, %s13609_s13  ;;  %3797 = vrot.lane.b32.xlu0 %v15442_v15, %s13609_s13  ;;  %v2992_v26 = vsel %vm342_vm1, %v2948_v22, 0  ;;  %v2931_v22 = vsel %vm2921_vm7, %v15344_v17, %v15342_v7 }
 0x237   :  { %12319 = vmatprep.subr.msk.bf16.mxu1 %vm342_vm1, %v2949_v47  ;;  %12318 = vmatmul.mubr.msk.bf16.vlgmr.msra.gmra.mrb[0].mxu0 %vm338_vm2, %v15433_v2  ;;  %v2930_v47 = vsel %vm2921_vm7, %v15333_v29, %v15344_v17  ;;  %v15529_v29 = vld [vmem:[%s19823_s1 + $0x88] ss:$60 sps:$4 sm:$0xff]   ;;  %v2932_v17 = vsel %vm2921_vm7, %v15342_v7, %v15352_v10  ;;  %v15553_v7 = vld [vmem:[%s19823_s1 + $0x90] ss:$60 sps:$4 sm:$0xff]  }
 0x238   :  { %3069 = vmatpush1.bf16.msra.mxu1 %v2992_v26  ;;  %v2908_v42 = vpop.permute.xlu1 %2907  ;;  %3108 = vmatpush1.bf16.msra.mxu0 %v2926_v3  ;;  %v2906_v6 = vpop.permute.xlu0 %2905  ;;  %v2933_v3 = vsel %vm2921_vm7, %v15352_v10, %v15350_v5  ;;  %v2942_v5 = vsel %vm2921_vm7, %v15389_v59, %v15387_v63  ;;  %v2944_v10 = vsel %vm2921_vm7, %v15402_v23, %v15400_v0 }
 0x239   :  { %3150 = vmatprep.subr.bf16.mxu1 %v2929_v30  ;;  %3109 = vmatprep.subr.bf16.mxu0 %v2939_v21  ;;  %v2950_v48 = vsel %vm2921_vm7, %v2904_v9, %v2906_v6  ;;  %v2951_v12 = vsel %vm2921_vm7, %v2906_v6, %v2908_v42  ;;  %v2943_v30 = vsel %vm2921_vm7, %v15387_v63, %v15402_v23  ;;  %v15571_v23 = vld [vmem:[%s19823_s1 + $0x98] ss:$60 sps:$4 sm:$0xff]  }
 0x23a   :  { %3803 = vrot.lane.b32.xlu1 %v15198_v51, %s13609_s13  ;;  %3801 = vrot.lane.b32.xlu0 %v15464_v43, %s13609_s13  ;;  %v2998_v52 = vsel %vm342_vm1, %v2950_v48, 0  ;;  %v2945_v21 = vsel %vm2921_vm7, %v15400_v0, %v15408_v4 }
 0x23b   :  { %12320 = vmatmul.mubr.msk.bf16.vlgmr.msra.gmra.mrb[0].mxu1 %vm338_vm2, %v15433_v2  ;;  %3139 = vmatprep.mubr.bf16.mxu0 %v19859_v46 }
 0x23c   :  { %3151 = vmatpush1.bf16.msra.mxu1 %v2928_v62  ;;  %v2912_v55 = vpop.permute.xlu1 %2911  ;;  %3110 = vmatpush1.bf16.msra.mxu0 %v2938_v60  ;;  %v2910_v37 = vpop.permute.xlu0 %2909 }
 0x23d   :  { %3152 = vmatprep.subr.bf16.mxu1 %v2941_v34  ;;  %12321 = vmatprep.subr.msk.bf16.mxu0 %vm342_vm1, %v2951_v12  ;;  %v2952_v57 = vsel %vm2921_vm7, %v2908_v42, %v2910_v37  ;;  %v2953_v11 = vsel %vm2921_vm7, %v2910_v37, %v2912_v55 }
 0x23e   :  { %3807 = vrot.lane.b32.xlu1 %v15221_v61, %s13609_s13  ;;  %3805 = vrot.lane.b32.xlu0 %v15488_v58, %s13609_s13  ;;  %v3004_v44 = vsel %vm342_vm1, %v2952_v57, 0 }
 0x23f   :  { %3182 = vmatprep.mubr.bf16.mxu1 %v19859_v46 }
 0x240   :  { %3153 = vmatpush1.bf16.msra.mxu1 %v2940_v50  ;;  %v2916_v9 = vpop.permute.xlu1 %2915  ;;  %3112 = vmatpush1.bf16.msra.mxu0 %v2998_v52  ;;  %v2914_v13 = vpop.permute.xlu0 %2913 }
 0x241   :  { %12323 = vmatprep.subr.msk.bf16.mxu1 %vm342_vm1, %v2953_v11  ;;  %3193 = vmatprep.subr.bf16.mxu0 %v2931_v22  ;;  %v2954_v62 = vsel %vm2921_vm7, %v2912_v55, %v2914_v13  ;;  %v2955_v34 = vsel %vm2921_vm7, %v2914_v13, %v2916_v9 }
 0x242   :  { %3811 = vrot.lane.b32.xlu1 %v15241_v1, %s13609_s13  ;;  %3809 = vrot.lane.b32.xlu0 %v15508_v24, %s13609_s13  ;;  %v3010_v59 = vsel %vm342_vm1, %v2954_v62, 0 }
 0x243   :  { %12322 = vmatmul.mubr.msk.bf16.vlgmr.msra.gmra.mrb[4].mxu0 %vm338_vm2, %v15433_v2 }
 0x244   :  { %3155 = vmatpush1.bf16.msra.mxu1 %v3004_v44  ;;  %v2920_v26 = vpop.permute.xlu1 %2919  ;;  %3194 = vmatpush1.bf16.msra.mxu0 %v2930_v47  ;;  %v2918_v42 = vpop.permute.xlu0 %2917  ;;  %v15608_v44 = vld [vmem:[%s19823_s1 + $0xa8] ss:$60 sps:$4 sm:$0xff]  }
 0x245   :  { %3236 = vmatprep.subr.bf16.mxu1 %v2933_v3  ;;  %3195 = vmatprep.subr.bf16.mxu0 %v2943_v30  ;;  %v2956_v63 = vsel %vm2921_vm7, %v2916_v9, %v2918_v42  ;;  %v2957_v55 = vsel %vm2921_vm7, %v2918_v42, %v2920_v26  ;;  %v15591_v9 = vld [vmem:[%s19823_s1 + $0xa0] ss:$60 sps:$4 sm:$0xff]   ;;  %vm9821_vm7 = vcmask 195584  }
 0x246   :  { %3815 = vrot.lane.b32.xlu1 %v15262_v18, %s13609_s13  ;;  %3813 = vrot.lane.b32.xlu0 %v15529_v29, %s13609_s13  ;;  %v3016_v37 = vsel %vm342_vm1, %v2956_v63, 0 }
 0x247   :  { %12324 = vmatmul.mubr.msk.bf16.vlgmr.msra.gmra.mrb[4].mxu1 %vm338_vm2, %v15433_v2  ;;  %3225 = vmatprep.mubr.bf16.mxu0 %v19859_v46 }
 0x248   :  { %3237 = vmatpush1.bf16.msra.mxu1 %v2932_v17  ;;  %v3314_v6 = vpop.permute.xlu1 %3313  ;;  %3196 = vmatpush1.bf16.msra.mxu0 %v2942_v5  ;;  %v3312_v60 = vpop.permute.xlu0 %3311 }
 0x249   :  { %3238 = vmatprep.subr.bf16.mxu1 %v2945_v21  ;;  %12325 = vmatprep.subr.msk.bf16.mxu0 %vm342_vm1, %v2955_v34  ;;  %v3390_v12 = vsel %vm3389_vm8, %v3312_v60, %v3314_v6 }
 0x24a   :  { %3819 = vrot.lane.b32.xlu1 %v15286_v45, %s13609_s13  ;;  %3817 = vrot.lane.b32.xlu0 %v15553_v7, %s13609_s13 }
 0x24b   :  { %3268 = vmatprep.mubr.bf16.mxu1 %v19859_v46 }
 0x24c   :  { %3239 = vmatpush1.bf16.msra.mxu1 %v2944_v10  ;;  %v3318_v4 = vpop.permute.xlu1 %3317  ;;  %3198 = vmatpush1.bf16.msra.mxu0 %v3010_v59  ;;  %v3316_v48 = vpop.permute.xlu0 %3315 }
 0x24d   :  { %12327 = vmatprep.subr.msk.bf16.mxu1 %vm342_vm1, %v2957_v55  ;;  %v3391_v0 = vsel %vm3389_vm8, %v3314_v6, %v3316_v48  ;;  %v3392_v11 = vsel %vm3389_vm8, %v3316_v48, %v3318_v4  ;;  %v13507_v48 = vld [vmem:[%s19823_s1] ss:$60 sps:$4 sm:$0xff]  }
 0x24e   :  { %3823 = vrot.lane.b32.xlu1 %v15306_v16, %s13609_s13  ;;  %3821 = vrot.lane.b32.xlu0 %v15571_v23, %s13609_s13 }
 0x24f   :  { %3489 = vmatprep.subr.bf16.mxu0 %v3391_v0  ;;  %12326 = vmatmul.mubr.msk.bf16.vlgmr.msra.gmra.mrb[8].mxu0 %vm338_vm2, %v15433_v2 }
 0x250   :  { %3241 = vmatpush1.bf16.msra.mxu1 %v3016_v37  ;;  %v15579_v50 = vpop.permute.xlu1 %3321  ;;  %3490 = vmatpush1.bf16.msra.mxu0 %v3390_v12  ;;  %v15581_v57 = vpop.permute.xlu0 %3319 }
 0x251   :  { %3521 = vmatprep.mubr.bf16.mxu0 %v19859_v46  ;;  %v3393_v52 = vsel %vm3389_vm8, %v3318_v4, %v15581_v57 }
 0x252   :  { %3827 = vrot.lane.b32.xlu1 %v15326_v53, %s13609_s13  ;;  %3825 = vrot.lane.b32.xlu0 %v15591_v9, %s13609_s13 }
 0x253   :  { %3532 = vmatprep.subr.bf16.mxu1 %v3393_v52  ;;  %12328 = vmatmul.mubr.msk.bf16.vlgmr.msra.gmra.mrb[8].mxu1 %vm338_vm2, %v15433_v2 }
 0x254   :  { %v15598_v13 = vpop.permute.xlu1 %3325  ;;  %3533 = vmatpush1.bf16.msra.mxu1 %v3392_v11  ;;  %v15600_v22 = vpop.permute.xlu0 %3323  ;;  %3564 = vmatprep.mubr.bf16.mxu1 %v19859_v46 }
 0x256   :  { %3831 = vrot.lane.b32.xlu1 %v13833_v28, %s13609_s13  ;;  %3829 = vrot.lane.b32.xlu0 %v15608_v44, %s13609_s13 }
 0x258   :  { %v15612_v2 = vpop.permute.xlu1 %3329  ;;  %v15614_v47 = vpop.permute.xlu0 %3327 }
 0x25a   :  { %3835 = vrot.lane.b32.xlu1 %v13851_v33, %s13609_s13  ;;  %3833 = vrot.lane.b32.xlu0 %v13829_v27, %s13609_s13 }
 0x25c   :  { %v15620_v26 = vpop.permute.xlu1 %3333  ;;  %v15622_v3 = vpop.permute.xlu0 %3331 }
 0x25e   :  { %3839 = vrot.lane.b32.xlu1 %v13862_v36, %s13609_s13  ;;  %3837 = vrot.lane.b32.xlu0 %v13847_v32, %s13609_s13 }
 0x260   :  { %v3338_v42 = vpop.permute.xlu1 %3337  ;;  %v15628_v30 = vpop.permute.xlu0 %3335 }
 0x262   :  { %3843 = vrot.lane.b32.xlu1 %v13873_v39, %s13609_s13  ;;  %3841 = vrot.lane.b32.xlu0 %v13858_v35, %s13609_s13 }
 0x264   :  { %v3342_v17 = vpop.permute.xlu1 %3341  ;;  %v3340_v5 = vpop.permute.xlu0 %3339 }
 0x265   :  { %v3403_v6 = vsel %vm3389_vm8, %v3340_v5, %v3342_v17  ;;  %v3402_v21 = vsel %vm3389_vm8, %v3338_v42, %v3340_v5 }
 0x266   :  { %3847 = vrot.lane.b32.xlu1 %v13881_v41, %s13609_s13  ;;  %3845 = vrot.lane.b32.xlu0 %v13869_v38, %s13609_s13 }
 0x267   :  { %3491 = vmatprep.subr.bf16.mxu0 %v3403_v6 }
 0x268   :  { %3492 = vmatpush1.bf16.msra.mxu0 %v3402_v21  ;;  %v15640_v62 = vpop.permute.xlu1 %3345  ;;  %v3344_v60 = vpop.permute.xlu0 %3343 }
 0x269   :  { %v3405_v34 = vsel %vm3389_vm8, %v3344_v60, %v15640_v62  ;;  %v3404_v10 = vsel %vm3389_vm8, %v3342_v17, %v3344_v60  ;;  %v15706_v60 = vld [vmem:[%s19824_s0 + $0x38] sm:$0x1f]  }
 0x26a   :  { %3851 = vrot.lane.b32.xlu1 %v19861_v8, %s13609_s13  ;;  %3849 = vrot.lane.b32.xlu0 %v13877_v40, %s13609_s13 }
 0x26b   :  { %3534 = vmatprep.subr.bf16.mxu1 %v3405_v34 }
 0x26c   :  { %3535 = vmatpush1.bf16.msra.mxu1 %v3404_v10  ;;  %v15649_v63 = vpop.permute.xlu1 %3349  ;;  %v3348_v59 = vpop.permute.xlu0 %3347 }
 0x26e   :  { %3855 = vrot.lane.b32.xlu1 %v14897_v31, %s13609_s13  ;;  %3853 = vrot.lane.b32.xlu0 %v19860_v49, %s13609_s13  ;;  %s13612_s13 = smov 75  }
 0x270   :  { %v15655_v4 = vpop.permute.xlu1 %3353  ;;  %v15657_v55 = vpop.permute.xlu0 %3351 }
 0x272   :  { %4249 = vrot.lane.b32.xlu1 %v15396_v25, %s13610_s11  ;;  %4247 = vrot.lane.b32.xlu0 %v13507_v48, %s13610_s11  ;;  %v13508_v25 = vld [vmem:[%s19823_s1 + $0x10] ss:$60 sps:$4 sm:$0xff]  }
 0x274   :  { %v15665_v0 = vpop.permute.xlu1 %3357  ;;  %v15667_v31 = vpop.permute.xlu0 %3355 }
 0x276   :  { %4253 = vrot.lane.b32.xlu1 %v15126_v20, %s13610_s11  ;;  %4251 = vrot.lane.b32.xlu0 %v15133_v56, %s13610_s11  ;;  %v13509_v20 = vld [vmem:[%s19823_s1 + $0x18] ss:$60 sps:$4 sm:$0xff]  }
 0x278   :  { %v15673_v37 = vpop.permute.xlu1 %3361  ;;  %v15675_v12 = vpop.permute.xlu0 %3359 }
 0x27a   :  { %4257 = vrot.lane.b32.xlu1 %v15144_v14, %s13610_s11  ;;  %4255 = vrot.lane.b32.xlu0 %v13508_v25, %s13610_s11  ;;  %v3394_v25 = vsel %vm3389_vm8, %v15581_v57, %v15579_v50  ;;  %v3406_v57 = vsel %vm3389_vm8, %v15640_v62, %v3348_v59 }
 0x27c   :  { %v3366_v52 = vpop.permute.xlu1 %3365  ;;  %v3364_v11 = vpop.permute.xlu0 %3363 }
 0x27d   :  { %v3414_v56 = vsel %vm3389_vm8, %v3364_v11, %v3366_v52 }
 0x27e   :  { %4261 = vrot.lane.b32.xlu1 %v15421_v19, %s13610_s11  ;;  %4259 = vrot.lane.b32.xlu0 %v13509_v20, %s13610_s11  ;;  %v3454_v5 = vsel %vm342_vm1, %v3414_v56, 0  ;;  %v13510_v19 = vld [vmem:[%s19823_s1 + $0x20] ss:$60 sps:$4 sm:$0xff]   ;;  %v3409_v56 = vsel %vm3389_vm8, %v15657_v55, %v15655_v4 }
 0x280   :  { %v3370_v14 = vpop.permute.xlu1 %3369  ;;  %v3368_v42 = vpop.permute.xlu0 %3367 }
 0x281   :  { %v3415_v17 = vsel %vm3389_vm8, %v3366_v52, %v3368_v42  ;;  %v3416_v6 = vsel %vm3389_vm8, %v3368_v42, %v3370_v14 }
 0x282   :  { %4265 = vrot.lane.b32.xlu1 %v15442_v15, %s13610_s11  ;;  %4263 = vrot.lane.b32.xlu0 %v13510_v19, %s13610_s11  ;;  %v3395_v15 = vsel %vm3389_vm8, %v15579_v50, %v15600_v22  ;;  %v3460_v48 = vsel %vm342_vm1, %v3416_v6, 0  ;;  %v3396_v50 = vsel %vm3389_vm8, %v15600_v22, %v15598_v13 }
 0x283   :  { %12332 = vmatprep.subr.msk.bf16.mxu0 %vm342_vm1, %v3415_v17 }
 0x284   :  { %3494 = vmatpush1.bf16.msra.mxu0 %v3454_v5  ;;  %v3374_v21 = vpop.permute.xlu1 %3373  ;;  %v3372_v34 = vpop.permute.xlu0 %3371  ;;  %v3401_v5 = vsel %vm3389_vm8, %v15620_v26, %v15628_v30 }
 0x285   :  { %3575 = vmatprep.subr.bf16.mxu0 %v3395_v15  ;;  %v3417_v10 = vsel %vm3389_vm8, %v3370_v14, %v3372_v34 }
 0x286   :  { %4269 = vrot.lane.b32.xlu1 %v15464_v43, %s13610_s11  ;;  %4267 = vrot.lane.b32.xlu0 %v15177_v54, %s13610_s11  ;;  %v3397_v43 = vsel %vm3389_vm8, %v15598_v13, %v15614_v47  ;;  %v3407_v54 = vsel %vm3389_vm8, %v3348_v59, %v15649_v63  ;;  %v3408_v13 = vsel %vm3389_vm8, %v15649_v63, %v15657_v55 }
 0x287   :  { %12334 = vmatprep.subr.msk.bf16.mxu1 %vm342_vm1, %v3417_v10  ;;  %12333 = vmatmul.mubr.msk.bf16.vlgmr.msra.gmra.mrb[0].mxu0 %vm338_vm2, %v15706_v60  ;;  %v3398_v63 = vsel %vm3389_vm8, %v15614_v47, %v15612_v2  ;;  %v3410_v47 = vsel %vm3389_vm8, %v15655_v4, %v15667_v31 }
 0x288   :  { %3537 = vmatpush1.bf16.msra.mxu1 %v3460_v48  ;;  %v3378_v52 = vpop.permute.xlu1 %3377  ;;  %3576 = vmatpush1.bf16.msra.mxu0 %v3394_v25  ;;  %v3376_v11 = vpop.permute.xlu0 %3375 }
 0x289   :  { %3618 = vmatprep.subr.bf16.mxu1 %v3397_v43  ;;  %3577 = vmatprep.subr.bf16.mxu0 %v3407_v54  ;;  %v3419_v14 = vsel %vm3389_vm8, %v3374_v21, %v3376_v11  ;;  %v3420_v22 = vsel %vm3389_vm8, %v3376_v11, %v3378_v52  ;;  %v15899_v11 = vld [vmem:[%s19823_s1 + $0x8] ss:$60 sps:$4 sm:$0xff]  }
 0x28a   :  { %4273 = vrot.lane.b32.xlu1 %v15488_v58, %s13610_s11  ;;  %4271 = vrot.lane.b32.xlu0 %v15198_v51, %s13610_s11  ;;  %v3418_v51 = vsel %vm3389_vm8, %v3372_v34, %v3374_v21 }
 0x28b   :  { %12335 = vmatmul.mubr.msk.bf16.vlgmr.msra.gmra.mrb[0].mxu1 %vm338_vm2, %v15706_v60  ;;  %3607 = vmatprep.mubr.bf16.mxu0 %v19859_v46  ;;  %v3466_v62 = vsel %vm342_vm1, %v3418_v51, 0 }
 0x28c   :  { %3619 = vmatpush1.bf16.msra.mxu1 %v3396_v50  ;;  %v3382_v20 = vpop.permute.xlu1 %3381  ;;  %3578 = vmatpush1.bf16.msra.mxu0 %v3406_v57  ;;  %v3380_v58 = vpop.permute.xlu0 %3379  ;;  %v15910_v57 = vld [vmem:[%s19823_s1 + $0x14] ss:$60 sps:$4 sm:$0xff]  }
 0x28d   :  { %3620 = vmatprep.subr.bf16.mxu1 %v3409_v56  ;;  %12336 = vmatprep.subr.msk.bf16.mxu0 %vm342_vm1, %v3419_v14  ;;  %v3421_v42 = vsel %vm3389_vm8, %v3378_v52, %v3380_v58  ;;  %v15935_v14 = vld [vmem:[%s19823_s1 + $0x18] ss:$60 sps:$4 sm:$0xff]  }
 0x28e   :  { %4277 = vrot.lane.b32.xlu1 %v15508_v24, %s13610_s11  ;;  %4275 = vrot.lane.b32.xlu0 %v15221_v61, %s13610_s11  ;;  %v3399_v61 = vsel %vm3389_vm8, %v15612_v2, %v15622_v3  ;;  %v3472_v24 = vsel %vm342_vm1, %v3420_v22, 0  ;;  %v3400_v2 = vsel %vm3389_vm8, %v15622_v3, %v15620_v26  ;;  %v3412_v26 = vsel %vm3389_vm8, %v15665_v0, %v15675_v12 }
 0x28f   :  { %3650 = vmatprep.mubr.bf16.mxu1 %v19859_v46  ;;  %19870 = vst [vmem:[#allocation3_spill] sm:$0xff] %v15935_v14 }
 0x290   :  { %3621 = vmatpush1.bf16.msra.mxu1 %v3408_v13  ;;  %v3386_v59 = vpop.permute.xlu1 %3385  ;;  %3580 = vmatpush1.bf16.msra.mxu0 %v3466_v62  ;;  %v3384_v17 = vpop.permute.xlu0 %3383  ;;  %v15944_v62 = vld [vmem:[%s19823_s1 + $0x24] ss:$60 sps:$4 sm:$0xff]  }
 0x291   :  { %12338 = vmatprep.subr.msk.bf16.mxu1 %vm342_vm1, %v3421_v42  ;;  %3661 = vmatprep.subr.bf16.mxu0 %v3399_v61  ;;  %v3423_v6 = vsel %vm3389_vm8, %v3382_v20, %v3384_v17  ;;  %v3424_v3 = vsel %vm3389_vm8, %v3384_v17, %v3386_v59 }
 0x292   :  { %4281 = vrot.lane.b32.xlu1 %v15529_v29, %s13610_s11  ;;  %4279 = vrot.lane.b32.xlu0 %v15241_v1, %s13610_s11  ;;  %v3411_v1 = vsel %vm3389_vm8, %v15667_v31, %v15665_v0  ;;  %v3484_v0 = vsel %vm342_vm1, %v3424_v3, 0 }
 0x293   :  { %12337 = vmatmul.mubr.msk.bf16.vlgmr.msra.gmra.mrb[4].mxu0 %vm338_vm2, %v15706_v60 }
 0x294   :  { %3623 = vmatpush1.bf16.msra.mxu1 %v3472_v24  ;;  %v3780_v55 = vpop.permute.xlu1 %3779  ;;  %3662 = vmatpush1.bf16.msra.mxu0 %v3398_v63  ;;  %v3388_v29 = vpop.permute.xlu0 %3387  ;;  %v15960_v63 = vld [vmem:[%s19823_s1 + $0x2c] ss:$60 sps:$4 sm:$0xff]  }
 0x295   :  { %3704 = vmatprep.subr.bf16.mxu1 %v3401_v5  ;;  %3663 = vmatprep.subr.bf16.mxu0 %v3411_v1  ;;  %v3425_v4 = vsel %vm3389_vm8, %v3386_v59, %v3388_v29  ;;  %v15951_v59 = vld [vmem:[%s19823_s1 + $0x20] ss:$60 sps:$4 sm:$0xff]   ;;  %v15969_v5 = vld [vmem:[%s19823_s1 + $0x28] ss:$60 sps:$4 sm:$0xff]  }
 0x296   :  { %4285 = vrot.lane.b32.xlu1 %v15553_v7, %s13610_s11  ;;  %4283 = vrot.lane.b32.xlu0 %v15262_v18, %s13610_s11  ;;  %v3413_v7 = vsel %vm3389_vm8, %v15675_v12, %v15673_v37  ;;  %v3422_v18 = vsel %vm3389_vm8, %v3380_v58, %v3382_v20  ;;  %v15917_v20 = vld [vmem:[%s19823_s1 + $0x10] ss:$60 sps:$4 sm:$0xff]   ;;  %v15928_v58 = vld [vmem:[%s19823_s1 + $0x1c] ss:$60 sps:$4 sm:$0xff]   ;;  %19871 = vst [vmem:[#allocation4_spill] sm:$0xff] %v15951_v59  ;;  %19872 = vst [vmem:[#allocation5_spill] sm:$0xff] %v15969_v5 }
 0x297   :  { %12339 = vmatmul.mubr.msk.bf16.vlgmr.msra.gmra.mrb[4].mxu1 %vm338_vm2, %v15706_v60  ;;  %3693 = vmatprep.mubr.bf16.mxu0 %v19859_v46  ;;  %v3478_v31 = vsel %vm342_vm1, %v3422_v18, 0  ;;  %19869 = vst [vmem:[#allocation2_spill] sm:$0xff] %v15928_v58  ;;  %v15986_v18 = vld [vmem:[%s19823_s1 + $0x34] ss:$60 sps:$4 sm:$0xff]   ;;  %vm10289_vm8 = vcmask 187392  }
 0x298   :  { %3705 = vmatpush1.bf16.msra.mxu1 %v3400_v2  ;;  %v3784_v30 = vpop.permute.xlu1 %3783  ;;  %3664 = vmatpush1.bf16.msra.mxu0 %v3410_v47  ;;  %v3782_v19 = vpop.permute.xlu0 %3781  ;;  %v15977_v2 = vld [vmem:[%s19824_s0 + $0x40] sm:$0x1f]  }
 0x299   :  { %3706 = vmatprep.subr.bf16.mxu1 %v3413_v7  ;;  %12340 = vmatprep.subr.msk.bf16.mxu0 %vm342_vm1, %v3423_v6  ;;  %v3858_v12 = vsel %vm3857_vm9, %v3780_v55, %v3782_v19  ;;  %v15995_v6 = vld [vmem:[%s19823_s1 + $0x30] ss:$60 sps:$4 sm:$0xff]  }
 0x29a   :  { %4289 = vrot.lane.b32.xlu1 %v15571_v23, %s13610_s11  ;;  %4287 = vrot.lane.b32.xlu0 %v15286_v45, %s13610_s11  ;;  %v3859_v45 = vsel %vm3857_vm9, %v3782_v19, %v3784_v30 }
 0x29b   :  { %3736 = vmatprep.mubr.bf16.mxu1 %v19859_v46 }
 0x29c   :  { %3707 = vmatpush1.bf16.msra.mxu1 %v3412_v26  ;;  %v15804_v37 = vpop.permute.xlu1 %3787  ;;  %3666 = vmatpush1.bf16.msra.mxu0 %v3478_v31  ;;  %v3786_v23 = vpop.permute.xlu0 %3785 }
 0x29d   :  { %12342 = vmatprep.subr.msk.bf16.mxu1 %vm342_vm1, %v3425_v4  ;;  %3957 = vmatprep.subr.bf16.mxu0 %v3859_v45  ;;  %v3861_v15 = vsel %vm3857_vm9, %v3786_v23, %v15804_v37 }
 0x29e   :  { %4293 = vrot.lane.b32.xlu1 %v15591_v9, %s13610_s11  ;;  %4291 = vrot.lane.b32.xlu0 %v15306_v16, %s13610_s11  ;;  %v3860_v16 = vsel %vm3857_vm9, %v3784_v30, %v3786_v23 }
 0x29f   :  { %12341 = vmatmul.mubr.msk.bf16.vlgmr.msra.gmra.mrb[8].mxu0 %vm338_vm2, %v15706_v60 }
 0x2a0   :  { %3709 = vmatpush1.bf16.msra.mxu1 %v3484_v0  ;;  %v15816_v21 = vpop.permute.xlu1 %3791  ;;  %3958 = vmatpush1.bf16.msra.mxu0 %v3858_v12  ;;  %v15820_v34 = vpop.permute.xlu0 %3789  ;;  %v16025_v0 = vld [vmem:[%s19823_s1 + $0x7c] ss:$60 sps:$4 sm:$0xff]  }
 0x2a1   :  { %4000 = vmatprep.subr.bf16.mxu1 %v3861_v15  ;;  %3989 = vmatprep.mubr.bf16.mxu0 %v19859_v46  ;;  %v3863_v1 = vsel %vm3857_vm9, %v15820_v34, %v15816_v21  ;;  %v3862_v26 = vsel %vm3857_vm9, %v15804_v37, %v15820_v34  ;;  %v16013_v37 = vld [vmem:[%s19823_s1 + $0x80] ss:$60 sps:$4 sm:$0xff]  }
 0x2a2   :  { %4297 = vrot.lane.b32.xlu1 %v15608_v44, %s13610_s11  ;;  %4295 = vrot.lane.b32.xlu0 %v15326_v53, %s13610_s11 }
 0x2a3   :  { %12343 = vmatmul.mubr.msk.bf16.vlgmr.msra.gmra.mrb[8].mxu1 %vm338_vm2, %v15706_v60 }
 0x2a4   :  { %4001 = vmatpush1.bf16.msra.mxu1 %v3860_v16  ;;  %v15830_v9 = vpop.permute.xlu1 %3795  ;;  %4032 = vmatprep.mubr.bf16.mxu1 %v19859_v46  ;;  %v15833_v10 = vpop.permute.xlu0 %3793 }
 0x2a5   :  { %v3865_v4 = vsel %vm3857_vm9, %v15833_v10, %v15830_v9  ;;  %v3864_v45 = vsel %vm3857_vm9, %v15816_v21, %v15833_v10 }
 0x2a6   :  { %4301 = vrot.lane.b32.xlu1 %v13829_v27, %s13610_s11  ;;  %4299 = vrot.lane.b32.xlu0 %v13833_v28, %s13610_s11 }
 0x2a8   :  { %v15839_v44 = vpop.permute.xlu1 %3799  ;;  %v15841_v53 = vpop.permute.xlu0 %3797 }
 0x2aa   :  { %4305 = vrot.lane.b32.xlu1 %v13847_v32, %s13610_s11  ;;  %4303 = vrot.lane.b32.xlu0 %v13851_v33, %s13610_s11 }
 0x2ac   :  { %v15847_v60 = vpop.permute.xlu1 %3803  ;;  %v15849_v48 = vpop.permute.xlu0 %3801 }
 0x2ae   :  { %4309 = vrot.lane.b32.xlu1 %v13858_v35, %s13610_s11  ;;  %4307 = vrot.lane.b32.xlu0 %v13862_v36, %s13610_s11 }
 0x2b0   :  { %v3808_v27 = vpop.permute.xlu1 %3807  ;;  %v3806_v28 = vpop.permute.xlu0 %3805 }
 0x2b1   :  { %v3870_v35 = vsel %vm3857_vm9, %v3806_v28, %v3808_v27 }
 0x2b2   :  { %4313 = vrot.lane.b32.xlu1 %v13869_v38, %s13610_s11  ;;  %4311 = vrot.lane.b32.xlu0 %v13873_v39, %s13610_s11 }
 0x2b4   :  { %v3812_v32 = vpop.permute.xlu1 %3811  ;;  %v3810_v33 = vpop.permute.xlu0 %3809 }
 0x2b5   :  { %v3871_v25 = vsel %vm3857_vm9, %v3808_v27, %v3810_v33  ;;  %v16042_v27 = vld [vmem:[%s19823_s1 + $0x88] ss:$60 sps:$4 sm:$0xff]  }
 0x2b6   :  { %4317 = vrot.lane.b32.xlu1 %v13877_v40, %s13610_s11  ;;  %4315 = vrot.lane.b32.xlu0 %v13881_v41, %s13610_s11  ;;  %v15876_v40 = vld [vmem:[%s19823_s1 + $0x4] ss:$60 sps:$4 sm:$0xff]   ;;  %v3872_v41 = vsel %vm3857_vm9, %v3810_v33, %v3812_v32 }
 0x2b7   :  { %3959 = vmatprep.subr.bf16.mxu0 %v3871_v25 }
 0x2b8   :  { %3960 = vmatpush1.bf16.msra.mxu0 %v3870_v35  ;;  %v15865_v36 = vpop.permute.xlu1 %3815  ;;  %v15867_v38 = vpop.permute.xlu0 %3813 }
 0x2b9   :  { %v3873_v39 = vsel %vm3857_vm9, %v3812_v32, %v15867_v38  ;;  %v3874_v12 = vsel %vm3857_vm9, %v15867_v38, %v15865_v36  ;;  %v16052_v32 = vld [vmem:[%s19823_s1 + $0x84] ss:$60 sps:$4 sm:$0xff]  }
 0x2ba   :  { %4321 = vrot.lane.b32.xlu1 %v19860_v49, %s13610_s11  ;;  %4319 = vrot.lane.b32.xlu0 %v19861_v8, %s13610_s11  ;;  %v15890_v49 = vld [vmem:[%s19823_s1 + $0xc] ss:$60 sps:$4 sm:$0xff]   ;;  %v13511_v8 = vld [vmem:[%s19823_s1 + $0x120] ss:$0 sps:$4 sm:$0xff]  }
 0x2bb   :  { %4002 = vmatprep.subr.bf16.mxu1 %v3873_v39  ;;  %v3867_v39 = vsel %vm3857_vm9, %v15841_v53, %v15839_v44 }
 0x2bc   :  { %4003 = vmatpush1.bf16.msra.mxu1 %v3872_v41  ;;  %v15881_v52 = vpop.permute.xlu1 %3819  ;;  %v15883_v43 = vpop.permute.xlu0 %3817  ;;  %v16067_v41 = vld [vmem:[%s19823_s1 + $0x90] ss:$60 sps:$4 sm:$0xff]  }
 0x2bd   :  { %v3875_v23 = vsel %vm3857_vm9, %v15865_v36, %v15883_v43  ;;  %v3876_v28 = vsel %vm3857_vm9, %v15883_v43, %v15881_v52  ;;  %v16075_v43 = vld [vmem:[%s19823_s1 + $0x8c] ss:$60 sps:$4 sm:$0xff]  }
 0x2be   :  { %4889 = vrot.lane.b32.xlu1 %v15876_v40, %s13611_s25  ;;  %4323 = vrot.lane.b32.xlu0 %v13511_v8, %s13610_s11  ;;  %v3866_v8 = vsel %vm3857_vm9, %v15830_v9, %v15841_v53  ;;  %v16093_v9 = vld [vmem:[%s19823_s1 + $0x98] ss:$60 sps:$4 sm:$0xff]   ;;  %v3868_v53 = vsel %vm3857_vm9, %v15839_v44, %v15849_v48 }
 0x2c0   :  { %v15901_v54 = vpop.permute.xlu1 %3823  ;;  %v15903_v50 = vpop.permute.xlu0 %3821 }
 0x2c1   :  { %v3877_v34 = vsel %vm3857_vm9, %v15881_v52, %v15903_v50 }
 0x2c2   :  { %4893 = vrot.lane.b32.xlu1 %v15890_v49, %s13611_s25  ;;  %4891 = vrot.lane.b32.xlu0 %v15899_v11, %s13611_s25 }
 0x2c4   :  { %v15919_v56 = vpop.permute.xlu1 %3827  ;;  %v15921_v51 = vpop.permute.xlu0 %3825 }
 0x2c6   :  { %4897 = vrot.lane.b32.xlu1 %v15910_v57, %s13611_s25  ;;  %4895 = vrot.lane.b32.xlu0 %v15917_v20, %s13611_s25 }
 0x2c8   :  { %v3832_v13 = vpop.permute.xlu1 %3831  ;;  %v15937_v22 = vpop.permute.xlu0 %3829 }
 0x2ca   :  { %4901 = vrot.lane.b32.xlu1 %v15928_v58, %s13611_s25  ;;  %4899 = vrot.lane.b32.xlu0 %v15935_v14, %s13611_s25 }
 0x2cc   :  { %v3836_v42 = vpop.permute.xlu1 %3835  ;;  %v3834_v17 = vpop.permute.xlu0 %3833 }
 0x2cd   :  { %v3882_v61 = vsel %vm3857_vm9, %v3832_v13, %v3834_v17  ;;  %v3883_v24 = vsel %vm3857_vm9, %v3834_v17, %v3836_v42 }
 0x2ce   :  { %4905 = vrot.lane.b32.xlu1 %v15944_v62, %s13611_s25  ;;  %4903 = vrot.lane.b32.xlu0 %v15951_v59, %s13611_s25  ;;  %v3922_v55 = vsel %vm342_vm1, %v3882_v61, 0  ;;  %v3879_v61 = vsel %vm3857_vm9, %v15901_v54, %v15921_v51 }
 0x2cf   :  { %12347 = vmatprep.subr.msk.bf16.mxu0 %vm342_vm1, %v3883_v24  ;;  %v3878_v24 = vsel %vm3857_vm9, %v15903_v50, %v15901_v54  ;;  %v16122_v54 = vld [vmem:[%s19823_s1 + $0xa0] ss:$60 sps:$4 sm:$0xff]   ;;  %v3880_v50 = vsel %vm3857_vm9, %v15921_v51, %v15919_v56  ;;  %v16145_v51 = vld [vmem:[%s19823_s1 + $0xa8] ss:$60 sps:$4 sm:$0xff]  }
 0x2d0   :  { %3962 = vmatpush1.bf16.msra.mxu0 %v3922_v55  ;;  %v3840_v29 = vpop.permute.xlu1 %3839  ;;  %v3838_v47 = vpop.permute.xlu0 %3837 }
 0x2d1   :  { %4043 = vmatprep.subr.bf16.mxu0 %v3863_v1  ;;  %v3884_v30 = vsel %vm3857_vm9, %v3836_v42, %v3838_v47  ;;  %v3885_v7 = vsel %vm3857_vm9, %v3838_v47, %v3840_v29  ;;  %v3869_v42 = vsel %vm3857_vm9, %v15849_v48, %v15847_v60  ;;  %v16105_v60 = vld [vmem:[%s19823_s1 + $0x94] ss:$60 sps:$4 sm:$0xff]  }
 0x2d2   :  { %4909 = vrot.lane.b32.xlu1 %v15960_v63, %s13611_s25  ;;  %4907 = vrot.lane.b32.xlu0 %v15969_v5, %s13611_s25  ;;  %v3928_v19 = vsel %vm342_vm1, %v3884_v30, 0 }
 0x2d3   :  { %12349 = vmatprep.subr.msk.bf16.mxu1 %vm342_vm1, %v3885_v7  ;;  %12348 = vmatmul.mubr.msk.bf16.vlgmr.msra.gmra.mrb[0].mxu0 %vm338_vm2, %v15977_v2 }
 0x2d4   :  { %4005 = vmatpush1.bf16.msra.mxu1 %v3928_v19  ;;  %v3844_v3 = vpop.permute.xlu1 %3843  ;;  %4044 = vmatpush1.bf16.msra.mxu0 %v3862_v26  ;;  %v3842_v31 = vpop.permute.xlu0 %3841 }
 0x2d5   :  { %4086 = vmatprep.subr.bf16.mxu1 %v3865_v4  ;;  %4045 = vmatprep.subr.bf16.mxu0 %v3875_v23  ;;  %v3886_v16 = vsel %vm3857_vm9, %v3840_v29, %v3842_v31  ;;  %v3887_v10 = vsel %vm3857_vm9, %v3842_v31, %v3844_v3  ;;  %v3881_v29 = vsel %vm3857_vm9, %v15919_v56, %v15937_v22  ;;  %v16132_v22 = vld [vmem:[%s19823_s1 + $0x9c] ss:$60 sps:$4 sm:$0xff]   ;;  %v16153_v4 = vld [vmem:[%s19823_s1 + $0xa4] ss:$60 sps:$4 sm:$0xff]  }
 0x2d6   :  { %4913 = vrot.lane.b32.xlu1 %v15986_v18, %s13611_s25  ;;  %4911 = vrot.lane.b32.xlu0 %v15995_v6, %s13611_s25  ;;  %v3934_v25 = vsel %vm342_vm1, %v3886_v16, 0  ;;  %v4738_v31 = vld [vmem:[%s19823_s1 + $0xf4] sm:$0xff]  ;;  %v16177_v16 = vld [vmem:[%s19823_s1 + $0xac] ss:$60 sps:$4 sm:$0xff]  }
 0x2d7   :  { %12350 = vmatmul.mubr.msk.bf16.vlgmr.msra.gmra.mrb[0].mxu1 %vm338_vm2, %v15977_v2  ;;  %4075 = vmatprep.mubr.bf16.mxu0 %v19859_v46 }
 0x2d8   :  { %4087 = vmatpush1.bf16.msra.mxu1 %v3864_v45  ;;  %v3848_v15 = vpop.permute.xlu1 %3847  ;;  %4046 = vmatpush1.bf16.msra.mxu0 %v3874_v12  ;;  %v3846_v21 = vpop.permute.xlu0 %3845 }
 0x2d9   :  { %4088 = vmatprep.subr.bf16.mxu1 %v3877_v34  ;;  %12351 = vmatprep.subr.msk.bf16.mxu0 %vm342_vm1, %v3887_v10  ;;  %v3888_v33 = vsel %vm3857_vm9, %v3844_v3, %v3846_v21  ;;  %v3889_v36 = vsel %vm3857_vm9, %v3846_v21, %v3848_v15  ;;  %v16170_v34 = vcombine.low %v4738_v31, %v4738_v31  ;;  %v4739_v21 = vld [vmem:[%s19823_s1 + $0xfc] sm:$0xff] }
 0x2da   :  { %4917 = vrot.lane.b32.xlu1 %v16013_v37, %s13611_s25  ;;  %4915 = vrot.lane.b32.xlu0 %v16025_v0, %s13611_s25  ;;  %v3940_v52 = vsel %vm342_vm1, %v3888_v33, 0 }
 0x2db   :  { %4118 = vmatprep.mubr.bf16.mxu1 %v19859_v46 }
 0x2dc   :  { %4089 = vmatpush1.bf16.msra.mxu1 %v3876_v28  ;;  %v3852_v35 = vpop.permute.xlu1 %3851  ;;  %4048 = vmatpush1.bf16.msra.mxu0 %v3934_v25  ;;  %v3850_v38 = vpop.permute.xlu0 %3849  ;;  %v16192_v25 = vcombine.low %v4739_v21, %v4739_v21 }
 0x2dd   :  { %12353 = vmatprep.subr.msk.bf16.mxu1 %vm342_vm1, %v3889_v36  ;;  %4129 = vmatprep.subr.bf16.mxu0 %v3867_v39  ;;  %v3890_v1 = vsel %vm3857_vm9, %v3848_v15, %v3850_v38  ;;  %v3891_v48 = vsel %vm3857_vm9, %v3850_v38, %v3852_v35 }
 0x2de   :  { %4921 = vrot.lane.b32.xlu1 %v16042_v27, %s13611_s25  ;;  %4919 = vrot.lane.b32.xlu0 %v16052_v32, %s13611_s25  ;;  %v3946_v30 = vsel %vm342_vm1, %v3890_v1, 0 }
 0x2df   :  { %12352 = vmatmul.mubr.msk.bf16.vlgmr.msra.gmra.mrb[4].mxu0 %vm338_vm2, %v15977_v2 }
 0x2e0   :  { %4091 = vmatpush1.bf16.msra.mxu1 %v3940_v52  ;;  %v3856_v13 = vpop.permute.xlu1 %3855  ;;  %4130 = vmatpush1.bf16.msra.mxu0 %v3866_v8  ;;  %v3854_v17 = vpop.permute.xlu0 %3853  ;;  %v16211_v52 = vcombine.high %v4739_v21, %v4739_v21  ;;  %v4741_v8 = vld [vmem:[%s19823_s1 + $0x10c] sm:$0xff] }
 0x2e1   :  { %4172 = vmatprep.subr.bf16.mxu1 %v3869_v42  ;;  %4131 = vmatprep.subr.bf16.mxu0 %v3879_v61  ;;  %v3892_v47 = vsel %vm3857_vm9, %v3852_v35, %v3854_v17  ;;  %v3893_v19 = vsel %vm3857_vm9, %v3854_v17, %v3856_v13  ;;  %v16196_v35 = vcombine.high %v4738_v31, %v4738_v31  ;;  %vm10757_vm9 = vcmask 179200  }
 0x2e2   :  { %4925 = vrot.lane.b32.xlu1 %v16067_v41, %s13611_s25  ;;  %4923 = vrot.lane.b32.xlu0 %v16075_v43, %s13611_s25  ;;  %v3952_v3 = vsel %vm342_vm1, %v3892_v47, 0  ;;  %v16222_v17 = vcombine.low %v4741_v8, %v4741_v8  ;;  %v16239_v1 = vcombine.high %v4741_v8, %v4741_v8 }
 0x2e3   :  { %12354 = vmatmul.mubr.msk.bf16.vlgmr.msra.gmra.mrb[4].mxu1 %vm338_vm2, %v15977_v2  ;;  %4161 = vmatprep.mubr.bf16.mxu0 %v19859_v46 }
 0x2e4   :  { %4173 = vmatpush1.bf16.msra.mxu1 %v3868_v53  ;;  %v4250_v55 = vpop.permute.xlu1 %4249  ;;  %4132 = vmatpush1.bf16.msra.mxu0 %v3878_v24  ;;  %v4248_v44 = vpop.permute.xlu0 %4247  ;;  %v4742_v53 = vld [vmem:[%s19823_s1 + $0x114] sm:$0xff] }
 0x2e5   :  { %4174 = vmatprep.subr.bf16.mxu1 %v3881_v29  ;;  %12355 = vmatprep.subr.msk.bf16.mxu0 %vm342_vm1, %v3891_v48  ;;  %v4326_v23 = vsel %vm4325_vm10, %v4248_v44, %v4250_v55  ;;  %v16235_v29 = vcombine.low %v4742_v53, %v4742_v53  ;;  %v4743_v44 = vld [vmem:[%s19823_s1 + $0x11c] sm:$0xff] }
 0x2e6   :  { %4929 = vrot.lane.b32.xlu1 %v16093_v9, %s13611_s25  ;;  %4927 = vrot.lane.b32.xlu0 %v16105_v60, %s13611_s25 }
 0x2e7   :  { %4204 = vmatprep.mubr.bf16.mxu1 %v19859_v46 }
 0x2e8   :  { %4175 = vmatpush1.bf16.msra.mxu1 %v3880_v50  ;;  %v4254_v7 = vpop.permute.xlu1 %4253  ;;  %4134 = vmatpush1.bf16.msra.mxu0 %v3946_v30  ;;  %v4252_v26 = vpop.permute.xlu0 %4251 }
 0x2e9   :  { %12357 = vmatprep.subr.msk.bf16.mxu1 %vm342_vm1, %v3893_v19  ;;  %v4327_v56 = vsel %vm4325_vm10, %v4250_v55, %v4252_v26  ;;  %v4328_v10 = vsel %vm4325_vm10, %v4252_v26, %v4254_v7  ;;  %v16252_v19 = vcombine.high %v4742_v53, %v4742_v53 }
 0x2ea   :  { %4933 = vrot.lane.b32.xlu1 %v16122_v54, %s13611_s25  ;;  %4931 = vrot.lane.b32.xlu0 %v16132_v22, %s13611_s25 }
 0x2eb   :  { %4425 = vmatprep.subr.bf16.mxu0 %v4327_v56  ;;  %12356 = vmatmul.mubr.msk.bf16.vlgmr.msra.gmra.mrb[8].mxu0 %vm338_vm2, %v15977_v2 }
 0x2ec   :  { %4177 = vmatpush1.bf16.msra.mxu1 %v3952_v3  ;;  %v16161_v45 = vpop.permute.xlu1 %4257  ;;  %4426 = vmatpush1.bf16.msra.mxu0 %v4326_v23  ;;  %v16163_v12 = vpop.permute.xlu0 %4255  ;;  %v16264_v23 = vld [vmem:[%s19823_s1 + $0x124] ss:$0 sps:$4 sm:$0xff]  }
 0x2ed   :  { %4457 = vmatprep.mubr.bf16.mxu0 %v19859_v46  ;;  %v4329_v15 = vsel %vm4325_vm10, %v4254_v7, %v16163_v12  ;;  %v16248_v7 = vcombine.low %v4743_v44, %v4743_v44 }
 0x2ee   :  { %4937 = vrot.lane.b32.xlu1 %v16145_v51, %s13611_s25  ;;  %4935 = vrot.lane.b32.xlu0 %v16153_v4, %s13611_s25 }
 0x2ef   :  { %4468 = vmatprep.subr.bf16.mxu1 %v4329_v15  ;;  %12358 = vmatmul.mubr.msk.bf16.vlgmr.msra.gmra.mrb[8].mxu1 %vm338_vm2, %v15977_v2  ;;  %v4740_v2 = vld [vmem:[%s19823_s1 + $0x104] sm:$0xff]  ;;  %v16268_v15 = vcombine.high %v4743_v44, %v4743_v44 }
 0x2f0   :  { %v16185_v28 = vpop.permute.xlu1 %4261  ;;  %4469 = vmatpush1.bf16.msra.mxu1 %v4328_v10  ;;  %v16187_v33 = vpop.permute.xlu0 %4259  ;;  %4500 = vmatprep.mubr.bf16.mxu1 %v19859_v46  ;;  %v16207_v39 = vcombine.low %v4740_v2, %v4740_v2  ;;  %v16226_v61 = vcombine.high %v4740_v2, %v4740_v2 }
 0x2f2   :  { %4941 = vrot.lane.b32.xlu1 %v16170_v34, %s13611_s25  ;;  %4939 = vrot.lane.b32.xlu0 %v16177_v16, %s13611_s25 }
 0x2f4   :  { %v16201_v36 = vpop.permute.xlu1 %4265  ;;  %v16203_v38 = vpop.permute.xlu0 %4263 }
 0x2f6   :  { %4945 = vrot.lane.b32.xlu1 %v16192_v25, %s13611_s25  ;;  %4943 = vrot.lane.b32.xlu0 %v16196_v35, %s13611_s25 }
 0x2f8   :  { %v16216_v13 = vpop.permute.xlu1 %4269  ;;  %v16218_v42 = vpop.permute.xlu0 %4267 }
 0x2fa   :  { %4949 = vrot.lane.b32.xlu1 %v16207_v39, %s13611_s25  ;;  %4947 = vrot.lane.b32.xlu0 %v16211_v52, %s13611_s25 }
 0x2fc   :  { %v4274_v24 = vpop.permute.xlu1 %4273  ;;  %v16231_v55 = vpop.permute.xlu0 %4271 }
 0x2fe   :  { %4953 = vrot.lane.b32.xlu1 %v16222_v17, %s13611_s25  ;;  %4951 = vrot.lane.b32.xlu0 %v16226_v61, %s13611_s25 }
 0x300   :  { %v4278_v48 = vpop.permute.xlu1 %4277  ;;  %v4276_v50 = vpop.permute.xlu0 %4275 }
 0x301   :  { %v4339_v47 = vsel %vm4325_vm10, %v4276_v50, %v4278_v48  ;;  %v4338_v30 = vsel %vm4325_vm10, %v4274_v24, %v4276_v50 }
 0x302   :  { %4957 = vrot.lane.b32.xlu1 %v16235_v29, %s13611_s25  ;;  %4955 = vrot.lane.b32.xlu0 %v16239_v1, %s13611_s25 }
 0x303   :  { %4427 = vmatprep.subr.bf16.mxu0 %v4339_v47 }
 0x304   :  { %4428 = vmatpush1.bf16.msra.mxu0 %v4338_v30  ;;  %v16254_v26 = vpop.permute.xlu1 %4281  ;;  %v4280_v56 = vpop.permute.xlu0 %4279 }
 0x305   :  { %v4341_v3 = vsel %vm4325_vm10, %v4280_v56, %v16254_v26  ;;  %v4340_v31 = vsel %vm4325_vm10, %v4278_v48, %v4280_v56 }
 0x306   :  { %4961 = vrot.lane.b32.xlu1 %v16248_v7, %s13611_s25  ;;  %4959 = vrot.lane.b32.xlu0 %v16252_v19, %s13611_s25 }
 0x307   :  { %4470 = vmatprep.subr.bf16.mxu1 %v4341_v3 }
 0x308   :  { %4471 = vmatpush1.bf16.msra.mxu1 %v4340_v31  ;;  %v16270_v21 = vpop.permute.xlu1 %4285  ;;  %v4284_v10 = vpop.permute.xlu0 %4283 }
 0x30a   :  { %4965 = vrot.lane.b32.xlu1 %v16264_v23, %s13611_s25  ;;  %4963 = vrot.lane.b32.xlu0 %v16268_v15, %s13611_s25  ;;  %s13624_s25 = smov 21  }
 0x30c   :  { %v16276_v2 = vpop.permute.xlu1 %4289  ;;  %v16278_v8 = vpop.permute.xlu0 %4287 }
 0x30e   :  { %5359 = vrot.lane.b32.xlu1 %v15899_v11, %s13612_s13  ;;  %5357 = vrot.lane.b32.xlu0 %v15876_v40, %s13612_s13 }
 0x310   :  { %v16284_v53 = vpop.permute.xlu1 %4293  ;;  %v16286_v24 = vpop.permute.xlu0 %4291 }
 0x312   :  { %5363 = vrot.lane.b32.xlu1 %v15917_v20, %s13612_s13  ;;  %5361 = vrot.lane.b32.xlu0 %v15890_v49, %s13612_s13 }
 0x314   :  { %v16292_v44 = vpop.permute.xlu1 %4297  ;;  %v16294_v48 = vpop.permute.xlu0 %4295 }
 0x316   :  { %5367 = vrot.lane.b32.xlu1 %v15935_v14, %s13612_s13  ;;  %5365 = vrot.lane.b32.xlu0 %v15910_v57, %s13612_s13 }
 0x318   :  { %v4302_v50 = vpop.permute.xlu1 %4301  ;;  %v4300_v47 = vpop.permute.xlu0 %4299 }
 0x319   :  { %v4350_v30 = vsel %vm4325_vm10, %v4300_v47, %v4302_v50  ;;  %v4331_v47 = vsel %vm4325_vm10, %v16161_v45, %v16187_v33 }
 0x31a   :  { %5371 = vrot.lane.b32.xlu1 %v15951_v59, %s13612_s13  ;;  %5369 = vrot.lane.b32.xlu0 %v15928_v58, %s13612_s13  ;;  %v4390_v14 = vsel %vm342_vm1, %v4350_v30, 0 }
 0x31c   :  { %v4306_v56 = vpop.permute.xlu1 %4305  ;;  %v4304_v3 = vpop.permute.xlu0 %4303 }
 0x31d   :  { %v4351_v31 = vsel %vm4325_vm10, %v4302_v50, %v4304_v3  ;;  %v4352_v59 = vsel %vm4325_vm10, %v4304_v3, %v4306_v56  ;;  %v4330_v3 = vsel %vm4325_vm10, %v16163_v12, %v16161_v45  ;;  %v4342_v45 = vsel %vm4325_vm10, %v16254_v26, %v4284_v10 }
 0x31e   :  { %5375 = vrot.lane.b32.xlu1 %v15969_v5, %s13612_s13  ;;  %5373 = vrot.lane.b32.xlu0 %v15944_v62, %s13612_s13  ;;  %v16319_v5 = vld [vmem:[%s19824_s0 + $0x48] sm:$0x1f]  }
 0x31f   :  { %12362 = vmatprep.subr.msk.bf16.mxu0 %vm342_vm1, %v4351_v31 }
 0x320   :  { %4430 = vmatpush1.bf16.msra.mxu0 %v4390_v14  ;;  %v4310_v58 = vpop.permute.xlu1 %4309  ;;  %v4308_v50 = vpop.permute.xlu0 %4307  ;;  %v4396_v14 = vsel %vm342_vm1, %v4352_v59, 0  ;;  %v4332_v59 = vsel %vm4325_vm10, %v16187_v33, %v16185_v28 }
 0x321   :  { %4511 = vmatprep.subr.bf16.mxu0 %v4331_v47  ;;  %v4353_v30 = vsel %vm4325_vm10, %v4306_v56, %v4308_v50  ;;  %v4333_v56 = vsel %vm4325_vm10, %v16185_v28, %v16203_v38  ;;  %v4344_v28 = vsel %vm4325_vm10, %v16270_v21, %v16278_v8 }
 0x322   :  { %5379 = vrot.lane.b32.xlu1 %v15995_v6, %s13612_s13  ;;  %5377 = vrot.lane.b32.xlu0 %v15960_v63, %s13612_s13 }
 0x323   :  { %12364 = vmatprep.subr.msk.bf16.mxu1 %vm342_vm1, %v4353_v30  ;;  %12363 = vmatmul.mubr.msk.bf16.vlgmr.msra.gmra.mrb[0].mxu0 %vm338_vm2, %v16319_v5  ;;  %v4343_v30 = vsel %vm4325_vm10, %v4284_v10, %v16270_v21 }
 0x324   :  { %4473 = vmatpush1.bf16.msra.mxu1 %v4396_v14  ;;  %v4314_v31 = vpop.permute.xlu1 %4313  ;;  %4512 = vmatpush1.bf16.msra.mxu0 %v4330_v3  ;;  %v4312_v47 = vpop.permute.xlu0 %4311  ;;  %v4345_v14 = vsel %vm4325_vm10, %v16278_v8, %v16276_v2  ;;  %v4354_v3 = vsel %vm4325_vm10, %v4308_v50, %v4310_v58  ;;  %v4334_v8 = vsel %vm4325_vm10, %v16203_v38, %v16201_v36 }
 0x325   :  { %4554 = vmatprep.subr.bf16.mxu1 %v4333_v56  ;;  %4513 = vmatprep.subr.bf16.mxu0 %v4343_v30  ;;  %v4355_v30 = vsel %vm4325_vm10, %v4310_v58, %v4312_v47  ;;  %v4356_v33 = vsel %vm4325_vm10, %v4312_v47, %v4314_v31  ;;  %v4402_v26 = vsel %vm342_vm1, %v4354_v3, 0  ;;  %v4337_v47 = vsel %vm4325_vm10, %v16216_v13, %v16231_v55 }
 0x326   :  { %5383 = vrot.lane.b32.xlu1 %v16025_v0, %s13612_s13  ;;  %5381 = vrot.lane.b32.xlu0 %v15986_v18, %s13612_s13  ;;  %v4408_v21 = vsel %vm342_vm1, %v4356_v33, 0  ;;  %v4346_v38 = vsel %vm4325_vm10, %v16276_v2, %v16286_v24  ;;  %v4349_v3 = vsel %vm4325_vm10, %v16294_v48, %v16292_v44 }
 0x327   :  { %12365 = vmatmul.mubr.msk.bf16.vlgmr.msra.gmra.mrb[0].mxu1 %vm338_vm2, %v16319_v5  ;;  %4543 = vmatprep.mubr.bf16.mxu0 %v19859_v46 }
 0x328   :  { %4555 = vmatpush1.bf16.msra.mxu1 %v4332_v59  ;;  %v4318_v12 = vpop.permute.xlu1 %4317  ;;  %4514 = vmatpush1.bf16.msra.mxu0 %v4342_v45  ;;  %v4316_v56 = vpop.permute.xlu0 %4315  ;;  %v4335_v59 = vsel %vm4325_vm10, %v16201_v36, %v16218_v42  ;;  %v4336_v36 = vsel %vm4325_vm10, %v16218_v42, %v16216_v13  ;;  %v4348_v13 = vsel %vm4325_vm10, %v16284_v53, %v16294_v48 }
 0x329   :  { %4556 = vmatprep.subr.bf16.mxu1 %v4345_v14  ;;  %12366 = vmatprep.subr.msk.bf16.mxu0 %vm342_vm1, %v4355_v30  ;;  %v4357_v10 = vsel %vm4325_vm10, %v4314_v31, %v4316_v56  ;;  %v4347_v14 = vsel %vm4325_vm10, %v16286_v24, %v16284_v53  ;;  %v4358_v30 = vsel %vm4325_vm10, %v4316_v56, %v4318_v12 }
 0x32a   :  { %5387 = vrot.lane.b32.xlu1 %v16052_v32, %s13612_s13  ;;  %5385 = vrot.lane.b32.xlu0 %v16013_v37, %s13612_s13  ;;  %v4414_v24 = vsel %vm342_vm1, %v4358_v30, 0 }
 0x32b   :  { %4586 = vmatprep.mubr.bf16.mxu1 %v19859_v46 }
 0x32c   :  { %4557 = vmatpush1.bf16.msra.mxu1 %v4344_v28  ;;  %v4322_v58 = vpop.permute.xlu1 %4321  ;;  %4516 = vmatpush1.bf16.msra.mxu0 %v4402_v26  ;;  %v4320_v50 = vpop.permute.xlu0 %4319 }
 0x32d   :  { %12368 = vmatprep.subr.msk.bf16.mxu1 %vm342_vm1, %v4357_v10  ;;  %4597 = vmatprep.subr.bf16.mxu0 %v4335_v59  ;;  %v4359_v33 = vsel %vm4325_vm10, %v4318_v12, %v4320_v50  ;;  %v4360_v42 = vsel %vm4325_vm10, %v4320_v50, %v4322_v58 }
 0x32e   :  { %5391 = vrot.lane.b32.xlu1 %v16075_v43, %s13612_s13  ;;  %5389 = vrot.lane.b32.xlu0 %v16042_v27, %s13612_s13  ;;  %v4420_v53 = vsel %vm342_vm1, %v4360_v42, 0 }
 0x32f   :  { %12367 = vmatmul.mubr.msk.bf16.vlgmr.msra.gmra.mrb[4].mxu0 %vm338_vm2, %v16319_v5 }
 0x330   :  { %4559 = vmatpush1.bf16.msra.mxu1 %v4408_v21  ;;  %v4890_v31 = vpop.permute.xlu1 %4889  ;;  %4598 = vmatpush1.bf16.msra.mxu0 %v4334_v8  ;;  %v4324_v45 = vpop.permute.xlu0 %4323 }
 0x331   :  { %4640 = vmatprep.subr.bf16.mxu1 %v4337_v47  ;;  %4599 = vmatprep.subr.bf16.mxu0 %v4347_v14  ;;  %v4361_v2 = vsel %vm4325_vm10, %v4322_v58, %v4324_v45  ;;  %vm11225_vm10 = vcmask 171008  }
 0x332   :  { %5395 = vrot.lane.b32.xlu1 %v16105_v60, %s13612_s13  ;;  %5393 = vrot.lane.b32.xlu0 %v16067_v41, %s13612_s13 }
 0x333   :  { %12369 = vmatmul.mubr.msk.bf16.vlgmr.msra.gmra.mrb[4].mxu1 %vm338_vm2, %v16319_v5  ;;  %4629 = vmatprep.mubr.bf16.mxu0 %v19859_v46 }
 0x334   :  { %4641 = vmatpush1.bf16.msra.mxu1 %v4336_v36  ;;  %v4894_v55 = vpop.permute.xlu1 %4893  ;;  %4600 = vmatpush1.bf16.msra.mxu0 %v4346_v38  ;;  %v4892_v28 = vpop.permute.xlu0 %4891 }
 0x335   :  { %4642 = vmatprep.subr.bf16.mxu1 %v4349_v3  ;;  %12370 = vmatprep.subr.msk.bf16.mxu0 %vm342_vm1, %v4359_v33  ;;  %v4969_v56 = vsel %vm4967_vm11, %v4892_v28, %v4894_v55  ;;  %v4968_v48 = vsel %vm4967_vm11, %v4890_v31, %v4892_v28 }
 0x336   :  { %5399 = vrot.lane.b32.xlu1 %v16132_v22, %s13612_s13  ;;  %5397 = vrot.lane.b32.xlu0 %v16093_v9, %s13612_s13 }
 0x337   :  { %4672 = vmatprep.mubr.bf16.mxu1 %v19859_v46 }
 0x338   :  { %4643 = vmatpush1.bf16.msra.mxu1 %v4348_v13  ;;  %v16417_v44 = vpop.permute.xlu1 %4897  ;;  %4602 = vmatpush1.bf16.msra.mxu0 %v4414_v24  ;;  %v4896_v12 = vpop.permute.xlu0 %4895 }
 0x339   :  { %12372 = vmatprep.subr.msk.bf16.mxu1 %vm342_vm1, %v4361_v2  ;;  %5067 = vmatprep.subr.bf16.mxu0 %v4969_v56  ;;  %v4971_v58 = vsel %vm4967_vm11, %v4896_v12, %v16417_v44  ;;  %v4970_v50 = vsel %vm4967_vm11, %v4894_v55, %v4896_v12 }
 0x33a   :  { %5403 = vrot.lane.b32.xlu1 %v16153_v4, %s13612_s13  ;;  %5401 = vrot.lane.b32.xlu0 %v16122_v54, %s13612_s13 }
 0x33b   :  { %12371 = vmatmul.mubr.msk.bf16.vlgmr.msra.gmra.mrb[8].mxu0 %vm338_vm2, %v16319_v5 }
 0x33c   :  { %4645 = vmatpush1.bf16.msra.mxu1 %v4420_v53  ;;  %v16429_v26 = vpop.permute.xlu1 %4901  ;;  %5068 = vmatpush1.bf16.msra.mxu0 %v4968_v48  ;;  %v16433_v10 = vpop.permute.xlu0 %4899 }
 0x33d   :  { %5110 = vmatprep.subr.bf16.mxu1 %v4971_v58  ;;  %5099 = vmatprep.mubr.bf16.mxu0 %v19859_v46  ;;  %v19873_v58 = vld [vmem:[#allocation2_spill] sm:$0xff] }
 0x33e   :  { %5407 = vrot.lane.b32.xlu1 %v16177_v16, %s13612_s13  ;;  %5405 = vrot.lane.b32.xlu0 %v16145_v51, %s13612_s13 }
 0x33f   :  { %12373 = vmatmul.mubr.msk.bf16.vlgmr.msra.gmra.mrb[8].mxu1 %vm338_vm2, %v16319_v5 }
 0x340   :  { %5111 = vmatpush1.bf16.msra.mxu1 %v4970_v50  ;;  %v16443_v59 = vpop.permute.xlu1 %4905  ;;  %5142 = vmatprep.mubr.bf16.mxu1 %v19859_v46  ;;  %v16446_v21 = vpop.permute.xlu0 %4903 }
 0x342   :  { %5411 = vrot.lane.b32.xlu1 %v16196_v35, %s13612_s13  ;;  %5409 = vrot.lane.b32.xlu0 %v16170_v34, %s13612_s13 }
 0x344   :  { %v16452_v8 = vpop.permute.xlu1 %4909  ;;  %v16454_v31 = vpop.permute.xlu0 %4907 }
 0x346   :  { %5415 = vrot.lane.b32.xlu1 %v16211_v52, %s13612_s13  ;;  %5413 = vrot.lane.b32.xlu0 %v16192_v25, %s13612_s13 }
 0x348   :  { %v16460_v5 = vpop.permute.xlu1 %4913  ;;  %v16462_v47 = vpop.permute.xlu0 %4911 }
 0x34a   :  { %5419 = vrot.lane.b32.xlu1 %v16226_v61, %s13612_s13  ;;  %5417 = vrot.lane.b32.xlu0 %v16207_v39, %s13612_s13 }
 0x34c   :  { %v4918_v45 = vpop.permute.xlu1 %4917  ;;  %v4916_v14 = vpop.permute.xlu0 %4915 }
 0x34d   :  { %v4980_v3 = vsel %vm4967_vm11, %v4916_v14, %v4918_v45 }
 0x34e   :  { %5423 = vrot.lane.b32.xlu1 %v16239_v1, %s13612_s13  ;;  %5421 = vrot.lane.b32.xlu0 %v16222_v17, %s13612_s13 }
 0x350   :  { %v4922_v36 = vpop.permute.xlu1 %4921  ;;  %v4920_v38 = vpop.permute.xlu0 %4919 }
 0x351   :  { %v4981_v55 = vsel %vm4967_vm11, %v4918_v45, %v4920_v38  ;;  %v4982_v13 = vsel %vm4967_vm11, %v4920_v38, %v4922_v36  ;;  %v4973_v38 = vsel %vm4967_vm11, %v16433_v10, %v16429_v26 }
 0x352   :  { %5427 = vrot.lane.b32.xlu1 %v16252_v19, %s13612_s13  ;;  %5425 = vrot.lane.b32.xlu0 %v16235_v29, %s13612_s13 }
 0x353   :  { %5069 = vmatprep.subr.bf16.mxu0 %v4981_v55  ;;  %v16528_v55 = vld [vmem:[%s19824_s0 + $0x50] sm:$0x1f]  }
 0x354   :  { %5070 = vmatpush1.bf16.msra.mxu0 %v4980_v3  ;;  %v4926_v30 = vpop.permute.xlu1 %4925  ;;  %v4924_v28 = vpop.permute.xlu0 %4923 }
 0x355   :  { %v4983_v33 = vsel %vm4967_vm11, %v4922_v36, %v4924_v28 }
 0x356   :  { %5431 = vrot.lane.b32.xlu1 %v16268_v15, %s13612_s13  ;;  %5429 = vrot.lane.b32.xlu0 %v16248_v7, %s13612_s13 }
 0x357   :  { %5112 = vmatprep.subr.bf16.mxu1 %v4983_v33 }
 0x358   :  { %5113 = vmatpush1.bf16.msra.mxu1 %v4982_v13  ;;  %v16484_v42 = vpop.permute.xlu1 %4929  ;;  %v16486_v2 = vpop.permute.xlu0 %4927  ;;  %v19876_v13 = vld [vmem:[#allocation5_spill] sm:$0xff] }
 0x35a   :  { %5825 = vrot.lane.b32.xlu1 %v15876_v40, %s13613_s15  ;;  %5433 = vrot.lane.b32.xlu0 %v16264_v23, %s13612_s13 }
 0x35c   :  { %v16492_v24 = vpop.permute.xlu1 %4933  ;;  %v16494_v12 = vpop.permute.xlu0 %4931 }
 0x35e   :  { %5829 = vrot.lane.b32.xlu1 %v15890_v49, %s13613_s15  ;;  %5827 = vrot.lane.b32.xlu0 %v15899_v11, %s13613_s15  ;;  %v19874_v49 = vld [vmem:[#allocation3_spill] sm:$0xff] }
 0x360   :  { %v16500_v56 = vpop.permute.xlu1 %4937  ;;  %v16502_v53 = vpop.permute.xlu0 %4935 }
 0x362   :  { %5833 = vrot.lane.b32.xlu1 %v15910_v57, %s13613_s15  ;;  %5831 = vrot.lane.b32.xlu0 %v15917_v20, %s13613_s15  ;;  %v19875_v20 = vld [vmem:[#allocation4_spill] sm:$0xff] }
 0x364   :  { %v4942_v40 = vpop.permute.xlu1 %4941  ;;  %v16508_v48 = vpop.permute.xlu0 %4939 }
 0x366   :  { %5837 = vrot.lane.b32.xlu1 %v19873_v58, %s13613_s15  ;;  %5835 = vrot.lane.b32.xlu0 %v19874_v49, %s13613_s15  ;;  %v4972_v58 = vsel %vm4967_vm11, %v16417_v44, %v16433_v10  ;;  %v4974_v44 = vsel %vm4967_vm11, %v16429_v26, %v16446_v21  ;;  %v4984_v10 = vsel %vm4967_vm11, %v4924_v28, %v4926_v30 }
 0x367   :  { %v4986_v26 = vsel %vm4967_vm11, %v16486_v2, %v16484_v42 }
 0x368   :  { %v4946_v11 = vpop.permute.xlu1 %4945  ;;  %v4944_v50 = vpop.permute.xlu0 %4943 }
 0x369   :  { %v4992_v45 = vsel %vm4967_vm11, %v4942_v40, %v4944_v50  ;;  %v4993_v57 = vsel %vm4967_vm11, %v4944_v50, %v4946_v11  ;;  %v4985_v50 = vsel %vm4967_vm11, %v4926_v30, %v16486_v2 }
 0x36a   :  { %5841 = vrot.lane.b32.xlu1 %v15944_v62, %s13613_s15  ;;  %5839 = vrot.lane.b32.xlu0 %v19875_v20, %s13613_s15  ;;  %v5032_v14 = vsel %vm342_vm1, %v4992_v45, 0 }
 0x36b   :  { %12416 = vmatprep.subr.msk.bf16.mxu0 %vm342_vm1, %v4993_v57  ;;  %v4987_v57 = vsel %vm4967_vm11, %v16484_v42, %v16494_v12  ;;  %v4976_v42 = vsel %vm4967_vm11, %v16443_v59, %v16454_v31 }
 0x36c   :  { %5072 = vmatpush1.bf16.msra.mxu0 %v5032_v14  ;;  %v4950_v36 = vpop.permute.xlu1 %4949  ;;  %v4948_v62 = vpop.permute.xlu0 %4947 }
 0x36d   :  { %5153 = vmatprep.subr.bf16.mxu0 %v4973_v38  ;;  %v4994_v3 = vsel %vm4967_vm11, %v4946_v11, %v4948_v62  ;;  %v4995_v33 = vsel %vm4967_vm11, %v4948_v62, %v4950_v36  ;;  %v4979_v38 = vsel %vm4967_vm11, %v16462_v47, %v16460_v5 }
 0x36e   :  { %5845 = vrot.lane.b32.xlu1 %v15960_v63, %s13613_s15  ;;  %5843 = vrot.lane.b32.xlu0 %v19876_v13, %s13613_s15  ;;  %v5038_v40 = vsel %vm342_vm1, %v4994_v3, 0  ;;  %v4975_v63 = vsel %vm4967_vm11, %v16446_v21, %v16443_v59  ;;  %v4978_v59 = vsel %vm4967_vm11, %v16452_v8, %v16462_v47 }
 0x36f   :  { %12418 = vmatprep.subr.msk.bf16.mxu1 %vm342_vm1, %v4995_v33  ;;  %12417 = vmatmul.mubr.msk.bf16.vlgmr.msra.gmra.mrb[0].mxu0 %vm338_vm2, %v16528_v55 }
 0x370   :  { %5115 = vmatpush1.bf16.msra.mxu1 %v5038_v40  ;;  %v4954_v49 = vpop.permute.xlu1 %4953  ;;  %5154 = vmatpush1.bf16.msra.mxu0 %v4972_v58  ;;  %v4952_v11 = vpop.permute.xlu0 %4951 }
 0x371   :  { %5196 = vmatprep.subr.bf16.mxu1 %v4975_v63  ;;  %5155 = vmatprep.subr.bf16.mxu0 %v4985_v50  ;;  %v4997_v20 = vsel %vm4967_vm11, %v4952_v11, %v4954_v49 }
 0x372   :  { %5849 = vrot.lane.b32.xlu1 %v15986_v18, %s13613_s15  ;;  %5847 = vrot.lane.b32.xlu0 %v15995_v6, %s13613_s15  ;;  %v4996_v18 = vsel %vm4967_vm11, %v4950_v36, %v4952_v11 }
 0x373   :  { %12419 = vmatmul.mubr.msk.bf16.vlgmr.msra.gmra.mrb[0].mxu1 %vm338_vm2, %v16528_v55  ;;  %5185 = vmatprep.mubr.bf16.mxu0 %v19859_v46  ;;  %v5044_v30 = vsel %vm342_vm1, %v4996_v18, 0 }
 0x374   :  { %5197 = vmatpush1.bf16.msra.mxu1 %v4974_v44  ;;  %v4958_v45 = vpop.permute.xlu1 %4957  ;;  %5156 = vmatpush1.bf16.msra.mxu0 %v4984_v10  ;;  %v4956_v6 = vpop.permute.xlu0 %4955 }
 0x375   :  { %5198 = vmatprep.subr.bf16.mxu1 %v4987_v57  ;;  %12420 = vmatprep.subr.msk.bf16.mxu0 %vm342_vm1, %v4997_v20  ;;  %v4998_v21 = vsel %vm4967_vm11, %v4954_v49, %v4956_v6  ;;  %v4999_v14 = vsel %vm4967_vm11, %v4956_v6, %v4958_v45 }
 0x376   :  { %5853 = vrot.lane.b32.xlu1 %v16013_v37, %s13613_s15  ;;  %5851 = vrot.lane.b32.xlu0 %v16025_v0, %s13613_s15  ;;  %v4977_v37 = vsel %vm4967_vm11, %v16454_v31, %v16452_v8  ;;  %v5050_v0 = vsel %vm342_vm1, %v4998_v21, 0  ;;  %v4988_v31 = vsel %vm4967_vm11, %v16494_v12, %v16492_v24  ;;  %v4990_v8 = vsel %vm4967_vm11, %v16502_v53, %v16500_v56 }
 0x377   :  { %5228 = vmatprep.mubr.bf16.mxu1 %v19859_v46 }
 0x378   :  { %5199 = vmatpush1.bf16.msra.mxu1 %v4986_v26  ;;  %v4962_v28 = vpop.permute.xlu1 %4961  ;;  %5158 = vmatpush1.bf16.msra.mxu0 %v5044_v30  ;;  %v4960_v36 = vpop.permute.xlu0 %4959 }
 0x379   :  { %12422 = vmatprep.subr.msk.bf16.mxu1 %vm342_vm1, %v4999_v14  ;;  %5239 = vmatprep.subr.bf16.mxu0 %v4977_v37  ;;  %v5001_v3 = vsel %vm4967_vm11, %v4960_v36, %v4962_v28  ;;  %v16729_v37 = vld [vmem:[%s19823_s1 + $0x10] ss:$60 sps:$4 sm:$0xff]  }
 0x37a   :  { %5857 = vrot.lane.b32.xlu1 %v16042_v27, %s13613_s15  ;;  %5855 = vrot.lane.b32.xlu0 %v16052_v32, %s13613_s15  ;;  %v4989_v32 = vsel %vm4967_vm11, %v16492_v24, %v16502_v53 }
 0x37b   :  { %12421 = vmatmul.mubr.msk.bf16.vlgmr.msra.gmra.mrb[4].mxu0 %vm338_vm2, %v16528_v55 }
 0x37c   :  { %5201 = vmatpush1.bf16.msra.mxu1 %v5050_v0  ;;  %v4966_v2 = vpop.permute.xlu1 %4965  ;;  %5240 = vmatpush1.bf16.msra.mxu0 %v4976_v42  ;;  %v4964_v27 = vpop.permute.xlu0 %4963  ;;  %v16736_v0 = vld [vmem:[%s19823_s1 + $0xc] ss:$60 sps:$4 sm:$0xff]  }
 0x37d   :  { %5282 = vmatprep.subr.bf16.mxu1 %v4979_v38  ;;  %5241 = vmatprep.subr.bf16.mxu0 %v4989_v32  ;;  %v5002_v47 = vsel %vm4967_vm11, %v4962_v28, %v4964_v27  ;;  %v16711_v28 = vld [vmem:[%s19823_s1 + $0x8] ss:$60 sps:$4 sm:$0xff]   ;;  %v16747_v38 = vld [vmem:[%s19823_s1 + $0x18] ss:$60 sps:$4 sm:$0xff]  }
 0x37e   :  { %5861 = vrot.lane.b32.xlu1 %v16067_v41, %s13613_s15  ;;  %5859 = vrot.lane.b32.xlu0 %v16075_v43, %s13613_s15  ;;  %v4991_v41 = vsel %vm4967_vm11, %v16500_v56, %v16508_v48  ;;  %v5000_v43 = vsel %vm4967_vm11, %v4958_v45, %v4960_v36  ;;  %v5003_v48 = vsel %vm4967_vm11, %v4964_v27, %v4966_v2  ;;  %v5062_v56 = vsel %vm342_vm1, %v5002_v47, 0  ;;  %v16754_v27 = vld [vmem:[%s19823_s1 + $0x14] ss:$60 sps:$4 sm:$0xff]  }
 0x37f   :  { %12423 = vmatmul.mubr.msk.bf16.vlgmr.msra.gmra.mrb[4].mxu1 %vm338_vm2, %v16528_v55  ;;  %5271 = vmatprep.mubr.bf16.mxu0 %v19859_v46  ;;  %v5056_v24 = vsel %vm342_vm1, %v5000_v43, 0  ;;  %vm11693_vm11 = vcmask 162816  }
 0x380   :  { %5283 = vmatpush1.bf16.msra.mxu1 %v4978_v59  ;;  %v5360_v5 = vpop.permute.xlu1 %5359  ;;  %5242 = vmatpush1.bf16.msra.mxu0 %v4988_v31  ;;  %v5358_v62 = vpop.permute.xlu0 %5357  ;;  %v16761_v31 = vld [vmem:[%s19823_s1 + $0x20] ss:$60 sps:$4 sm:$0xff]  }
 0x381   :  { %5284 = vmatprep.subr.bf16.mxu1 %v4991_v41  ;;  %12424 = vmatprep.subr.msk.bf16.mxu0 %vm342_vm1, %v5001_v3  ;;  %v5436_v53 = vsel %vm5435_vm12, %v5358_v62, %v5360_v5  ;;  %v16776_v3 = vld [vmem:[%s19823_s1 + $0x28] ss:$60 sps:$4 sm:$0xff]  }
 0x382   :  { %5865 = vrot.lane.b32.xlu1 %v16093_v9, %s13613_s15  ;;  %5863 = vrot.lane.b32.xlu0 %v16105_v60, %s13613_s15 }
 0x383   :  { %5314 = vmatprep.mubr.bf16.mxu1 %v19859_v46 }
 0x384   :  { %5285 = vmatpush1.bf16.msra.mxu1 %v4990_v8  ;;  %v5364_v12 = vpop.permute.xlu1 %5363  ;;  %5244 = vmatpush1.bf16.msra.mxu0 %v5056_v24  ;;  %v5362_v9 = vpop.permute.xlu0 %5361  ;;  %v16785_v24 = vld [vmem:[%s19823_s1 + $0x24] ss:$60 sps:$4 sm:$0xff]  }
 0x385   :  { %12426 = vmatprep.subr.msk.bf16.mxu1 %vm342_vm1, %v5003_v48  ;;  %v5437_v60 = vsel %vm5435_vm12, %v5360_v5, %v5362_v9  ;;  %v16768_v5 = vld [vmem:[%s19823_s1 + $0x1c] ss:$60 sps:$4 sm:$0xff]  }
 0x386   :  { %5869 = vrot.lane.b32.xlu1 %v16122_v54, %s13613_s15  ;;  %5867 = vrot.lane.b32.xlu0 %v16132_v22, %s13613_s15  ;;  %v5438_v22 = vsel %vm5435_vm12, %v5362_v9, %v5364_v12 }
 0x387   :  { %5535 = vmatprep.subr.bf16.mxu0 %v5437_v60  ;;  %12425 = vmatmul.mubr.msk.bf16.vlgmr.msra.gmra.mrb[8].mxu0 %vm338_vm2, %v16528_v55  ;;  %v16797_v60 = vld [vmem:[%s19824_s0 + $0x58] sm:$0x1f]  }
 0x388   :  { %5287 = vmatpush1.bf16.msra.mxu1 %v5062_v56  ;;  %v16636_v33 = vpop.permute.xlu1 %5367  ;;  %5536 = vmatpush1.bf16.msra.mxu0 %v5436_v53  ;;  %v16638_v13 = vpop.permute.xlu0 %5365  ;;  %v16802_v53 = vld [vmem:[%s19823_s1 + $0x30] ss:$60 sps:$4 sm:$0xff]  }
 0x389   :  { %5567 = vmatprep.mubr.bf16.mxu0 %v19859_v46  ;;  %v5439_v54 = vsel %vm5435_vm12, %v5364_v12, %v16638_v13 }
 0x38a   :  { %5873 = vrot.lane.b32.xlu1 %v16145_v51, %s13613_s15  ;;  %5871 = vrot.lane.b32.xlu0 %v16153_v4, %s13613_s15 }
 0x38b   :  { %5578 = vmatprep.subr.bf16.mxu1 %v5439_v54  ;;  %12427 = vmatmul.mubr.msk.bf16.vlgmr.msra.gmra.mrb[8].mxu1 %vm338_vm2, %v16528_v55 }
 0x38c   :  { %v16650_v40 = vpop.permute.xlu1 %5371  ;;  %5579 = vmatpush1.bf16.msra.mxu1 %v5438_v22  ;;  %v16652_v58 = vpop.permute.xlu0 %5369  ;;  %5610 = vmatprep.mubr.bf16.mxu1 %v19859_v46  ;;  %v16810_v22 = vld [vmem:[%s19823_s1 + $0x2c] ss:$60 sps:$4 sm:$0xff]  }
 0x38d   :  { %v5441_v9 = vsel %vm5435_vm12, %v16636_v33, %v16652_v58 }
 0x38e   :  { %5877 = vrot.lane.b32.xlu1 %v16170_v34, %s13613_s15  ;;  %5875 = vrot.lane.b32.xlu0 %v16177_v16, %s13613_s15 }
 0x390   :  { %v16659_v51 = vpop.permute.xlu1 %5375  ;;  %v16661_v4 = vpop.permute.xlu0 %5373 }
 0x392   :  { %5881 = vrot.lane.b32.xlu1 %v16192_v25, %s13613_s15  ;;  %5879 = vrot.lane.b32.xlu0 %v16196_v35, %s13613_s15 }
 0x394   :  { %v16667_v55 = vpop.permute.xlu1 %5379  ;;  %v16669_v49 = vpop.permute.xlu0 %5377 }
 0x396   :  { %5885 = vrot.lane.b32.xlu1 %v16207_v39, %s13613_s15  ;;  %5883 = vrot.lane.b32.xlu0 %v16211_v52, %s13613_s15 }
 0x398   :  { %v5384_v16 = vpop.permute.xlu1 %5383  ;;  %v16675_v63 = vpop.permute.xlu0 %5381 }
 0x39a   :  { %5889 = vrot.lane.b32.xlu1 %v16222_v17, %s13613_s15  ;;  %5887 = vrot.lane.b32.xlu0 %v16226_v61, %s13613_s15 }
 0x39c   :  { %v5388_v11 = vpop.permute.xlu1 %5387  ;;  %v5386_v50 = vpop.permute.xlu0 %5385 }
 0x39d   :  { %v5449_v44 = vsel %vm5435_vm12, %v5386_v50, %v5388_v11  ;;  %v5448_v10 = vsel %vm5435_vm12, %v5384_v16, %v5386_v50 }
 0x39e   :  { %5893 = vrot.lane.b32.xlu1 %v16235_v29, %s13613_s15  ;;  %5891 = vrot.lane.b32.xlu0 %v16239_v1, %s13613_s15 }
 0x39f   :  { %5537 = vmatprep.subr.bf16.mxu0 %v5449_v44  ;;  %v5443_v44 = vsel %vm5435_vm12, %v16650_v40, %v16661_v4 }
 0x3a0   :  { %5538 = vmatpush1.bf16.msra.mxu0 %v5448_v10  ;;  %v16687_v45 = vpop.permute.xlu1 %5391  ;;  %v5390_v57 = vpop.permute.xlu0 %5389 }
 0x3a1   :  { %v5451_v18 = vsel %vm5435_vm12, %v5390_v57, %v16687_v45  ;;  %v5450_v6 = vsel %vm5435_vm12, %v5388_v11, %v5390_v57  ;;  %v5440_v11 = vsel %vm5435_vm12, %v16638_v13, %v16636_v33  ;;  %v16837_v33 = vld [vmem:[%s19823_s1 + $0x34] ss:$60 sps:$4 sm:$0xff]   ;;  %v5442_v13 = vsel %vm5435_vm12, %v16652_v58, %v16650_v40  ;;  %v16859_v40 = vld [vmem:[%s19823_s1 + $0x84] ss:$60 sps:$4 sm:$0xff]  }
 0x3a2   :  { %5897 = vrot.lane.b32.xlu1 %v16248_v7, %s13613_s15  ;;  %5895 = vrot.lane.b32.xlu0 %v16252_v19, %s13613_s15  ;;  %v16866_v58 = vld [vmem:[%s19823_s1 + $0x80] ss:$60 sps:$4 sm:$0xff]  }
 0x3a3   :  { %5580 = vmatprep.subr.bf16.mxu1 %v5451_v18  ;;  %v16830_v18 = vld [vmem:[%s19823_s1 + $0x7c] ss:$60 sps:$4 sm:$0xff]  }
 0x3a4   :  { %5581 = vmatpush1.bf16.msra.mxu1 %v5450_v6  ;;  %v16696_v20 = vpop.permute.xlu1 %5395  ;;  %v16698_v26 = vpop.permute.xlu0 %5393 }
 0x3a5   :  { %v5453_v57 = vsel %vm5435_vm12, %v16698_v26, %v16696_v20  ;;  %v5452_v6 = vsel %vm5435_vm12, %v16687_v45, %v16698_v26 }
 0x3a6   :  { %5901 = vrot.lane.b32.xlu1 %v16264_v23, %s13613_s15  ;;  %5899 = vrot.lane.b32.xlu0 %v16268_v15, %s13613_s15  ;;  %v16718_v23 = vld [vmem:[%s19823_s1 + $0x4] ss:$60 sps:$4 sm:$0xff]   ;;  %s13617_s15 = smov 113  }
 0x3a8   :  { %v16704_v21 = vpop.permute.xlu1 %5399  ;;  %v16706_v30 = vpop.permute.xlu0 %5397 }
 0x3a9   :  { %v5454_v45 = vsel %vm5435_vm12, %v16696_v20, %v16706_v30  ;;  %v16884_v20 = vld [vmem:[%s19823_s1 + $0x8c] ss:$60 sps:$4 sm:$0xff]  }
 0x3aa   :  { %6295 = vrot.lane.b32.xlu1 %v16711_v28, %s13614_s22  ;;  %6293 = vrot.lane.b32.xlu0 %v16718_v23, %s13614_s22 }
 0x3ac   :  { %v16722_v14 = vpop.permute.xlu1 %5403  ;;  %v16724_v36 = vpop.permute.xlu0 %5401 }
 0x3ae   :  { %6299 = vrot.lane.b32.xlu1 %v16729_v37, %s13614_s22  ;;  %6297 = vrot.lane.b32.xlu0 %v16736_v0, %s13614_s22 }
 0x3b0   :  { %v16740_v42 = vpop.permute.xlu1 %5407  ;;  %v16742_v2 = vpop.permute.xlu0 %5405 }
 0x3b2   :  { %6303 = vrot.lane.b32.xlu1 %v16747_v38, %s13614_s22  ;;  %6301 = vrot.lane.b32.xlu0 %v16754_v27, %s13614_s22 }
 0x3b4   :  { %v5412_v32 = vpop.permute.xlu1 %5411  ;;  %v5410_v59 = vpop.permute.xlu0 %5409 }
 0x3b5   :  { %v5460_v41 = vsel %vm5435_vm12, %v5410_v59, %v5412_v32  ;;  %v5455_v59 = vsel %vm5435_vm12, %v16706_v30, %v16704_v21  ;;  %v16891_v30 = vld [vmem:[%s19823_s1 + $0x88] ss:$60 sps:$4 sm:$0xff]  }
 0x3b6   :  { %6307 = vrot.lane.b32.xlu1 %v16761_v31, %s13614_s22  ;;  %6305 = vrot.lane.b32.xlu0 %v16768_v5, %s13614_s22  ;;  %v5500_v47 = vsel %vm342_vm1, %v5460_v41, 0 }
 0x3b8   :  { %v5416_v43 = vpop.permute.xlu1 %5415  ;;  %v5414_v62 = vpop.permute.xlu0 %5413 }
 0x3b9   :  { %v5461_v8 = vsel %vm5435_vm12, %v5412_v32, %v5414_v62  ;;  %v5462_v12 = vsel %vm5435_vm12, %v5414_v62, %v5416_v43 }
 0x3ba   :  { %6311 = vrot.lane.b32.xlu1 %v16776_v3, %s13614_s22  ;;  %6309 = vrot.lane.b32.xlu0 %v16785_v24, %s13614_s22  ;;  %v5506_v16 = vsel %vm342_vm1, %v5462_v12, 0 }
 0x3bb   :  { %12431 = vmatprep.subr.msk.bf16.mxu0 %vm342_vm1, %v5461_v8 }
 0x3bc   :  { %5540 = vmatpush1.bf16.msra.mxu0 %v5500_v47  ;;  %v5420_v48 = vpop.permute.xlu1 %5419  ;;  %v5418_v56 = vpop.permute.xlu0 %5417 }
 0x3bd   :  { %5621 = vmatprep.subr.bf16.mxu0 %v5441_v9  ;;  %v5463_v54 = vsel %vm5435_vm12, %v5416_v43, %v5418_v56  ;;  %v5464_v41 = vsel %vm5435_vm12, %v5418_v56, %v5420_v48  ;;  %v5445_v9 = vsel %vm5435_vm12, %v16659_v51, %v16669_v49 }
 0x3be   :  { %6315 = vrot.lane.b32.xlu1 %v16802_v53, %s13614_s22  ;;  %6313 = vrot.lane.b32.xlu0 %v16810_v22, %s13614_s22  ;;  %v5512_v8 = vsel %vm342_vm1, %v5464_v41, 0 }
 0x3bf   :  { %12433 = vmatprep.subr.msk.bf16.mxu1 %vm342_vm1, %v5463_v54  ;;  %12432 = vmatmul.mubr.msk.bf16.vlgmr.msra.gmra.mrb[0].mxu0 %vm338_vm2, %v16797_v60  ;;  %v5444_v54 = vsel %vm5435_vm12, %v16661_v4, %v16659_v51  ;;  %v16917_v51 = vld [vmem:[%s19823_s1 + $0x90] ss:$60 sps:$4 sm:$0xff]   ;;  %v5446_v4 = vsel %vm5435_vm12, %v16669_v49, %v16667_v55  ;;  %v16946_v49 = vld [vmem:[%s19823_s1 + $0x98] ss:$60 sps:$4 sm:$0xff]  }
 0x3c0   :  { %5583 = vmatpush1.bf16.msra.mxu1 %v5506_v16  ;;  %v5424_v50 = vpop.permute.xlu1 %5423  ;;  %5622 = vmatpush1.bf16.msra.mxu0 %v5440_v11  ;;  %v5422_v10 = vpop.permute.xlu0 %5421  ;;  %v5447_v11 = vsel %vm5435_vm12, %v16667_v55, %v16675_v63  ;;  %v5456_v63 = vsel %vm5435_vm12, %v16704_v21, %v16724_v36  ;;  %v16939_v55 = vld [vmem:[%s19823_s1 + $0x9c] ss:$60 sps:$4 sm:$0xff]   ;;  %v5458_v21 = vsel %vm5435_vm12, %v16722_v14, %v16742_v2 }
 0x3c1   :  { %5664 = vmatprep.subr.bf16.mxu1 %v5443_v44  ;;  %5623 = vmatprep.subr.bf16.mxu0 %v5453_v57  ;;  %v5465_v62 = vsel %vm5435_vm12, %v5420_v48, %v5422_v10  ;;  %v5466_v26 = vsel %vm5435_vm12, %v5422_v10, %v5424_v50  ;;  %v5457_v44 = vsel %vm5435_vm12, %v16724_v36, %v16722_v14  ;;  %v16910_v10 = vld [vmem:[%s19823_s1 + $0x94] ss:$60 sps:$4 sm:$0xff]   ;;  %v16964_v14 = vld [vmem:[%s19823_s1 + $0xa4] ss:$60 sps:$4 sm:$0xff]  }
 0x3c2   :  { %6319 = vrot.lane.b32.xlu1 %v16830_v18, %s13614_s22  ;;  %6317 = vrot.lane.b32.xlu0 %v16837_v33, %s13614_s22  ;;  %v5518_v56 = vsel %vm342_vm1, %v5466_v26, 0 }
 0x3c3   :  { %12434 = vmatmul.mubr.msk.bf16.vlgmr.msra.gmra.mrb[0].mxu1 %vm338_vm2, %v16797_v60  ;;  %5653 = vmatprep.mubr.bf16.mxu0 %v19859_v46 }
 0x3c4   :  { %5665 = vmatpush1.bf16.msra.mxu1 %v5442_v13  ;;  %v5428_v32 = vpop.permute.xlu1 %5427  ;;  %5624 = vmatpush1.bf16.msra.mxu0 %v5452_v6  ;;  %v5426_v43 = vpop.permute.xlu0 %5425  ;;  %v5459_v13 = vsel %vm5435_vm12, %v16742_v2, %v16740_v42  ;;  %v16971_v2 = vld [vmem:[%s19823_s1 + $0xa0] ss:$60 sps:$4 sm:$0xff]  }
 0x3c5   :  { %5666 = vmatprep.subr.bf16.mxu1 %v5455_v59  ;;  %12435 = vmatprep.subr.msk.bf16.mxu0 %vm342_vm1, %v5465_v62  ;;  %v5467_v12 = vsel %vm5435_vm12, %v5424_v50, %v5426_v43  ;;  %v5468_v6 = vsel %vm5435_vm12, %v5426_v43, %v5428_v32 }
 0x3c6   :  { %6323 = vrot.lane.b32.xlu1 %v16859_v40, %s13614_s22  ;;  %6321 = vrot.lane.b32.xlu0 %v16866_v58, %s13614_s22 }
 0x3c7   :  { %5696 = vmatprep.mubr.bf16.mxu1 %v19859_v46 }
 0x3c8   :  { %5667 = vmatpush1.bf16.msra.mxu1 %v5454_v45  ;;  %v5432_v47 = vpop.permute.xlu1 %5431  ;;  %5626 = vmatpush1.bf16.msra.mxu0 %v5512_v8  ;;  %v5430_v48 = vpop.permute.xlu0 %5429 }
 0x3c9   :  { %12437 = vmatprep.subr.msk.bf16.mxu1 %vm342_vm1, %v5467_v12  ;;  %5707 = vmatprep.subr.bf16.mxu0 %v5445_v9  ;;  %v5469_v41 = vsel %vm5435_vm12, %v5428_v32, %v5430_v48  ;;  %v5470_v36 = vsel %vm5435_vm12, %v5430_v48, %v5432_v47  ;;  %v5524_v32 = vsel %vm342_vm1, %v5468_v6, 0  ;;  %v16988_v9 = vld [vmem:[%s19823_s1 + $0xac] ss:$60 sps:$4 sm:$0xff]  }
 0x3ca   :  { %6327 = vrot.lane.b32.xlu1 %v16884_v20, %s13614_s22  ;;  %6325 = vrot.lane.b32.xlu0 %v16891_v30, %s13614_s22  ;;  %v5530_v26 = vsel %vm342_vm1, %v5470_v36, 0 }
 0x3cb   :  { %12436 = vmatmul.mubr.msk.bf16.vlgmr.msra.gmra.mrb[4].mxu0 %vm338_vm2, %v16797_v60 }
 0x3cc   :  { %5669 = vmatpush1.bf16.msra.mxu1 %v5518_v56  ;;  %v5826_v16 = vpop.permute.xlu1 %5825  ;;  %5708 = vmatpush1.bf16.msra.mxu0 %v5444_v54  ;;  %v5434_v50 = vpop.permute.xlu0 %5433  ;;  %v16996_v56 = vld [vmem:[%s19823_s1 + $0xa8] ss:$60 sps:$4 sm:$0xff]  }
 0x3cd   :  { %5750 = vmatprep.subr.bf16.mxu1 %v5447_v11  ;;  %5709 = vmatprep.subr.bf16.mxu0 %v5457_v44  ;;  %v5471_v42 = vsel %vm5435_vm12, %v5432_v47, %v5434_v50 }
 0x3ce   :  { %6331 = vrot.lane.b32.xlu1 %v16910_v10, %s13614_s22  ;;  %6329 = vrot.lane.b32.xlu0 %v16917_v51, %s13614_s22 }
 0x3cf   :  { %12438 = vmatmul.mubr.msk.bf16.vlgmr.msra.gmra.mrb[4].mxu1 %vm338_vm2, %v16797_v60  ;;  %5739 = vmatprep.mubr.bf16.mxu0 %v19859_v46 }
 0x3d0   :  { %5751 = vmatpush1.bf16.msra.mxu1 %v5446_v4  ;;  %v5830_v57 = vpop.permute.xlu1 %5829  ;;  %5710 = vmatpush1.bf16.msra.mxu0 %v5456_v63  ;;  %v5828_v59 = vpop.permute.xlu0 %5827 }
 0x3d1   :  { %5752 = vmatprep.subr.bf16.mxu1 %v5459_v13  ;;  %12439 = vmatprep.subr.msk.bf16.mxu0 %vm342_vm1, %v5469_v41  ;;  %v5905_v45 = vsel %vm5903_vm13, %v5828_v59, %v5830_v57  ;;  %v5904_v8 = vsel %vm5903_vm13, %v5826_v16, %v5828_v59 }
 0x3d2   :  { %6335 = vrot.lane.b32.xlu1 %v16939_v55, %s13614_s22  ;;  %6333 = vrot.lane.b32.xlu0 %v16946_v49, %s13614_s22 }
 0x3d3   :  { %5782 = vmatprep.mubr.bf16.mxu1 %v19859_v46 }
 0x3d4   :  { %5753 = vmatpush1.bf16.msra.mxu1 %v5458_v21  ;;  %v16957_v43 = vpop.permute.xlu1 %5833  ;;  %5712 = vmatpush1.bf16.msra.mxu0 %v5524_v32  ;;  %v5832_v62 = vpop.permute.xlu0 %5831 }
 0x3d5   :  { %12441 = vmatprep.subr.msk.bf16.mxu1 %vm342_vm1, %v5471_v42  ;;  %6003 = vmatprep.subr.bf16.mxu0 %v5905_v45  ;;  %v5907_v12 = vsel %vm5903_vm13, %v5832_v62, %v16957_v43  ;;  %v5906_v54 = vsel %vm5903_vm13, %v5830_v57, %v5832_v62 }
 0x3d6   :  { %6339 = vrot.lane.b32.xlu1 %v16964_v14, %s13614_s22  ;;  %6337 = vrot.lane.b32.xlu0 %v16971_v2, %s13614_s22 }
 0x3d7   :  { %12440 = vmatmul.mubr.msk.bf16.vlgmr.msra.gmra.mrb[8].mxu0 %vm338_vm2, %v16797_v60 }
 0x3d8   :  { %5755 = vmatpush1.bf16.msra.mxu1 %v5530_v26  ;;  %v16979_v47 = vpop.permute.xlu1 %5837  ;;  %6004 = vmatpush1.bf16.msra.mxu0 %v5904_v8  ;;  %v16983_v48 = vpop.permute.xlu0 %5835  ;;  %v17053_v26 = vld [vmem:[%s19823_s1 + $0x124] ss:$0 sps:$4 sm:$0xff]  }
 0x3d9   :  { %6046 = vmatprep.subr.bf16.mxu1 %v5907_v12  ;;  %6035 = vmatprep.mubr.bf16.mxu0 %v19859_v46 }
 0x3da   :  { %6343 = vrot.lane.b32.xlu1 %v16988_v9, %s13614_s22  ;;  %6341 = vrot.lane.b32.xlu0 %v16996_v56, %s13614_s22 }
 0x3db   :  { %12442 = vmatmul.mubr.msk.bf16.vlgmr.msra.gmra.mrb[8].mxu1 %vm338_vm2, %v16797_v60 }
 0x3dc   :  { %6047 = vmatpush1.bf16.msra.mxu1 %v5906_v54  ;;  %v17003_v16 = vpop.permute.xlu1 %5841  ;;  %6078 = vmatprep.mubr.bf16.mxu1 %v19859_v46  ;;  %v17006_v11 = vpop.permute.xlu0 %5839 }
 0x3de   :  { %6347 = vrot.lane.b32.xlu1 %v16196_v35, %s13614_s22  ;;  %6345 = vrot.lane.b32.xlu0 %v16170_v34, %s13614_s22 }
 0x3e0   :  { %v17012_v50 = vpop.permute.xlu1 %5845  ;;  %v17014_v44 = vpop.permute.xlu0 %5843 }
 0x3e2   :  { %6351 = vrot.lane.b32.xlu1 %v16211_v52, %s13614_s22  ;;  %6349 = vrot.lane.b32.xlu0 %v16192_v25, %s13614_s22 }
 0x3e4   :  { %v17020_v60 = vpop.permute.xlu1 %5849  ;;  %v17022_v4 = vpop.permute.xlu0 %5847 }
 0x3e6   :  { %6355 = vrot.lane.b32.xlu1 %v16226_v61, %s13614_s22  ;;  %6353 = vrot.lane.b32.xlu0 %v16207_v39, %s13614_s22 }
 0x3e8   :  { %v5854_v63 = vpop.permute.xlu1 %5853  ;;  %v5852_v57 = vpop.permute.xlu0 %5851 }
 0x3e9   :  { %v5916_v41 = vsel %vm5903_vm13, %v5852_v57, %v5854_v63 }
 0x3ea   :  { %6359 = vrot.lane.b32.xlu1 %v16239_v1, %s13614_s22  ;;  %6357 = vrot.lane.b32.xlu0 %v16222_v17, %s13614_s22 }
 0x3ec   :  { %v5858_v13 = vpop.permute.xlu1 %5857  ;;  %v5856_v6 = vpop.permute.xlu0 %5855 }
 0x3ed   :  { %v5917_v59 = vsel %vm5903_vm13, %v5854_v63, %v5856_v6  ;;  %v5918_v32 = vsel %vm5903_vm13, %v5856_v6, %v5858_v13  ;;  %v17093_v6 = vld [vmem:[%s19824_s0 + $0x60] sm:$0x1f]  }
 0x3ee   :  { %6363 = vrot.lane.b32.xlu1 %v16252_v19, %s13614_s22  ;;  %6361 = vrot.lane.b32.xlu0 %v16235_v29, %s13614_s22 }
 0x3ef   :  { %6005 = vmatprep.subr.bf16.mxu0 %v5917_v59 }
 0x3f0   :  { %6006 = vmatpush1.bf16.msra.mxu0 %v5916_v41  ;;  %v5862_v21 = vpop.permute.xlu1 %5861  ;;  %v5860_v36 = vpop.permute.xlu0 %5859 }
 0x3f1   :  { %v5919_v42 = vsel %vm5903_vm13, %v5858_v13, %v5860_v36 }
 0x3f2   :  { %6367 = vrot.lane.b32.xlu1 %v16268_v15, %s13614_s22  ;;  %6365 = vrot.lane.b32.xlu0 %v16248_v7, %s13614_s22 }
 0x3f3   :  { %6048 = vmatprep.subr.bf16.mxu1 %v5919_v42  ;;  %v5908_v42 = vsel %vm5903_vm13, %v16957_v43, %v16983_v48  ;;  %v5910_v43 = vsel %vm5903_vm13, %v16979_v47, %v17006_v11 }
 0x3f4   :  { %6049 = vmatpush1.bf16.msra.mxu1 %v5918_v32  ;;  %v17044_v62 = vpop.permute.xlu1 %5865  ;;  %v17046_v45 = vpop.permute.xlu0 %5863 }
 0x3f6   :  { %6761 = vrot.lane.b32.xlu1 %v16718_v23, %s13615_s23  ;;  %6369 = vrot.lane.b32.xlu0 %v17053_v26, %s13614_s22 }
 0x3f8   :  { %v17057_v8 = vpop.permute.xlu1 %5869  ;;  %v17059_v12 = vpop.permute.xlu0 %5867 }
 0x3fa   :  { %6765 = vrot.lane.b32.xlu1 %v16736_v0, %s13615_s23  ;;  %6763 = vrot.lane.b32.xlu0 %v16711_v28, %s13615_s23 }
 0x3fc   :  { %v17065_v54 = vpop.permute.xlu1 %5873  ;;  %v17067_v23 = vpop.permute.xlu0 %5871 }
 0x3fe   :  { %6769 = vrot.lane.b32.xlu1 %v16754_v27, %s13615_s23  ;;  %6767 = vrot.lane.b32.xlu0 %v16729_v37, %s13615_s23 }
 0x400   :  { %v5878_v63 = vpop.permute.xlu1 %5877  ;;  %v17073_v57 = vpop.permute.xlu0 %5875 }
 0x402   :  { %6773 = vrot.lane.b32.xlu1 %v16768_v5, %s13615_s23  ;;  %6771 = vrot.lane.b32.xlu0 %v16747_v38, %s13615_s23  ;;  %v5909_v38 = vsel %vm5903_vm13, %v16983_v48, %v16979_v47  ;;  %v5920_v48 = vsel %vm5903_vm13, %v5860_v36, %v5862_v21  ;;  %v5922_v47 = vsel %vm5903_vm13, %v17046_v45, %v17044_v62 }
 0x404   :  { %v5882_v28 = vpop.permute.xlu1 %5881  ;;  %v5880_v0 = vpop.permute.xlu0 %5879 }
 0x405   :  { %v5928_v13 = vsel %vm5903_vm13, %v5878_v63, %v5880_v0  ;;  %v5929_v27 = vsel %vm5903_vm13, %v5880_v0, %v5882_v28  ;;  %v5923_v0 = vsel %vm5903_vm13, %v17044_v62, %v17059_v12  ;;  %v5912_v62 = vsel %vm5903_vm13, %v17003_v16, %v17014_v44 }
 0x406   :  { %6777 = vrot.lane.b32.xlu1 %v16785_v24, %s13615_s23  ;;  %6775 = vrot.lane.b32.xlu0 %v16761_v31, %s13615_s23  ;;  %v5968_v37 = vsel %vm342_vm1, %v5928_v13, 0 }
 0x407   :  { %12446 = vmatprep.subr.msk.bf16.mxu0 %vm342_vm1, %v5929_v27 }
 0x408   :  { %6008 = vmatpush1.bf16.msra.mxu0 %v5968_v37  ;;  %v5886_v5 = vpop.permute.xlu1 %5885  ;;  %v5884_v24 = vpop.permute.xlu0 %5883 }
 0x409   :  { %6089 = vmatprep.subr.bf16.mxu0 %v5909_v38  ;;  %v5930_v59 = vsel %vm5903_vm13, %v5882_v28, %v5884_v24  ;;  %v5931_v31 = vsel %vm5903_vm13, %v5884_v24, %v5886_v5 }
 0x40a   :  { %6781 = vrot.lane.b32.xlu1 %v16810_v22, %s13615_s23  ;;  %6779 = vrot.lane.b32.xlu0 %v16776_v3, %s13615_s23  ;;  %v5974_v41 = vsel %vm342_vm1, %v5930_v59, 0  ;;  %v5911_v22 = vsel %vm5903_vm13, %v17006_v11, %v17003_v16  ;;  %v5921_v3 = vsel %vm5903_vm13, %v5862_v21, %v17046_v45  ;;  %v5914_v16 = vsel %vm5903_vm13, %v17012_v50, %v17022_v4 }
 0x40b   :  { %12448 = vmatprep.subr.msk.bf16.mxu1 %vm342_vm1, %v5931_v31  ;;  %12447 = vmatmul.mubr.msk.bf16.vlgmr.msra.gmra.mrb[0].mxu0 %vm338_vm2, %v17093_v6 }
 0x40c   :  { %6051 = vmatpush1.bf16.msra.mxu1 %v5974_v41  ;;  %v5890_v32 = vpop.permute.xlu1 %5889  ;;  %6090 = vmatpush1.bf16.msra.mxu0 %v5908_v42  ;;  %v5888_v63 = vpop.permute.xlu0 %5887 }
 0x40d   :  { %6132 = vmatprep.subr.bf16.mxu1 %v5911_v22  ;;  %6091 = vmatprep.subr.bf16.mxu0 %v5921_v3  ;;  %v5933_v13 = vsel %vm5903_vm13, %v5888_v63, %v5890_v32 }
 0x40e   :  { %6785 = vrot.lane.b32.xlu1 %v16837_v33, %s13615_s23  ;;  %6783 = vrot.lane.b32.xlu0 %v16802_v53, %s13615_s23  ;;  %v5932_v33 = vsel %vm5903_vm13, %v5886_v5, %v5888_v63  ;;  %v5915_v5 = vsel %vm5903_vm13, %v17022_v4, %v17020_v60 }
 0x40f   :  { %12449 = vmatmul.mubr.msk.bf16.vlgmr.msra.gmra.mrb[0].mxu1 %vm338_vm2, %v17093_v6  ;;  %6121 = vmatprep.mubr.bf16.mxu0 %v19859_v46  ;;  %v5980_v21 = vsel %vm342_vm1, %v5932_v33, 0  ;;  %v17313_v33 = vld [vmem:[%s19823_s1 + $0x18] ss:$60 sps:$4 sm:$0xff]  }
 0x410   :  { %6133 = vmatpush1.bf16.msra.mxu1 %v5910_v43  ;;  %v5894_v28 = vpop.permute.xlu1 %5893  ;;  %6092 = vmatpush1.bf16.msra.mxu0 %v5920_v48  ;;  %v5892_v53 = vpop.permute.xlu0 %5891  ;;  %19877 = vst [vmem:[#allocation2_spill] sm:$0xff] %v17313_v33 }
 0x411   :  { %6134 = vmatprep.subr.bf16.mxu1 %v5923_v0  ;;  %12450 = vmatprep.subr.msk.bf16.mxu0 %vm342_vm1, %v5933_v13  ;;  %v5934_v11 = vsel %vm5903_vm13, %v5890_v32, %v5892_v53  ;;  %v5935_v27 = vsel %vm5903_vm13, %v5892_v53, %v5894_v28  ;;  %v17306_v0 = vld [vmem:[%s19823_s1 + $0x1c] ss:$60 sps:$4 sm:$0xff]  }
 0x412   :  { %6789 = vrot.lane.b32.xlu1 %v16866_v58, %s13615_s23  ;;  %6787 = vrot.lane.b32.xlu0 %v16830_v18, %s13615_s23  ;;  %v5913_v18 = vsel %vm5903_vm13, %v17014_v44, %v17012_v50  ;;  %v5986_v58 = vsel %vm342_vm1, %v5934_v11, 0  ;;  %v5924_v44 = vsel %vm5903_vm13, %v17059_v12, %v17057_v8  ;;  %v5926_v50 = vsel %vm5903_vm13, %v17067_v23, %v17065_v54  ;;  %v17331_v11 = vld [vmem:[%s19823_s1 + $0x20] ss:$60 sps:$4 sm:$0xff]  }
 0x413   :  { %6164 = vmatprep.mubr.bf16.mxu1 %v19859_v46  ;;  %19878 = vst [vmem:[#allocation3_spill] sm:$0xff] %v17331_v11 }
 0x414   :  { %6135 = vmatpush1.bf16.msra.mxu1 %v5922_v47  ;;  %v5898_v36 = vpop.permute.xlu1 %5897  ;;  %6094 = vmatpush1.bf16.msra.mxu0 %v5980_v21  ;;  %v5896_v37 = vpop.permute.xlu0 %5895  ;;  %v17324_v47 = vld [vmem:[%s19823_s1 + $0x24] ss:$60 sps:$4 sm:$0xff]  }
 0x415   :  { %12452 = vmatprep.subr.msk.bf16.mxu1 %vm342_vm1, %v5935_v27  ;;  %6175 = vmatprep.subr.bf16.mxu0 %v5913_v18  ;;  %v5937_v24 = vsel %vm5903_vm13, %v5896_v37, %v5898_v36  ;;  %v17338_v27 = vld [vmem:[%s19823_s1 + $0x2c] ss:$60 sps:$4 sm:$0xff]  }
 0x416   :  { %6793 = vrot.lane.b32.xlu1 %v16891_v30, %s13615_s23  ;;  %6791 = vrot.lane.b32.xlu0 %v16859_v40, %s13615_s23  ;;  %v5925_v40 = vsel %vm5903_vm13, %v17057_v8, %v17067_v23 }
 0x417   :  { %12451 = vmatmul.mubr.msk.bf16.vlgmr.msra.gmra.mrb[4].mxu0 %vm338_vm2, %v17093_v6 }
 0x418   :  { %6137 = vmatpush1.bf16.msra.mxu1 %v5986_v58  ;;  %v5902_v45 = vpop.permute.xlu1 %5901  ;;  %6176 = vmatpush1.bf16.msra.mxu0 %v5912_v62  ;;  %v5900_v30 = vpop.permute.xlu0 %5899 }
 0x419   :  { %6218 = vmatprep.subr.bf16.mxu1 %v5915_v5  ;;  %6177 = vmatprep.subr.bf16.mxu0 %v5925_v40  ;;  %v5938_v4 = vsel %vm5903_vm13, %v5898_v36, %v5900_v30  ;;  %v17354_v5 = vld [vmem:[%s19823_s1 + $0x34] ss:$60 sps:$4 sm:$0xff]  }
 0x41a   :  { %6797 = vrot.lane.b32.xlu1 %v16917_v51, %s13615_s23  ;;  %6795 = vrot.lane.b32.xlu0 %v16884_v20, %s13615_s23  ;;  %v5927_v51 = vsel %vm5903_vm13, %v17065_v54, %v17073_v57  ;;  %v5936_v20 = vsel %vm5903_vm13, %v5894_v28, %v5896_v37  ;;  %v5939_v57 = vsel %vm5903_vm13, %v5900_v30, %v5902_v45  ;;  %v5998_v54 = vsel %vm342_vm1, %v5938_v4, 0  ;;  %v17345_v37 = vld [vmem:[%s19823_s1 + $0x28] ss:$60 sps:$4 sm:$0xff]   ;;  %v17363_v40 = vld [vmem:[%s19823_s1 + $0x30] ss:$60 sps:$4 sm:$0xff]  }
 0x41b   :  { %12453 = vmatmul.mubr.msk.bf16.vlgmr.msra.gmra.mrb[4].mxu1 %vm338_vm2, %v17093_v6  ;;  %6207 = vmatprep.mubr.bf16.mxu0 %v19859_v46  ;;  %v5992_v8 = vsel %vm342_vm1, %v5936_v20, 0  ;;  %19879 = vst [vmem:[#allocation4_spill] sm:$0xff] %v17345_v37  ;;  %v17389_v4 = vld [vmem:[%s19823_s1 + $0x38] ss:$60 sps:$4 sm:$0xff]  }
 0x41c   :  { %6219 = vmatpush1.bf16.msra.mxu1 %v5914_v16  ;;  %v6296_v60 = vpop.permute.xlu1 %6295  ;;  %6178 = vmatpush1.bf16.msra.mxu0 %v5924_v44  ;;  %v6294_v38 = vpop.permute.xlu0 %6293 }
 0x41d   :  { %6220 = vmatprep.subr.bf16.mxu1 %v5927_v51  ;;  %12454 = vmatprep.subr.msk.bf16.mxu0 %vm342_vm1, %v5937_v24  ;;  %v6372_v23 = vsel %vm6371_vm14, %v6294_v38, %v6296_v60  ;;  %v17372_v51 = vld [vmem:[%s19824_s0 + $0x68] sm:$0x1f]   ;;  %v17380_v24 = vld [vmem:[%s19823_s1 + $0x80] ss:$60 sps:$4 sm:$0xff]  }
 0x41e   :  { %6801 = vrot.lane.b32.xlu1 %v16946_v49, %s13615_s23  ;;  %6799 = vrot.lane.b32.xlu0 %v16910_v10, %s13615_s23 }
 0x41f   :  { %6250 = vmatprep.mubr.bf16.mxu1 %v19859_v46 }
 0x420   :  { %6221 = vmatpush1.bf16.msra.mxu1 %v5926_v50  ;;  %v6300_v12 = vpop.permute.xlu1 %6299  ;;  %6180 = vmatpush1.bf16.msra.mxu0 %v5992_v8  ;;  %v6298_v49 = vpop.permute.xlu0 %6297 }
 0x421   :  { %12456 = vmatprep.subr.msk.bf16.mxu1 %vm342_vm1, %v5939_v57  ;;  %v6373_v10 = vsel %vm6371_vm14, %v6296_v60, %v6298_v49 }
 0x422   :  { %6805 = vrot.lane.b32.xlu1 %v16971_v2, %s13615_s23  ;;  %6803 = vrot.lane.b32.xlu0 %v16939_v55, %s13615_s23  ;;  %v6374_v2 = vsel %vm6371_vm14, %v6298_v49, %v6300_v12 }
 0x423   :  { %6471 = vmatprep.subr.bf16.mxu0 %v6373_v10  ;;  %12455 = vmatmul.mubr.msk.bf16.vlgmr.msra.gmra.mrb[8].mxu0 %vm338_vm2, %v17093_v6 }
 0x424   :  { %6223 = vmatpush1.bf16.msra.mxu1 %v5998_v54  ;;  %v17201_v59 = vpop.permute.xlu1 %6303  ;;  %6472 = vmatpush1.bf16.msra.mxu0 %v6372_v23  ;;  %v17203_v31 = vpop.permute.xlu0 %6301  ;;  %v17407_v54 = vld [vmem:[%s19823_s1 + $0x88] ss:$60 sps:$4 sm:$0xff]  }
 0x425   :  { %6503 = vmatprep.mubr.bf16.mxu0 %v19859_v46  ;;  %v6375_v55 = vsel %vm6371_vm14, %v6300_v12, %v17203_v31  ;;  %v6376_v8 = vsel %vm6371_vm14, %v17203_v31, %v17201_v59 }
 0x426   :  { %6809 = vrot.lane.b32.xlu1 %v16996_v56, %s13615_s23  ;;  %6807 = vrot.lane.b32.xlu0 %v16964_v14, %s13615_s23 }
 0x427   :  { %6514 = vmatprep.subr.bf16.mxu1 %v6375_v55  ;;  %12457 = vmatmul.mubr.msk.bf16.vlgmr.msra.gmra.mrb[8].mxu1 %vm338_vm2, %v17093_v6 }
 0x428   :  { %v17215_v41 = vpop.permute.xlu1 %6307  ;;  %6515 = vmatpush1.bf16.msra.mxu1 %v6374_v2  ;;  %v17217_v42 = vpop.permute.xlu0 %6305  ;;  %6546 = vmatprep.mubr.bf16.mxu1 %v19859_v46 }
 0x429   :  { %v6377_v60 = vsel %vm6371_vm14, %v17201_v59, %v17217_v42  ;;  %v6378_v23 = vsel %vm6371_vm14, %v17217_v42, %v17215_v41  ;;  %v17419_v59 = vld [vmem:[%s19823_s1 + $0x84] ss:$60 sps:$4 sm:$0xff]  }
 0x42a   :  { %6813 = vrot.lane.b32.xlu1 %v16170_v34, %s13615_s23  ;;  %6811 = vrot.lane.b32.xlu0 %v16988_v9, %s13615_s23 }
 0x42c   :  { %v17224_v14 = vpop.permute.xlu1 %6311  ;;  %v17226_v56 = vpop.permute.xlu0 %6309 }
 0x42d   :  { %v6379_v57 = vsel %vm6371_vm14, %v17215_v41, %v17226_v56 }
 0x42e   :  { %6817 = vrot.lane.b32.xlu1 %v16192_v25, %s13615_s23  ;;  %6815 = vrot.lane.b32.xlu0 %v16196_v35, %s13615_s23 }
 0x430   :  { %v17232_v6 = vpop.permute.xlu1 %6315  ;;  %v17234_v32 = vpop.permute.xlu0 %6313 }
 0x432   :  { %6821 = vrot.lane.b32.xlu1 %v16207_v39, %s13615_s23  ;;  %6819 = vrot.lane.b32.xlu0 %v16211_v52, %s13615_s23 }
 0x434   :  { %v6320_v34 = vpop.permute.xlu1 %6319  ;;  %v17240_v9 = vpop.permute.xlu0 %6317 }
 0x436   :  { %6825 = vrot.lane.b32.xlu1 %v16222_v17, %s13615_s23  ;;  %6823 = vrot.lane.b32.xlu0 %v16226_v61, %s13615_s23 }
 0x438   :  { %v6324_v25 = vpop.permute.xlu1 %6323  ;;  %v6322_v35 = vpop.permute.xlu0 %6321 }
 0x439   :  { %v6385_v22 = vsel %vm6371_vm14, %v6322_v35, %v6324_v25  ;;  %v6384_v39 = vsel %vm6371_vm14, %v6320_v34, %v6322_v35 }
 0x43a   :  { %6829 = vrot.lane.b32.xlu1 %v16235_v29, %s13615_s23  ;;  %6827 = vrot.lane.b32.xlu0 %v16239_v1, %s13615_s23 }
 0x43b   :  { %6473 = vmatprep.subr.bf16.mxu0 %v6385_v22  ;;  %v17446_v22 = vld [vmem:[%s19823_s1 + $0x8c] ss:$60 sps:$4 sm:$0xff]  }
 0x43c   :  { %6474 = vmatpush1.bf16.msra.mxu0 %v6384_v39  ;;  %v17252_v52 = vpop.permute.xlu1 %6327  ;;  %v6326_v17 = vpop.permute.xlu0 %6325 }
 0x43d   :  { %v6387_v61 = vsel %vm6371_vm14, %v6326_v17, %v17252_v52  ;;  %v6386_v29 = vsel %vm6371_vm14, %v6324_v25, %v6326_v17  ;;  %v17436_v25 = vld [vmem:[%s19823_s1 + $0x90] ss:$60 sps:$4 sm:$0xff]  }
 0x43e   :  { %6833 = vrot.lane.b32.xlu1 %v16248_v7, %s13615_s23  ;;  %6831 = vrot.lane.b32.xlu0 %v16252_v19, %s13615_s23  ;;  %v17270_v7 = vld [vmem:[%s19823_s1 + $0xc] ss:$60 sps:$4 sm:$0xff]  }
 0x43f   :  { %6516 = vmatprep.subr.bf16.mxu1 %v6387_v61  ;;  %v17277_v19 = vld [vmem:[%s19823_s1 + $0x8] ss:$60 sps:$4 sm:$0xff]  }
 0x440   :  { %6517 = vmatpush1.bf16.msra.mxu1 %v6386_v29  ;;  %v17261_v63 = vpop.permute.xlu1 %6331  ;;  %v17263_v1 = vpop.permute.xlu0 %6329 }
 0x441   :  { %v6389_v10 = vsel %vm6371_vm14, %v17263_v1, %v17261_v63  ;;  %v6388_v31 = vsel %vm6371_vm14, %v17252_v52, %v17263_v1  ;;  %v17461_v1 = vld [vmem:[%s19823_s1 + $0x98] ss:$60 sps:$4 sm:$0xff]  }
 0x442   :  { %6837 = vrot.lane.b32.xlu1 %v17053_v26, %s13615_s23  ;;  %6835 = vrot.lane.b32.xlu0 %v16268_v15, %s13615_s23  ;;  %v17288_v26 = vld [vmem:[%s19823_s1 + $0x14] ss:$60 sps:$4 sm:$0xff]  }
 0x443   :  { %v17295_v15 = vld [vmem:[%s19823_s1 + $0x10] ss:$60 sps:$4 sm:$0xff]  }
 0x444   :  { %v17279_v3 = vpop.permute.xlu1 %6335  ;;  %v17281_v43 = vpop.permute.xlu0 %6333 }
 0x445   :  { %v6391_v2 = vsel %vm6371_vm14, %v17281_v43, %v17279_v3  ;;  %v6390_v35 = vsel %vm6371_vm14, %v17261_v63, %v17281_v43  ;;  %v6381_v63 = vsel %vm6371_vm14, %v17224_v14, %v17234_v32 }
 0x446   :  { %7405 = vrot.lane.b32.xlu1 %v17270_v7, %s13616_s30  ;;  %7403 = vrot.lane.b32.xlu0 %v17277_v19, %s13616_s30 }
 0x448   :  { %v17297_v48 = vpop.permute.xlu1 %6339  ;;  %v17299_v28 = vpop.permute.xlu0 %6337 }
 0x44a   :  { %7409 = vrot.lane.b32.xlu1 %v17288_v26, %s13616_s30  ;;  %7407 = vrot.lane.b32.xlu0 %v17295_v15, %s13616_s30 }
 0x44c   :  { %v17315_v53 = vpop.permute.xlu1 %6343  ;;  %v17317_v13 = vpop.permute.xlu0 %6341 }
 0x44e   :  { %7413 = vrot.lane.b32.xlu1 %v17306_v0, %s13616_s30  ;;  %7411 = vrot.lane.b32.xlu0 %v17313_v33, %s13616_s30 }
 0x450   :  { %v6348_v21 = vpop.permute.xlu1 %6347  ;;  %v6346_v36 = vpop.permute.xlu0 %6345 }
 0x451   :  { %v6396_v18 = vsel %vm6371_vm14, %v6346_v36, %v6348_v21  ;;  %v6380_v36 = vsel %vm6371_vm14, %v17226_v56, %v17224_v14  ;;  %v17487_v14 = vld [vmem:[%s19823_s1 + $0xa0] ss:$60 sps:$4 sm:$0xff]   ;;  %v6382_v56 = vsel %vm6371_vm14, %v17234_v32, %v17232_v6 }
 0x452   :  { %7417 = vrot.lane.b32.xlu1 %v17324_v47, %s13616_s30  ;;  %7415 = vrot.lane.b32.xlu0 %v17331_v11, %s13616_s30  ;;  %v6436_v30 = vsel %vm342_vm1, %v6396_v18, 0 }
 0x454   :  { %v6352_v58 = vpop.permute.xlu1 %6351  ;;  %v6350_v62 = vpop.permute.xlu0 %6349 }
 0x455   :  { %v6397_v45 = vsel %vm6371_vm14, %v6348_v21, %v6350_v62  ;;  %v6398_v16 = vsel %vm6371_vm14, %v6350_v62, %v6352_v58  ;;  %v17469_v21 = vld [vmem:[%s19823_s1 + $0x94] ss:$60 sps:$4 sm:$0xff]  }
 0x456   :  { %7421 = vrot.lane.b32.xlu1 %v17338_v27, %s13616_s30  ;;  %7419 = vrot.lane.b32.xlu0 %v17345_v37, %s13616_s30  ;;  %v6442_v50 = vsel %vm342_vm1, %v6398_v16, 0 }
 0x457   :  { %12461 = vmatprep.subr.msk.bf16.mxu0 %vm342_vm1, %v6397_v45  ;;  %v6393_v45 = vsel %vm6371_vm14, %v17299_v28, %v17297_v48 }
 0x458   :  { %6476 = vmatpush1.bf16.msra.mxu0 %v6436_v30  ;;  %v6356_v44 = vpop.permute.xlu1 %6355  ;;  %v6354_v20 = vpop.permute.xlu0 %6353  ;;  %v6392_v30 = vsel %vm6371_vm14, %v17279_v3, %v17299_v28  ;;  %v17516_v3 = vld [vmem:[%s19823_s1 + $0xa8] ss:$60 sps:$4 sm:$0xff]   ;;  %v6394_v28 = vsel %vm6371_vm14, %v17297_v48, %v17317_v13 }
 0x459   :  { %6557 = vmatprep.subr.bf16.mxu0 %v6377_v60  ;;  %v6399_v38 = vsel %vm6371_vm14, %v6352_v58, %v6354_v20  ;;  %v6400_v34 = vsel %vm6371_vm14, %v6354_v20, %v6356_v44  ;;  %v6383_v58 = vsel %vm6371_vm14, %v17232_v6, %v17240_v9  ;;  %v17499_v9 = vld [vmem:[%s19823_s1 + $0x9c] ss:$60 sps:$4 sm:$0xff]  }
 0x45a   :  { %7425 = vrot.lane.b32.xlu1 %v17354_v5, %s13616_s30  ;;  %7423 = vrot.lane.b32.xlu0 %v17363_v40, %s13616_s30  ;;  %v6448_v52 = vsel %vm342_vm1, %v6400_v34, 0 }
 0x45b   :  { %12463 = vmatprep.subr.msk.bf16.mxu1 %vm342_vm1, %v6399_v38  ;;  %12462 = vmatmul.mubr.msk.bf16.vlgmr.msra.gmra.mrb[0].mxu0 %vm338_vm2, %v17372_v51 }
 0x45c   :  { %6519 = vmatpush1.bf16.msra.mxu1 %v6442_v50  ;;  %v6360_v12 = vpop.permute.xlu1 %6359  ;;  %6558 = vmatpush1.bf16.msra.mxu0 %v6376_v8  ;;  %v6358_v49 = vpop.permute.xlu0 %6357 }
 0x45d   :  { %6600 = vmatprep.subr.bf16.mxu1 %v6379_v57  ;;  %6559 = vmatprep.subr.bf16.mxu0 %v6389_v10  ;;  %v6401_v42 = vsel %vm6371_vm14, %v6356_v44, %v6358_v49  ;;  %v6402_v39 = vsel %vm6371_vm14, %v6358_v49, %v6360_v12  ;;  %v6395_v44 = vsel %vm6371_vm14, %v17317_v13, %v17315_v53  ;;  %v17526_v53 = vld [vmem:[%s19823_s1 + $0xa4] ss:$60 sps:$4 sm:$0xff]   ;;  %v17541_v13 = vld [vmem:[%s19823_s1 + $0xb0] ss:$60 sps:$4 sm:$0xff]   ;;  %v7252_v10 = vld [vmem:[%s19823_s1 + $0xf8] sm:$0xff] }
 0x45e   :  { %7429 = vrot.lane.b32.xlu1 %v17380_v24, %s13616_s30  ;;  %7427 = vrot.lane.b32.xlu0 %v17389_v4, %s13616_s30  ;;  %v6454_v43 = vsel %vm342_vm1, %v6402_v39, 0  ;;  %v17549_v49 = vld [vmem:[%s19823_s1 + $0xac] ss:$60 sps:$4 sm:$0xff]   ;;  %v17565_v34 = vcombine.high %v7252_v10, %v7252_v10 }
 0x45f   :  { %12464 = vmatmul.mubr.msk.bf16.vlgmr.msra.gmra.mrb[0].mxu1 %vm338_vm2, %v17372_v51  ;;  %6589 = vmatprep.mubr.bf16.mxu0 %v19859_v46 }
 0x460   :  { %6601 = vmatpush1.bf16.msra.mxu1 %v6378_v23  ;;  %v6364_v55 = vpop.permute.xlu1 %6363  ;;  %6560 = vmatpush1.bf16.msra.mxu0 %v6388_v31  ;;  %v6362_v41 = vpop.permute.xlu0 %6361 }
 0x461   :  { %6602 = vmatprep.subr.bf16.mxu1 %v6391_v2  ;;  %12465 = vmatprep.subr.msk.bf16.mxu0 %vm342_vm1, %v6401_v42  ;;  %v6403_v61 = vsel %vm6371_vm14, %v6360_v12, %v6362_v41  ;;  %v6404_v60 = vsel %vm6371_vm14, %v6362_v41, %v6364_v55  ;;  %v17573_v42 = vcombine.low %v7252_v10, %v7252_v10 }
 0x462   :  { %7433 = vrot.lane.b32.xlu1 %v17407_v54, %s13616_s30  ;;  %7431 = vrot.lane.b32.xlu0 %v17419_v59, %s13616_s30  ;;  %v6460_v50 = vsel %vm342_vm1, %v6404_v60, 0 }
 0x463   :  { %6632 = vmatprep.mubr.bf16.mxu1 %v19859_v46 }
 0x464   :  { %6603 = vmatpush1.bf16.msra.mxu1 %v6390_v35  ;;  %v6368_v17 = vpop.permute.xlu1 %6367  ;;  %6562 = vmatpush1.bf16.msra.mxu0 %v6448_v52  ;;  %v6366_v29 = vpop.permute.xlu0 %6365  ;;  %v7253_v35 = vld [vmem:[%s19823_s1 + $0x100] sm:$0xff] }
 0x465   :  { %12467 = vmatprep.subr.msk.bf16.mxu1 %vm342_vm1, %v6403_v61  ;;  %6643 = vmatprep.subr.bf16.mxu0 %v6381_v63  ;;  %v6405_v32 = vsel %vm6371_vm14, %v6364_v55, %v6366_v29  ;;  %v6406_v20 = vsel %vm6371_vm14, %v6366_v29, %v6368_v17  ;;  %v7254_v61 = vld [vmem:[%s19823_s1 + $0x108] sm:$0xff] }
 0x466   :  { %7437 = vrot.lane.b32.xlu1 %v17436_v25, %s13616_s30  ;;  %7435 = vrot.lane.b32.xlu0 %v17446_v22, %s13616_s30  ;;  %v6466_v57 = vsel %vm342_vm1, %v6406_v20, 0 }
 0x467   :  { %12466 = vmatmul.mubr.msk.bf16.vlgmr.msra.gmra.mrb[4].mxu0 %vm338_vm2, %v17372_v51 }
 0x468   :  { %6605 = vmatpush1.bf16.msra.mxu1 %v6454_v43  ;;  %v6762_v18 = vpop.permute.xlu1 %6761  ;;  %6644 = vmatpush1.bf16.msra.mxu0 %v6380_v36  ;;  %v6370_v62 = vpop.permute.xlu0 %6369  ;;  %v17600_v43 = vcombine.high %v7254_v61, %v7254_v61  ;;  %v17604_v36 = vcombine.low %v7254_v61, %v7254_v61 }
 0x469   :  { %6686 = vmatprep.subr.bf16.mxu1 %v6383_v58  ;;  %6645 = vmatprep.subr.bf16.mxu0 %v6393_v45  ;;  %v6407_v38 = vsel %vm6371_vm14, %v6368_v17, %v6370_v62  ;;  %v17585_v17 = vcombine.high %v7253_v35, %v7253_v35 }
 0x46a   :  { %7441 = vrot.lane.b32.xlu1 %v17461_v1, %s13616_s30  ;;  %7439 = vrot.lane.b32.xlu0 %v17469_v21, %s13616_s30 }
 0x46b   :  { %12468 = vmatmul.mubr.msk.bf16.vlgmr.msra.gmra.mrb[4].mxu1 %vm338_vm2, %v17372_v51  ;;  %6675 = vmatprep.mubr.bf16.mxu0 %v19859_v46 }
 0x46c   :  { %6687 = vmatpush1.bf16.msra.mxu1 %v6382_v56  ;;  %v6766_v16 = vpop.permute.xlu1 %6765  ;;  %6646 = vmatpush1.bf16.msra.mxu0 %v6392_v30  ;;  %v6764_v6 = vpop.permute.xlu0 %6763  ;;  %v7256_v30 = vld [vmem:[%s19823_s1 + $0x118] sm:$0xff] }
 0x46d   :  { %6688 = vmatprep.subr.bf16.mxu1 %v6395_v44  ;;  %12469 = vmatprep.subr.msk.bf16.mxu0 %vm342_vm1, %v6405_v32  ;;  %v6841_v48 = vsel %vm6839_vm15, %v6764_v6, %v6766_v16  ;;  %v6840_v23 = vsel %vm6839_vm15, %v6762_v18, %v6764_v6  ;;  %v7255_v18 = vld [vmem:[%s19823_s1 + $0x110] sm:$0xff]  ;;  %v17626_v60 = vcombine.high %v7256_v30, %v7256_v30  ;;  %v7257_v32 = vld [vmem:[%s19823_s1 + $0x120] sm:$0xff] }
 0x46e   :  { %7445 = vrot.lane.b32.xlu1 %v17487_v14, %s13616_s30  ;;  %7443 = vrot.lane.b32.xlu0 %v17499_v9, %s13616_s30  ;;  %v17615_v45 = vcombine.high %v7255_v18, %v7255_v18  ;;  %v17619_v56 = vcombine.low %v7255_v18, %v7255_v18  ;;  %v17630_v6 = vcombine.low %v7256_v30, %v7256_v30 }
 0x46f   :  { %6718 = vmatprep.mubr.bf16.mxu1 %v19859_v46 }
 0x470   :  { %6689 = vmatpush1.bf16.msra.mxu1 %v6394_v28  ;;  %v17532_v8 = vpop.permute.xlu1 %6769  ;;  %6648 = vmatpush1.bf16.msra.mxu0 %v6460_v50  ;;  %v6768_v12 = vpop.permute.xlu0 %6767  ;;  %v17638_v50 = vcombine.high %v7257_v32, %v7257_v32 }
 0x471   :  { %12471 = vmatprep.subr.msk.bf16.mxu1 %vm342_vm1, %v6407_v38  ;;  %6939 = vmatprep.subr.bf16.mxu0 %v6841_v48  ;;  %v6843_v55 = vsel %vm6839_vm15, %v6768_v12, %v17532_v8  ;;  %v6842_v41 = vsel %vm6839_vm15, %v6766_v16, %v6768_v12  ;;  %v17643_v48 = vcombine.low %v7257_v32, %v7257_v32 }
 0x472   :  { %7449 = vrot.lane.b32.xlu1 %v17516_v3, %s13616_s30  ;;  %7447 = vrot.lane.b32.xlu0 %v17526_v53, %s13616_s30 }
 0x473   :  { %12470 = vmatmul.mubr.msk.bf16.vlgmr.msra.gmra.mrb[8].mxu0 %vm338_vm2, %v17372_v51 }
 0x474   :  { %6691 = vmatpush1.bf16.msra.mxu1 %v6466_v57  ;;  %v17557_v31 = vpop.permute.xlu1 %6773  ;;  %6940 = vmatpush1.bf16.msra.mxu0 %v6840_v23  ;;  %v17561_v2 = vpop.permute.xlu0 %6771 }
 0x475   :  { %6982 = vmatprep.subr.bf16.mxu1 %v6843_v55  ;;  %6971 = vmatprep.mubr.bf16.mxu0 %v19859_v46 }
 0x476   :  { %7453 = vrot.lane.b32.xlu1 %v17541_v13, %s13616_s30  ;;  %7451 = vrot.lane.b32.xlu0 %v17549_v49, %s13616_s30 }
 0x477   :  { %12472 = vmatmul.mubr.msk.bf16.vlgmr.msra.gmra.mrb[8].mxu1 %vm338_vm2, %v17372_v51  ;;  %v17589_v51 = vcombine.low %v7253_v35, %v7253_v35 }
 0x478   :  { %6983 = vmatpush1.bf16.msra.mxu1 %v6842_v41  ;;  %v17578_v39 = vpop.permute.xlu1 %6777  ;;  %7014 = vmatprep.mubr.bf16.mxu1 %v19859_v46  ;;  %v17581_v52 = vpop.permute.xlu0 %6775  ;;  %v17654_v41 = vld [vmem:[%s19823_s1 + $0x128] ss:$0 sps:$4 sm:$0xff]  }
 0x47a   :  { %7457 = vrot.lane.b32.xlu1 %v17565_v34, %s13616_s30  ;;  %7455 = vrot.lane.b32.xlu0 %v17573_v42, %s13616_s30 }
 0x47c   :  { %v17594_v29 = vpop.permute.xlu1 %6781  ;;  %v17596_v63 = vpop.permute.xlu0 %6779 }
 0x47e   :  { %7461 = vrot.lane.b32.xlu1 %v17585_v17, %s13616_s30  ;;  %7459 = vrot.lane.b32.xlu0 %v17589_v51, %s13616_s30 }
 0x480   :  { %v17609_v58 = vpop.permute.xlu1 %6785  ;;  %v17611_v62 = vpop.permute.xlu0 %6783 }
 0x482   :  { %7465 = vrot.lane.b32.xlu1 %v17600_v43, %s13616_s30  ;;  %7463 = vrot.lane.b32.xlu0 %v17604_v36, %s13616_s30 }
 0x484   :  { %v6790_v16 = vpop.permute.xlu1 %6789  ;;  %v6788_v44 = vpop.permute.xlu0 %6787 }
 0x485   :  { %v6852_v12 = vsel %vm6839_vm15, %v6788_v44, %v6790_v16 }
 0x486   :  { %7469 = vrot.lane.b32.xlu1 %v17615_v45, %s13616_s30  ;;  %7467 = vrot.lane.b32.xlu0 %v17619_v56, %s13616_s30 }
 0x488   :  { %v6794_v28 = vpop.permute.xlu1 %6793  ;;  %v6792_v20 = vpop.permute.xlu0 %6791 }
 0x489   :  { %v6853_v38 = vsel %vm6839_vm15, %v6790_v16, %v6792_v20  ;;  %v6854_v55 = vsel %vm6839_vm15, %v6792_v20, %v6794_v28 }
 0x48a   :  { %7473 = vrot.lane.b32.xlu1 %v17626_v60, %s13616_s30  ;;  %7471 = vrot.lane.b32.xlu0 %v17630_v6, %s13616_s30 }
 0x48b   :  { %6941 = vmatprep.subr.bf16.mxu0 %v6853_v38 }
 0x48c   :  { %6942 = vmatpush1.bf16.msra.mxu0 %v6852_v12  ;;  %v6798_v57 = vpop.permute.xlu1 %6797  ;;  %v6796_v10 = vpop.permute.xlu0 %6795 }
 0x48d   :  { %v6855_v23 = vsel %vm6839_vm15, %v6794_v28, %v6796_v10 }
 0x48e   :  { %7477 = vrot.lane.b32.xlu1 %v17638_v50, %s13616_s30  ;;  %7475 = vrot.lane.b32.xlu0 %v17643_v48, %s13616_s30 }
 0x48f   :  { %6984 = vmatprep.subr.bf16.mxu1 %v6855_v23 }
 0x490   :  { %6985 = vmatpush1.bf16.msra.mxu1 %v6854_v55  ;;  %v17656_v35 = vpop.permute.xlu1 %6801  ;;  %v17658_v61 = vpop.permute.xlu0 %6799 }
 0x492   :  { %7871 = vrot.lane.b32.xlu1 %v17277_v19, %s13617_s15  ;;  %7479 = vrot.lane.b32.xlu0 %v17654_v41, %s13616_s30  ;;  %s13625_s30 = smov 20  }
 0x494   :  { %v17664_v18 = vpop.permute.xlu1 %6805  ;;  %v17666_v30 = vpop.permute.xlu0 %6803 }
 0x496   :  { %7875 = vrot.lane.b32.xlu1 %v17295_v15, %s13617_s15  ;;  %7873 = vrot.lane.b32.xlu0 %v17270_v7, %s13617_s15 }
 0x498   :  { %v17672_v16 = vpop.permute.xlu1 %6809  ;;  %v17674_v44 = vpop.permute.xlu0 %6807 }
 0x49a   :  { %7879 = vrot.lane.b32.xlu1 %v17313_v33, %s13617_s15  ;;  %7877 = vrot.lane.b32.xlu0 %v17288_v26, %s13617_s15  ;;  %v6845_v33 = vsel %vm6839_vm15, %v17561_v2, %v17557_v31 }
 0x49c   :  { %v6814_v32 = vpop.permute.xlu1 %6813  ;;  %v17680_v28 = vpop.permute.xlu0 %6811 }
 0x49e   :  { %7883 = vrot.lane.b32.xlu1 %v17331_v11, %s13617_s15  ;;  %7881 = vrot.lane.b32.xlu0 %v17306_v0, %s13617_s15 }
 0x4a0   :  { %v6818_v20 = vpop.permute.xlu1 %6817  ;;  %v6816_v38 = vpop.permute.xlu0 %6815 }
 0x4a1   :  { %v6864_v12 = vsel %vm6839_vm15, %v6814_v32, %v6816_v38  ;;  %v6865_v23 = vsel %vm6839_vm15, %v6816_v38, %v6818_v20  ;;  %v17700_v32 = vld [vmem:[%s19824_s0 + $0x70] sm:$0x1f]  }
 0x4a2   :  { %7887 = vrot.lane.b32.xlu1 %v17345_v37, %s13617_s15  ;;  %7885 = vrot.lane.b32.xlu0 %v17324_v47, %s13617_s15  ;;  %v6904_v55 = vsel %vm342_vm1, %v6864_v12, 0 }
 0x4a3   :  { %12476 = vmatprep.subr.msk.bf16.mxu0 %vm342_vm1, %v6865_v23 }
 0x4a4   :  { %6944 = vmatpush1.bf16.msra.mxu0 %v6904_v55  ;;  %v6822_v11 = vpop.permute.xlu1 %6821  ;;  %v6820_v37 = vpop.permute.xlu0 %6819 }
 0x4a5   :  { %7025 = vmatprep.subr.bf16.mxu0 %v6845_v33  ;;  %v6866_v38 = vsel %vm6839_vm15, %v6818_v20, %v6820_v37  ;;  %v6867_v12 = vsel %vm6839_vm15, %v6820_v37, %v6822_v11  ;;  %v6844_v33 = vsel %vm6839_vm15, %v17532_v8, %v17561_v2  ;;  %v6847_v37 = vsel %vm6839_vm15, %v17581_v52, %v17578_v39 }
 0x4a6   :  { %7891 = vrot.lane.b32.xlu1 %v17363_v40, %s13617_s15  ;;  %7889 = vrot.lane.b32.xlu0 %v17338_v27, %s13617_s15  ;;  %v6910_v23 = vsel %vm342_vm1, %v6866_v38, 0  ;;  %v6846_v8 = vsel %vm6839_vm15, %v17557_v31, %v17581_v52  ;;  %v6856_v2 = vsel %vm6839_vm15, %v6796_v10, %v6798_v57  ;;  %v6858_v31 = vsel %vm6839_vm15, %v17658_v61, %v17656_v35 }
 0x4a7   :  { %12478 = vmatprep.subr.msk.bf16.mxu1 %vm342_vm1, %v6867_v12  ;;  %12477 = vmatmul.mubr.msk.bf16.vlgmr.msra.gmra.mrb[0].mxu0 %vm338_vm2, %v17700_v32  ;;  %v6857_v12 = vsel %vm6839_vm15, %v6798_v57, %v17658_v61  ;;  %v6848_v61 = vsel %vm6839_vm15, %v17578_v39, %v17596_v63  ;;  %v6850_v39 = vsel %vm6839_vm15, %v17594_v29, %v17611_v62 }
 0x4a8   :  { %6987 = vmatpush1.bf16.msra.mxu1 %v6910_v23  ;;  %v6826_v20 = vpop.permute.xlu1 %6825  ;;  %7026 = vmatpush1.bf16.msra.mxu0 %v6844_v33  ;;  %v6824_v55 = vpop.permute.xlu0 %6823  ;;  %v6859_v23 = vsel %vm6839_vm15, %v17656_v35, %v17666_v30 }
 0x4a9   :  { %7068 = vmatprep.subr.bf16.mxu1 %v6847_v37  ;;  %7027 = vmatprep.subr.bf16.mxu0 %v6857_v12  ;;  %v6868_v33 = vsel %vm6839_vm15, %v6822_v11, %v6824_v55  ;;  %v6869_v12 = vsel %vm6839_vm15, %v6824_v55, %v6826_v20 }
 0x4aa   :  { %7895 = vrot.lane.b32.xlu1 %v17389_v4, %s13617_s15  ;;  %7893 = vrot.lane.b32.xlu0 %v17354_v5, %s13617_s15  ;;  %v6916_v52 = vsel %vm342_vm1, %v6868_v33, 0  ;;  %v6861_v33 = vsel %vm6839_vm15, %v17664_v18, %v17674_v44 }
 0x4ab   :  { %12479 = vmatmul.mubr.msk.bf16.vlgmr.msra.gmra.mrb[0].mxu1 %vm338_vm2, %v17700_v32  ;;  %7057 = vmatprep.mubr.bf16.mxu0 %v19859_v46 }
 0x4ac   :  { %7069 = vmatpush1.bf16.msra.mxu1 %v6846_v8  ;;  %v6830_v38 = vpop.permute.xlu1 %6829  ;;  %7028 = vmatpush1.bf16.msra.mxu0 %v6856_v2  ;;  %v6828_v37 = vpop.permute.xlu0 %6827  ;;  %v6849_v8 = vsel %vm6839_vm15, %v17596_v63, %v17594_v29  ;;  %v6851_v2 = vsel %vm6839_vm15, %v17611_v62, %v17609_v58  ;;  %v6860_v63 = vsel %vm6839_vm15, %v17666_v30, %v17664_v18 }
 0x4ad   :  { %7070 = vmatprep.subr.bf16.mxu1 %v6859_v23  ;;  %12480 = vmatprep.subr.msk.bf16.mxu0 %vm342_vm1, %v6869_v12  ;;  %v6870_v11 = vsel %vm6839_vm15, %v6826_v20, %v6828_v37  ;;  %v6871_v10 = vsel %vm6839_vm15, %v6828_v37, %v6830_v38  ;;  %v6863_v37 = vsel %vm6839_vm15, %v17672_v16, %v17680_v28 }
 0x4ae   :  { %7899 = vrot.lane.b32.xlu1 %v17419_v59, %s13617_s15  ;;  %7897 = vrot.lane.b32.xlu0 %v17380_v24, %s13617_s15  ;;  %v6922_v35 = vsel %vm342_vm1, %v6870_v11, 0  ;;  %v6862_v29 = vsel %vm6839_vm15, %v17674_v44, %v17672_v16 }
 0x4af   :  { %7100 = vmatprep.mubr.bf16.mxu1 %v19859_v46 }
 0x4b0   :  { %7071 = vmatpush1.bf16.msra.mxu1 %v6858_v31  ;;  %v6834_v57 = vpop.permute.xlu1 %6833  ;;  %7030 = vmatpush1.bf16.msra.mxu0 %v6916_v52  ;;  %v6832_v55 = vpop.permute.xlu0 %6831 }
 0x4b1   :  { %12482 = vmatprep.subr.msk.bf16.mxu1 %vm342_vm1, %v6871_v10  ;;  %7111 = vmatprep.subr.bf16.mxu0 %v6849_v8  ;;  %v6872_v12 = vsel %vm6839_vm15, %v6830_v38, %v6832_v55  ;;  %v6873_v11 = vsel %vm6839_vm15, %v6832_v55, %v6834_v57 }
 0x4b2   :  { %7903 = vrot.lane.b32.xlu1 %v17446_v22, %s13617_s15  ;;  %7901 = vrot.lane.b32.xlu0 %v17407_v54, %s13617_s15  ;;  %v6928_v18 = vsel %vm342_vm1, %v6872_v12, 0 }
 0x4b3   :  { %12481 = vmatmul.mubr.msk.bf16.vlgmr.msra.gmra.mrb[4].mxu0 %vm338_vm2, %v17700_v32 }
 0x4b4   :  { %7073 = vmatpush1.bf16.msra.mxu1 %v6922_v35  ;;  %v6838_v20 = vpop.permute.xlu1 %6837  ;;  %7112 = vmatpush1.bf16.msra.mxu0 %v6848_v61  ;;  %v6836_v23 = vpop.permute.xlu0 %6835 }
 0x4b5   :  { %7154 = vmatprep.subr.bf16.mxu1 %v6851_v2  ;;  %7113 = vmatprep.subr.bf16.mxu0 %v6861_v33  ;;  %v6874_v62 = vsel %vm6839_vm15, %v6834_v57, %v6836_v23  ;;  %v6875_v28 = vsel %vm6839_vm15, %v6836_v23, %v6838_v20 }
 0x4b6   :  { %7907 = vrot.lane.b32.xlu1 %v17469_v21, %s13617_s15  ;;  %7905 = vrot.lane.b32.xlu0 %v17436_v25, %s13617_s15  ;;  %v6934_v44 = vsel %vm342_vm1, %v6874_v62, 0 }
 0x4b7   :  { %12483 = vmatmul.mubr.msk.bf16.vlgmr.msra.gmra.mrb[4].mxu1 %vm338_vm2, %v17700_v32  ;;  %7143 = vmatprep.mubr.bf16.mxu0 %v19859_v46 }
 0x4b8   :  { %7155 = vmatpush1.bf16.msra.mxu1 %v6850_v39  ;;  %v7406_v58 = vpop.permute.xlu1 %7405  ;;  %7114 = vmatpush1.bf16.msra.mxu0 %v6860_v63  ;;  %v7404_v31 = vpop.permute.xlu0 %7403 }
 0x4b9   :  { %7156 = vmatprep.subr.bf16.mxu1 %v6863_v37  ;;  %12484 = vmatprep.subr.msk.bf16.mxu0 %vm342_vm1, %v6873_v11  ;;  %v7482_v52 = vsel %vm7481_vm0, %v7404_v31, %v7406_v58 }
 0x4ba   :  { %7911 = vrot.lane.b32.xlu1 %v17499_v9, %s13617_s15  ;;  %7909 = vrot.lane.b32.xlu0 %v17461_v1, %s13617_s15 }
 0x4bb   :  { %7186 = vmatprep.mubr.bf16.mxu1 %v19859_v46 }
 0x4bc   :  { %7157 = vmatpush1.bf16.msra.mxu1 %v6862_v29  ;;  %v7410_v30 = vpop.permute.xlu1 %7409  ;;  %7116 = vmatpush1.bf16.msra.mxu0 %v6928_v18  ;;  %v7408_v38 = vpop.permute.xlu0 %7407 }
 0x4bd   :  { %12486 = vmatprep.subr.msk.bf16.mxu1 %vm342_vm1, %v6875_v28  ;;  %v7483_v16 = vsel %vm7481_vm0, %v7406_v58, %v7408_v38  ;;  %v7484_v8 = vsel %vm7481_vm0, %v7408_v38, %v7410_v30 }
 0x4be   :  { %7915 = vrot.lane.b32.xlu1 %v17526_v53, %s13617_s15  ;;  %7913 = vrot.lane.b32.xlu0 %v17487_v14, %s13617_s15 }
 0x4bf   :  { %7581 = vmatprep.subr.bf16.mxu0 %v7483_v16  ;;  %12485 = vmatmul.mubr.msk.bf16.vlgmr.msra.gmra.mrb[8].mxu0 %vm338_vm2, %v17700_v32 }
 0x4c0   :  { %7159 = vmatpush1.bf16.msra.mxu1 %v6934_v44  ;;  %v17808_v57 = vpop.permute.xlu1 %7413  ;;  %7582 = vmatpush1.bf16.msra.mxu0 %v7482_v52  ;;  %v17810_v10 = vpop.permute.xlu0 %7411 }
 0x4c1   :  { %7613 = vmatprep.mubr.bf16.mxu0 %v19859_v46  ;;  %v7485_v55 = vsel %vm7481_vm0, %v7410_v30, %v17810_v10 }
 0x4c2   :  { %7919 = vrot.lane.b32.xlu1 %v17549_v49, %s13617_s15  ;;  %7917 = vrot.lane.b32.xlu0 %v17516_v3, %s13617_s15 }
 0x4c3   :  { %7624 = vmatprep.subr.bf16.mxu1 %v7485_v55  ;;  %12487 = vmatmul.mubr.msk.bf16.vlgmr.msra.gmra.mrb[8].mxu1 %vm338_vm2, %v17700_v32 }
 0x4c4   :  { %v17822_v35 = vpop.permute.xlu1 %7417  ;;  %7625 = vmatpush1.bf16.msra.mxu1 %v7484_v8  ;;  %v17824_v61 = vpop.permute.xlu0 %7415  ;;  %7656 = vmatprep.mubr.bf16.mxu1 %v19859_v46 }
 0x4c6   :  { %7923 = vrot.lane.b32.xlu1 %v17573_v42, %s13617_s15  ;;  %7921 = vrot.lane.b32.xlu0 %v17541_v13, %s13617_s15 }
 0x4c8   :  { %v17831_v20 = vpop.permute.xlu1 %7421  ;;  %v17833_v2 = vpop.permute.xlu0 %7419 }
 0x4ca   :  { %7927 = vrot.lane.b32.xlu1 %v17589_v51, %s13617_s15  ;;  %7925 = vrot.lane.b32.xlu0 %v17565_v34, %s13617_s15 }
 0x4cc   :  { %v17839_v32 = vpop.permute.xlu1 %7425  ;;  %v17841_v23 = vpop.permute.xlu0 %7423 }
 0x4ce   :  { %7931 = vrot.lane.b32.xlu1 %v17604_v36, %s13617_s15  ;;  %7929 = vrot.lane.b32.xlu0 %v17585_v17, %s13617_s15 }
 0x4d0   :  { %v7430_v33 = vpop.permute.xlu1 %7429  ;;  %v17847_v39 = vpop.permute.xlu0 %7427 }
 0x4d2   :  { %7935 = vrot.lane.b32.xlu1 %v17619_v56, %s13617_s15  ;;  %7933 = vrot.lane.b32.xlu0 %v17600_v43, %s13617_s15 }
 0x4d4   :  { %v7434_v63 = vpop.permute.xlu1 %7433  ;;  %v7432_v58 = vpop.permute.xlu0 %7431 }
 0x4d5   :  { %v7495_v37 = vsel %vm7481_vm0, %v7432_v58, %v7434_v63  ;;  %v7494_v12 = vsel %vm7481_vm0, %v7430_v33, %v7432_v58 }
 0x4d6   :  { %7939 = vrot.lane.b32.xlu1 %v17630_v6, %s13617_s15  ;;  %7937 = vrot.lane.b32.xlu0 %v17615_v45, %s13617_s15 }
 0x4d7   :  { %7583 = vmatprep.subr.bf16.mxu0 %v7495_v37  ;;  %v19882_v37 = vld [vmem:[#allocation4_spill] sm:$0xff] }
 0x4d8   :  { %7584 = vmatpush1.bf16.msra.mxu0 %v7494_v12  ;;  %v17859_v31 = vpop.permute.xlu1 %7437  ;;  %v7436_v11 = vpop.permute.xlu0 %7435 }
 0x4d9   :  { %v7497_v29 = vsel %vm7481_vm0, %v7436_v11, %v17859_v31  ;;  %v7496_v62 = vsel %vm7481_vm0, %v7434_v63, %v7436_v11  ;;  %v7487_v11 = vsel %vm7481_vm0, %v17808_v57, %v17824_v61 }
 0x4da   :  { %7943 = vrot.lane.b32.xlu1 %v17643_v48, %s13617_s15  ;;  %7941 = vrot.lane.b32.xlu0 %v17626_v60, %s13617_s15 }
 0x4db   :  { %7626 = vmatprep.subr.bf16.mxu1 %v7497_v29 }
 0x4dc   :  { %7627 = vmatpush1.bf16.msra.mxu1 %v7496_v62  ;;  %v17868_v18 = vpop.permute.xlu1 %7441  ;;  %v7440_v30 = vpop.permute.xlu0 %7439 }
 0x4de   :  { %7947 = vrot.lane.b32.xlu1 %v17654_v41, %s13617_s15  ;;  %7945 = vrot.lane.b32.xlu0 %v17638_v50, %s13617_s15 }
 0x4e0   :  { %v17874_v28 = vpop.permute.xlu1 %7445  ;;  %v17876_v38 = vpop.permute.xlu0 %7443 }
 0x4e2   :  { %8341 = vrot.lane.b32.xlu1 %v17270_v7, %s13618_s19  ;;  %8339 = vrot.lane.b32.xlu0 %v17277_v19, %s13618_s19  ;;  %v19880_v7 = vld [vmem:[#allocation2_spill] sm:$0xff] }
 0x4e4   :  { %v17882_v16 = vpop.permute.xlu1 %7449  ;;  %v17884_v44 = vpop.permute.xlu0 %7447 }
 0x4e6   :  { %8345 = vrot.lane.b32.xlu1 %v17288_v26, %s13618_s19  ;;  %8343 = vrot.lane.b32.xlu0 %v17295_v15, %s13618_s19  ;;  %v19881_v26 = vld [vmem:[#allocation3_spill] sm:$0xff] }
 0x4e8   :  { %v17890_v52 = vpop.permute.xlu1 %7453  ;;  %v17892_v55 = vpop.permute.xlu0 %7451 }
 0x4ea   :  { %8349 = vrot.lane.b32.xlu1 %v17306_v0, %s13618_s19  ;;  %8347 = vrot.lane.b32.xlu0 %v19880_v7, %s13618_s19 }
 0x4ec   :  { %v7458_v19 = vpop.permute.xlu1 %7457  ;;  %v7456_v8 = vpop.permute.xlu0 %7455 }
 0x4ed   :  { %v7506_v15 = vsel %vm7481_vm0, %v7456_v8, %v7458_v19 }
 0x4ee   :  { %8353 = vrot.lane.b32.xlu1 %v17324_v47, %s13618_s19  ;;  %8351 = vrot.lane.b32.xlu0 %v19881_v26, %s13618_s19  ;;  %v7546_v58 = vsel %vm342_vm1, %v7506_v15, 0 }
 0x4f0   :  { %v7462_v33 = vpop.permute.xlu1 %7461  ;;  %v7460_v63 = vpop.permute.xlu0 %7459 }
 0x4f1   :  { %v7507_v0 = vsel %vm7481_vm0, %v7458_v19, %v7460_v63  ;;  %v7508_v47 = vsel %vm7481_vm0, %v7460_v63, %v7462_v33  ;;  %v7486_v19 = vsel %vm7481_vm0, %v17810_v10, %v17808_v57  ;;  %v7488_v57 = vsel %vm7481_vm0, %v17824_v61, %v17822_v35 }
 0x4f2   :  { %8357 = vrot.lane.b32.xlu1 %v17338_v27, %s13618_s19  ;;  %8355 = vrot.lane.b32.xlu0 %v19882_v37, %s13618_s19  ;;  %v17917_v27 = vld [vmem:[%s19824_s0 + $0x78] sm:$0x1f]   ;;  %v7552_v7 = vsel %vm342_vm1, %v7508_v47, 0  ;;  %v7498_v10 = vsel %vm7481_vm0, %v17859_v31, %v7440_v30  ;;  %v7493_v37 = vsel %vm7481_vm0, %v17839_v32, %v17847_v39 }
 0x4f3   :  { %12530 = vmatprep.subr.msk.bf16.mxu0 %vm342_vm1, %v7507_v0 }
 0x4f4   :  { %7586 = vmatpush1.bf16.msra.mxu0 %v7546_v58  ;;  %v7466_v12 = vpop.permute.xlu1 %7465  ;;  %v7464_v29 = vpop.permute.xlu0 %7463 }
 0x4f5   :  { %7667 = vmatprep.subr.bf16.mxu0 %v7487_v11  ;;  %v7509_v62 = vsel %vm7481_vm0, %v7462_v33, %v7464_v29  ;;  %v7501_v33 = vsel %vm7481_vm0, %v17876_v38, %v17874_v28 }
 0x4f6   :  { %8361 = vrot.lane.b32.xlu1 %v17354_v5, %s13618_s19  ;;  %8359 = vrot.lane.b32.xlu0 %v17363_v40, %s13618_s19  ;;  %v7489_v5 = vsel %vm7481_vm0, %v17822_v35, %v17833_v2  ;;  %v7499_v40 = vsel %vm7481_vm0, %v7440_v30, %v17868_v18  ;;  %v7500_v35 = vsel %vm7481_vm0, %v17868_v18, %v17876_v38 }
 0x4f7   :  { %12532 = vmatprep.subr.msk.bf16.mxu1 %vm342_vm1, %v7509_v62  ;;  %12531 = vmatmul.mubr.msk.bf16.vlgmr.msra.gmra.mrb[0].mxu0 %vm338_vm2, %v17917_v27  ;;  %v7490_v18 = vsel %vm7481_vm0, %v17833_v2, %v17831_v20  ;;  %v7502_v2 = vsel %vm7481_vm0, %v17874_v28, %v17884_v44 }
 0x4f8   :  { %7629 = vmatpush1.bf16.msra.mxu1 %v7552_v7  ;;  %v7470_v8 = vpop.permute.xlu1 %7469  ;;  %7668 = vmatpush1.bf16.msra.mxu0 %v7486_v19  ;;  %v7468_v26 = vpop.permute.xlu0 %7467 }
 0x4f9   :  { %7710 = vmatprep.subr.bf16.mxu1 %v7489_v5  ;;  %7669 = vmatprep.subr.bf16.mxu0 %v7499_v40  ;;  %v7511_v63 = vsel %vm7481_vm0, %v7466_v12, %v7468_v26  ;;  %v7512_v61 = vsel %vm7481_vm0, %v7468_v26, %v7470_v8 }
 0x4fa   :  { %8365 = vrot.lane.b32.xlu1 %v17380_v24, %s13618_s19  ;;  %8363 = vrot.lane.b32.xlu0 %v17389_v4, %s13618_s19  ;;  %v7510_v24 = vsel %vm7481_vm0, %v7464_v29, %v7466_v12 }
 0x4fb   :  { %12533 = vmatmul.mubr.msk.bf16.vlgmr.msra.gmra.mrb[0].mxu1 %vm338_vm2, %v17917_v27  ;;  %7699 = vmatprep.mubr.bf16.mxu0 %v19859_v46  ;;  %v7558_v31 = vsel %vm342_vm1, %v7510_v24, 0 }
 0x4fc   :  { %7711 = vmatpush1.bf16.msra.mxu1 %v7488_v57  ;;  %v7474_v15 = vpop.permute.xlu1 %7473  ;;  %7670 = vmatpush1.bf16.msra.mxu0 %v7498_v10  ;;  %v7472_v4 = vpop.permute.xlu0 %7471 }
 0x4fd   :  { %7712 = vmatprep.subr.bf16.mxu1 %v7501_v33  ;;  %12534 = vmatprep.subr.msk.bf16.mxu0 %vm342_vm1, %v7511_v63  ;;  %v7513_v0 = vsel %vm7481_vm0, %v7470_v8, %v7472_v4 }
 0x4fe   :  { %8369 = vrot.lane.b32.xlu1 %v17407_v54, %s13618_s19  ;;  %8367 = vrot.lane.b32.xlu0 %v17419_v59, %s13618_s19  ;;  %v7491_v54 = vsel %vm7481_vm0, %v17831_v20, %v17841_v23  ;;  %v7564_v59 = vsel %vm342_vm1, %v7512_v61, 0  ;;  %v7492_v20 = vsel %vm7481_vm0, %v17841_v23, %v17839_v32  ;;  %v7504_v32 = vsel %vm7481_vm0, %v17882_v16, %v17892_v55  ;;  %v18094_v61 = vld [vmem:[%s19823_s1 + $0x8] ss:$60 sps:$4 sm:$0xff]  }
 0x4ff   :  { %7742 = vmatprep.mubr.bf16.mxu1 %v19859_v46 }
 0x500   :  { %7713 = vmatpush1.bf16.msra.mxu1 %v7500_v35  ;;  %v7478_v30 = vpop.permute.xlu1 %7477  ;;  %7672 = vmatpush1.bf16.msra.mxu0 %v7558_v31  ;;  %v7476_v58 = vpop.permute.xlu0 %7475 }
 0x501   :  { %12536 = vmatprep.subr.msk.bf16.mxu1 %vm342_vm1, %v7513_v0  ;;  %7753 = vmatprep.subr.bf16.mxu0 %v7491_v54  ;;  %v7515_v12 = vsel %vm7481_vm0, %v7474_v15, %v7476_v58  ;;  %v7516_v23 = vsel %vm7481_vm0, %v7476_v58, %v7478_v30  ;;  %v18107_v0 = vld [vmem:[%s19823_s1 + $0x10] ss:$60 sps:$4 sm:$0xff]  }
 0x502   :  { %8373 = vrot.lane.b32.xlu1 %v17436_v25, %s13618_s19  ;;  %8371 = vrot.lane.b32.xlu0 %v17446_v22, %s13618_s19  ;;  %v7503_v22 = vsel %vm7481_vm0, %v17884_v44, %v17882_v16  ;;  %v7576_v16 = vsel %vm342_vm1, %v7516_v23, 0  ;;  %v18114_v58 = vld [vmem:[%s19823_s1 + $0xc] ss:$60 sps:$4 sm:$0xff]  }
 0x503   :  { %12535 = vmatmul.mubr.msk.bf16.vlgmr.msra.gmra.mrb[4].mxu0 %vm338_vm2, %v17917_v27 }
 0x504   :  { %7715 = vmatpush1.bf16.msra.mxu1 %v7564_v59  ;;  %v7872_v38 = vpop.permute.xlu1 %7871  ;;  %7754 = vmatpush1.bf16.msra.mxu0 %v7490_v18  ;;  %v7480_v25 = vpop.permute.xlu0 %7479  ;;  %v18125_v59 = vld [vmem:[%s19823_s1 + $0x18] ss:$60 sps:$4 sm:$0xff]  }
 0x505   :  { %7796 = vmatprep.subr.bf16.mxu1 %v7493_v37  ;;  %7755 = vmatprep.subr.bf16.mxu0 %v7503_v22  ;;  %v7517_v28 = vsel %vm7481_vm0, %v7478_v30, %v7480_v25  ;;  %v18132_v18 = vld [vmem:[%s19823_s1 + $0x14] ss:$60 sps:$4 sm:$0xff]   ;;  %v18141_v25 = vld [vmem:[%s19823_s1 + $0x20] ss:$60 sps:$4 sm:$0xff]  }
 0x506   :  { %8377 = vrot.lane.b32.xlu1 %v17461_v1, %s13618_s19  ;;  %8375 = vrot.lane.b32.xlu0 %v17469_v21, %s13618_s19  ;;  %v7505_v1 = vsel %vm7481_vm0, %v17892_v55, %v17890_v52  ;;  %v7514_v21 = vsel %vm7481_vm0, %v7472_v4, %v7474_v15  ;;  %v18148_v22 = vld [vmem:[%s19823_s1 + $0x1c] ss:$60 sps:$4 sm:$0xff]  }
 0x507   :  { %12537 = vmatmul.mubr.msk.bf16.vlgmr.msra.gmra.mrb[4].mxu1 %vm338_vm2, %v17917_v27  ;;  %7785 = vmatprep.mubr.bf16.mxu0 %v19859_v46  ;;  %v7570_v44 = vsel %vm342_vm1, %v7514_v21, 0 }
 0x508   :  { %7797 = vmatpush1.bf16.msra.mxu1 %v7492_v20  ;;  %v7876_v39 = vpop.permute.xlu1 %7875  ;;  %7756 = vmatpush1.bf16.msra.mxu0 %v7502_v2  ;;  %v7874_v47 = vpop.permute.xlu0 %7873 }
 0x509   :  { %7798 = vmatprep.subr.bf16.mxu1 %v7505_v1  ;;  %12538 = vmatprep.subr.msk.bf16.mxu0 %vm342_vm1, %v7515_v12  ;;  %v7950_v55 = vsel %vm7949_vm3, %v7872_v38, %v7874_v47  ;;  %v18156_v1 = vld [vmem:[%s19823_s1 + $0x28] ss:$60 sps:$4 sm:$0xff]  }
 0x50a   :  { %8381 = vrot.lane.b32.xlu1 %v17487_v14, %s13618_s19  ;;  %8379 = vrot.lane.b32.xlu0 %v17499_v9, %s13618_s19  ;;  %v7951_v9 = vsel %vm7949_vm3, %v7874_v47, %v7876_v39  ;;  %v18164_v47 = vld [vmem:[%s19823_s1 + $0x24] ss:$60 sps:$4 sm:$0xff]  }
 0x50b   :  { %7828 = vmatprep.mubr.bf16.mxu1 %v19859_v46 }
 0x50c   :  { %7799 = vmatpush1.bf16.msra.mxu1 %v7504_v32  ;;  %v18015_v52 = vpop.permute.xlu1 %7879  ;;  %7758 = vmatpush1.bf16.msra.mxu0 %v7570_v44  ;;  %v7878_v14 = vpop.permute.xlu0 %7877 }
 0x50d   :  { %12540 = vmatprep.subr.msk.bf16.mxu1 %vm342_vm1, %v7517_v28  ;;  %8049 = vmatprep.subr.bf16.mxu0 %v7951_v9  ;;  %v7953_v29 = vsel %vm7949_vm3, %v7878_v14, %v18015_v52  ;;  %v18176_v28 = vld [vmem:[%s19824_s0 + $0x80] sm:$0x1f]   ;;  %v18182_v9 = vld [vmem:[%s19823_s1 + $0x30] ss:$60 sps:$4 sm:$0xff]  }
 0x50e   :  { %8385 = vrot.lane.b32.xlu1 %v17516_v3, %s13618_s19  ;;  %8383 = vrot.lane.b32.xlu0 %v17526_v53, %s13618_s19  ;;  %v7952_v3 = vsel %vm7949_vm3, %v7876_v39, %v7878_v14 }
 0x50f   :  { %12539 = vmatmul.mubr.msk.bf16.vlgmr.msra.gmra.mrb[8].mxu0 %vm338_vm2, %v17917_v27 }
 0x510   :  { %7801 = vmatpush1.bf16.msra.mxu1 %v7576_v16  ;;  %v18027_v11 = vpop.permute.xlu1 %7883  ;;  %8050 = vmatpush1.bf16.msra.mxu0 %v7950_v55  ;;  %v18031_v62 = vpop.permute.xlu0 %7881  ;;  %v18190_v55 = vld [vmem:[%s19823_s1 + $0x2c] ss:$60 sps:$4 sm:$0xff]  }
 0x511   :  { %8092 = vmatprep.subr.bf16.mxu1 %v7953_v29  ;;  %8081 = vmatprep.mubr.bf16.mxu0 %v19859_v46  ;;  %v7955_v23 = vsel %vm7949_vm3, %v18031_v62, %v18027_v11 }
 0x512   :  { %8389 = vrot.lane.b32.xlu1 %v17541_v13, %s13618_s19  ;;  %8387 = vrot.lane.b32.xlu0 %v17549_v49, %s13618_s19 }
 0x513   :  { %12541 = vmatmul.mubr.msk.bf16.vlgmr.msra.gmra.mrb[8].mxu1 %vm338_vm2, %v17917_v27 }
 0x514   :  { %8093 = vmatpush1.bf16.msra.mxu1 %v7952_v3  ;;  %v18041_v53 = vpop.permute.xlu1 %7887  ;;  %8124 = vmatprep.mubr.bf16.mxu1 %v19859_v46  ;;  %v18044_v7 = vpop.permute.xlu0 %7885  ;;  %v7954_v3 = vsel %vm7949_vm3, %v18015_v52, %v18031_v62  ;;  %v18217_v52 = vld [vmem:[%s19823_s1 + $0x34] ss:$60 sps:$4 sm:$0xff]  }
 0x515   :  { %v7956_v62 = vsel %vm7949_vm3, %v18027_v11, %v18044_v7  ;;  %v18239_v11 = vld [vmem:[%s19823_s1 + $0x88] ss:$60 sps:$4 sm:$0xff]  }
 0x516   :  { %8393 = vrot.lane.b32.xlu1 %v17565_v34, %s13618_s19  ;;  %8391 = vrot.lane.b32.xlu0 %v17573_v42, %s13618_s19  ;;  %19883 = vst [vmem:[#allocation5_spill] sm:$0xff] %v18239_v11 }
 0x518   :  { %v18050_v13 = vpop.permute.xlu1 %7891  ;;  %v18052_v49 = vpop.permute.xlu0 %7889 }
 0x51a   :  { %8397 = vrot.lane.b32.xlu1 %v17585_v17, %s13618_s19  ;;  %8395 = vrot.lane.b32.xlu0 %v17589_v51, %s13618_s19 }
 0x51c   :  { %v18058_v27 = vpop.permute.xlu1 %7895  ;;  %v18060_v19 = vpop.permute.xlu0 %7893 }
 0x51e   :  { %8401 = vrot.lane.b32.xlu1 %v17600_v43, %s13618_s19  ;;  %8399 = vrot.lane.b32.xlu0 %v17604_v36, %s13618_s19 }
 0x520   :  { %v7900_v8 = vpop.permute.xlu1 %7899  ;;  %v7898_v5 = vpop.permute.xlu0 %7897 }
 0x521   :  { %v7962_v10 = vsel %vm7949_vm3, %v7898_v5, %v7900_v8  ;;  %v7957_v5 = vsel %vm7949_vm3, %v18044_v7, %v18041_v53  ;;  %v18246_v7 = vld [vmem:[%s19823_s1 + $0x84] ss:$60 sps:$4 sm:$0xff]  }
 0x522   :  { %8405 = vrot.lane.b32.xlu1 %v17615_v45, %s13618_s19  ;;  %8403 = vrot.lane.b32.xlu0 %v17619_v56, %s13618_s19  ;;  %19884 = vst [vmem:[#allocation2_spill] sm:$0xff] %v18246_v7 }
 0x524   :  { %v7904_v26 = vpop.permute.xlu1 %7903  ;;  %v7902_v40 = vpop.permute.xlu0 %7901 }
 0x525   :  { %v7963_v57 = vsel %vm7949_vm3, %v7900_v8, %v7902_v40  ;;  %v7964_v4 = vsel %vm7949_vm3, %v7902_v40, %v7904_v26 }
 0x526   :  { %8409 = vrot.lane.b32.xlu1 %v17626_v60, %s13618_s19  ;;  %8407 = vrot.lane.b32.xlu0 %v17630_v6, %s13618_s19 }
 0x527   :  { %8051 = vmatprep.subr.bf16.mxu0 %v7963_v57  ;;  %v18210_v57 = vld [vmem:[%s19823_s1 + $0x38] ss:$60 sps:$4 sm:$0xff]  }
 0x528   :  { %8052 = vmatpush1.bf16.msra.mxu0 %v7962_v10  ;;  %v18076_v15 = vpop.permute.xlu1 %7907  ;;  %v18078_v33 = vpop.permute.xlu0 %7905 }
 0x529   :  { %v7965_v24 = vsel %vm7949_vm3, %v7904_v26, %v18078_v33  ;;  %v7966_v10 = vsel %vm7949_vm3, %v18078_v33, %v18076_v15 }
 0x52a   :  { %8413 = vrot.lane.b32.xlu1 %v17638_v50, %s13618_s19  ;;  %8411 = vrot.lane.b32.xlu0 %v17643_v48, %s13618_s19 }
 0x52b   :  { %8094 = vmatprep.subr.bf16.mxu1 %v7965_v24 }
 0x52c   :  { %8095 = vmatpush1.bf16.msra.mxu1 %v7964_v4  ;;  %v18087_v63 = vpop.permute.xlu1 %7911  ;;  %v18089_v35 = vpop.permute.xlu0 %7909 }
 0x52d   :  { %v7967_v40 = vsel %vm7949_vm3, %v18076_v15, %v18089_v35  ;;  %v7968_v15 = vsel %vm7949_vm3, %v18089_v35, %v18087_v63  ;;  %v18271_v35 = vld [vmem:[%s19823_s1 + $0x8c] ss:$60 sps:$4 sm:$0xff]  }
 0x52e   :  { %8807 = vrot.lane.b32.xlu1 %v18094_v61, %s13619_s26  ;;  %8415 = vrot.lane.b32.xlu0 %v17654_v41, %s13618_s19  ;;  %19885 = vst [vmem:[#allocation3_spill] sm:$0xff] %v18271_v35 }
 0x530   :  { %v18100_v31 = vpop.permute.xlu1 %7915  ;;  %v18102_v30 = vpop.permute.xlu0 %7913 }
 0x531   :  { %v7969_v4 = vsel %vm7949_vm3, %v18087_v63, %v18102_v30  ;;  %v18264_v63 = vld [vmem:[%s19823_s1 + $0x90] ss:$60 sps:$4 sm:$0xff]  }
 0x532   :  { %8811 = vrot.lane.b32.xlu1 %v18107_v0, %s13619_s26  ;;  %8809 = vrot.lane.b32.xlu0 %v18114_v58, %s13619_s26 }
 0x534   :  { %v18118_v41 = vpop.permute.xlu1 %7919  ;;  %v18120_v54 = vpop.permute.xlu0 %7917 }
 0x536   :  { %8815 = vrot.lane.b32.xlu1 %v18125_v59, %s13619_s26  ;;  %8813 = vrot.lane.b32.xlu0 %v18132_v18, %s13619_s26 }
 0x538   :  { %v7924_v38 = vpop.permute.xlu1 %7923  ;;  %v18136_v37 = vpop.permute.xlu0 %7921 }
 0x53a   :  { %8819 = vrot.lane.b32.xlu1 %v18141_v25, %s13619_s26  ;;  %8817 = vrot.lane.b32.xlu0 %v18148_v22, %s13619_s26 }
 0x53c   :  { %v7928_v20 = vpop.permute.xlu1 %7927  ;;  %v7926_v2 = vpop.permute.xlu0 %7925 }
 0x53d   :  { %v7974_v39 = vsel %vm7949_vm3, %v7924_v38, %v7926_v2  ;;  %v7975_v21 = vsel %vm7949_vm3, %v7926_v2, %v7928_v20 }
 0x53e   :  { %8823 = vrot.lane.b32.xlu1 %v18156_v1, %s13619_s26  ;;  %8821 = vrot.lane.b32.xlu0 %v18164_v47, %s13619_s26  ;;  %v8014_v12 = vsel %vm342_vm1, %v7974_v39, 0 }
 0x53f   :  { %12545 = vmatprep.subr.msk.bf16.mxu0 %vm342_vm1, %v7975_v21 }
 0x540   :  { %8054 = vmatpush1.bf16.msra.mxu0 %v8014_v12  ;;  %v7932_v32 = vpop.permute.xlu1 %7931  ;;  %v7930_v44 = vpop.permute.xlu0 %7929 }
 0x541   :  { %8135 = vmatprep.subr.bf16.mxu0 %v7955_v23  ;;  %v7976_v14 = vsel %vm7949_vm3, %v7928_v20, %v7930_v44  ;;  %v7977_v16 = vsel %vm7949_vm3, %v7930_v44, %v7932_v32  ;;  %v7959_v23 = vsel %vm7949_vm3, %v18052_v49, %v18050_v13 }
 0x542   :  { %8827 = vrot.lane.b32.xlu1 %v18182_v9, %s13619_s26  ;;  %8825 = vrot.lane.b32.xlu0 %v18190_v55, %s13619_s26  ;;  %v8020_v29 = vsel %vm342_vm1, %v7976_v14, 0  ;;  %v7958_v14 = vsel %vm7949_vm3, %v18041_v53, %v18052_v49  ;;  %v18292_v53 = vld [vmem:[%s19823_s1 + $0x80] ss:$60 sps:$4 sm:$0xff]   ;;  %v7960_v49 = vsel %vm7949_vm3, %v18050_v13, %v18060_v19  ;;  %v7972_v13 = vsel %vm7949_vm3, %v18120_v54, %v18118_v41 }
 0x543   :  { %12547 = vmatprep.subr.msk.bf16.mxu1 %vm342_vm1, %v7977_v16  ;;  %12546 = vmatmul.mubr.msk.bf16.vlgmr.msra.gmra.mrb[0].mxu0 %vm338_vm2, %v18176_v28  ;;  %19886 = vst [vmem:[#allocation4_spill] sm:$0xff] %v18292_v53 }
 0x544   :  { %8097 = vmatpush1.bf16.msra.mxu1 %v8020_v29  ;;  %v7936_v8 = vpop.permute.xlu1 %7935  ;;  %8136 = vmatpush1.bf16.msra.mxu0 %v7954_v3  ;;  %v7934_v26 = vpop.permute.xlu0 %7933  ;;  %v7961_v29 = vsel %vm7949_vm3, %v18060_v19, %v18058_v27  ;;  %v7970_v27 = vsel %vm7949_vm3, %v18102_v30, %v18100_v31 }
 0x545   :  { %8178 = vmatprep.subr.bf16.mxu1 %v7957_v5  ;;  %8137 = vmatprep.subr.bf16.mxu0 %v7967_v40  ;;  %v7978_v38 = vsel %vm7949_vm3, %v7932_v32, %v7934_v26  ;;  %v7979_v2 = vsel %vm7949_vm3, %v7934_v26, %v7936_v8  ;;  %v7973_v26 = vsel %vm7949_vm3, %v18118_v41, %v18136_v37 }
 0x546   :  { %8831 = vrot.lane.b32.xlu1 %v18210_v57, %s13619_s26  ;;  %8829 = vrot.lane.b32.xlu0 %v18217_v52, %s13619_s26  ;;  %v8026_v39 = vsel %vm342_vm1, %v7978_v38, 0 }
 0x547   :  { %12548 = vmatmul.mubr.msk.bf16.vlgmr.msra.gmra.mrb[0].mxu1 %vm338_vm2, %v18176_v28  ;;  %8167 = vmatprep.mubr.bf16.mxu0 %v19859_v46 }
 0x548   :  { %8179 = vmatpush1.bf16.msra.mxu1 %v7956_v62  ;;  %v7940_v24 = vpop.permute.xlu1 %7939  ;;  %8138 = vmatpush1.bf16.msra.mxu0 %v7966_v10  ;;  %v7938_v20 = vpop.permute.xlu0 %7937 }
 0x549   :  { %8180 = vmatprep.subr.bf16.mxu1 %v7969_v4  ;;  %12549 = vmatprep.subr.msk.bf16.mxu0 %vm342_vm1, %v7979_v2  ;;  %v7980_v33 = vsel %vm7949_vm3, %v7936_v8, %v7938_v20  ;;  %v7981_v12 = vsel %vm7949_vm3, %v7938_v20, %v7940_v24  ;;  %v7971_v8 = vsel %vm7949_vm3, %v18100_v31, %v18120_v54  ;;  %v18340_v2 = vld [vmem:[%s19823_s1 + $0x98] ss:$60 sps:$4 sm:$0xff]  }
 0x54a   :  { %8837 = vrot.lane.b32.xlu1 %v18239_v11, %s13619_s26  ;;  %8835 = vrot.lane.b32.xlu0 %v18246_v7, %s13619_s26  ;;  %v8032_v44 = vsel %vm342_vm1, %v7980_v33, 0  ;;  %v18349_v33 = vld [vmem:[%s19823_s1 + $0x94] ss:$60 sps:$4 sm:$0xff]  }
 0x54b   :  { %8210 = vmatprep.mubr.bf16.mxu1 %v19859_v46 }
 0x54c   :  { %8181 = vmatpush1.bf16.msra.mxu1 %v7968_v15  ;;  %v7944_v21 = vpop.permute.xlu1 %7943  ;;  %8140 = vmatpush1.bf16.msra.mxu0 %v8026_v39  ;;  %v7942_v32 = vpop.permute.xlu0 %7941 }
 0x54d   :  { %12551 = vmatprep.subr.msk.bf16.mxu1 %vm342_vm1, %v7981_v12  ;;  %8221 = vmatprep.subr.bf16.mxu0 %v7959_v23  ;;  %v7982_v40 = vsel %vm7949_vm3, %v7940_v24, %v7942_v32  ;;  %v7983_v10 = vsel %vm7949_vm3, %v7942_v32, %v7944_v21  ;;  %v18364_v32 = vld [vmem:[%s19823_s1 + $0xa0] ss:$60 sps:$4 sm:$0xff]  }
 0x54e   :  { %8841 = vrot.lane.b32.xlu1 %v18264_v63, %s13619_s26  ;;  %8839 = vrot.lane.b32.xlu0 %v18271_v35, %s13619_s26  ;;  %v8038_v31 = vsel %vm342_vm1, %v7982_v40, 0 }
 0x54f   :  { %12550 = vmatmul.mubr.msk.bf16.vlgmr.msra.gmra.mrb[4].mxu0 %vm338_vm2, %v18176_v28 }
 0x550   :  { %8183 = vmatpush1.bf16.msra.mxu1 %v8032_v44  ;;  %v7948_v16 = vpop.permute.xlu1 %7947  ;;  %8222 = vmatpush1.bf16.msra.mxu0 %v7958_v14  ;;  %v7946_v3 = vpop.permute.xlu0 %7945 }
 0x551   :  { %8264 = vmatprep.subr.bf16.mxu1 %v7961_v29  ;;  %8223 = vmatprep.subr.bf16.mxu0 %v7971_v8  ;;  %v7984_v19 = vsel %vm7949_vm3, %v7944_v21, %v7946_v3  ;;  %v7985_v37 = vsel %vm7949_vm3, %v7946_v3, %v7948_v16  ;;  %v18396_v8 = vld [vmem:[%s19823_s1 + $0xa8] ss:$60 sps:$4 sm:$0xff]  }
 0x552   :  { %8859 = vrot.lane.b32.xlu1 %v17573_v42, %s13619_s26  ;;  %8833 = vrot.lane.b32.xlu0 %v18292_v53, %s13619_s26  ;;  %v8044_v54 = vsel %vm342_vm1, %v7984_v19, 0 }
 0x553   :  { %12552 = vmatmul.mubr.msk.bf16.vlgmr.msra.gmra.mrb[4].mxu1 %vm338_vm2, %v18176_v28  ;;  %8253 = vmatprep.mubr.bf16.mxu0 %v19859_v46 }
 0x554   :  { %8265 = vmatpush1.bf16.msra.mxu1 %v7960_v49  ;;  %v8342_v5 = vpop.permute.xlu1 %8341  ;;  %8224 = vmatpush1.bf16.msra.mxu0 %v7970_v27  ;;  %v8340_v62 = vpop.permute.xlu0 %8339  ;;  %v18403_v49 = vld [vmem:[%s19823_s1 + $0xa4] ss:$60 sps:$4 sm:$0xff]  }
 0x555   :  { %8266 = vmatprep.subr.bf16.mxu1 %v7973_v26  ;;  %12553 = vmatprep.subr.msk.bf16.mxu0 %vm342_vm1, %v7983_v10  ;;  %v8418_v4 = vsel %vm8417_vm4, %v8340_v62, %v8342_v5  ;;  %v18410_v26 = vld [vmem:[%s19823_s1 + $0xb0] ss:$60 sps:$4 sm:$0xff]  }
 0x556   :  { %8863 = vrot.lane.b32.xlu1 %v17589_v51, %s13619_s26  ;;  %8861 = vrot.lane.b32.xlu0 %v17565_v34, %s13619_s26  ;;  %v18419_v10 = vld [vmem:[%s19823_s1 + $0xac] ss:$60 sps:$4 sm:$0xff]  }
 0x557   :  { %8296 = vmatprep.mubr.bf16.mxu1 %v19859_v46 }
 0x558   :  { %8267 = vmatpush1.bf16.msra.mxu1 %v7972_v13  ;;  %v8346_v30 = vpop.permute.xlu1 %8345  ;;  %8226 = vmatpush1.bf16.msra.mxu0 %v8038_v31  ;;  %v8344_v24 = vpop.permute.xlu0 %8343 }
 0x559   :  { %12555 = vmatprep.subr.msk.bf16.mxu1 %vm342_vm1, %v7985_v37  ;;  %v8419_v41 = vsel %vm8417_vm4, %v8342_v5, %v8344_v24  ;;  %v8420_v39 = vsel %vm8417_vm4, %v8344_v24, %v8346_v30 }
 0x55a   :  { %8867 = vrot.lane.b32.xlu1 %v17604_v36, %s13619_s26  ;;  %8865 = vrot.lane.b32.xlu0 %v17585_v17, %s13619_s26 }
 0x55b   :  { %8517 = vmatprep.subr.bf16.mxu0 %v8419_v41  ;;  %12554 = vmatmul.mubr.msk.bf16.vlgmr.msra.gmra.mrb[8].mxu0 %vm338_vm2, %v18176_v28  ;;  %v18437_v41 = vld [vmem:[%s19823_s1 + $0x128] ss:$0 sps:$4 sm:$0xff]  }
 0x55c   :  { %8269 = vmatpush1.bf16.msra.mxu1 %v8044_v54  ;;  %v18332_v38 = vpop.permute.xlu1 %8349  ;;  %8518 = vmatpush1.bf16.msra.mxu0 %v8418_v4  ;;  %v18334_v20 = vpop.permute.xlu0 %8347 }
 0x55d   :  { %8549 = vmatprep.mubr.bf16.mxu0 %v19859_v46  ;;  %v8421_v15 = vsel %vm8417_vm4, %v8346_v30, %v18334_v20 }
 0x55e   :  { %8845 = vrot.lane.b32.xlu1 %v18340_v2, %s13619_s26  ;;  %8843 = vrot.lane.b32.xlu0 %v18349_v33, %s13619_s26 }
 0x55f   :  { %8560 = vmatprep.subr.bf16.mxu1 %v8421_v15  ;;  %12556 = vmatmul.mubr.msk.bf16.vlgmr.msra.gmra.mrb[8].mxu1 %vm338_vm2, %v18176_v28  ;;  %v18371_v28 = vld [vmem:[%s19823_s1 + $0x9c] ss:$60 sps:$4 sm:$0xff]  }
 0x560   :  { %v18356_v21 = vpop.permute.xlu1 %8353  ;;  %8561 = vmatpush1.bf16.msra.mxu1 %v8420_v39  ;;  %v18358_v12 = vpop.permute.xlu0 %8351  ;;  %8592 = vmatprep.mubr.bf16.mxu1 %v19859_v46 }
 0x562   :  { %8849 = vrot.lane.b32.xlu1 %v18364_v32, %s13619_s26  ;;  %8847 = vrot.lane.b32.xlu0 %v18371_v28, %s13619_s26 }
 0x564   :  { %v18375_v23 = vpop.permute.xlu1 %8357  ;;  %v18377_v44 = vpop.permute.xlu0 %8355 }
 0x566   :  { %8871 = vrot.lane.b32.xlu1 %v17619_v56, %s13619_s26  ;;  %8869 = vrot.lane.b32.xlu0 %v17600_v43, %s13619_s26 }
 0x568   :  { %v18383_v14 = vpop.permute.xlu1 %8361  ;;  %v18385_v16 = vpop.permute.xlu0 %8359 }
 0x56a   :  { %8875 = vrot.lane.b32.xlu1 %v17630_v6, %s13619_s26  ;;  %8873 = vrot.lane.b32.xlu0 %v17615_v45, %s13619_s26 }
 0x56c   :  { %v8366_v29 = vpop.permute.xlu1 %8365  ;;  %v18391_v3 = vpop.permute.xlu0 %8363 }
 0x56e   :  { %8853 = vrot.lane.b32.xlu1 %v18396_v8, %s13619_s26  ;;  %8851 = vrot.lane.b32.xlu0 %v18403_v49, %s13619_s26 }
 0x570   :  { %v8370_v27 = vpop.permute.xlu1 %8369  ;;  %v8368_v5 = vpop.permute.xlu0 %8367 }
 0x571   :  { %v8431_v40 = vsel %vm8417_vm4, %v8368_v5, %v8370_v27  ;;  %v8430_v62 = vsel %vm8417_vm4, %v8366_v29, %v8368_v5 }
 0x572   :  { %8857 = vrot.lane.b32.xlu1 %v18410_v26, %s13619_s26  ;;  %8855 = vrot.lane.b32.xlu0 %v18419_v10, %s13619_s26 }
 0x573   :  { %8519 = vmatprep.subr.bf16.mxu0 %v8431_v40 }
 0x574   :  { %8520 = vmatpush1.bf16.msra.mxu0 %v8430_v62  ;;  %v18423_v13 = vpop.permute.xlu1 %8373  ;;  %v8372_v19 = vpop.permute.xlu0 %8371 }
 0x575   :  { %v8433_v31 = vsel %vm8417_vm4, %v8372_v19, %v18423_v13  ;;  %v8432_v30 = vsel %vm8417_vm4, %v8370_v27, %v8372_v19 }
 0x576   :  { %8879 = vrot.lane.b32.xlu1 %v17643_v48, %s13619_s26  ;;  %8877 = vrot.lane.b32.xlu0 %v17626_v60, %s13619_s26 }
 0x577   :  { %8562 = vmatprep.subr.bf16.mxu1 %v8433_v31 }
 0x578   :  { %8563 = vmatpush1.bf16.msra.mxu1 %v8432_v30  ;;  %v18432_v37 = vpop.permute.xlu1 %8377  ;;  %v8376_v24 = vpop.permute.xlu0 %8375 }
 0x57a   :  { %8883 = vrot.lane.b32.xlu1 %v18437_v41, %s13619_s26  ;;  %8881 = vrot.lane.b32.xlu0 %v17638_v50, %s13619_s26 }
 0x57c   :  { %v18443_v54 = vpop.permute.xlu1 %8381  ;;  %v18445_v4 = vpop.permute.xlu0 %8379 }
 0x57e   :  { %9279 = vrot.lane.b32.xlu1 %v18107_v0, %s13620_s16  ;;  %9277 = vrot.lane.b32.xlu0 %v18114_v58, %s13620_s16 }
 0x580   :  { %v18451_v15 = vpop.permute.xlu1 %8385  ;;  %v18453_v39 = vpop.permute.xlu0 %8383 }
 0x582   :  { %9283 = vrot.lane.b32.xlu1 %v18125_v59, %s13620_s16  ;;  %9281 = vrot.lane.b32.xlu0 %v18132_v18, %s13620_s16 }
 0x584   :  { %v18459_v29 = vpop.permute.xlu1 %8389  ;;  %v18461_v27 = vpop.permute.xlu0 %8387 }
 0x586   :  { %9303 = vrot.lane.b32.xlu1 %v18246_v7, %s13620_s16  ;;  %9275 = vrot.lane.b32.xlu0 %v18094_v61, %s13620_s16 }
 0x588   :  { %v8394_v5 = vpop.permute.xlu1 %8393  ;;  %v8392_v40 = vpop.permute.xlu0 %8391 }
 0x589   :  { %v8442_v62 = vsel %vm8417_vm4, %v8392_v40, %v8394_v5  ;;  %v8423_v40 = vsel %vm8417_vm4, %v18332_v38, %v18358_v12 }
 0x58a   :  { %9307 = vrot.lane.b32.xlu1 %v18271_v35, %s13620_s16  ;;  %9305 = vrot.lane.b32.xlu0 %v18239_v11, %s13620_s16  ;;  %v8482_v7 = vsel %vm342_vm1, %v8442_v62, 0 }
 0x58c   :  { %v8398_v19 = vpop.permute.xlu1 %8397  ;;  %v8396_v31 = vpop.permute.xlu0 %8395 }
 0x58d   :  { %v8443_v30 = vsel %vm8417_vm4, %v8394_v5, %v8396_v31  ;;  %v8444_v35 = vsel %vm8417_vm4, %v8396_v31, %v8398_v19  ;;  %v8422_v31 = vsel %vm8417_vm4, %v18334_v20, %v18332_v38  ;;  %v8434_v38 = vsel %vm8417_vm4, %v18423_v13, %v8376_v24 }
 0x58e   :  { %9301 = vrot.lane.b32.xlu1 %v18292_v53, %s13620_s16  ;;  %9309 = vrot.lane.b32.xlu0 %v18264_v63, %s13620_s16  ;;  %v18486_v53 = vld [vmem:[%s19824_s0 + $0x88] sm:$0x1f]  }
 0x58f   :  { %12560 = vmatprep.subr.msk.bf16.mxu0 %vm342_vm1, %v8443_v30 }
 0x590   :  { %8522 = vmatpush1.bf16.msra.mxu0 %v8482_v7  ;;  %v8402_v11 = vpop.permute.xlu1 %8401  ;;  %v8400_v5 = vpop.permute.xlu0 %8399  ;;  %v8488_v7 = vsel %vm342_vm1, %v8444_v35, 0  ;;  %v8424_v35 = vsel %vm8417_vm4, %v18358_v12, %v18356_v21 }
 0x591   :  { %8603 = vmatprep.subr.bf16.mxu0 %v8423_v40  ;;  %v8445_v62 = vsel %vm8417_vm4, %v8398_v19, %v8400_v5  ;;  %v8425_v19 = vsel %vm8417_vm4, %v18356_v21, %v18377_v44  ;;  %v8436_v21 = vsel %vm8417_vm4, %v18432_v37, %v18445_v4 }
 0x592   :  { %9329 = vrot.lane.b32.xlu1 %v17565_v34, %s13620_s16  ;;  %9327 = vrot.lane.b32.xlu0 %v17573_v42, %s13620_s16 }
 0x593   :  { %12562 = vmatprep.subr.msk.bf16.mxu1 %vm342_vm1, %v8445_v62  ;;  %12561 = vmatmul.mubr.msk.bf16.vlgmr.msra.gmra.mrb[0].mxu0 %vm338_vm2, %v18486_v53  ;;  %v8435_v62 = vsel %vm8417_vm4, %v8376_v24, %v18432_v37 }
 0x594   :  { %8565 = vmatpush1.bf16.msra.mxu1 %v8488_v7  ;;  %v8406_v30 = vpop.permute.xlu1 %8405  ;;  %8604 = vmatpush1.bf16.msra.mxu0 %v8422_v31  ;;  %v8404_v40 = vpop.permute.xlu0 %8403  ;;  %v8437_v7 = vsel %vm8417_vm4, %v18445_v4, %v18443_v54  ;;  %v8446_v31 = vsel %vm8417_vm4, %v8400_v5, %v8402_v11  ;;  %v8426_v4 = vsel %vm8417_vm4, %v18377_v44, %v18375_v23 }
 0x595   :  { %8646 = vmatprep.subr.bf16.mxu1 %v8425_v19  ;;  %8605 = vmatprep.subr.bf16.mxu0 %v8435_v62  ;;  %v8447_v62 = vsel %vm8417_vm4, %v8402_v11, %v8404_v40  ;;  %v8448_v12 = vsel %vm8417_vm4, %v8404_v40, %v8406_v30  ;;  %v8494_v13 = vsel %vm342_vm1, %v8446_v31, 0  ;;  %v8429_v40 = vsel %vm8417_vm4, %v18383_v14, %v18391_v3 }
 0x596   :  { %9333 = vrot.lane.b32.xlu1 %v17585_v17, %s13620_s16  ;;  %9331 = vrot.lane.b32.xlu0 %v17589_v51, %s13620_s16  ;;  %v8500_v37 = vsel %vm342_vm1, %v8448_v12, 0  ;;  %v8438_v44 = vsel %vm8417_vm4, %v18443_v54, %v18453_v39  ;;  %v8441_v31 = vsel %vm8417_vm4, %v18461_v27, %v18459_v29 }
 0x597   :  { %12563 = vmatmul.mubr.msk.bf16.vlgmr.msra.gmra.mrb[0].mxu1 %vm338_vm2, %v18486_v53  ;;  %8635 = vmatprep.mubr.bf16.mxu0 %v19859_v46 }
 0x598   :  { %8647 = vmatpush1.bf16.msra.mxu1 %v8424_v35  ;;  %v8410_v20 = vpop.permute.xlu1 %8409  ;;  %8606 = vmatpush1.bf16.msra.mxu0 %v8434_v38  ;;  %v8408_v19 = vpop.permute.xlu0 %8407  ;;  %v8427_v35 = vsel %vm8417_vm4, %v18375_v23, %v18385_v16  ;;  %v8428_v23 = vsel %vm8417_vm4, %v18385_v16, %v18383_v14  ;;  %v8440_v14 = vsel %vm8417_vm4, %v18451_v15, %v18461_v27 }
 0x599   :  { %8648 = vmatprep.subr.bf16.mxu1 %v8437_v7  ;;  %12564 = vmatprep.subr.msk.bf16.mxu0 %vm342_vm1, %v8447_v62  ;;  %v8449_v24 = vsel %vm8417_vm4, %v8406_v30, %v8408_v19  ;;  %v8439_v7 = vsel %vm8417_vm4, %v18453_v39, %v18451_v15  ;;  %v8450_v62 = vsel %vm8417_vm4, %v8408_v19, %v8410_v20 }
 0x59a   :  { %9285 = vrot.lane.b32.xlu1 %v18148_v22, %s13620_s16  ;;  %9335 = vrot.lane.b32.xlu0 %v17604_v36, %s13620_s16  ;;  %v8506_v39 = vsel %vm342_vm1, %v8450_v62, 0 }
 0x59b   :  { %8678 = vmatprep.mubr.bf16.mxu1 %v19859_v46 }
 0x59c   :  { %8649 = vmatpush1.bf16.msra.mxu1 %v8436_v21  ;;  %v8414_v11 = vpop.permute.xlu1 %8413  ;;  %8608 = vmatpush1.bf16.msra.mxu0 %v8494_v13  ;;  %v8412_v5 = vpop.permute.xlu0 %8411 }
 0x59d   :  { %12566 = vmatprep.subr.msk.bf16.mxu1 %vm342_vm1, %v8449_v24  ;;  %8689 = vmatprep.subr.bf16.mxu0 %v8427_v35  ;;  %v8451_v12 = vsel %vm8417_vm4, %v8410_v20, %v8412_v5  ;;  %v8452_v16 = vsel %vm8417_vm4, %v8412_v5, %v8414_v11 }
 0x59e   :  { %9289 = vrot.lane.b32.xlu1 %v18164_v47, %s13620_s16  ;;  %9287 = vrot.lane.b32.xlu0 %v18141_v25, %s13620_s16  ;;  %v8512_v15 = vsel %vm342_vm1, %v8452_v16, 0 }
 0x59f   :  { %12565 = vmatmul.mubr.msk.bf16.vlgmr.msra.gmra.mrb[4].mxu0 %vm338_vm2, %v18486_v53 }
 0x5a0   :  { %8651 = vmatpush1.bf16.msra.mxu1 %v8500_v37  ;;  %v8808_v30 = vpop.permute.xlu1 %8807  ;;  %8690 = vmatpush1.bf16.msra.mxu0 %v8426_v4  ;;  %v8416_v38 = vpop.permute.xlu0 %8415 }
 0x5a1   :  { %8732 = vmatprep.subr.bf16.mxu1 %v8429_v40  ;;  %8691 = vmatprep.subr.bf16.mxu0 %v8439_v7  ;;  %v8453_v54 = vsel %vm8417_vm4, %v8414_v11, %v8416_v38 }
 0x5a2   :  { %9311 = vrot.lane.b32.xlu1 %v18349_v33, %s13620_s16  ;;  %9291 = vrot.lane.b32.xlu0 %v18156_v1, %s13620_s16 }
 0x5a3   :  { %12567 = vmatmul.mubr.msk.bf16.vlgmr.msra.gmra.mrb[4].mxu1 %vm338_vm2, %v18486_v53  ;;  %8721 = vmatprep.mubr.bf16.mxu0 %v19859_v46 }
 0x5a4   :  { %8733 = vmatpush1.bf16.msra.mxu1 %v8428_v23  ;;  %v8812_v3 = vpop.permute.xlu1 %8811  ;;  %8692 = vmatpush1.bf16.msra.mxu0 %v8438_v44  ;;  %v8810_v21 = vpop.permute.xlu0 %8809 }
 0x5a5   :  { %8734 = vmatprep.subr.bf16.mxu1 %v8441_v31  ;;  %12568 = vmatprep.subr.msk.bf16.mxu0 %vm342_vm1, %v8451_v12  ;;  %v8887_v19 = vsel %vm8885_vm5, %v8810_v21, %v8812_v3  ;;  %v8886_v27 = vsel %vm8885_vm5, %v8808_v30, %v8810_v21 }
 0x5a6   :  { %9315 = vrot.lane.b32.xlu1 %v18371_v28, %s13620_s16  ;;  %9313 = vrot.lane.b32.xlu0 %v18340_v2, %s13620_s16 }
 0x5a7   :  { %8764 = vmatprep.mubr.bf16.mxu1 %v19859_v46 }
 0x5a8   :  { %8735 = vmatpush1.bf16.msra.mxu1 %v8440_v14  ;;  %v18584_v29 = vpop.permute.xlu1 %8815  ;;  %8694 = vmatpush1.bf16.msra.mxu0 %v8506_v39  ;;  %v8814_v20 = vpop.permute.xlu0 %8813 }
 0x5a9   :  { %12570 = vmatprep.subr.msk.bf16.mxu1 %vm342_vm1, %v8453_v54  ;;  %8985 = vmatprep.subr.bf16.mxu0 %v8887_v19  ;;  %v8889_v11 = vsel %vm8885_vm5, %v8814_v20, %v18584_v29  ;;  %v8888_v5 = vsel %vm8885_vm5, %v8812_v3, %v8814_v20 }
 0x5aa   :  { %9337 = vrot.lane.b32.xlu1 %v17600_v43, %s13620_s16  ;;  %9317 = vrot.lane.b32.xlu0 %v18364_v32, %s13620_s16 }
 0x5ab   :  { %12569 = vmatmul.mubr.msk.bf16.vlgmr.msra.gmra.mrb[8].mxu0 %vm338_vm2, %v18486_v53 }
 0x5ac   :  { %8737 = vmatpush1.bf16.msra.mxu1 %v8512_v15  ;;  %v18596_v13 = vpop.permute.xlu1 %8819  ;;  %8986 = vmatpush1.bf16.msra.mxu0 %v8886_v27  ;;  %v18600_v24 = vpop.permute.xlu0 %8817 }
 0x5ad   :  { %9028 = vmatprep.subr.bf16.mxu1 %v8889_v11  ;;  %9017 = vmatprep.mubr.bf16.mxu0 %v19859_v46  ;;  %v8891_v27 = vsel %vm8885_vm5, %v18600_v24, %v18596_v13  ;;  %v18665_v11 = vld [vmem:[%s19824_s0 + $0x90] sm:$0x1f]  }
 0x5ae   :  { %9341 = vrot.lane.b32.xlu1 %v17615_v45, %s13620_s16  ;;  %9339 = vrot.lane.b32.xlu0 %v17619_v56, %s13620_s16 }
 0x5af   :  { %12571 = vmatmul.mubr.msk.bf16.vlgmr.msra.gmra.mrb[8].mxu1 %vm338_vm2, %v18486_v53 }
 0x5b0   :  { %9029 = vmatpush1.bf16.msra.mxu1 %v8888_v5  ;;  %v18610_v35 = vpop.permute.xlu1 %8823  ;;  %9060 = vmatprep.mubr.bf16.mxu1 %v19859_v46  ;;  %v18613_v37 = vpop.permute.xlu0 %8821 }
 0x5b2   :  { %9293 = vrot.lane.b32.xlu1 %v18190_v55, %s13620_s16  ;;  %9343 = vrot.lane.b32.xlu0 %v17630_v6, %s13620_s16 }
 0x5b4   :  { %v18619_v4 = vpop.permute.xlu1 %8827  ;;  %v18621_v30 = vpop.permute.xlu0 %8825 }
 0x5b6   :  { %9297 = vrot.lane.b32.xlu1 %v18217_v52, %s13620_s16  ;;  %9295 = vrot.lane.b32.xlu0 %v18182_v9, %s13620_s16 }
 0x5b8   :  { %v18627_v53 = vpop.permute.xlu1 %8831  ;;  %v18629_v40 = vpop.permute.xlu0 %8829 }
 0x5ba   :  { %9319 = vrot.lane.b32.xlu1 %v18403_v49, %s13620_s16  ;;  %9299 = vrot.lane.b32.xlu0 %v18210_v57, %s13620_s16 }
 0x5bc   :  { %v8838_v38 = vpop.permute.xlu1 %8837  ;;  %v8836_v7 = vpop.permute.xlu0 %8835 }
 0x5bd   :  { %v8899_v23 = vsel %vm8885_vm5, %v8836_v7, %v8838_v38 }
 0x5be   :  { %9323 = vrot.lane.b32.xlu1 %v18419_v10, %s13620_s16  ;;  %9321 = vrot.lane.b32.xlu0 %v18396_v8, %s13620_s16 }
 0x5bf   :  { %8987 = vmatprep.subr.bf16.mxu0 %v8899_v23  ;;  %v8890_v23 = vsel %vm8885_vm5, %v18584_v29, %v18600_v24  ;;  %v8892_v29 = vsel %vm8885_vm5, %v18596_v13, %v18613_v37 }
 0x5c0   :  { %v8842_v44 = vpop.permute.xlu1 %8841  ;;  %v8840_v3 = vpop.permute.xlu0 %8839 }
 0x5c1   :  { %v8901_v31 = vsel %vm8885_vm5, %v8840_v3, %v8842_v44  ;;  %v8900_v62 = vsel %vm8885_vm5, %v8838_v38, %v8840_v3 }
 0x5c2   :  { %9345 = vrot.lane.b32.xlu1 %v17626_v60, %s13620_s16  ;;  %9325 = vrot.lane.b32.xlu0 %v18410_v26, %s13620_s16 }
 0x5c3   :  { %9030 = vmatprep.subr.bf16.mxu1 %v8901_v31 }
 0x5c4   :  { %9031 = vmatpush1.bf16.msra.mxu1 %v8900_v62  ;;  %v8860_v21 = vpop.permute.xlu1 %8859  ;;  %v8834_v12 = vpop.permute.xlu0 %8833 }
 0x5c5   :  { %v8898_v14 = vsel %vm8885_vm5, %v8834_v12, %v8836_v7 }
 0x5c6   :  { %9349 = vrot.lane.b32.xlu1 %v17638_v50, %s13620_s16  ;;  %9347 = vrot.lane.b32.xlu0 %v17643_v48, %s13620_s16 }
 0x5c7   :  { %8988 = vmatpush1.bf16.msra.mxu0 %v8898_v14 }
 0x5c8   :  { %v8864_v16 = vpop.permute.xlu1 %8863  ;;  %v8862_v54 = vpop.permute.xlu0 %8861 }
 0x5c9   :  { %v8910_v39 = vsel %vm8885_vm5, %v8860_v21, %v8862_v54  ;;  %v8911_v20 = vsel %vm8885_vm5, %v8862_v54, %v8864_v16  ;;  %v19887_v21 = vld [vmem:[#allocation5_spill] sm:$0xff]  ;;  %v19889_v54 = vld [vmem:[#allocation3_spill] sm:$0xff] }
 0x5ca   :  { %9745 = vrot.lane.b32.xlu1 %v18114_v58, %s13621_s5  ;;  %9351 = vrot.lane.b32.xlu0 %v18437_v41, %s13620_s16  ;;  %v8950_v19 = vsel %vm342_vm1, %v8910_v39, 0 }
 0x5cb   :  { %12575 = vmatprep.subr.msk.bf16.mxu0 %vm342_vm1, %v8911_v20 }
 0x5cc   :  { %8990 = vmatpush1.bf16.msra.mxu0 %v8950_v19  ;;  %v8868_v15 = vpop.permute.xlu1 %8867  ;;  %v8866_v58 = vpop.permute.xlu0 %8865  ;;  %v8895_v19 = vsel %vm8885_vm5, %v18621_v30, %v18619_v4 }
 0x5cd   :  { %9071 = vmatprep.subr.bf16.mxu0 %v8891_v27  ;;  %v8912_v5 = vsel %vm8885_vm5, %v8864_v16, %v8866_v58  ;;  %v8913_v38 = vsel %vm8885_vm5, %v8866_v58, %v8868_v15 }
 0x5ce   :  { %9749 = vrot.lane.b32.xlu1 %v18132_v18, %s13621_s5  ;;  %9747 = vrot.lane.b32.xlu0 %v18107_v0, %s13621_s5  ;;  %v8956_v7 = vsel %vm342_vm1, %v8912_v5, 0  ;;  %v8893_v18 = vsel %vm8885_vm5, %v18613_v37, %v18610_v35  ;;  %v19890_v5 = vld [vmem:[#allocation4_spill] sm:$0xff] }
 0x5cf   :  { %12577 = vmatprep.subr.msk.bf16.mxu1 %vm342_vm1, %v8913_v38  ;;  %12576 = vmatmul.mubr.msk.bf16.vlgmr.msra.gmra.mrb[0].mxu0 %vm338_vm2, %v18665_v11 }
 0x5d0   :  { %9033 = vmatpush1.bf16.msra.mxu1 %v8956_v7  ;;  %v8846_v3 = vpop.permute.xlu1 %8845  ;;  %9072 = vmatpush1.bf16.msra.mxu0 %v8890_v23  ;;  %v8844_v31 = vpop.permute.xlu0 %8843  ;;  %v8894_v7 = vsel %vm8885_vm5, %v18610_v35, %v18621_v30  ;;  %v8896_v35 = vsel %vm8885_vm5, %v18619_v4, %v18629_v40 }
 0x5d1   :  { %9114 = vmatprep.subr.bf16.mxu1 %v8893_v18  ;;  %v8903_v0 = vsel %vm8885_vm5, %v8844_v31, %v8846_v3  ;;  %v8902_v62 = vsel %vm8885_vm5, %v8842_v44, %v8844_v31  ;;  %9103 = vmatprep.mubr.bf16.mxu0 %v19859_v46 }
 0x5d2   :  { %9743 = vrot.lane.b32.xlu1 %v18094_v61, %s13621_s5  ;;  %9751 = vrot.lane.b32.xlu0 %v18125_v59, %s13621_s5  ;;  %v19888_v59 = vld [vmem:[#allocation2_spill] sm:$0xff] }
 0x5d3   :  { %9073 = vmatprep.subr.bf16.mxu0 %v8903_v0  ;;  %12578 = vmatmul.mubr.msk.bf16.vlgmr.msra.gmra.mrb[0].mxu1 %vm338_vm2, %v18665_v11 }
 0x5d4   :  { %v8850_v24 = vpop.permute.xlu1 %8849  ;;  %9074 = vmatpush1.bf16.msra.mxu0 %v8902_v62  ;;  %9115 = vmatpush1.bf16.msra.mxu1 %v8892_v29  ;;  %v8848_v61 = vpop.permute.xlu0 %8847 }
 0x5d5   :  { %v8905_v44 = vsel %vm8885_vm5, %v8848_v61, %v8850_v24  ;;  %v8904_v12 = vsel %vm8885_vm5, %v8846_v3, %v8848_v61  ;;  %9146 = vmatprep.mubr.bf16.mxu1 %v19859_v46  ;;  %v8897_v3 = vsel %vm8885_vm5, %v18629_v40, %v18627_v53 }
 0x5d6   :  { %9773 = vrot.lane.b32.xlu1 %v19887_v21, %s13621_s5  ;;  %9771 = vrot.lane.b32.xlu0 %v19888_v59, %s13621_s5 }
 0x5d7   :  { %9116 = vmatprep.subr.bf16.mxu1 %v8905_v44 }
 0x5d8   :  { %v8872_v14 = vpop.permute.xlu1 %8871  ;;  %9117 = vmatpush1.bf16.msra.mxu1 %v8904_v12  ;;  %v8870_v13 = vpop.permute.xlu0 %8869 }
 0x5d9   :  { %v8914_v37 = vsel %vm8885_vm5, %v8868_v15, %v8870_v13  ;;  %v8915_v16 = vsel %vm8885_vm5, %v8870_v13, %v8872_v14 }
 0x5da   :  { %9777 = vrot.lane.b32.xlu1 %v18264_v63, %s13621_s5  ;;  %9775 = vrot.lane.b32.xlu0 %v19889_v54, %s13621_s5  ;;  %v8962_v39 = vsel %vm342_vm1, %v8914_v37, 0 }
 0x5db   :  { %12579 = vmatprep.subr.msk.bf16.mxu0 %vm342_vm1, %v8915_v16 }
 0x5dc   :  { %9076 = vmatpush1.bf16.msra.mxu0 %v8962_v39  ;;  %v8876_v20 = vpop.permute.xlu1 %8875  ;;  %v8874_v27 = vpop.permute.xlu0 %8873 }
 0x5dd   :  { %9157 = vmatprep.subr.bf16.mxu0 %v8895_v19  ;;  %v8916_v15 = vsel %vm8885_vm5, %v8872_v14, %v8874_v27  ;;  %v8917_v58 = vsel %vm8885_vm5, %v8874_v27, %v8876_v20 }
 0x5de   :  { %9795 = vrot.lane.b32.xlu1 %v17573_v42, %s13621_s5  ;;  %9769 = vrot.lane.b32.xlu0 %v19890_v5, %s13621_s5  ;;  %v8968_v38 = vsel %vm342_vm1, %v8916_v15, 0 }
 0x5df   :  { %12581 = vmatprep.subr.msk.bf16.mxu1 %vm342_vm1, %v8917_v58  ;;  %12580 = vmatmul.mubr.msk.bf16.vlgmr.msra.gmra.mrb[4].mxu0 %vm338_vm2, %v18665_v11 }
 0x5e0   :  { %9119 = vmatpush1.bf16.msra.mxu1 %v8968_v38  ;;  %v8854_v23 = vpop.permute.xlu1 %8853  ;;  %9158 = vmatpush1.bf16.msra.mxu0 %v8894_v7  ;;  %v8852_v18 = vpop.permute.xlu0 %8851 }
 0x5e1   :  { %9200 = vmatprep.subr.bf16.mxu1 %v8897_v3  ;;  %v8907_v31 = vsel %vm8885_vm5, %v8852_v18, %v8854_v23  ;;  %v8906_v0 = vsel %vm8885_vm5, %v8850_v24, %v8852_v18  ;;  %9189 = vmatprep.mubr.bf16.mxu0 %v19859_v46 }
 0x5e2   :  { %9799 = vrot.lane.b32.xlu1 %v17589_v51, %s13621_s5  ;;  %9797 = vrot.lane.b32.xlu0 %v17565_v34, %s13621_s5 }
 0x5e3   :  { %9159 = vmatprep.subr.bf16.mxu0 %v8907_v31  ;;  %12582 = vmatmul.mubr.msk.bf16.vlgmr.msra.gmra.mrb[4].mxu1 %vm338_vm2, %v18665_v11 }
 0x5e4   :  { %v8858_v30 = vpop.permute.xlu1 %8857  ;;  %9160 = vmatpush1.bf16.msra.mxu0 %v8906_v0  ;;  %9201 = vmatpush1.bf16.msra.mxu1 %v8896_v35  ;;  %v8856_v53 = vpop.permute.xlu0 %8855 }
 0x5e5   :  { %v8909_v62 = vsel %vm8885_vm5, %v8856_v53, %v8858_v30  ;;  %v8908_v29 = vsel %vm8885_vm5, %v8854_v23, %v8856_v53  ;;  %9232 = vmatprep.mubr.bf16.mxu1 %v19859_v46 }
 0x5e6   :  { %9803 = vrot.lane.b32.xlu1 %v17604_v36, %s13621_s5  ;;  %9801 = vrot.lane.b32.xlu0 %v17585_v17, %s13621_s5 }
 0x5e7   :  { %9202 = vmatprep.subr.bf16.mxu1 %v8909_v62 }
 0x5e8   :  { %v8880_v24 = vpop.permute.xlu1 %8879  ;;  %9203 = vmatpush1.bf16.msra.mxu1 %v8908_v29  ;;  %v8878_v4 = vpop.permute.xlu0 %8877 }
 0x5e9   :  { %v8918_v40 = vsel %vm8885_vm5, %v8876_v20, %v8878_v4  ;;  %v8919_v61 = vsel %vm8885_vm5, %v8878_v4, %v8880_v24 }
 0x5ea   :  { %9755 = vrot.lane.b32.xlu1 %v18141_v25, %s13621_s5  ;;  %9753 = vrot.lane.b32.xlu0 %v18148_v22, %s13621_s5  ;;  %v8974_v44 = vsel %vm342_vm1, %v8918_v40, 0 }
 0x5eb   :  { %12583 = vmatprep.subr.msk.bf16.mxu0 %vm342_vm1, %v8919_v61 }
 0x5ec   :  { %9162 = vmatpush1.bf16.msra.mxu0 %v8974_v44  ;;  %v8884_v12 = vpop.permute.xlu1 %8883  ;;  %v8882_v14 = vpop.permute.xlu0 %8881 }
 0x5ed   :  { %v8920_v13 = vsel %vm8885_vm5, %v8880_v24, %v8882_v14  ;;  %v8921_v37 = vsel %vm8885_vm5, %v8882_v14, %v8884_v12  ;;  %v18817_v24 = vld [vmem:[%s19824_s0 + $0x98] sm:$0x1f]  }
 0x5ee   :  { %9759 = vrot.lane.b32.xlu1 %v18156_v1, %s13621_s5  ;;  %9757 = vrot.lane.b32.xlu0 %v18164_v47, %s13621_s5  ;;  %v8980_v25 = vsel %vm342_vm1, %v8920_v13, 0 }
 0x5ef   :  { %12585 = vmatprep.subr.msk.bf16.mxu1 %vm342_vm1, %v8921_v37  ;;  %12584 = vmatmul.mubr.msk.bf16.vlgmr.msra.gmra.mrb[8].mxu0 %vm338_vm2, %v18665_v11 }
 0x5f0   :  { %9205 = vmatpush1.bf16.msra.mxu1 %v8980_v25  ;;  %v9280_v22 = vpop.permute.xlu1 %9279  ;;  %v9278_v16 = vpop.permute.xlu0 %9277  ;;  %9485 = vmatprep.mubr.bf16.mxu0 %v19859_v46 }
 0x5f1   :  { %v9355_v1 = vsel %vm9353_vm6, %v9278_v16, %v9280_v22 }
 0x5f2   :  { %9781 = vrot.lane.b32.xlu1 %v18340_v2, %s13621_s5  ;;  %9779 = vrot.lane.b32.xlu0 %v18349_v33, %s13621_s5 }
 0x5f3   :  { %9453 = vmatprep.subr.bf16.mxu0 %v9355_v1  ;;  %12586 = vmatmul.mubr.msk.bf16.vlgmr.msra.gmra.mrb[8].mxu1 %vm338_vm2, %v18665_v11 }
 0x5f4   :  { %v18772_v47 = vpop.permute.xlu1 %9283  ;;  %v9282_v39 = vpop.permute.xlu0 %9281  ;;  %9528 = vmatprep.mubr.bf16.mxu1 %v19859_v46 }
 0x5f5   :  { %v9357_v20 = vsel %vm9353_vm6, %v9282_v39, %v18772_v47  ;;  %v9356_v19 = vsel %vm9353_vm6, %v9280_v22, %v9282_v39  ;;  %v18848_v22 = vld [vmem:[%s19823_s1 + $0x10] ss:$60 sps:$4 sm:$0xff]  }
 0x5f6   :  { %9785 = vrot.lane.b32.xlu1 %v18364_v32, %s13621_s5  ;;  %9783 = vrot.lane.b32.xlu0 %v18371_v28, %s13621_s5 }
 0x5f7   :  { %9496 = vmatprep.subr.bf16.mxu1 %v9357_v20  ;;  %v18864_v20 = vld [vmem:[%s19823_s1 + $0x18] ss:$60 sps:$4 sm:$0xff]  }
 0x5f8   :  { %9497 = vmatpush1.bf16.msra.mxu1 %v9356_v19  ;;  %v9304_v27 = vpop.permute.xlu1 %9303  ;;  %v9276_v15 = vpop.permute.xlu0 %9275 }
 0x5f9   :  { %v9354_v11 = vsel %vm9353_vm6, %v9276_v15, %v9278_v16  ;;  %v18856_v16 = vld [vmem:[%s19823_s1 + $0xc] ss:$60 sps:$4 sm:$0xff]  }
 0x5fa   :  { %9807 = vrot.lane.b32.xlu1 %v17619_v56, %s13621_s5  ;;  %9805 = vrot.lane.b32.xlu0 %v17600_v43, %s13621_s5 }
 0x5fb   :  { %9454 = vmatpush1.bf16.msra.mxu0 %v9354_v11 }
 0x5fc   :  { %v9308_v58 = vpop.permute.xlu1 %9307  ;;  %v9306_v38 = vpop.permute.xlu0 %9305 }
 0x5fd   :  { %v9367_v7 = vsel %vm9353_vm6, %v9304_v27, %v9306_v38  ;;  %v9368_v0 = vsel %vm9353_vm6, %v9306_v38, %v9308_v58 }
 0x5fe   :  { %9811 = vrot.lane.b32.xlu1 %v17630_v6, %s13621_s5  ;;  %9809 = vrot.lane.b32.xlu0 %v17615_v45, %s13621_s5 }
 0x5ff   :  { %9455 = vmatprep.subr.bf16.mxu0 %v9367_v7 }
 0x600   :  { %v9302_v23 = vpop.permute.xlu1 %9301  ;;  %v9310_v18 = vpop.permute.xlu0 %9309 }
 0x601   :  { %v9366_v3 = vsel %vm9353_vm6, %v9302_v23, %v9304_v27  ;;  %v9369_v31 = vsel %vm9353_vm6, %v9308_v58, %v9310_v18  ;;  %v18872_v27 = vld [vmem:[%s19823_s1 + $0x14] ss:$60 sps:$4 sm:$0xff]   ;;  %v18884_v23 = vld [vmem:[%s19823_s1 + $0x8] ss:$60 sps:$4 sm:$0xff]  }
 0x602   :  { %9763 = vrot.lane.b32.xlu1 %v18182_v9, %s13621_s5  ;;  %9456 = vmatpush1.bf16.msra.mxu0 %v9366_v3 }
 0x603   :  { %9761 = vrot.lane.b32.xlu0 %v18190_v55, %s13621_s5  ;;  %9498 = vmatprep.subr.bf16.mxu1 %v9369_v31 }
 0x604   :  { %9499 = vmatpush1.bf16.msra.mxu1 %v9368_v0  ;;  %v9330_v35 = vpop.permute.xlu1 %9329  ;;  %v9328_v30 = vpop.permute.xlu0 %9327 }
 0x605   :  { %v9378_v9 = vsel %vm9353_vm6, %v9328_v30, %v9330_v35 }
 0x606   :  { %9767 = vrot.lane.b32.xlu1 %v18210_v57, %s13621_s5  ;;  %v9418_v29 = vsel %vm342_vm1, %v9378_v9, 0 }
 0x607   :  { %9765 = vrot.lane.b32.xlu0 %v18217_v52, %s13621_s5 }
 0x608   :  { %v9334_v53 = vpop.permute.xlu1 %9333  ;;  %v9332_v62 = vpop.permute.xlu0 %9331 }
 0x609   :  { %v9379_v55 = vsel %vm9353_vm6, %v9330_v35, %v9332_v62  ;;  %v9380_v57 = vsel %vm9353_vm6, %v9332_v62, %v9334_v53 }
 0x60a   :  { %9789 = vrot.lane.b32.xlu1 %v18396_v8, %s13621_s5  ;;  %12590 = vmatprep.subr.msk.bf16.mxu0 %vm342_vm1, %v9379_v55 }
 0x60b   :  { %9787 = vrot.lane.b32.xlu0 %v18403_v49, %s13621_s5  ;;  %9458 = vmatpush1.bf16.msra.mxu0 %v9418_v29  ;;  %v9424_v49 = vsel %vm342_vm1, %v9380_v57, 0 }
 0x60c   :  { %v9286_v52 = vpop.permute.xlu1 %9285  ;;  %v9336_v4 = vpop.permute.xlu0 %9335 }
 0x60d   :  { %v9381_v8 = vsel %vm9353_vm6, %v9334_v53, %v9336_v4 }
 0x60e   :  { %9793 = vrot.lane.b32.xlu1 %v18410_v26, %s13621_s5  ;;  %12592 = vmatprep.subr.msk.bf16.mxu1 %vm342_vm1, %v9381_v8 }
 0x60f   :  { %9791 = vrot.lane.b32.xlu0 %v18419_v10, %s13621_s5  ;;  %9501 = vmatpush1.bf16.msra.mxu1 %v9424_v49  ;;  %v9358_v10 = vsel %vm9353_vm6, %v18772_v47, %v9286_v52  ;;  %v18925_v49 = vld [vmem:[%s19823_s1 + $0x1c] ss:$60 sps:$4 sm:$0xff]  }
 0x610   :  { %v9290_v40 = vpop.permute.xlu1 %9289  ;;  %12591 = vmatmul.mubr.msk.bf16.vlgmr.msra.gmra.mrb[0].mxu0 %vm338_vm2, %v18817_v24  ;;  %v9288_v61 = vpop.permute.xlu0 %9287 }
 0x611   :  { %9571 = vmatprep.mubr.bf16.mxu0 %v19859_v46  ;;  %v9359_v26 = vsel %vm9353_vm6, %v9286_v52, %v9288_v61  ;;  %v9360_v13 = vsel %vm9353_vm6, %v9288_v61, %v9290_v40 }
 0x612   :  { %9815 = vrot.lane.b32.xlu1 %v17643_v48, %s13621_s5  ;;  %9539 = vmatprep.subr.bf16.mxu0 %v9359_v26 }
 0x613   :  { %9813 = vrot.lane.b32.xlu0 %v17626_v60, %s13621_s5  ;;  %9540 = vmatpush1.bf16.msra.mxu0 %v9358_v10 }
 0x614   :  { %v9312_v44 = vpop.permute.xlu1 %9311  ;;  %12593 = vmatmul.mubr.msk.bf16.vlgmr.msra.gmra.mrb[0].mxu1 %vm338_vm2, %v18817_v24  ;;  %v9292_v12 = vpop.permute.xlu0 %9291 }
 0x615   :  { %9614 = vmatprep.mubr.bf16.mxu1 %v19859_v46  ;;  %v9361_v14 = vsel %vm9353_vm6, %v9290_v40, %v9292_v12  ;;  %v9370_v1 = vsel %vm9353_vm6, %v9310_v18, %v9312_v44 }
 0x616   :  { %9819 = vrot.lane.b32.xlu1 %v18437_v41, %s13621_s5  ;;  %9582 = vmatprep.subr.bf16.mxu1 %v9361_v14 }
 0x617   :  { %9817 = vrot.lane.b32.xlu0 %v17638_v50, %s13621_s5  ;;  %9583 = vmatpush1.bf16.msra.mxu1 %v9360_v13  ;;  %v18945_v13 = vld [vmem:[%s19823_s1 + $0x20] ss:$60 sps:$4 sm:$0xff]  }
 0x618   :  { %v9316_v37 = vpop.permute.xlu1 %9315  ;;  %v9314_v25 = vpop.permute.xlu0 %9313 }
 0x619   :  { %v9371_v41 = vsel %vm9353_vm6, %v9312_v44, %v9314_v25  ;;  %v9372_v15 = vsel %vm9353_vm6, %v9314_v25, %v9316_v37 }
 0x61a   :  { %10215 = vrot.lane.b32.xlu1 %v18848_v22, %s13622_s10  ;;  %9541 = vmatprep.subr.bf16.mxu0 %v9371_v41 }
 0x61b   :  { %10213 = vrot.lane.b32.xlu0 %v18856_v16, %s13622_s10  ;;  %9542 = vmatpush1.bf16.msra.mxu0 %v9370_v1 }
 0x61c   :  { %v9338_v47 = vpop.permute.xlu1 %9337  ;;  %v9318_v39 = vpop.permute.xlu0 %9317 }
 0x61d   :  { %v9373_v19 = vsel %vm9353_vm6, %v9316_v37, %v9318_v39  ;;  %v9382_v11 = vsel %vm9353_vm6, %v9336_v4, %v9338_v47 }
 0x61e   :  { %10219 = vrot.lane.b32.xlu1 %v18864_v20, %s13622_s10  ;;  %9584 = vmatprep.subr.bf16.mxu1 %v9373_v19  ;;  %v9430_v3 = vsel %vm342_vm1, %v9382_v11, 0 }
 0x61f   :  { %10217 = vrot.lane.b32.xlu0 %v18872_v27, %s13622_s10  ;;  %9585 = vmatpush1.bf16.msra.mxu1 %v9372_v15 }
 0x620   :  { %v9342_v58 = vpop.permute.xlu1 %9341  ;;  %v9340_v38 = vpop.permute.xlu0 %9339 }
 0x621   :  { %v9383_v7 = vsel %vm9353_vm6, %v9338_v47, %v9340_v38  ;;  %v9384_v18 = vsel %vm9353_vm6, %v9340_v38, %v9342_v58 }
 0x622   :  { %10239 = vrot.lane.b32.xlu1 %v19888_v59, %s13622_s10  ;;  %12594 = vmatprep.subr.msk.bf16.mxu0 %vm342_vm1, %v9383_v7  ;;  %v9436_v35 = vsel %vm342_vm1, %v9384_v18, 0 }
 0x623   :  { %10211 = vrot.lane.b32.xlu0 %v18884_v23, %s13622_s10  ;;  %9544 = vmatpush1.bf16.msra.mxu0 %v9430_v3 }
 0x624   :  { %v9294_v31 = vpop.permute.xlu1 %9293  ;;  %v9344_v0 = vpop.permute.xlu0 %9343 }
 0x625   :  { %v9385_v59 = vsel %vm9353_vm6, %v9342_v58, %v9344_v0 }
 0x626   :  { %10243 = vrot.lane.b32.xlu1 %v19889_v54, %s13622_s10  ;;  %12596 = vmatprep.subr.msk.bf16.mxu1 %vm342_vm1, %v9385_v59 }
 0x627   :  { %10241 = vrot.lane.b32.xlu0 %v19887_v21, %s13622_s10  ;;  %9587 = vmatpush1.bf16.msra.mxu1 %v9436_v35  ;;  %v9362_v21 = vsel %vm9353_vm6, %v9292_v12, %v9294_v31  ;;  %v18937_v12 = vld [vmem:[%s19823_s1 + $0x24] ss:$60 sps:$4 sm:$0xff]  }
 0x628   :  { %v9298_v30 = vpop.permute.xlu1 %9297  ;;  %12595 = vmatmul.mubr.msk.bf16.vlgmr.msra.gmra.mrb[4].mxu0 %vm338_vm2, %v18817_v24  ;;  %v9296_v9 = vpop.permute.xlu0 %9295 }
 0x629   :  { %9657 = vmatprep.mubr.bf16.mxu0 %v19859_v46  ;;  %v9363_v54 = vsel %vm9353_vm6, %v9294_v31, %v9296_v9 }
 0x62a   :  { %10237 = vrot.lane.b32.xlu1 %v19890_v5, %s13622_s10  ;;  %9625 = vmatprep.subr.bf16.mxu0 %v9363_v54 }
 0x62b   :  { %10245 = vrot.lane.b32.xlu0 %v18264_v63, %s13622_s10  ;;  %9626 = vmatpush1.bf16.msra.mxu0 %v9362_v21  ;;  %v9364_v63 = vsel %vm9353_vm6, %v9296_v9, %v9298_v30  ;;  %v19005_v21 = vld [vmem:[%s19823_s1 + $0x34] ss:$60 sps:$4 sm:$0xff]  }
 0x62c   :  { %v9320_v53 = vpop.permute.xlu1 %9319  ;;  %12597 = vmatmul.mubr.msk.bf16.vlgmr.msra.gmra.mrb[4].mxu1 %vm338_vm2, %v18817_v24  ;;  %v9300_v62 = vpop.permute.xlu0 %9299 }
 0x62d   :  { %9700 = vmatprep.mubr.bf16.mxu1 %v19859_v46  ;;  %v9365_v5 = vsel %vm9353_vm6, %v9298_v30, %v9300_v62  ;;  %v9374_v52 = vsel %vm9353_vm6, %v9318_v39, %v9320_v53  ;;  %v18958_v39 = vld [vmem:[%s19823_s1 + $0x28] ss:$60 sps:$4 sm:$0xff]  }
 0x62e   :  { %10265 = vrot.lane.b32.xlu1 %v17565_v34, %s13622_s10  ;;  %9668 = vmatprep.subr.bf16.mxu1 %v9365_v5 }
 0x62f   :  { %10263 = vrot.lane.b32.xlu0 %v17573_v42, %s13622_s10  ;;  %9669 = vmatpush1.bf16.msra.mxu1 %v9364_v63 }
 0x630   :  { %v9324_v55 = vpop.permute.xlu1 %9323  ;;  %v9322_v29 = vpop.permute.xlu0 %9321 }
 0x631   :  { %v9375_v57 = vsel %vm9353_vm6, %v9320_v53, %v9322_v29  ;;  %v9376_v61 = vsel %vm9353_vm6, %v9322_v29, %v9324_v55  ;;  %v19012_v53 = vld [vmem:[%s19823_s1 + $0x30] ss:$60 sps:$4 sm:$0xff]  }
 0x632   :  { %10269 = vrot.lane.b32.xlu1 %v17585_v17, %s13622_s10  ;;  %9627 = vmatprep.subr.bf16.mxu0 %v9375_v57  ;;  %v19028_v57 = vld [vmem:[%s19823_s1 + $0x38] ss:$60 sps:$4 sm:$0xff]  }
 0x633   :  { %10267 = vrot.lane.b32.xlu0 %v17589_v51, %s13622_s10  ;;  %9628 = vmatpush1.bf16.msra.mxu0 %v9374_v52 }
 0x634   :  { %v9346_v4 = vpop.permute.xlu1 %9345  ;;  %v9326_v8 = vpop.permute.xlu0 %9325 }
 0x635   :  { %v9377_v40 = vsel %vm9353_vm6, %v9324_v55, %v9326_v8  ;;  %v9386_v26 = vsel %vm9353_vm6, %v9344_v0, %v9346_v4  ;;  %v19020_v55 = vld [vmem:[%s19823_s1 + $0xa4] ss:$60 sps:$4 sm:$0xff]  }
 0x636   :  { %10221 = vrot.lane.b32.xlu1 %v18925_v49, %s13622_s10  ;;  %9670 = vmatprep.subr.bf16.mxu1 %v9377_v40  ;;  %v9442_v37 = vsel %vm342_vm1, %v9386_v26, 0  ;;  %v19037_v8 = vld [vmem:[%s19824_s0 + $0xa0] sm:$0x1f]   ;;  %v19043_v26 = vld [vmem:[%s19823_s1 + $0xac] ss:$60 sps:$4 sm:$0xff]  }
 0x637   :  { %10271 = vrot.lane.b32.xlu0 %v17604_v36, %s13622_s10  ;;  %9671 = vmatpush1.bf16.msra.mxu1 %v9376_v61 }
 0x638   :  { %v9350_v10 = vpop.permute.xlu1 %9349  ;;  %v9348_v44 = vpop.permute.xlu0 %9347 }
 0x639   :  { %v9387_v14 = vsel %vm9353_vm6, %v9346_v4, %v9348_v44  ;;  %v9388_v25 = vsel %vm9353_vm6, %v9348_v44, %v9350_v10  ;;  %v19051_v44 = vld [vmem:[%s19823_s1 + $0xa8] ss:$60 sps:$4 sm:$0xff]  }
 0x63a   :  { %10225 = vrot.lane.b32.xlu1 %v18937_v12, %s13622_s10  ;;  %12598 = vmatprep.subr.msk.bf16.mxu0 %vm342_vm1, %v9387_v14  ;;  %v9448_v19 = vsel %vm342_vm1, %v9388_v25, 0 }
 0x63b   :  { %10223 = vrot.lane.b32.xlu0 %v18945_v13, %s13622_s10  ;;  %9630 = vmatpush1.bf16.msra.mxu0 %v9442_v37 }
 0x63c   :  { %v9746_v41 = vpop.permute.xlu1 %9745  ;;  %v9352_v1 = vpop.permute.xlu0 %9351 }
 0x63d   :  { %v9389_v47 = vsel %vm9353_vm6, %v9350_v10, %v9352_v1 }
 0x63e   :  { %10247 = vrot.lane.b32.xlu1 %v18349_v33, %s13622_s10  ;;  %12600 = vmatprep.subr.msk.bf16.mxu1 %vm342_vm1, %v9389_v47  ;;  %v19067_v47 = vld [vmem:[%s19823_s1 + $0xb0] ss:$60 sps:$4 sm:$0xff]  }
 0x63f   :  { %10227 = vrot.lane.b32.xlu0 %v18958_v39, %s13622_s10  ;;  %9673 = vmatpush1.bf16.msra.mxu1 %v9448_v19 }
 0x640   :  { %v9750_v15 = vpop.permute.xlu1 %9749  ;;  %12599 = vmatmul.mubr.msk.bf16.vlgmr.msra.gmra.mrb[8].mxu0 %vm338_vm2, %v18817_v24  ;;  %v9748_v11 = vpop.permute.xlu0 %9747 }
 0x641   :  { %9953 = vmatprep.mubr.bf16.mxu0 %v19859_v46  ;;  %v9823_v33 = vsel %vm9821_vm7, %v9746_v41, %v9748_v11 }
 0x642   :  { %10251 = vrot.lane.b32.xlu1 %v18371_v28, %s13622_s10  ;;  %9921 = vmatprep.subr.bf16.mxu0 %v9823_v33 }
 0x643   :  { %10249 = vrot.lane.b32.xlu0 %v18340_v2, %s13622_s10  ;;  %12601 = vmatmul.mubr.msk.bf16.vlgmr.msra.gmra.mrb[8].mxu1 %vm338_vm2, %v18817_v24  ;;  %v9824_v2 = vsel %vm9821_vm7, %v9748_v11, %v9750_v15 }
 0x644   :  { %v9744_v58 = vpop.permute.xlu1 %9743  ;;  %v9752_v7 = vpop.permute.xlu0 %9751  ;;  %9996 = vmatprep.mubr.bf16.mxu1 %v19859_v46 }
 0x645   :  { %v9822_v38 = vsel %vm9821_vm7, %v9744_v58, %v9746_v41  ;;  %v9825_v28 = vsel %vm9821_vm7, %v9750_v15, %v9752_v7 }
 0x646   :  { %10273 = vrot.lane.b32.xlu1 %v17600_v43, %s13622_s10  ;;  %9922 = vmatpush1.bf16.msra.mxu0 %v9822_v38 }
 0x647   :  { %10253 = vrot.lane.b32.xlu0 %v18364_v32, %s13622_s10  ;;  %9964 = vmatprep.subr.bf16.mxu1 %v9825_v28  ;;  %v18992_v32 = vld [vmem:[%s19823_s1 + $0x2c] ss:$60 sps:$4 sm:$0xff]  }
 0x648   :  { %9965 = vmatpush1.bf16.msra.mxu1 %v9824_v2  ;;  %v9774_v3 = vpop.permute.xlu1 %9773  ;;  %v9772_v24 = vpop.permute.xlu0 %9771  ;;  %v19088_v2 = vld [vmem:[%s19823_s1 + $0x128] ss:$0 sps:$4 sm:$0xff]  }
 0x649   :  { %v9835_v18 = vsel %vm9821_vm7, %v9772_v24, %v9774_v3 }
 0x64a   :  { %10277 = vrot.lane.b32.xlu1 %v17615_v45, %s13622_s10  ;;  %9923 = vmatprep.subr.bf16.mxu0 %v9835_v18 }
 0x64b   :  { %10275 = vrot.lane.b32.xlu0 %v17619_v56, %s13622_s10 }
 0x64c   :  { %v18987_v31 = vpop.permute.xlu1 %9777  ;;  %v9776_v0 = vpop.permute.xlu0 %9775 }
 0x64d   :  { %v9837_v59 = vsel %vm9821_vm7, %v9776_v0, %v18987_v31  ;;  %v9836_v35 = vsel %vm9821_vm7, %v9774_v3, %v9776_v0 }
 0x64e   :  { %10229 = vrot.lane.b32.xlu1 %v18992_v32, %s13622_s10  ;;  %9966 = vmatprep.subr.bf16.mxu1 %v9837_v59 }
 0x64f   :  { %10279 = vrot.lane.b32.xlu0 %v17630_v6, %s13622_s10  ;;  %9967 = vmatpush1.bf16.msra.mxu1 %v9836_v35 }
 0x650   :  { %v9796_v30 = vpop.permute.xlu1 %9795  ;;  %v9770_v9 = vpop.permute.xlu0 %9769 }
 0x651   :  { %v9834_v54 = vsel %vm9821_vm7, %v9770_v9, %v9772_v24 }
 0x652   :  { %10233 = vrot.lane.b32.xlu1 %v19005_v21, %s13622_s10  ;;  %9924 = vmatpush1.bf16.msra.mxu0 %v9834_v54 }
 0x653   :  { %10231 = vrot.lane.b32.xlu0 %v19012_v53, %s13622_s10 }
 0x654   :  { %v9800_v62 = vpop.permute.xlu1 %9799  ;;  %v9798_v5 = vpop.permute.xlu0 %9797 }
 0x655   :  { %v9846_v63 = vsel %vm9821_vm7, %v9796_v30, %v9798_v5  ;;  %v9847_v29 = vsel %vm9821_vm7, %v9798_v5, %v9800_v62 }
 0x656   :  { %10255 = vrot.lane.b32.xlu1 %v19020_v55, %s13622_s10  ;;  %12605 = vmatprep.subr.msk.bf16.mxu0 %vm342_vm1, %v9847_v29  ;;  %v9886_v52 = vsel %vm342_vm1, %v9846_v63, 0  ;;  %v19110_v63 = vld [vmem:[%s19823_s1 + $0x88] ss:$60 sps:$4 sm:$0xff]  }
 0x657   :  { %10235 = vrot.lane.b32.xlu0 %v19028_v57, %s13622_s10  ;;  %9926 = vmatpush1.bf16.msra.mxu0 %v9886_v52  ;;  %v19118_v52 = vld [vmem:[%s19823_s1 + $0x84] ss:$60 sps:$4 sm:$0xff]  }
 0x658   :  { %v9804_v4 = vpop.permute.xlu1 %9803  ;;  %v9802_v40 = vpop.permute.xlu0 %9801 }
 0x659   :  { %v9848_v61 = vsel %vm9821_vm7, %v9800_v62, %v9802_v40  ;;  %v9849_v10 = vsel %vm9821_vm7, %v9802_v40, %v9804_v4 }
 0x65a   :  { %10259 = vrot.lane.b32.xlu1 %v19043_v26, %s13622_s10  ;;  %12607 = vmatprep.subr.msk.bf16.mxu1 %vm342_vm1, %v9849_v10  ;;  %v9892_v14 = vsel %vm342_vm1, %v9848_v61, 0  ;;  %v19130_v10 = vld [vmem:[%s19823_s1 + $0x90] ss:$60 sps:$4 sm:$0xff]  }
 0x65b   :  { %10257 = vrot.lane.b32.xlu0 %v19051_v44, %s13622_s10  ;;  %9969 = vmatpush1.bf16.msra.mxu1 %v9892_v14 }
 0x65c   :  { %v9756_v37 = vpop.permute.xlu1 %9755  ;;  %12606 = vmatmul.mubr.msk.bf16.vlgmr.msra.gmra.mrb[0].mxu0 %vm338_vm2, %v19037_v8  ;;  %v9754_v25 = vpop.permute.xlu0 %9753 }
 0x65d   :  { %10039 = vmatprep.mubr.bf16.mxu0 %v19859_v46  ;;  %v9827_v41 = vsel %vm9821_vm7, %v9754_v25, %v9756_v37  ;;  %v9826_v1 = vsel %vm9821_vm7, %v9752_v7, %v9754_v25  ;;  %v19139_v25 = vld [vmem:[%s19823_s1 + $0x8c] ss:$60 sps:$4 sm:$0xff]  }
 0x65e   :  { %10281 = vrot.lane.b32.xlu1 %v17626_v60, %s13622_s10  ;;  %10007 = vmatprep.subr.bf16.mxu0 %v9827_v41 }
 0x65f   :  { %10261 = vrot.lane.b32.xlu0 %v19067_v47, %s13622_s10  ;;  %10008 = vmatpush1.bf16.msra.mxu0 %v9826_v1 }
 0x660   :  { %v9760_v19 = vpop.permute.xlu1 %9759  ;;  %12608 = vmatmul.mubr.msk.bf16.vlgmr.msra.gmra.mrb[0].mxu1 %vm338_vm2, %v19037_v8  ;;  %v9758_v15 = vpop.permute.xlu0 %9757 }
 0x661   :  { %10082 = vmatprep.mubr.bf16.mxu1 %v19859_v46  ;;  %v9829_v11 = vsel %vm9821_vm7, %v9758_v15, %v9760_v19  ;;  %v9828_v33 = vsel %vm9821_vm7, %v9756_v37, %v9758_v15 }
 0x662   :  { %10285 = vrot.lane.b32.xlu1 %v17638_v50, %s13622_s10  ;;  %10050 = vmatprep.subr.bf16.mxu1 %v9829_v11  ;;  %v19153_v11 = vld [vmem:[%s19823_s1 + $0x80] ss:$60 sps:$4 sm:$0xff]  }
 0x663   :  { %10283 = vrot.lane.b32.xlu0 %v17643_v48, %s13622_s10  ;;  %10051 = vmatpush1.bf16.msra.mxu1 %v9828_v33 }
 0x664   :  { %v9782_v58 = vpop.permute.xlu1 %9781  ;;  %v9780_v38 = vpop.permute.xlu0 %9779 }
 0x665   :  { %v9839_v7 = vsel %vm9821_vm7, %v9780_v38, %v9782_v58  ;;  %v9838_v28 = vsel %vm9821_vm7, %v18987_v31, %v9780_v38 }
 0x666   :  { %10681 = vrot.lane.b32.xlu1 %v18856_v16, %s13623_s18  ;;  %10009 = vmatprep.subr.bf16.mxu0 %v9839_v7 }
 0x667   :  { %10287 = vrot.lane.b32.xlu0 %v19088_v2, %s13622_s10  ;;  %10010 = vmatpush1.bf16.msra.mxu0 %v9838_v28 }
 0x668   :  { %v9786_v3 = vpop.permute.xlu1 %9785  ;;  %v9784_v24 = vpop.permute.xlu0 %9783 }
 0x669   :  { %v9841_v18 = vsel %vm9821_vm7, %v9784_v24, %v9786_v3  ;;  %v9840_v0 = vsel %vm9821_vm7, %v9782_v58, %v9784_v24 }
 0x66a   :  { %10685 = vrot.lane.b32.xlu1 %v18872_v27, %s13623_s18  ;;  %10052 = vmatprep.subr.bf16.mxu1 %v9841_v18 }
 0x66b   :  { %10683 = vrot.lane.b32.xlu0 %v18848_v22, %s13623_s18  ;;  %10053 = vmatpush1.bf16.msra.mxu1 %v9840_v0 }
 0x66c   :  { %v9808_v31 = vpop.permute.xlu1 %9807  ;;  %v9806_v59 = vpop.permute.xlu0 %9805 }
 0x66d   :  { %v9850_v35 = vsel %vm9821_vm7, %v9804_v4, %v9806_v59  ;;  %v9851_v30 = vsel %vm9821_vm7, %v9806_v59, %v9808_v31 }
 0x66e   :  { %10679 = vrot.lane.b32.xlu1 %v18884_v23, %s13623_s18  ;;  %12609 = vmatprep.subr.msk.bf16.mxu0 %vm342_vm1, %v9851_v30  ;;  %v9898_v9 = vsel %vm342_vm1, %v9850_v35, 0 }
 0x66f   :  { %10687 = vrot.lane.b32.xlu0 %v18864_v20, %s13623_s18  ;;  %10012 = vmatpush1.bf16.msra.mxu0 %v9898_v9 }
 0x670   :  { %v9812_v54 = vpop.permute.xlu1 %9811  ;;  %v9810_v62 = vpop.permute.xlu0 %9809 }
 0x671   :  { %v9852_v5 = vsel %vm9821_vm7, %v9808_v31, %v9810_v62  ;;  %v9853_v29 = vsel %vm9821_vm7, %v9810_v62, %v9812_v54 }
 0x672   :  { %10709 = vrot.lane.b32.xlu1 %v19110_v63, %s13623_s18  ;;  %12611 = vmatprep.subr.msk.bf16.mxu1 %vm342_vm1, %v9853_v29  ;;  %v9904_v4 = vsel %vm342_vm1, %v9852_v5, 0 }
 0x673   :  { %10707 = vrot.lane.b32.xlu0 %v19118_v52, %s13623_s18  ;;  %10055 = vmatpush1.bf16.msra.mxu1 %v9904_v4 }
 0x674   :  { %v9764_v40 = vpop.permute.xlu1 %9763  ;;  %12610 = vmatmul.mubr.msk.bf16.vlgmr.msra.gmra.mrb[4].mxu0 %vm338_vm2, %v19037_v8 }
 0x675   :  { %v9762_v61 = vpop.permute.xlu0 %9761  ;;  %10125 = vmatprep.mubr.bf16.mxu0 %v19859_v46 }
 0x676   :  { %10713 = vrot.lane.b32.xlu1 %v19130_v10, %s13623_s18  ;;  %v9831_v14 = vsel %vm9821_vm7, %v9762_v61, %v9764_v40  ;;  %v9830_v37 = vsel %vm9821_vm7, %v9760_v19, %v9762_v61  ;;  %12612 = vmatmul.mubr.msk.bf16.vlgmr.msra.gmra.mrb[4].mxu1 %vm338_vm2, %v19037_v8  ;;  %v19191_v61 = vld [vmem:[%s19823_s1 + $0x98] ss:$60 sps:$4 sm:$0xff]  }
 0x677   :  { %10711 = vrot.lane.b32.xlu0 %v19139_v25, %s13623_s18  ;;  %10093 = vmatprep.subr.bf16.mxu0 %v9831_v14 }
 0x678   :  { %10094 = vmatpush1.bf16.msra.mxu0 %v9830_v37  ;;  %v9768_v41 = vpop.permute.xlu1 %9767  ;;  %10168 = vmatprep.mubr.bf16.mxu1 %v19859_v46  ;;  %v19199_v37 = vld [vmem:[%s19823_s1 + $0x94] ss:$60 sps:$4 sm:$0xff]  }
 0x679   :  { %v9766_v1 = vpop.permute.xlu0 %9765 }
 0x67a   :  { %10731 = vrot.lane.b32.xlu1 %v17573_v42, %s13623_s18  ;;  %v9833_v19 = vsel %vm9821_vm7, %v9766_v1, %v9768_v41  ;;  %v9832_v15 = vsel %vm9821_vm7, %v9764_v40, %v9766_v1 }
 0x67b   :  { %10705 = vrot.lane.b32.xlu0 %v19153_v11, %s13623_s18  ;;  %10136 = vmatprep.subr.bf16.mxu1 %v9833_v19  ;;  %v19211_v19 = vld [vmem:[%s19823_s1 + $0xa0] ss:$60 sps:$4 sm:$0xff]  }
 0x67c   :  { %10137 = vmatpush1.bf16.msra.mxu1 %v9832_v15  ;;  %v9790_v33 = vpop.permute.xlu1 %9789 }
 0x67d   :  { %v9788_v58 = vpop.permute.xlu0 %9787 }
 0x67e   :  { %10735 = vrot.lane.b32.xlu1 %v17589_v51, %s13623_s18  ;;  %v9843_v38 = vsel %vm9821_vm7, %v9788_v58, %v9790_v33  ;;  %v9842_v7 = vsel %vm9821_vm7, %v9786_v3, %v9788_v58 }
 0x67f   :  { %10733 = vrot.lane.b32.xlu0 %v17565_v34, %s13623_s18  ;;  %10095 = vmatprep.subr.bf16.mxu0 %v9843_v38 }
 0x680   :  { %10096 = vmatpush1.bf16.msra.mxu0 %v9842_v7  ;;  %v9794_v28 = vpop.permute.xlu1 %9793 }
 0x681   :  { %v9792_v24 = vpop.permute.xlu0 %9791 }
 0x682   :  { %10739 = vrot.lane.b32.xlu1 %v17604_v36, %s13623_s18  ;;  %v9845_v18 = vsel %vm9821_vm7, %v9792_v24, %v9794_v28  ;;  %v9844_v0 = vsel %vm9821_vm7, %v9790_v33, %v9792_v24 }
 0x683   :  { %10737 = vrot.lane.b32.xlu0 %v17585_v17, %s13623_s18  ;;  %10138 = vmatprep.subr.bf16.mxu1 %v9845_v18 }
 0x684   :  { %10139 = vmatpush1.bf16.msra.mxu1 %v9844_v0  ;;  %v9816_v3 = vpop.permute.xlu1 %9815 }
 0x685   :  { %v9814_v31 = vpop.permute.xlu0 %9813 }
 0x686   :  { %v9854_v59 = vsel %vm9821_vm7, %v9812_v54, %v9814_v31  ;;  %10691 = vrot.lane.b32.xlu1 %v18945_v13, %s13623_s18  ;;  %v9855_v35 = vsel %vm9821_vm7, %v9814_v31, %v9816_v3 }
 0x687   :  { %10689 = vrot.lane.b32.xlu0 %v18925_v49, %s13623_s18  ;;  %12613 = vmatprep.subr.msk.bf16.mxu0 %vm342_vm1, %v9855_v35  ;;  %v9910_v30 = vsel %vm342_vm1, %v9854_v59, 0 }
 0x688   :  { %10098 = vmatpush1.bf16.msra.mxu0 %v9910_v30  ;;  %v9820_v9 = vpop.permute.xlu1 %9819 }
 0x689   :  { %v9818_v62 = vpop.permute.xlu0 %9817 }
 0x68a   :  { %v9856_v5 = vsel %vm9821_vm7, %v9816_v3, %v9818_v62  ;;  %10695 = vrot.lane.b32.xlu1 %v18958_v39, %s13623_s18  ;;  %v9857_v54 = vsel %vm9821_vm7, %v9818_v62, %v9820_v9 }
 0x68b   :  { %10693 = vrot.lane.b32.xlu0 %v18937_v12, %s13623_s18  ;;  %12615 = vmatprep.subr.msk.bf16.mxu1 %vm342_vm1, %v9857_v54  ;;  %v9916_v29 = vsel %vm342_vm1, %v9856_v5, 0 }
 0x68c   :  { %10141 = vmatpush1.bf16.msra.mxu1 %v9916_v29  ;;  %v10216_v4 = vpop.permute.xlu1 %10215  ;;  %12614 = vmatmul.mubr.msk.bf16.vlgmr.msra.gmra.mrb[8].mxu0 %vm338_vm2, %v19037_v8 }
 0x68d   :  { %v10214_v40 = vpop.permute.xlu0 %10213  ;;  %10421 = vmatprep.mubr.bf16.mxu0 %v19859_v46 }
 0x68e   :  { %10717 = vrot.lane.b32.xlu1 %v19191_v61, %s13623_s18  ;;  %v10291_v14 = vsel %vm10289_vm8, %v10214_v40, %v10216_v4 }
 0x68f   :  { %10715 = vrot.lane.b32.xlu0 %v19199_v37, %s13623_s18  ;;  %10389 = vmatprep.subr.bf16.mxu0 %v10291_v14 }
 0x690   :  { %v19203_v41 = vpop.permute.xlu1 %10219  ;;  %12616 = vmatmul.mubr.msk.bf16.vlgmr.msra.gmra.mrb[8].mxu1 %vm338_vm2, %v19037_v8  ;;  %v19221_v8 = vld [vmem:[%s19823_s1 + $0x9c] ss:$60 sps:$4 sm:$0xff]  }
 0x691   :  { %v10218_v1 = vpop.permute.xlu0 %10217  ;;  %10464 = vmatprep.mubr.bf16.mxu1 %v19859_v46 }
 0x692   :  { %10721 = vrot.lane.b32.xlu1 %v19211_v19, %s13623_s18  ;;  %v10293_v15 = vsel %vm10289_vm8, %v10218_v1, %v19203_v41  ;;  %v10292_v33 = vsel %vm10289_vm8, %v10216_v4, %v10218_v1  ;;  %v19258_v1 = vld [vmem:[%s19824_s0 + $0xa8] sm:$0x1f]  }
 0x693   :  { %10719 = vrot.lane.b32.xlu0 %v19221_v8, %s13623_s18  ;;  %10432 = vmatprep.subr.bf16.mxu1 %v10293_v15 }
 0x694   :  { %10433 = vmatpush1.bf16.msra.mxu1 %v10292_v33  ;;  %v10240_v58 = vpop.permute.xlu1 %10239 }
 0x695   :  { %v10212_v38 = vpop.permute.xlu0 %10211 }
 0x696   :  { %v10290_v7 = vsel %vm10289_vm8, %v10212_v38, %v10214_v40  ;;  %10743 = vrot.lane.b32.xlu1 %v17619_v56, %s13623_s18 }
 0x697   :  { %10741 = vrot.lane.b32.xlu0 %v17600_v43, %s13623_s18  ;;  %10390 = vmatpush1.bf16.msra.mxu0 %v10290_v7 }
 0x698   :  { %v10244_v28 = vpop.permute.xlu1 %10243 }
 0x699   :  { %v10242_v24 = vpop.permute.xlu0 %10241 }
 0x69a   :  { %10747 = vrot.lane.b32.xlu1 %v17630_v6, %s13623_s18  ;;  %v10303_v18 = vsel %vm10289_vm8, %v10240_v58, %v10242_v24  ;;  %v10304_v35 = vsel %vm10289_vm8, %v10242_v24, %v10244_v28 }
 0x69b   :  { %10745 = vrot.lane.b32.xlu0 %v17615_v45, %s13623_s18  ;;  %10391 = vmatprep.subr.bf16.mxu0 %v10303_v18 }
 0x69c   :  { %v10238_v0 = vpop.permute.xlu1 %10237 }
 0x69d   :  { %v10302_v3 = vsel %vm10289_vm8, %v10238_v0, %v10240_v58  ;;  %v10246_v31 = vpop.permute.xlu0 %10245 }
 0x69e   :  { %10699 = vrot.lane.b32.xlu1 %v19012_v53, %s13623_s18  ;;  %10392 = vmatpush1.bf16.msra.mxu0 %v10302_v3  ;;  %v10305_v59 = vsel %vm10289_vm8, %v10244_v28, %v10246_v31 }
 0x69f   :  { %10697 = vrot.lane.b32.xlu0 %v18992_v32, %s13623_s18  ;;  %10434 = vmatprep.subr.bf16.mxu1 %v10305_v59 }
 0x6a0   :  { %10435 = vmatpush1.bf16.msra.mxu1 %v10304_v35  ;;  %v10266_v30 = vpop.permute.xlu1 %10265 }
 0x6a1   :  { %v10264_v9 = vpop.permute.xlu0 %10263 }
 0x6a2   :  { %10703 = vrot.lane.b32.xlu1 %v19028_v57, %s13623_s18  ;;  %v10314_v62 = vsel %vm10289_vm8, %v10264_v9, %v10266_v30 }
 0x6a3   :  { %10701 = vrot.lane.b32.xlu0 %v19005_v21, %s13623_s18  ;;  %v10354_v4 = vsel %vm342_vm1, %v10314_v62, 0 }
 0x6a4   :  { %v10270_v5 = vpop.permute.xlu1 %10269 }
 0x6a5   :  { %v10268_v54 = vpop.permute.xlu0 %10267 }
 0x6a6   :  { %10725 = vrot.lane.b32.xlu1 %v19051_v44, %s13623_s18  ;;  %v10315_v29 = vsel %vm10289_vm8, %v10266_v30, %v10268_v54  ;;  %v10316_v40 = vsel %vm10289_vm8, %v10268_v54, %v10270_v5 }
 0x6a7   :  { %10723 = vrot.lane.b32.xlu0 %v19020_v55, %s13623_s18  ;;  %12620 = vmatprep.subr.msk.bf16.mxu0 %vm342_vm1, %v10315_v29  ;;  %v10360_v58 = vsel %vm342_vm1, %v10316_v40, 0 }
 0x6a8   :  { %10394 = vmatpush1.bf16.msra.mxu0 %v10354_v4  ;;  %v10222_v14 = vpop.permute.xlu1 %10221 }
 0x6a9   :  { %v10272_v15 = vpop.permute.xlu0 %10271  ;;  %v10294_v24 = vsel %vm10289_vm8, %v19203_v41, %v10222_v14 }
 0x6aa   :  { %10729 = vrot.lane.b32.xlu1 %v19067_v47, %s13623_s18  ;;  %v10317_v33 = vsel %vm10289_vm8, %v10270_v5, %v10272_v15 }
 0x6ab   :  { %10727 = vrot.lane.b32.xlu0 %v19043_v26, %s13623_s18  ;;  %12622 = vmatprep.subr.msk.bf16.mxu1 %vm342_vm1, %v10317_v33 }
 0x6ac   :  { %10437 = vmatpush1.bf16.msra.mxu1 %v10360_v58  ;;  %v10226_v38 = vpop.permute.xlu1 %10225  ;;  %12621 = vmatmul.mubr.msk.bf16.vlgmr.msra.gmra.mrb[0].mxu0 %vm338_vm2, %v19258_v1 }
 0x6ad   :  { %v10224_v7 = vpop.permute.xlu0 %10223  ;;  %10507 = vmatprep.mubr.bf16.mxu0 %v19859_v46 }
 0x6ae   :  { %10751 = vrot.lane.b32.xlu1 %v17643_v48, %s13623_s18  ;;  %v10295_v28 = vsel %vm10289_vm8, %v10222_v14, %v10224_v7  ;;  %v10296_v59 = vsel %vm10289_vm8, %v10224_v7, %v10226_v38 }
 0x6af   :  { %10749 = vrot.lane.b32.xlu0 %v17626_v60, %s13623_s18  ;;  %10475 = vmatprep.subr.bf16.mxu0 %v10295_v28 }
 0x6b0   :  { %10476 = vmatpush1.bf16.msra.mxu0 %v10294_v24  ;;  %v10248_v18 = vpop.permute.xlu1 %10247  ;;  %12623 = vmatmul.mubr.msk.bf16.vlgmr.msra.gmra.mrb[0].mxu1 %vm338_vm2, %v19258_v1 }
 0x6b1   :  { %v10228_v0 = vpop.permute.xlu0 %10227  ;;  %10550 = vmatprep.mubr.bf16.mxu1 %v19859_v46  ;;  %v10306_v9 = vsel %vm10289_vm8, %v10246_v31, %v10248_v18 }
 0x6b2   :  { %10755 = vrot.lane.b32.xlu1 %v19088_v2, %s13623_s18  ;;  %v10297_v3 = vsel %vm10289_vm8, %v10226_v38, %v10228_v0 }
 0x6b3   :  { %10753 = vrot.lane.b32.xlu0 %v17638_v50, %s13623_s18  ;;  %10518 = vmatprep.subr.bf16.mxu1 %v10297_v3 }
 0x6b4   :  { %10519 = vmatpush1.bf16.msra.mxu1 %v10296_v59  ;;  %v10252_v41 = vpop.permute.xlu1 %10251 }
 0x6b5   :  { %v10250_v35 = vpop.permute.xlu0 %10249 }
 0x6b6   :  { %11151 = vrot.lane.b32.xlu1 %v18848_v22, %s13624_s25  ;;  %v10307_v30 = vsel %vm10289_vm8, %v10248_v18, %v10250_v35  ;;  %v10308_v22 = vsel %vm10289_vm8, %v10250_v35, %v10252_v41 }
 0x6b7   :  { %11149 = vrot.lane.b32.xlu0 %v18856_v16, %s13624_s25  ;;  %10477 = vmatprep.subr.bf16.mxu0 %v10307_v30 }
 0x6b8   :  { %10478 = vmatpush1.bf16.msra.mxu0 %v10306_v9  ;;  %v10274_v62 = vpop.permute.xlu1 %10273 }
 0x6b9   :  { %v10254_v5 = vpop.permute.xlu0 %10253  ;;  %v10318_v29 = vsel %vm10289_vm8, %v10272_v15, %v10274_v62 }
 0x6ba   :  { %11155 = vrot.lane.b32.xlu1 %v18864_v20, %s13624_s25  ;;  %v10309_v54 = vsel %vm10289_vm8, %v10252_v41, %v10254_v5  ;;  %v10366_v20 = vsel %vm342_vm1, %v10318_v29, 0 }
 0x6bb   :  { %11153 = vrot.lane.b32.xlu0 %v18872_v27, %s13624_s25  ;;  %10520 = vmatprep.subr.bf16.mxu1 %v10309_v54 }
 0x6bc   :  { %10521 = vmatpush1.bf16.msra.mxu1 %v10308_v22  ;;  %v10278_v4 = vpop.permute.xlu1 %10277 }
 0x6bd   :  { %v10276_v40 = vpop.permute.xlu0 %10275 }
 0x6be   :  { %11175 = vrot.lane.b32.xlu1 %v19118_v52, %s13624_s25  ;;  %v10319_v31 = vsel %vm10289_vm8, %v10274_v62, %v10276_v40  ;;  %v10320_v14 = vsel %vm10289_vm8, %v10276_v40, %v10278_v4 }
 0x6bf   :  { %11147 = vrot.lane.b32.xlu0 %v18884_v23, %s13624_s25  ;;  %12624 = vmatprep.subr.msk.bf16.mxu0 %vm342_vm1, %v10319_v31  ;;  %v10372_v38 = vsel %vm342_vm1, %v10320_v14, 0 }
 0x6c0   :  { %10480 = vmatpush1.bf16.msra.mxu0 %v10366_v20  ;;  %v10230_v33 = vpop.permute.xlu1 %10229 }
 0x6c1   :  { %v10280_v15 = vpop.permute.xlu0 %10279  ;;  %v10298_v18 = vsel %vm10289_vm8, %v10228_v0, %v10230_v33 }
 0x6c2   :  { %11179 = vrot.lane.b32.xlu1 %v19139_v25, %s13624_s25  ;;  %v10321_v58 = vsel %vm10289_vm8, %v10278_v4, %v10280_v15 }
 0x6c3   :  { %11177 = vrot.lane.b32.xlu0 %v19110_v63, %s13624_s25  ;;  %12626 = vmatprep.subr.msk.bf16.mxu1 %vm342_vm1, %v10321_v58 }
 0x6c4   :  { %10523 = vmatpush1.bf16.msra.mxu1 %v10372_v38  ;;  %v10234_v7 = vpop.permute.xlu1 %10233  ;;  %12625 = vmatmul.mubr.msk.bf16.vlgmr.msra.gmra.mrb[4].mxu0 %vm338_vm2, %v19258_v1 }
 0x6c5   :  { %v10232_v28 = vpop.permute.xlu0 %10231  ;;  %10593 = vmatprep.mubr.bf16.mxu0 %v19859_v46 }
 0x6c6   :  { %11173 = vrot.lane.b32.xlu1 %v19153_v11, %s13624_s25  ;;  %v10299_v24 = vsel %vm10289_vm8, %v10230_v33, %v10232_v28  ;;  %v10300_v35 = vsel %vm10289_vm8, %v10232_v28, %v10234_v7 }
 0x6c7   :  { %11181 = vrot.lane.b32.xlu0 %v19130_v10, %s13624_s25  ;;  %10561 = vmatprep.subr.bf16.mxu0 %v10299_v24 }
 0x6c8   :  { %10562 = vmatpush1.bf16.msra.mxu0 %v10298_v18  ;;  %v10256_v3 = vpop.permute.xlu1 %10255  ;;  %12627 = vmatmul.mubr.msk.bf16.vlgmr.msra.gmra.mrb[4].mxu1 %vm338_vm2, %v19258_v1 }
 0x6c9   :  { %v10236_v59 = vpop.permute.xlu0 %10235  ;;  %10636 = vmatprep.mubr.bf16.mxu1 %v19859_v46  ;;  %v10310_v62 = vsel %vm10289_vm8, %v10254_v5, %v10256_v3 }
 0x6ca   :  { %11201 = vrot.lane.b32.xlu1 %v17565_v34, %s13624_s25  ;;  %v10301_v41 = vsel %vm10289_vm8, %v10234_v7, %v10236_v59 }
 0x6cb   :  { %11199 = vrot.lane.b32.xlu0 %v17573_v42, %s13624_s25  ;;  %10604 = vmatprep.subr.bf16.mxu1 %v10301_v41 }
 0x6cc   :  { %10605 = vmatpush1.bf16.msra.mxu1 %v10300_v35  ;;  %v10260_v0 = vpop.permute.xlu1 %10259 }
 0x6cd   :  { %v10258_v30 = vpop.permute.xlu0 %10257 }
 0x6ce   :  { %11205 = vrot.lane.b32.xlu1 %v17585_v17, %s13624_s25  ;;  %v10311_v9 = vsel %vm10289_vm8, %v10256_v3, %v10258_v30  ;;  %v10312_v4 = vsel %vm10289_vm8, %v10258_v30, %v10260_v0 }
 0x6cf   :  { %11203 = vrot.lane.b32.xlu0 %v17589_v51, %s13624_s25  ;;  %10563 = vmatprep.subr.bf16.mxu0 %v10311_v9 }
 0x6d0   :  { %10564 = vmatpush1.bf16.msra.mxu0 %v10310_v62  ;;  %v10282_v54 = vpop.permute.xlu1 %10281 }
 0x6d1   :  { %v10262_v22 = vpop.permute.xlu0 %10261  ;;  %v10322_v40 = vsel %vm10289_vm8, %v10280_v15, %v10282_v54 }
 0x6d2   :  { %11157 = vrot.lane.b32.xlu1 %v18925_v49, %s13624_s25  ;;  %v10313_v29 = vsel %vm10289_vm8, %v10260_v0, %v10262_v22  ;;  %v10378_v49 = vsel %vm342_vm1, %v10322_v40, 0 }
 0x6d3   :  { %11207 = vrot.lane.b32.xlu0 %v17604_v36, %s13624_s25  ;;  %10606 = vmatprep.subr.bf16.mxu1 %v10313_v29 }
 0x6d4   :  { %10607 = vmatpush1.bf16.msra.mxu1 %v10312_v4  ;;  %v10286_v31 = vpop.permute.xlu1 %10285 }
 0x6d5   :  { %v10284_v20 = vpop.permute.xlu0 %10283 }
 0x6d6   :  { %11161 = vrot.lane.b32.xlu1 %v18937_v12, %s13624_s25  ;;  %v10323_v5 = vsel %vm10289_vm8, %v10282_v54, %v10284_v20  ;;  %v10324_v14 = vsel %vm10289_vm8, %v10284_v20, %v10286_v31 }
 0x6d7   :  { %11159 = vrot.lane.b32.xlu0 %v18945_v13, %s13624_s25  ;;  %12628 = vmatprep.subr.msk.bf16.mxu0 %vm342_vm1, %v10323_v5  ;;  %v10384_v12 = vsel %vm342_vm1, %v10324_v14, 0 }
 0x6d8   :  { %10566 = vmatpush1.bf16.msra.mxu0 %v10378_v49  ;;  %v10682_v33 = vpop.permute.xlu1 %10681  ;;  %v19405_v49 = vld [vmem:[%s19824_s0 + $0xb0] sm:$0x1f]  }
 0x6d9   :  { %v10288_v15 = vpop.permute.xlu0 %10287 }
 0x6da   :  { %v10325_v58 = vsel %vm10289_vm8, %v10286_v31, %v10288_v15  ;;  %11183 = vrot.lane.b32.xlu1 %v19199_v37, %s13624_s25 }
 0x6db   :  { %11163 = vrot.lane.b32.xlu0 %v18958_v39, %s13624_s25  ;;  %12630 = vmatprep.subr.msk.bf16.mxu1 %vm342_vm1, %v10325_v58 }
 0x6dc   :  { %10609 = vmatpush1.bf16.msra.mxu1 %v10384_v12  ;;  %v10686_v38 = vpop.permute.xlu1 %10685  ;;  %12629 = vmatmul.mubr.msk.bf16.vlgmr.msra.gmra.mrb[8].mxu0 %vm338_vm2, %v19258_v1 }
 0x6dd   :  { %v10684_v7 = vpop.permute.xlu0 %10683  ;;  %10889 = vmatprep.mubr.bf16.mxu0 %v19859_v46 }
 0x6de   :  { %11187 = vrot.lane.b32.xlu1 %v19221_v8, %s13624_s25  ;;  %v10759_v28 = vsel %vm10757_vm9, %v10682_v33, %v10684_v7  ;;  %v10760_v41 = vsel %vm10757_vm9, %v10684_v7, %v10686_v38 }
 0x6df   :  { %11185 = vrot.lane.b32.xlu0 %v19191_v61, %s13624_s25  ;;  %10857 = vmatprep.subr.bf16.mxu0 %v10759_v28 }
 0x6e0   :  { %v10680_v24 = vpop.permute.xlu1 %10679  ;;  %12631 = vmatmul.mubr.msk.bf16.vlgmr.msra.gmra.mrb[8].mxu1 %vm338_vm2, %v19258_v1 }
 0x6e1   :  { %v10758_v18 = vsel %vm10757_vm9, %v10680_v24, %v10682_v33  ;;  %v10688_v3 = vpop.permute.xlu0 %10687  ;;  %10932 = vmatprep.mubr.bf16.mxu1 %v19859_v46 }
 0x6e2   :  { %11209 = vrot.lane.b32.xlu1 %v17600_v43, %s13624_s25  ;;  %10858 = vmatpush1.bf16.msra.mxu0 %v10758_v18  ;;  %v10761_v59 = vsel %vm10757_vm9, %v10686_v38, %v10688_v3 }
 0x6e3   :  { %11189 = vrot.lane.b32.xlu0 %v19211_v19, %s13624_s25  ;;  %10900 = vmatprep.subr.bf16.mxu1 %v10761_v59 }
 0x6e4   :  { %10901 = vmatpush1.bf16.msra.mxu1 %v10760_v41  ;;  %v10710_v35 = vpop.permute.xlu1 %10709 }
 0x6e5   :  { %v10708_v1 = vpop.permute.xlu0 %10707 }
 0x6e6   :  { %11213 = vrot.lane.b32.xlu1 %v17615_v45, %s13624_s25  ;;  %v10771_v0 = vsel %vm10757_vm9, %v10708_v1, %v10710_v35 }
 0x6e7   :  { %11211 = vrot.lane.b32.xlu0 %v17619_v56, %s13624_s25  ;;  %10859 = vmatprep.subr.bf16.mxu0 %v10771_v0 }
 0x6e8   :  { %v10714_v30 = vpop.permute.xlu1 %10713 }
 0x6e9   :  { %v10712_v9 = vpop.permute.xlu0 %10711 }
 0x6ea   :  { %11165 = vrot.lane.b32.xlu1 %v18992_v32, %s13624_s25  ;;  %v10773_v62 = vsel %vm10757_vm9, %v10712_v9, %v10714_v30  ;;  %v10772_v54 = vsel %vm10757_vm9, %v10710_v35, %v10712_v9 }
 0x6eb   :  { %11215 = vrot.lane.b32.xlu0 %v17630_v6, %s13624_s25  ;;  %10902 = vmatprep.subr.bf16.mxu1 %v10773_v62 }
 0x6ec   :  { %10903 = vmatpush1.bf16.msra.mxu1 %v10772_v54  ;;  %v10732_v22 = vpop.permute.xlu1 %10731 }
 0x6ed   :  { %v10706_v29 = vpop.permute.xlu0 %10705 }
 0x6ee   :  { %v10770_v4 = vsel %vm10757_vm9, %v10706_v29, %v10708_v1  ;;  %11169 = vrot.lane.b32.xlu1 %v19005_v21, %s13624_s25 }
 0x6ef   :  { %11167 = vrot.lane.b32.xlu0 %v19012_v53, %s13624_s25  ;;  %10860 = vmatpush1.bf16.msra.mxu0 %v10770_v4  ;;  %v13594_v4 = vld [vmem:[%s19823_s1 + $0x18] ss:$60 sps:$4 sm:$0xff]  }
 0x6f0   :  { %v10736_v32 = vpop.permute.xlu1 %10735 }
 0x6f1   :  { %v10734_v40 = vpop.permute.xlu0 %10733 }
 0x6f2   :  { %v10782_v31 = vsel %vm10757_vm9, %v10732_v22, %v10734_v40  ;;  %11191 = vrot.lane.b32.xlu1 %v19020_v55, %s13624_s25  ;;  %v10783_v20 = vsel %vm10757_vm9, %v10734_v40, %v10736_v32 }
 0x6f3   :  { %11171 = vrot.lane.b32.xlu0 %v19028_v57, %s13624_s25  ;;  %12635 = vmatprep.subr.msk.bf16.mxu0 %vm342_vm1, %v10783_v20  ;;  %v10822_v21 = vsel %vm342_vm1, %v10782_v31, 0 }
 0x6f4   :  { %10862 = vmatpush1.bf16.msra.mxu0 %v10822_v21  ;;  %v10740_v5 = vpop.permute.xlu1 %10739 }
 0x6f5   :  { %v10738_v14 = vpop.permute.xlu0 %10737 }
 0x6f6   :  { %v10784_v33 = vsel %vm10757_vm9, %v10736_v32, %v10738_v14  ;;  %11195 = vrot.lane.b32.xlu1 %v19043_v26, %s13624_s25  ;;  %v10785_v55 = vsel %vm10757_vm9, %v10738_v14, %v10740_v5 }
 0x6f7   :  { %11193 = vrot.lane.b32.xlu0 %v19051_v44, %s13624_s25  ;;  %12637 = vmatprep.subr.msk.bf16.mxu1 %vm342_vm1, %v10785_v55  ;;  %v10828_v15 = vsel %vm342_vm1, %v10784_v33, 0 }
 0x6f8   :  { %10905 = vmatpush1.bf16.msra.mxu1 %v10828_v15  ;;  %v10692_v58 = vpop.permute.xlu1 %10691  ;;  %12636 = vmatmul.mubr.msk.bf16.vlgmr.msra.gmra.mrb[0].mxu0 %vm338_vm2, %v19405_v49 }
 0x6f9   :  { %v10690_v12 = vpop.permute.xlu0 %10689  ;;  %10975 = vmatprep.mubr.bf16.mxu0 %v19859_v46 }
 0x6fa   :  { %11217 = vrot.lane.b32.xlu1 %v17626_v60, %s13624_s25  ;;  %v10763_v26 = vsel %vm10757_vm9, %v10690_v12, %v10692_v58  ;;  %v10762_v38 = vsel %vm10757_vm9, %v10688_v3, %v10690_v12 }
 0x6fb   :  { %11197 = vrot.lane.b32.xlu0 %v19067_v47, %s13624_s25  ;;  %10943 = vmatprep.subr.bf16.mxu0 %v10763_v26 }
 0x6fc   :  { %10944 = vmatpush1.bf16.msra.mxu0 %v10762_v38  ;;  %v10696_v7 = vpop.permute.xlu1 %10695  ;;  %12638 = vmatmul.mubr.msk.bf16.vlgmr.msra.gmra.mrb[0].mxu1 %vm338_vm2, %v19405_v49 }
 0x6fd   :  { %v10694_v28 = vpop.permute.xlu0 %10693  ;;  %11018 = vmatprep.mubr.bf16.mxu1 %v19859_v46 }
 0x6fe   :  { %11221 = vrot.lane.b32.xlu1 %v17638_v50, %s13624_s25  ;;  %v10765_v24 = vsel %vm10757_vm9, %v10694_v28, %v10696_v7  ;;  %v10764_v18 = vsel %vm10757_vm9, %v10692_v58, %v10694_v28 }
 0x6ff   :  { %11219 = vrot.lane.b32.xlu0 %v17643_v48, %s13624_s25  ;;  %10986 = vmatprep.subr.bf16.mxu1 %v10765_v24 }
 0x700   :  { %10987 = vmatpush1.bf16.msra.mxu1 %v10764_v18  ;;  %v10718_v3 = vpop.permute.xlu1 %10717 }
 0x701   :  { %v10716_v59 = vpop.permute.xlu0 %10715 }
 0x702   :  { %11617 = vrot.lane.b32.xlu1 %v18856_v16, %s13625_s30  ;;  %v10775_v41 = vsel %vm10757_vm9, %v10716_v59, %v10718_v3  ;;  %v10774_v35 = vsel %vm10757_vm9, %v10714_v30, %v10716_v59  ;;  %v13593_v16 = vld [vmem:[%s19823_s1 + $0x10] ss:$60 sps:$4 sm:$0xff]  }
 0x703   :  { %11223 = vrot.lane.b32.xlu0 %v19088_v2, %s13624_s25  ;;  %10945 = vmatprep.subr.bf16.mxu0 %v10775_v41  ;;  %v13596_v41 = vld [vmem:[%s19823_s1 + $0x24] ss:$60 sps:$4 sm:$0xff]  }
 0x704   :  { %10946 = vmatpush1.bf16.msra.mxu0 %v10774_v35  ;;  %v10722_v1 = vpop.permute.xlu1 %10721 }
 0x705   :  { %v10720_v0 = vpop.permute.xlu0 %10719 }
 0x706   :  { %v10776_v9 = vsel %vm10757_vm9, %v10718_v3, %v10720_v0  ;;  %11621 = vrot.lane.b32.xlu1 %v18872_v27, %s13625_s30  ;;  %v10777_v62 = vsel %vm10757_vm9, %v10720_v0, %v10722_v1 }
 0x707   :  { %11619 = vrot.lane.b32.xlu0 %v13593_v16, %s13625_s30  ;;  %10988 = vmatprep.subr.bf16.mxu1 %v10777_v62 }
 0x708   :  { %10989 = vmatpush1.bf16.msra.mxu1 %v10776_v9  ;;  %v10744_v30 = vpop.permute.xlu1 %10743 }
 0x709   :  { %v10742_v54 = vpop.permute.xlu0 %10741 }
 0x70a   :  { %v10786_v22 = vsel %vm10757_vm9, %v10740_v5, %v10742_v54  ;;  %v10787_v29 = vsel %vm10757_vm9, %v10742_v54, %v10744_v30  ;;  %11615 = vrot.lane.b32.xlu1 %v18884_v23, %s13625_s30 }
 0x70b   :  { %v10834_v27 = vsel %vm342_vm1, %v10786_v22, 0  ;;  %11623 = vrot.lane.b32.xlu0 %v13594_v4, %s13625_s30  ;;  %12639 = vmatprep.subr.msk.bf16.mxu0 %vm342_vm1, %v10787_v29 }
 0x70c   :  { %10948 = vmatpush1.bf16.msra.mxu0 %v10834_v27  ;;  %v10748_v32 = vpop.permute.xlu1 %10747 }
 0x70d   :  { %v10746_v40 = vpop.permute.xlu0 %10745 }
 0x70e   :  { %v10788_v31 = vsel %vm10757_vm9, %v10744_v30, %v10746_v40  ;;  %v10789_v20 = vsel %vm10757_vm9, %v10746_v40, %v10748_v32  ;;  %11645 = vrot.lane.b32.xlu1 %v19110_v63, %s13625_s30 }
 0x70f   :  { %v10840_v23 = vsel %vm342_vm1, %v10788_v31, 0  ;;  %11643 = vrot.lane.b32.xlu0 %v19118_v52, %s13625_s30  ;;  %12641 = vmatprep.subr.msk.bf16.mxu1 %vm342_vm1, %v10789_v20 }
 0x710   :  { %10991 = vmatpush1.bf16.msra.mxu1 %v10840_v23  ;;  %v10700_v21 = vpop.permute.xlu1 %10699  ;;  %12640 = vmatmul.mubr.msk.bf16.vlgmr.msra.gmra.mrb[4].mxu0 %vm338_vm2, %v19405_v49 }
 0x711   :  { %v10698_v5 = vpop.permute.xlu0 %10697  ;;  %11061 = vmatprep.mubr.bf16.mxu0 %v19859_v46 }
 0x712   :  { %v10766_v14 = vsel %vm10757_vm9, %v10696_v7, %v10698_v5  ;;  %11649 = vrot.lane.b32.xlu1 %v19130_v10, %s13625_s30  ;;  %v10767_v63 = vsel %vm10757_vm9, %v10698_v5, %v10700_v21  ;;  %v19577_v5 = vld [vmem:[%s19824_s0 + $0xb8] sm:$0x1f]  }
 0x713   :  { %11647 = vrot.lane.b32.xlu0 %v19139_v25, %s13625_s30  ;;  %11029 = vmatprep.subr.bf16.mxu0 %v10767_v63 }
 0x714   :  { %11030 = vmatpush1.bf16.msra.mxu0 %v10766_v14  ;;  %v10704_v52 = vpop.permute.xlu1 %10703  ;;  %12642 = vmatmul.mubr.msk.bf16.vlgmr.msra.gmra.mrb[4].mxu1 %vm338_vm2, %v19405_v49 }
 0x715   :  { %v10702_v33 = vpop.permute.xlu0 %10701  ;;  %11104 = vmatprep.mubr.bf16.mxu1 %v19859_v46 }
 0x716   :  { %v10768_v55 = vsel %vm10757_vm9, %v10700_v21, %v10702_v33  ;;  %11667 = vrot.lane.b32.xlu1 %v17573_v42, %s13625_s30  ;;  %v10769_v10 = vsel %vm10757_vm9, %v10702_v33, %v10704_v52  ;;  %v13600_v52 = vld [vmem:[%s19823_s1 + $0xac] ss:$60 sps:$4 sm:$0xff]  }
 0x717   :  { %11641 = vrot.lane.b32.xlu0 %v19153_v11, %s13625_s30  ;;  %11072 = vmatprep.subr.bf16.mxu1 %v10769_v10 }
 0x718   :  { %11073 = vmatpush1.bf16.msra.mxu1 %v10768_v55  ;;  %v10726_v25 = vpop.permute.xlu1 %10725 }
 0x719   :  { %v10724_v15 = vpop.permute.xlu0 %10723 }
 0x71a   :  { %v10778_v58 = vsel %vm10757_vm9, %v10722_v1, %v10724_v15  ;;  %11671 = vrot.lane.b32.xlu1 %v17589_v51, %s13625_s30  ;;  %v10779_v12 = vsel %vm10757_vm9, %v10724_v15, %v10726_v25 }
 0x71b   :  { %11669 = vrot.lane.b32.xlu0 %v17565_v34, %s13625_s30  ;;  %11031 = vmatprep.subr.bf16.mxu0 %v10779_v12 }
 0x71c   :  { %11032 = vmatpush1.bf16.msra.mxu0 %v10778_v58  ;;  %v10730_v42 = vpop.permute.xlu1 %10729 }
 0x71d   :  { %v10728_v26 = vpop.permute.xlu0 %10727 }
 0x71e   :  { %v10780_v11 = vsel %vm10757_vm9, %v10726_v25, %v10728_v26  ;;  %11675 = vrot.lane.b32.xlu1 %v17604_v36, %s13625_s30  ;;  %v10781_v38 = vsel %vm10757_vm9, %v10728_v26, %v10730_v42  ;;  %v13595_v36 = vld [vmem:[%s19823_s1 + $0x1c] ss:$60 sps:$4 sm:$0xff]   ;;  %v12075_v42 = vld [vmem:[%s19825_s2] sm:$0xff] }
 0x71f   :  { %11673 = vrot.lane.b32.xlu0 %v17585_v17, %s13625_s30  ;;  %11074 = vmatprep.subr.bf16.mxu1 %v10781_v38 }
 0x720   :  { %11075 = vmatpush1.bf16.msra.mxu1 %v10780_v11  ;;  %v10752_v51 = vpop.permute.xlu1 %10751 }
 0x721   :  { %v10750_v7 = vpop.permute.xlu0 %10749 }
 0x722   :  { %v10790_v34 = vsel %vm10757_vm9, %v10748_v32, %v10750_v7  ;;  %v10791_v28 = vsel %vm10757_vm9, %v10750_v7, %v10752_v51  ;;  %11627 = vrot.lane.b32.xlu1 %v18945_v13, %s13625_s30 }
 0x723   :  { %v10846_v24 = vsel %vm342_vm1, %v10790_v34, 0  ;;  %11625 = vrot.lane.b32.xlu0 %v13595_v36, %s13625_s30  ;;  %12643 = vmatprep.subr.msk.bf16.mxu0 %vm342_vm1, %v10791_v28 }
 0x724   :  { %11034 = vmatpush1.bf16.msra.mxu0 %v10846_v24  ;;  %v10756_v17 = vpop.permute.xlu1 %10755 }
 0x725   :  { %v10754_v18 = vpop.permute.xlu0 %10753 }
 0x726   :  { %v10792_v3 = vsel %vm10757_vm9, %v10752_v51, %v10754_v18  ;;  %v10793_v59 = vsel %vm10757_vm9, %v10754_v18, %v10756_v17  ;;  %11631 = vrot.lane.b32.xlu1 %v18958_v39, %s13625_s30 }
 0x727   :  { %v10852_v13 = vsel %vm342_vm1, %v10792_v3, 0  ;;  %11629 = vrot.lane.b32.xlu0 %v13596_v41, %s13625_s30  ;;  %12645 = vmatprep.subr.msk.bf16.mxu1 %vm342_vm1, %v10793_v59 }
 0x728   :  { %11077 = vmatpush1.bf16.msra.mxu1 %v10852_v13  ;;  %v11152_v35 = vpop.permute.xlu1 %11151  ;;  %12644 = vmatmul.mubr.msk.bf16.vlgmr.msra.gmra.mrb[8].mxu0 %vm338_vm2, %v19405_v49 }
 0x729   :  { %v11150_v1 = vpop.permute.xlu0 %11149  ;;  %11357 = vmatprep.mubr.bf16.mxu0 %v19859_v46 }
 0x72a   :  { %11653 = vrot.lane.b32.xlu1 %v19191_v61, %s13625_s30  ;;  %v11227_v39 = vsel %vm11225_vm10, %v11150_v1, %v11152_v35 }
 0x72b   :  { %11651 = vrot.lane.b32.xlu0 %v19199_v37, %s13625_s30  ;;  %11325 = vmatprep.subr.bf16.mxu0 %v11227_v39 }
 0x72c   :  { %v19523_v0 = vpop.permute.xlu1 %11155  ;;  %12646 = vmatmul.mubr.msk.bf16.vlgmr.msra.gmra.mrb[8].mxu1 %vm338_vm2, %v19405_v49 }
 0x72d   :  { %v11154_v9 = vpop.permute.xlu0 %11153  ;;  %11400 = vmatprep.mubr.bf16.mxu1 %v19859_v46 }
 0x72e   :  { %v11228_v62 = vsel %vm11225_vm10, %v11152_v35, %v11154_v9  ;;  %11657 = vrot.lane.b32.xlu1 %v19211_v19, %s13625_s30  ;;  %v11229_v61 = vsel %vm11225_vm10, %v11154_v9, %v19523_v0 }
 0x72f   :  { %11655 = vrot.lane.b32.xlu0 %v19221_v8, %s13625_s30  ;;  %11368 = vmatprep.subr.bf16.mxu1 %v11229_v61 }
 0x730   :  { %11369 = vmatpush1.bf16.msra.mxu1 %v11228_v62  ;;  %v11176_v37 = vpop.permute.xlu1 %11175 }
 0x731   :  { %v11148_v16 = vpop.permute.xlu0 %11147 }
 0x732   :  { %v11226_v49 = vsel %vm11225_vm10, %v11148_v16, %v11150_v1  ;;  %11679 = vrot.lane.b32.xlu1 %v17619_v56, %s13625_s30 }
 0x733   :  { %11677 = vrot.lane.b32.xlu0 %v17600_v43, %s13625_s30  ;;  %11326 = vmatpush1.bf16.msra.mxu0 %v11226_v49 }
 0x734   :  { %v11180_v19 = vpop.permute.xlu1 %11179 }
 0x735   :  { %v11178_v30 = vpop.permute.xlu0 %11177 }
 0x736   :  { %11683 = vrot.lane.b32.xlu1 %v17630_v6, %s13625_s30  ;;  %v11239_v8 = vsel %vm11225_vm10, %v11176_v37, %v11178_v30  ;;  %v11240_v56 = vsel %vm11225_vm10, %v11178_v30, %v11180_v19  ;;  %v13597_v6 = vld [vmem:[%s19823_s1 + $0x2c] ss:$60 sps:$4 sm:$0xff]  }
 0x737   :  { %11681 = vrot.lane.b32.xlu0 %v17615_v45, %s13625_s30  ;;  %11327 = vmatprep.subr.bf16.mxu0 %v11239_v8 }
 0x738   :  { %v11174_v54 = vpop.permute.xlu1 %11173 }
 0x739   :  { %v11238_v22 = vsel %vm11225_vm10, %v11174_v54, %v11176_v37  ;;  %v19546_v29 = vpop.permute.xlu0 %11181 }
 0x73a   :  { %11635 = vrot.lane.b32.xlu1 %v19012_v53, %s13625_s30  ;;  %11328 = vmatpush1.bf16.msra.mxu0 %v11238_v22  ;;  %v11241_v43 = vsel %vm11225_vm10, %v11180_v19, %v19546_v29  ;;  %v13598_v53 = vld [vmem:[%s19823_s1 + $0x34] ss:$60 sps:$4 sm:$0xff]  }
 0x73b   :  { %11633 = vrot.lane.b32.xlu0 %v13597_v6, %s13625_s30  ;;  %11370 = vmatprep.subr.bf16.mxu1 %v11241_v43 }
 0x73c   :  { %11371 = vmatpush1.bf16.msra.mxu1 %v11240_v56  ;;  %v11202_v45 = vpop.permute.xlu1 %11201 }
 0x73d   :  { %v11200_v27 = vpop.permute.xlu0 %11199 }
 0x73e   :  { %11639 = vrot.lane.b32.xlu1 %v19028_v57, %s13625_s30  ;;  %v11250_v4 = vsel %vm11225_vm10, %v11200_v27, %v11202_v45  ;;  %v13599_v57 = vld [vmem:[%s19823_s1 + $0xa4] ss:$60 sps:$4 sm:$0xff]  }
 0x73f   :  { %11637 = vrot.lane.b32.xlu0 %v13598_v53, %s13625_s30  ;;  %v11290_v20 = vsel %vm342_vm1, %v11250_v4, 0 }
 0x740   :  { %v11206_v32 = vpop.permute.xlu1 %11205 }
 0x741   :  { %v11204_v40 = vpop.permute.xlu0 %11203 }
 0x742   :  { %v11251_v31 = vsel %vm11225_vm10, %v11202_v45, %v11204_v40  ;;  %11661 = vrot.lane.b32.xlu1 %v19051_v44, %s13625_s30  ;;  %v11252_v23 = vsel %vm11225_vm10, %v11204_v40, %v11206_v32 }
 0x743   :  { %11659 = vrot.lane.b32.xlu0 %v13599_v57, %s13625_s30  ;;  %12650 = vmatprep.subr.msk.bf16.mxu0 %vm342_vm1, %v11251_v31  ;;  %v11296_v63 = vsel %vm342_vm1, %v11252_v23, 0 }
 0x744   :  { %11330 = vmatpush1.bf16.msra.mxu0 %v11290_v20  ;;  %v11158_v21 = vpop.permute.xlu1 %11157 }
 0x745   :  { %v11208_v44 = vpop.permute.xlu0 %11207  ;;  %v11230_v10 = vsel %vm11225_vm10, %v19523_v0, %v11158_v21 }
 0x746   :  { %v11253_v14 = vsel %vm11225_vm10, %v11206_v32, %v11208_v44  ;;  %11665 = vrot.lane.b32.xlu1 %v19067_v47, %s13625_s30 }
 0x747   :  { %11663 = vrot.lane.b32.xlu0 %v13600_v52, %s13625_s30  ;;  %12652 = vmatprep.subr.msk.bf16.mxu1 %vm342_vm1, %v11253_v14 }
 0x748   :  { %11373 = vmatpush1.bf16.msra.mxu1 %v11296_v63  ;;  %v11162_v33 = vpop.permute.xlu1 %11161  ;;  %12651 = vmatmul.mubr.msk.bf16.vlgmr.msra.gmra.mrb[0].mxu0 %vm338_vm2, %v19577_v5 }
 0x749   :  { %v11160_v55 = vpop.permute.xlu0 %11159  ;;  %11443 = vmatprep.mubr.bf16.mxu0 %v19859_v46 }
 0x74a   :  { %11687 = vrot.lane.b32.xlu1 %v17643_v48, %s13625_s30  ;;  %v11231_v47 = vsel %vm11225_vm10, %v11158_v21, %v11160_v55  ;;  %v11232_v58 = vsel %vm11225_vm10, %v11160_v55, %v11162_v33 }
 0x74b   :  { %11685 = vrot.lane.b32.xlu0 %v17626_v60, %s13625_s30  ;;  %11411 = vmatprep.subr.bf16.mxu0 %v11231_v47  ;;  %v12076_v60 = vld [vmem:[%s19825_s2 + $0x8] sm:$0x3] }
 0x74c   :  { %11412 = vmatpush1.bf16.msra.mxu0 %v11230_v10  ;;  %v11184_v25 = vpop.permute.xlu1 %11183  ;;  %12653 = vmatmul.mubr.msk.bf16.vlgmr.msra.gmra.mrb[0].mxu1 %vm338_vm2, %v19577_v5 }
 0x74d   :  { %v11164_v15 = vpop.permute.xlu0 %11163  ;;  %11486 = vmatprep.mubr.bf16.mxu1 %v19859_v46  ;;  %v11242_v11 = vsel %vm11225_vm10, %v19546_v29, %v11184_v25 }
 0x74e   :  { %11691 = vrot.lane.b32.xlu1 %v19088_v2, %s13625_s30  ;;  %v11233_v48 = vsel %vm11225_vm10, %v11162_v33, %v11164_v15 }
 0x74f   :  { %11689 = vrot.lane.b32.xlu0 %v17638_v50, %s13625_s30  ;;  %11454 = vmatprep.subr.bf16.mxu1 %v11233_v48 }
 0x750   :  { %11455 = vmatpush1.bf16.msra.mxu1 %v11232_v58  ;;  %v11188_v12 = vpop.permute.xlu1 %11187 }
 0x751   :  { %v11186_v26 = vpop.permute.xlu0 %11185 }
 0x752   :  { %v11243_v2 = vsel %vm11225_vm10, %v11184_v25, %v11186_v26  ;;  %12084 = vperm.xlu1 %13279, %v12076_v60   ;;  %v11244_v7 = vsel %vm11225_vm10, %v11186_v26, %v11188_v12 }
 0x753   :  { %11413 = vmatprep.subr.bf16.mxu0 %v11243_v2  ;;  %12079 = vperm.xlu0 %13278, %v12075_v42  }
 0x754   :  { %11414 = vmatpush1.bf16.msra.mxu0 %v11242_v11  ;;  %v11210_v50 = vpop.permute.xlu1 %11209 }
 0x755   :  { %v11190_v38 = vpop.permute.xlu0 %11189  ;;  %v11254_v34 = vsel %vm11225_vm10, %v11208_v44, %v11210_v50 }
 0x756   :  { %v11245_v51 = vsel %vm11225_vm10, %v11188_v12, %v11190_v38  ;;  %v11302_v17 = vsel %vm342_vm1, %v11254_v34, 0 }
 0x757   :  { %11456 = vmatprep.subr.bf16.mxu1 %v11245_v51 }
 0x758   :  { %11457 = vmatpush1.bf16.msra.mxu1 %v11244_v7  ;;  %v11214_v28 = vpop.permute.xlu1 %11213 }
 0x759   :  { %v11212_v24 = vpop.permute.xlu0 %11211 }
 0x75a   :  { %v11255_v36 = vsel %vm11225_vm10, %v11210_v50, %v11212_v24  ;;  %v11256_v18 = vsel %vm11225_vm10, %v11212_v24, %v11214_v28  ;;  %v19669_v50 = vld [vmem:[%s19824_s0 + $0xc0] sm:$0x1f]  }
 0x75b   :  { %12654 = vmatprep.subr.msk.bf16.mxu0 %vm342_vm1, %v11255_v36  ;;  %v11308_v41 = vsel %vm342_vm1, %v11256_v18, 0 }
 0x75c   :  { %11416 = vmatpush1.bf16.msra.mxu0 %v11302_v17  ;;  %v11166_v3 = vpop.permute.xlu1 %11165 }
 0x75d   :  { %v11216_v59 = vpop.permute.xlu0 %11215  ;;  %v11234_v0 = vsel %vm11225_vm10, %v11164_v15, %v11166_v3 }
 0x75e   :  { %v11257_v13 = vsel %vm11225_vm10, %v11214_v28, %v11216_v59 }
 0x75f   :  { %12656 = vmatprep.subr.msk.bf16.mxu1 %vm342_vm1, %v11257_v13  ;;  %12655 = vmatmul.mubr.msk.bf16.vlgmr.msra.gmra.mrb[4].mxu0 %vm338_vm2, %v19577_v5 }
 0x760   :  { %11459 = vmatpush1.bf16.msra.mxu1 %v11308_v41  ;;  %v11170_v35 = vpop.permute.xlu1 %11169  ;;  %11529 = vmatprep.mubr.bf16.mxu0 %v19859_v46 }
 0x761   :  { %v11168_v1 = vpop.permute.xlu0 %11167 }
 0x762   :  { %v11235_v39 = vsel %vm11225_vm10, %v11166_v3, %v11168_v1  ;;  %v11236_v37 = vsel %vm11225_vm10, %v11168_v1, %v11170_v35 }
 0x763   :  { %11497 = vmatprep.subr.bf16.mxu0 %v11235_v39  ;;  %12657 = vmatmul.mubr.msk.bf16.vlgmr.msra.gmra.mrb[4].mxu1 %vm338_vm2, %v19577_v5 }
 0x764   :  { %11498 = vmatpush1.bf16.msra.mxu0 %v11234_v0  ;;  %v11192_v9 = vpop.permute.xlu1 %11191  ;;  %11572 = vmatprep.mubr.bf16.mxu1 %v19859_v46 }
 0x765   :  { %v11172_v62 = vpop.permute.xlu0 %11171  ;;  %v11246_v30 = vsel %vm11225_vm10, %v11190_v38, %v11192_v9 }
 0x766   :  { %v11237_v61 = vsel %vm11225_vm10, %v11170_v35, %v11172_v62 }
 0x767   :  { %11540 = vmatprep.subr.bf16.mxu1 %v11237_v61 }
 0x768   :  { %11541 = vmatpush1.bf16.msra.mxu1 %v11236_v37  ;;  %v11196_v16 = vpop.permute.xlu1 %11195 }
 0x769   :  { %v11194_v49 = vpop.permute.xlu0 %11193 }
 0x76a   :  { %v11247_v19 = vsel %vm11225_vm10, %v11192_v9, %v11194_v49  ;;  %v11248_v29 = vsel %vm11225_vm10, %v11194_v49, %v11196_v16 }
 0x76b   :  { %11499 = vmatprep.subr.bf16.mxu0 %v11247_v19 }
 0x76c   :  { %11500 = vmatpush1.bf16.msra.mxu0 %v11246_v30  ;;  %v11218_v8 = vpop.permute.xlu1 %11217 }
 0x76d   :  { %v11198_v54 = vpop.permute.xlu0 %11197  ;;  %v11258_v43 = vsel %vm11225_vm10, %v11216_v59, %v11218_v8 }
 0x76e   :  { %v11249_v22 = vsel %vm11225_vm10, %v11196_v16, %v11198_v54  ;;  %v11314_v27 = vsel %vm342_vm1, %v11258_v43, 0 }
 0x76f   :  { %11542 = vmatprep.subr.bf16.mxu1 %v11249_v22 }
 0x770   :  { %11543 = vmatpush1.bf16.msra.mxu1 %v11248_v29  ;;  %v11222_v56 = vpop.permute.xlu1 %11221 }
 0x771   :  { %v11220_v6 = vpop.permute.xlu0 %11219 }
 0x772   :  { %v11259_v45 = vsel %vm11225_vm10, %v11218_v8, %v11220_v6  ;;  %v11260_v53 = vsel %vm11225_vm10, %v11220_v6, %v11222_v56 }
 0x773   :  { %12658 = vmatprep.subr.msk.bf16.mxu0 %vm342_vm1, %v11259_v45  ;;  %v11320_v31 = vsel %vm342_vm1, %v11260_v53, 0 }
 0x774   :  { %11502 = vmatpush1.bf16.msra.mxu0 %v11314_v27  ;;  %v11618_v4 = vpop.permute.xlu1 %11617 }
 0x775   :  { %v11224_v32 = vpop.permute.xlu0 %11223 }
 0x776   :  { %v11261_v40 = vsel %vm11225_vm10, %v11222_v56, %v11224_v32 }
 0x777   :  { %12660 = vmatprep.subr.msk.bf16.mxu1 %vm342_vm1, %v11261_v40  ;;  %12659 = vmatmul.mubr.msk.bf16.vlgmr.msra.gmra.mrb[8].mxu0 %vm338_vm2, %v19577_v5 }
 0x778   :  { %11545 = vmatpush1.bf16.msra.mxu1 %v11320_v31  ;;  %v11622_v20 = vpop.permute.xlu1 %11621  ;;  %11825 = vmatprep.mubr.bf16.mxu0 %v19859_v46 }
 0x779   :  { %v11620_v57 = vpop.permute.xlu0 %11619 }
 0x77a   :  { %v11695_v23 = vsel %vm11693_vm11, %v11618_v4, %v11620_v57  ;;  %v11696_v52 = vsel %vm11693_vm11, %v11620_v57, %v11622_v20 }
 0x77b   :  { %11793 = vmatprep.subr.bf16.mxu0 %v11695_v23  ;;  %12661 = vmatmul.mubr.msk.bf16.vlgmr.msra.gmra.mrb[8].mxu1 %vm338_vm2, %v19577_v5 }
 0x77c   :  { %v11616_v21 = vpop.permute.xlu1 %11615  ;;  %11868 = vmatprep.mubr.bf16.mxu1 %v19859_v46 }
 0x77d   :  { %v11694_v44 = vsel %vm11693_vm11, %v11616_v21, %v11618_v4  ;;  %v11624_v14 = vpop.permute.xlu0 %11623 }
 0x77e   :  { %11794 = vmatpush1.bf16.msra.mxu0 %v11694_v44  ;;  %v11697_v63 = vsel %vm11693_vm11, %v11622_v20, %v11624_v14 }
 0x77f   :  { %11836 = vmatprep.subr.bf16.mxu1 %v11697_v63 }
 0x780   :  { %11837 = vmatpush1.bf16.msra.mxu1 %v11696_v52  ;;  %v11646_v33 = vpop.permute.xlu1 %11645 }
 0x781   :  { %v11644_v55 = vpop.permute.xlu0 %11643 }
 0x782   :  { %v11707_v47 = vsel %vm11693_vm11, %v11644_v55, %v11646_v33 }
 0x783   :  { %11795 = vmatprep.subr.bf16.mxu0 %v11707_v47 }
 0x784   :  { %v11650_v10 = vpop.permute.xlu1 %11649 }
 0x785   :  { %v11648_v5 = vpop.permute.xlu0 %11647 }
 0x786   :  { %v11708_v25 = vsel %vm11693_vm11, %v11646_v33, %v11648_v5  ;;  %v11709_v15 = vsel %vm11693_vm11, %v11648_v5, %v11650_v10 }
 0x787   :  { %11838 = vmatprep.subr.bf16.mxu1 %v11709_v15 }
 0x788   :  { %11839 = vmatpush1.bf16.msra.mxu1 %v11708_v25  ;;  %v11668_v48 = vpop.permute.xlu1 %11667 }
 0x789   :  { %v11642_v58 = vpop.permute.xlu0 %11641 }
 0x78a   :  { %v11706_v60 = vsel %vm11693_vm11, %v11642_v58, %v11644_v55 }
 0x78b   :  { %11796 = vmatpush1.bf16.msra.mxu0 %v11706_v60 }
 0x78c   :  { %v11672_v12 = vpop.permute.xlu1 %11671 }
 0x78d   :  { %v11670_v42 = vpop.permute.xlu0 %11669 }
 0x78e   :  { %v11718_v26 = vsel %vm11693_vm11, %v11668_v48, %v11670_v42  ;;  %v11719_v2 = vsel %vm11693_vm11, %v11670_v42, %v11672_v12 }
 0x78f   :  { %v11758_v11 = vsel %vm342_vm1, %v11718_v26, 0  ;;  %12665 = vmatprep.subr.msk.bf16.mxu0 %vm342_vm1, %v11719_v2 }
 0x790   :  { %11798 = vmatpush1.bf16.msra.mxu0 %v11758_v11  ;;  %v11676_v38 = vpop.permute.xlu1 %11675 }
 0x791   :  { %v11674_v51 = vpop.permute.xlu0 %11673 }
 0x792   :  { %v11720_v7 = vsel %vm11693_vm11, %v11672_v12, %v11674_v51  ;;  %v11721_v34 = vsel %vm11693_vm11, %v11674_v51, %v11676_v38 }
 0x793   :  { %v11764_v28 = vsel %vm342_vm1, %v11720_v7, 0  ;;  %12666 = vmatmul.mubr.msk.bf16.vlgmr.msra.gmra.mrb[0].mxu0 %vm338_vm2, %v19669_v50  ;;  %12667 = vmatprep.subr.msk.bf16.mxu1 %vm342_vm1, %v11721_v34 }
 0x794   :  { %11841 = vmatpush1.bf16.msra.mxu1 %v11764_v28  ;;  %v11628_v24 = vpop.permute.xlu1 %11627  ;;  %11911 = vmatprep.mubr.bf16.mxu0 %v19859_v46 }
 0x795   :  { %v11626_v36 = vpop.permute.xlu0 %11625 }
 0x796   :  { %v11698_v17 = vsel %vm11693_vm11, %v11624_v14, %v11626_v36  ;;  %v11699_v18 = vsel %vm11693_vm11, %v11626_v36, %v11628_v24 }
 0x797   :  { %12668 = vmatmul.mubr.msk.bf16.vlgmr.msra.gmra.mrb[0].mxu1 %vm338_vm2, %v19669_v50  ;;  %11879 = vmatprep.subr.bf16.mxu0 %v11699_v18 }
 0x798   :  { %11880 = vmatpush1.bf16.msra.mxu0 %v11698_v17  ;;  %v11632_v3 = vpop.permute.xlu1 %11631  ;;  %11954 = vmatprep.mubr.bf16.mxu1 %v19859_v46 }
 0x799   :  { %v11630_v59 = vpop.permute.xlu0 %11629 }
 0x79a   :  { %v11700_v13 = vsel %vm11693_vm11, %v11628_v24, %v11630_v59  ;;  %v11701_v41 = vsel %vm11693_vm11, %v11630_v59, %v11632_v3 }
 0x79b   :  { %11922 = vmatprep.subr.bf16.mxu1 %v11701_v41 }
 0x79c   :  { %11923 = vmatpush1.bf16.msra.mxu1 %v11700_v13  ;;  %v11654_v35 = vpop.permute.xlu1 %11653 }
 0x79d   :  { %v11652_v1 = vpop.permute.xlu0 %11651 }
 0x79e   :  { %v11710_v39 = vsel %vm11693_vm11, %v11650_v10, %v11652_v1  ;;  %v11711_v0 = vsel %vm11693_vm11, %v11652_v1, %v11654_v35 }
 0x79f   :  { %11881 = vmatprep.subr.bf16.mxu0 %v11711_v0 }
 0x7a0   :  { %11882 = vmatpush1.bf16.msra.mxu0 %v11710_v39  ;;  %v11658_v9 = vpop.permute.xlu1 %11657 }
 0x7a1   :  { %v11656_v62 = vpop.permute.xlu0 %11655 }
 0x7a2   :  { %v11712_v61 = vsel %vm11693_vm11, %v11654_v35, %v11656_v62  ;;  %v11713_v37 = vsel %vm11693_vm11, %v11656_v62, %v11658_v9 }
 0x7a3   :  { %11924 = vmatprep.subr.bf16.mxu1 %v11713_v37 }
 0x7a4   :  { %11925 = vmatpush1.bf16.msra.mxu1 %v11712_v61  ;;  %v11680_v16 = vpop.permute.xlu1 %11679 }
 0x7a5   :  { %v11678_v49 = vpop.permute.xlu0 %11677 }
 0x7a6   :  { %v11722_v19 = vsel %vm11693_vm11, %v11676_v38, %v11678_v49  ;;  %v11723_v30 = vsel %vm11693_vm11, %v11678_v49, %v11680_v16 }
 0x7a7   :  { %v11770_v8 = vsel %vm342_vm1, %v11722_v19, 0  ;;  %12669 = vmatprep.subr.msk.bf16.mxu0 %vm342_vm1, %v11723_v30 }
 0x7a8   :  { %11884 = vmatpush1.bf16.msra.mxu0 %v11770_v8  ;;  %v11684_v54 = vpop.permute.xlu1 %11683 }
 0x7a9   :  { %v11682_v22 = vpop.permute.xlu0 %11681 }
 0x7aa   :  { %v11724_v29 = vsel %vm11693_vm11, %v11680_v16, %v11682_v22  ;;  %v11725_v43 = vsel %vm11693_vm11, %v11682_v22, %v11684_v54 }
 0x7ab   :  { %v11776_v56 = vsel %vm342_vm1, %v11724_v29, 0  ;;  %12670 = vmatmul.mubr.msk.bf16.vlgmr.msra.gmra.mrb[4].mxu0 %vm338_vm2, %v19669_v50  ;;  %12671 = vmatprep.subr.msk.bf16.mxu1 %vm342_vm1, %v11725_v43 }
 0x7ac   :  { %11927 = vmatpush1.bf16.msra.mxu1 %v11776_v56  ;;  %v11636_v6 = vpop.permute.xlu1 %11635  ;;  %11997 = vmatprep.mubr.bf16.mxu0 %v19859_v46 }
 0x7ad   :  { %v11634_v45 = vpop.permute.xlu0 %11633 }
 0x7ae   :  { %v11702_v27 = vsel %vm11693_vm11, %v11632_v3, %v11634_v45  ;;  %v11703_v53 = vsel %vm11693_vm11, %v11634_v45, %v11636_v6 }
 0x7af   :  { %12672 = vmatmul.mubr.msk.bf16.vlgmr.msra.gmra.mrb[4].mxu1 %vm338_vm2, %v19669_v50  ;;  %11965 = vmatprep.subr.bf16.mxu0 %v11703_v53 }
 0x7b0   :  { %11966 = vmatpush1.bf16.msra.mxu0 %v11702_v27  ;;  %v11640_v4 = vpop.permute.xlu1 %11639  ;;  %12040 = vmatprep.mubr.bf16.mxu1 %v19859_v46 }
 0x7b1   :  { %v11638_v32 = vpop.permute.xlu0 %11637 }
 0x7b2   :  { %v11704_v40 = vsel %vm11693_vm11, %v11636_v6, %v11638_v32  ;;  %v11705_v31 = vsel %vm11693_vm11, %v11638_v32, %v11640_v4 }
 0x7b3   :  { %12008 = vmatprep.subr.bf16.mxu1 %v11705_v31 }
 0x7b4   :  { %12009 = vmatpush1.bf16.msra.mxu1 %v11704_v40  ;;  %v11662_v20 = vpop.permute.xlu1 %11661 }
 0x7b5   :  { %v11660_v57 = vpop.permute.xlu0 %11659 }
 0x7b6   :  { %v11714_v23 = vsel %vm11693_vm11, %v11658_v9, %v11660_v57  ;;  %v11715_v21 = vsel %vm11693_vm11, %v11660_v57, %v11662_v20 }
 0x7b7   :  { %11967 = vmatprep.subr.bf16.mxu0 %v11715_v21 }
 0x7b8   :  { %11968 = vmatpush1.bf16.msra.mxu0 %v11714_v23  ;;  %v11666_v44 = vpop.permute.xlu1 %11665 }
 0x7b9   :  { %v11664_v14 = vpop.permute.xlu0 %11663 }
 0x7ba   :  { %v11716_v63 = vsel %vm11693_vm11, %v11662_v20, %v11664_v14  ;;  %v11717_v46 = vsel %vm11693_vm11, %v11664_v14, %v11666_v44 }
 0x7bb   :  { %12010 = vmatprep.subr.bf16.mxu1 %v11717_v46 }
 0x7bc   :  { %12011 = vmatpush1.bf16.msra.mxu1 %v11716_v63  ;;  %v11688_v52 = vpop.permute.xlu1 %11687 }
 0x7bd   :  { %v11686_v33 = vpop.permute.xlu0 %11685 }
 0x7be   :  { %v11726_v55 = vsel %vm11693_vm11, %v11684_v54, %v11686_v33  ;;  %v11727_v47 = vsel %vm11693_vm11, %v11686_v33, %v11688_v52 }
 0x7bf   :  { %v11782_v10 = vsel %vm342_vm1, %v11726_v55, 0  ;;  %12673 = vmatprep.subr.msk.bf16.mxu0 %vm342_vm1, %v11727_v47 }
 0x7c0   :  { %11970 = vmatpush1.bf16.msra.mxu0 %v11782_v10  ;;  %v11692_v5 = vpop.permute.xlu1 %11691 }
 0x7c1   :  { %v11690_v25 = vpop.permute.xlu0 %11689 }
 0x7c2   :  { %v11728_v15 = vsel %vm11693_vm11, %v11688_v52, %v11690_v25  ;;  %v11729_v48 = vsel %vm11693_vm11, %v11690_v25, %v11692_v5 }
 0x7c3   :  { %v11788_v58 = vsel %vm342_vm1, %v11728_v15, 0  ;;  %12674 = vmatmul.mubr.msk.bf16.vlgmr.msra.gmra.mrb[8].mxu0 %vm338_vm2, %v19669_v50  ;;  %12675 = vmatprep.subr.msk.bf16.mxu1 %vm342_vm1, %v11729_v48 }
 0x7c4   :  { %12013 = vmatpush1.bf16.msra.mxu1 %v11788_v58 }
 0x7c7   :  { %12676 = vmatmul.mubr.msk.bf16.vlgmr.msra.gmra.mrb[8].mxu1 %vm338_vm2, %v19669_v50 }
 0x7d1   :  { %v19725_v42 = vpop.permute.xlu1 %12084 }
 0x7d2   :  { %v19723_v60 = vpop.permute.xlu0 %12079 }
 0x866   :  { %v11827_v12 = vpop.f32.mrb[0].mxu0 }
 0x867   :  { %v12087_v26 = vadd.f32 %v19723_v60, %v11827_v12  ;;  %v11829_v2 = vpop.f32.mrb[1].mxu0 }
 0x868   :  { %v12088_v11 = vadd.f32 %v19723_v60, %v11829_v2  ;;  %v11831_v38 = vpop.f32.mrb[2].mxu0 }
 0x869   :  { %v12111_v51 = vmax.f32 %v12087_v26, 5.0  ;;  %v12099_v7 = vadd.f32 %v19725_v42, %v11831_v38  ;;  %v11833_v34 = vpop.f32.mrb[3].mxu0 }
 0x86a   :  { %v12112_v28 = vmax.f32 %v12088_v11, 5.0  ;;  %v12100_v24 = vadd.f32 %v19725_v42, %v11833_v34  ;;  %v11870_v36 = vpop.f32.mrb[0].mxu1 }
 0x86b   :  { %v12135_v50 = vmin.f32 %v12111_v51, 0.2  ;;  %v12123_v17 = vmax.f32 %v12099_v7, 5.0  ;;  %v12089_v18 = vadd.f32 %v19723_v60, %v11870_v36  ;;  %v11872_v3 = vpop.f32.mrb[1].mxu1 }
 0x86c   :  { %v12136_v59 = vmin.f32 %v12112_v28, 0.2  ;;  %v12124_v13 = vmax.f32 %v12100_v24, 5.0  ;;  %v12090_v41 = vadd.f32 %v19723_v60, %v11872_v3  ;;  %v11874_v35 = vpop.f32.mrb[2].mxu1 }
 0x86d   :  { %12159 = vst [vmem:[%s19826_s3] sm:$0xff] %v12135_v50  ;;  %v12147_v1 = vmin.f32 %v12123_v17, 0.2  ;;  %v12113_v39 = vmax.f32 %v12089_v18, 5.0  ;;  %v12101_v0 = vadd.f32 %v19725_v42, %v11874_v35  ;;  %v11876_v9 = vpop.f32.mrb[3].mxu1 }
 0x86e   :  { %12160 = vst [vmem:[%s19826_s3 + $0x8] sm:$0xff] %v12136_v59  ;;  %v12148_v62 = vmin.f32 %v12124_v13, 0.2  ;;  %v12114_v61 = vmax.f32 %v12090_v41, 5.0  ;;  %v12102_v37 = vadd.f32 %v19725_v42, %v11876_v9 }
 0x86f   :  { %12171 = vst [vmem:[%s19826_s3 + $0x60] sm:$0x3] %v12147_v1  ;;  %v12137_v16 = vmin.f32 %v12113_v39, 0.2  ;;  %v12125_v49 = vmax.f32 %v12101_v0, 5.0 }
 0x870   :  { %12172 = vst [vmem:[%s19826_s3 + $0x68] sm:$0x3] %v12148_v62  ;;  %v12138_v19 = vmin.f32 %v12114_v61, 0.2  ;;  %v12126_v30 = vmax.f32 %v12102_v37, 5.0 }
 0x871   :  { %12161 = vst [vmem:[%s19826_s3 + $0x10] sm:$0xff] %v12137_v16  ;;  %v12149_v8 = vmin.f32 %v12125_v49, 0.2 }
 0x872   :  { %12162 = vst [vmem:[%s19826_s3 + $0x18] sm:$0xff] %v12138_v19  ;;  %v12150_v54 = vmin.f32 %v12126_v30, 0.2 }
 0x873   :  { %12173 = vst [vmem:[%s19826_s3 + $0x70] sm:$0x3] %v12149_v8 }
 0x874   :  { %12174 = vst [vmem:[%s19826_s3 + $0x78] sm:$0x3] %v12150_v54 }
 0x87e   :  { %v11913_v22 = vpop.f32.mrb[4].mxu0 }
 0x87f   :  { %v12091_v29 = vadd.f32 %v19723_v60, %v11913_v22  ;;  %v11915_v43 = vpop.f32.mrb[5].mxu0 }
 0x880   :  { %v12092_v56 = vadd.f32 %v19723_v60, %v11915_v43  ;;  %v11917_v6 = vpop.f32.mrb[6].mxu0 }
 0x881   :  { %v12115_v45 = vmax.f32 %v12091_v29, 5.0  ;;  %v12103_v27 = vadd.f32 %v19725_v42, %v11917_v6  ;;  %v11919_v53 = vpop.f32.mrb[7].mxu0 }
 0x882   :  { %v12116_v4 = vmax.f32 %v12092_v56, 5.0  ;;  %v12104_v32 = vadd.f32 %v19725_v42, %v11919_v53  ;;  %v11956_v40 = vpop.f32.mrb[4].mxu1 }
 0x883   :  { %v12139_v31 = vmin.f32 %v12115_v45, 0.2  ;;  %v12127_v20 = vmax.f32 %v12103_v27, 5.0  ;;  %v12093_v57 = vadd.f32 %v19723_v60, %v11956_v40  ;;  %v11958_v23 = vpop.f32.mrb[5].mxu1 }
 0x884   :  { %v12140_v21 = vmin.f32 %v12116_v4, 0.2  ;;  %v12128_v44 = vmax.f32 %v12104_v32, 5.0  ;;  %v12094_v14 = vadd.f32 %v19723_v60, %v11958_v23  ;;  %v11960_v63 = vpop.f32.mrb[6].mxu1 }
 0x885   :  { %12163 = vst [vmem:[%s19826_s3 + $0x20] sm:$0xff] %v12139_v31  ;;  %v12151_v46 = vmin.f32 %v12127_v20, 0.2  ;;  %v12117_v52 = vmax.f32 %v12093_v57, 5.0  ;;  %v12105_v33 = vadd.f32 %v19725_v42, %v11960_v63  ;;  %v11962_v55 = vpop.f32.mrb[7].mxu1 }
 0x886   :  { %12164 = vst [vmem:[%s19826_s3 + $0x28] sm:$0xff] %v12140_v21  ;;  %v12152_v47 = vmin.f32 %v12128_v44, 0.2  ;;  %v12118_v10 = vmax.f32 %v12094_v14, 5.0  ;;  %v12106_v5 = vadd.f32 %v19725_v42, %v11962_v55 }
 0x887   :  { %12175 = vst [vmem:[%s19826_s3 + $0x80] sm:$0x3] %v12151_v46  ;;  %v12141_v25 = vmin.f32 %v12117_v52, 0.2  ;;  %v12129_v15 = vmax.f32 %v12105_v33, 5.0 }
 0x888   :  { %12176 = vst [vmem:[%s19826_s3 + $0x88] sm:$0x3] %v12152_v47  ;;  %v12142_v48 = vmin.f32 %v12118_v10, 0.2  ;;  %v12130_v58 = vmax.f32 %v12106_v5, 5.0 }
 0x889   :  { %12165 = vst [vmem:[%s19826_s3 + $0x30] sm:$0xff] %v12141_v25  ;;  %v12153_v12 = vmin.f32 %v12129_v15, 0.2 }
 0x88a   :  { %12166 = vst [vmem:[%s19826_s3 + $0x38] sm:$0xff] %v12142_v48  ;;  %v12154_v26 = vmin.f32 %v12130_v58, 0.2 }
 0x88b   :  { %12177 = vst [vmem:[%s19826_s3 + $0x90] sm:$0x3] %v12153_v12 }
 0x88c   :  { %12178 = vst [vmem:[%s19826_s3 + $0x98] sm:$0x3] %v12154_v26 }
 0x896   :  { %v11999_v2 = vpop.f32.mrb[8].mxu0 }
 0x897   :  { %v12095_v11 = vadd.f32 %v19723_v60, %v11999_v2  ;;  %v12001_v38 = vpop.f32.mrb[9].mxu0 }
 0x898   :  { %v12096_v51 = vadd.f32 %v19723_v60, %v12001_v38  ;;  %v12003_v7 = vpop.f32.mrb[10].mxu0 }
 0x899   :  { %v12119_v34 = vmax.f32 %v12095_v11, 5.0  ;;  %v12107_v28 = vadd.f32 %v19725_v42, %v12003_v7  ;;  %v12005_v24 = vpop.f32.mrb[11].mxu0 }
 0x89a   :  { %v12120_v36 = vmax.f32 %v12096_v51, 5.0  ;;  %v12108_v50 = vadd.f32 %v19725_v42, %v12005_v24  ;;  %v12042_v17 = vpop.f32.mrb[8].mxu1 }
 0x89b   :  { %v12143_v18 = vmin.f32 %v12119_v34, 0.2  ;;  %v12131_v3 = vmax.f32 %v12107_v28, 5.0  ;;  %v12097_v59 = vadd.f32 %v19723_v60, %v12042_v17  ;;  %v12044_v13 = vpop.f32.mrb[9].mxu1 }
 0x89c   :  { %v12144_v41 = vmin.f32 %v12120_v36, 0.2  ;;  %v12132_v35 = vmax.f32 %v12108_v50, 5.0  ;;  %v12098_v1 = vadd.f32 %v19723_v60, %v12044_v13  ;;  %v12046_v39 = vpop.f32.mrb[10].mxu1 }
 0x89d   :  { %12167 = vst [vmem:[%s19826_s3 + $0x40] sm:$0xff] %v12143_v18  ;;  %v12155_v0 = vmin.f32 %v12131_v3, 0.2  ;;  %v12121_v9 = vmax.f32 %v12097_v59, 5.0  ;;  %v12109_v62 = vadd.f32 %v19725_v42, %v12046_v39  ;;  %v12048_v61 = vpop.f32.mrb[11].mxu1 }
 0x89e   :  { %12168 = vst [vmem:[%s19826_s3 + $0x48] sm:$0xff] %v12144_v41  ;;  %v12156_v37 = vmin.f32 %v12132_v35, 0.2  ;;  %v12122_v16 = vmax.f32 %v12098_v1, 5.0  ;;  %v12110_v49 = vadd.f32 %v19725_v42, %v12048_v61 }
 0x89f   :  { %12179 = vst [vmem:[%s19826_s3 + $0xa0] sm:$0x3] %v12155_v0  ;;  %v12145_v60 = vmin.f32 %v12121_v9, 0.2  ;;  %v12133_v19 = vmax.f32 %v12109_v62, 5.0 }
 0x8a0   :  { %12180 = vst [vmem:[%s19826_s3 + $0xa8] sm:$0x3] %v12156_v37  ;;  %v12146_v30 = vmin.f32 %v12122_v16, 0.2  ;;  %v12134_v8 = vmax.f32 %v12110_v49, 5.0 }
 0x8a1   :  { %12169 = vst [vmem:[%s19826_s3 + $0x50] sm:$0xff] %v12145_v60  ;;  %v12157_v54 = vmin.f32 %v12133_v19, 0.2 }
 0x8a2   :  { %12170 = vst [vmem:[%s19826_s3 + $0x58] sm:$0xff] %v12146_v30  ;;  %v12158_v42 = vmin.f32 %v12134_v8, 0.2 }
 0x8a3   :  { %12181 = vst [vmem:[%s19826_s3 + $0xb0] sm:$0x3] %v12157_v54 }
 0x8a4   :  { %12182 = vst [vmem:[%s19826_s3 + $0xb8] sm:$0x3] %v12158_v42 }

</bundles_post_ra>
